<compile_context>
chip_gen: v6e
topology: v6e:2x2x1
jax: 0.10.0
libtpu: 0.0.40
codegen_flags: <defaults>
</compile_context>

<pallas_src>
import functools

import jax
import jax.numpy as jnp
from jax import lax
from jax.experimental import pallas as pl
from jax.experimental.pallas import tpu as pltpu


DILATION_RATES = (1, 2, 4, 8, 4, 2, 1)


# ---------------------------------------------------------------------------
# Fused whole-network kernel
# ---------------------------------------------------------------------------
def _drn_kernel(x_ref, w_ref, b_ref, o_ref, xpad_ref,
                *, n_blocks, ksize, pad, dilations):
    """DilatedResnet forward, fully fused.

    x_ref    : (B, L, C)          input activation, channels-last
    w_ref    : (T, ksize*C, C)    stacked per-layer weights (taps folded into K)
    b_ref    : (T, 1, C)          stacked per-layer biases
    o_ref    : (B, L, C)          output activation
    xpad_ref : (B, L + 2*pad, C)  VMEM scratch; zero borders emulate 'zeros'
                                  padding for every dilation.
    """
    B, L, C = x_ref.shape
    center = (ksize - 1) // 2

    # Zero the padded scratch once.  Only the [pad : pad+L] centre is ever
    # written afterwards, so the borders stay zero for all layers/blocks.
    xpad_ref[...] = jnp.zeros(xpad_ref.shape, xpad_ref.dtype)

    h = x_ref[...]                                      # residual stream (B, L, C)
    layer = 0
    for _ in range(n_blocks):                           # static unroll over blocks
        xpad_ref[:, pad:pad + L, :] = h                 # block input = h (n_cond == 0)
        y = h
        for d in dilations:                             # static unroll over 7 layers
            # Three statically-shifted views of the padded activation, fused on
            # the contraction axis -> one MXU matmul with K = ksize*C per layer.
            taps = [
                xpad_ref[:, pad + (k - center) * d: pad + (k - center) * d + L, :]
                for k in range(ksize)
            ]
            lhs = jnp.concatenate(taps, axis=-1).reshape(B * L, ksize * C)
            z = jnp.dot(lhs, w_ref[layer], preferred_element_type=jnp.float32)
            z = z + b_ref[layer]                        # bias folded onto the dot
            y = jnp.maximum(z, 0.0).reshape(B, L, C)    # ReLU
            xpad_ref[:, pad:pad + L, :] = y             # next layer's input
            layer += 1
        h = h + y                                       # residual: h = h + block(h)

    o_ref[...] = h.astype(o_ref.dtype)


def _drn_pallas(x_blc, w_stacked, b_stacked, *, n_blocks, ksize, pad):
    B, L, C = x_blc.shape
    T = w_stacked.shape[0]
    kernel = functools.partial(
        _drn_kernel, n_blocks=n_blocks, ksize=ksize, pad=pad,
        dilations=DILATION_RATES)
    return pl.pallas_call(
        kernel,
        out_shape=jax.ShapeDtypeStruct((B, L, C), jnp.float32),
        grid=(1,),
        in_specs=[
            pl.BlockSpec((B, L, C), lambda i: (0, 0, 0)),
            pl.BlockSpec((T, ksize * C, C), lambda i: (0, 0, 0)),
            pl.BlockSpec((T, 1, C), lambda i: (0, 0, 0)),
        ],
        out_specs=pl.BlockSpec((B, L, C), lambda i: (0, 0, 0)),
        scratch_shapes=[pltpu.VMEM((B, L + 2 * pad, C), jnp.float32)],
        compiler_params=pltpu.CompilerParams(
            dimension_semantics=("arbitrary",)),
    )(x_blc, w_stacked, b_stacked)


# ---------------------------------------------------------------------------
# Public forward: NCL -> NLC, stack weights, one fused pallas_call, NLC -> NCL
# ---------------------------------------------------------------------------
def dilated_resnet_forward(h_ncl, params):
    """h_ncl: (B, C, L) float32; params: list[block] of list[(w_kic, b_1c)]."""
    B, C, L = h_ncl.shape
    x = jnp.transpose(h_ncl, (0, 2, 1))                 # NCL -> NLC (channels-last)

    ksize = params[0][0][0].shape[0]
    pad = max(DILATION_RATES) * ((ksize - 1) // 2)
    # roll-free zero padding requires the largest shift to fit inside L
    assert pad < L, "largest dilated shift must be smaller than sequence length"

    w_list, b_list = [], []
    for block_params in params:
        for w, b in block_params:
            # (K, Cin, Cout) -> (K*Cin, Cout); row k*Cin+cin matches the
            # channel-concatenated LHS ordering [tap0 | tap1 | tap2].
            w_list.append(w.reshape(ksize * C, C))
            b_list.append(b.reshape(1, C))
    w_stacked = jnp.stack(w_list)                       # (T, K*C, C)
    b_stacked = jnp.stack(b_list)                       # (T, 1, C)

    out = _drn_pallas(x, w_stacked, b_stacked,
                      n_blocks=len(params), ksize=ksize, pad=pad)
    return jnp.transpose(out, (0, 2, 1))                # back to NCL


# ---------------------------------------------------------------------------
# Deterministic parameter init (torch Conv1d weights stored as (K, Cin, Cout))
# ---------------------------------------------------------------------------
def init_params(key, hidden_features, hidden_blocks, ksize):
    params = []
    C = hidden_features
    for _ in range(hidden_blocks):
        block = []
        for _ in DILATION_RATES:
            key, kw, kb = jax.random.split(key, 3)
            std = (2.0 / (C * ksize)) ** 0.5
            w = jax.random.normal(kw, (ksize, C, C), jnp.float32) * std
            b = jax.random.normal(kb, (1, C), jnp.float32) * 0.01
            block.append((w, b))
        params.append(block)
    return params


# ---------------------------------------------------------------------------
# Pure-JAX reference (lax.conv_general_dilated) for a correctness check
# ---------------------------------------------------------------------------
def _ref_forward(h_ncl, params):
    x = h_ncl
    for block_params in params:
        y = x
        for (w_kic, b), d in zip(block_params, DILATION_RATES):
            w_oik = jnp.transpose(w_kic, (2, 1, 0))     # (Cout, Cin, K)
            y = lax.conv_general_dilated(
                y, w_oik, window_strides=(1,), padding=[(d, d)],
                rhs_dilation=(d,), dimension_numbers=("NCH", "OIH", "NCH"))
            y = jnp.maximum(y + b[0][None, :, None], 0.0)
        x = x + y
    return x


if __name__ == "__main__":
    # Small shapes consistent with the module: B=2, hidden_features=32, L=64,
    # kernel_size=3, hidden_blocks=2, n_cond=0 (no variables_broadcast).
    B, C, L = 2, 32, 64
    KSIZE, BLOCKS = 3, 2

    key = jax.random.PRNGKey(0)
    key, kh = jax.random.split(key)
    h = jax.random.normal(kh, (B, C, L), jnp.float32)
    params = init_params(key, hidden_features=C, hidden_blocks=BLOCKS, ksize=KSIZE)

    out = dilated_resnet_forward(h, params)
    out = jax.block_until_ready(out)

    ref = jax.block_until_ready(_ref_forward(h, params))
    assert out.shape == (B, C, L)
    assert jnp.allclose(out, ref, rtol=5e-2, atol=5e-3), float(jnp.max(jnp.abs(out - ref)))

    print("KERNEL_OK")
</pallas_src>

<mosaic_0001>
module attributes {stable_mosaic.version = 11 : i64} {
  func.func @_drn_kernel(%arg0: i32, %arg1: memref<2x64x32xf32, #tpu.memory_space<vmem>>, %arg2: memref<14x96x32xf32, #tpu.memory_space<vmem>>, %arg3: memref<14x1x32xf32, #tpu.memory_space<vmem>>, %arg4: memref<2x64x32xf32, #tpu.memory_space<vmem>>, %arg5: memref<2x80x32xf32, #tpu.memory_space<vmem>>) attributes {dimension_semantics = [#tpu.dimension_semantics<arbitrary>], iteration_bounds = array<i64: 1>, scalar_prefetch = 0 : i64, scratch_operands = 1 : i64, tpu.core_type = #tpu.core_type<tc>, window_params = [{pipeline_mode = #tpu.pipeline_mode<synchronous>, transform_indices = @transform_0, window_bounds = array<i64: 2, 64, 32>}, {pipeline_mode = #tpu.pipeline_mode<synchronous>, transform_indices = @transform_1, window_bounds = array<i64: 14, 96, 32>}, {pipeline_mode = #tpu.pipeline_mode<synchronous>, transform_indices = @transform_2, window_bounds = array<i64: 14, 1, 32>}, {pipeline_mode = #tpu.pipeline_mode<synchronous>, transform_indices = @transform_3, window_bounds = array<i64: 2, 64, 32>}]} {
    %cst = arith.constant 0.000000e+00 : f32
    %0 = vector.broadcast %cst : f32 to vector<2x80x32xf32>
    %c0 = arith.constant 0 : index
    %c0_0 = arith.constant 0 : index
    %c0_1 = arith.constant 0 : index
    %1 = vector.load %arg5[%c0, %c0_0, %c0_1] : memref<2x80x32xf32, #tpu.memory_space<vmem>>, vector<2x80x32xf32>
    tpu.vector_store %arg5[%c0, %c0_0, %c0_1], %0 {strides = array<i32>} : memref<2x80x32xf32, #tpu.memory_space<vmem>>, vector<2x80x32xf32>,
    %c0_2 = arith.constant 0 : index
    %c0_3 = arith.constant 0 : index
    %c0_4 = arith.constant 0 : index
    %2 = vector.load %arg1[%c0_2, %c0_3, %c0_4] : memref<2x64x32xf32, #tpu.memory_space<vmem>>, vector<2x64x32xf32>
    %c0_5 = arith.constant 0 : index
    %c8 = arith.constant 8 : index
    %c0_6 = arith.constant 0 : index
    %3 = vector.load %arg5[%c0_5, %c8, %c0_6] : memref<2x80x32xf32, #tpu.memory_space<vmem>>, vector<2x64x32xf32>
    tpu.vector_store %arg5[%c0_5, %c8, %c0_6], %2 {strides = array<i32>} : memref<2x80x32xf32, #tpu.memory_space<vmem>>, vector<2x64x32xf32>,
    %c0_7 = arith.constant 0 : index
    %c7 = arith.constant 7 : index
    %c0_8 = arith.constant 0 : index
    %4 = vector.load %arg5[%c0_7, %c7, %c0_8] : memref<2x80x32xf32, #tpu.memory_space<vmem>>, vector<2x64x32xf32>
    %c0_9 = arith.constant 0 : index
    %c8_10 = arith.constant 8 : index
    %c0_11 = arith.constant 0 : index
    %5 = vector.load %arg5[%c0_9, %c8_10, %c0_11] : memref<2x80x32xf32, #tpu.memory_space<vmem>>, vector<2x64x32xf32>
    %c0_12 = arith.constant 0 : index
    %c9 = arith.constant 9 : index
    %c0_13 = arith.constant 0 : index
    %6 = vector.load %arg5[%c0_12, %c9, %c0_13] : memref<2x80x32xf32, #tpu.memory_space<vmem>>, vector<2x64x32xf32>
    %7 = tpu.concatenate %4, %5, %6 in 2 : vector<2x64x32xf32>, vector<2x64x32xf32>, vector<2x64x32xf32> -> vector<2x64x96xf32>
    %8 = vector.shape_cast %7 : vector<2x64x96xf32> to vector<128x96xf32>
    %c0_14 = arith.constant 0 : index
    %c0_15 = arith.constant 0 : index
    %c0_16 = arith.constant 0 : index
    %9 = vector.load %arg2[%c0_14, %c0_15, %c0_16] : memref<14x96x32xf32, #tpu.memory_space<vmem>>, vector<1x96x32xf32>
    %10 = vector.shape_cast %9 : vector<1x96x32xf32> to vector<96x32xf32>
    %cst_17 = arith.constant dense<0.000000e+00> : vector<128x32xf32>
    %11 = tpu.matmul %8, %10, %cst_17 {dimension_numbers = #tpu.dot_dimension_numbers<[1], [0], [0], [1], [0, 0, 1, 1], [], []>} : vector<128x96xf32>, vector<96x32xf32>, vector<128x32xf32> -> vector<128x32xf32>
    %c0_18 = arith.constant 0 : index
    %c0_19 = arith.constant 0 : index
    %c0_20 = arith.constant 0 : index
    %12 = vector.load %arg3[%c0_18, %c0_19, %c0_20] : memref<14x1x32xf32, #tpu.memory_space<vmem>>, vector<1x1x32xf32>
    %13 = vector.shape_cast %12 : vector<1x1x32xf32> to vector<1x32xf32>
    %14 = vector.broadcast %13 : vector<1x32xf32> to vector<128x32xf32>
    %15 = arith.addf %11, %14 : vector<128x32xf32>
    %cst_21 = arith.constant 0.000000e+00 : f32
    %16 = vector.broadcast %cst_21 : f32 to vector<128x32xf32>
    %17 = arith.maximumf %15, %16 : vector<128x32xf32>
    %18 = vector.shape_cast %17 : vector<128x32xf32> to vector<2x64x32xf32>
    %c0_22 = arith.constant 0 : index
    %c8_23 = arith.constant 8 : index
    %c0_24 = arith.constant 0 : index
    %19 = vector.load %arg5[%c0_22, %c8_23, %c0_24] : memref<2x80x32xf32, #tpu.memory_space<vmem>>, vector<2x64x32xf32>
    tpu.vector_store %arg5[%c0_22, %c8_23, %c0_24], %18 {strides = array<i32>} : memref<2x80x32xf32, #tpu.memory_space<vmem>>, vector<2x64x32xf32>,
    %c0_25 = arith.constant 0 : index
    %c6 = arith.constant 6 : index
    %c0_26 = arith.constant 0 : index
    %20 = vector.load %arg5[%c0_25, %c6, %c0_26] : memref<2x80x32xf32, #tpu.memory_space<vmem>>, vector<2x64x32xf32>
    %c0_27 = arith.constant 0 : index
    %c8_28 = arith.constant 8 : index
    %c0_29 = arith.constant 0 : index
    %21 = vector.load %arg5[%c0_27, %c8_28, %c0_29] : memref<2x80x32xf32, #tpu.memory_space<vmem>>, vector<2x64x32xf32>
    %c0_30 = arith.constant 0 : index
    %c10 = arith.constant 10 : index
    %c0_31 = arith.constant 0 : index
    %22 = vector.load %arg5[%c0_30, %c10, %c0_31] : memref<2x80x32xf32, #tpu.memory_space<vmem>>, vector<2x64x32xf32>
    %23 = tpu.concatenate %20, %21, %22 in 2 : vector<2x64x32xf32>, vector<2x64x32xf32>, vector<2x64x32xf32> -> vector<2x64x96xf32>
    %24 = vector.shape_cast %23 : vector<2x64x96xf32> to vector<128x96xf32>
    %c1 = arith.constant 1 : index
    %c0_32 = arith.constant 0 : index
    %c0_33 = arith.constant 0 : index
    %25 = vector.load %arg2[%c1, %c0_32, %c0_33] : memref<14x96x32xf32, #tpu.memory_space<vmem>>, vector<1x96x32xf32>
    %26 = vector.shape_cast %25 : vector<1x96x32xf32> to vector<96x32xf32>
    %cst_34 = arith.constant dense<0.000000e+00> : vector<128x32xf32>
    %27 = tpu.matmul %24, %26, %cst_34 {dimension_numbers = #tpu.dot_dimension_numbers<[1], [0], [0], [1], [0, 0, 1, 1], [], []>} : vector<128x96xf32>, vector<96x32xf32>, vector<128x32xf32> -> vector<128x32xf32>
    %c1_35 = arith.constant 1 : index
    %c0_36 = arith.constant 0 : index
    %c0_37 = arith.constant 0 : index
    %28 = vector.load %arg3[%c1_35, %c0_36, %c0_37] : memref<14x1x32xf32, #tpu.memory_space<vmem>>, vector<1x1x32xf32>
    %29 = vector.shape_cast %28 : vector<1x1x32xf32> to vector<1x32xf32>
    %30 = vector.broadcast %29 : vector<1x32xf32> to vector<128x32xf32>
    %31 = arith.addf %27, %30 : vector<128x32xf32>
    %cst_38 = arith.constant 0.000000e+00 : f32
    %32 = vector.broadcast %cst_38 : f32 to vector<128x32xf32>
    %33 = arith.maximumf %31, %32 : vector<128x32xf32>
    %34 = vector.shape_cast %33 : vector<128x32xf32> to vector<2x64x32xf32>
    %c0_39 = arith.constant 0 : index
    %c8_40 = arith.constant 8 : index
    %c0_41 = arith.constant 0 : index
    %35 = vector.load %arg5[%c0_39, %c8_40, %c0_41] : memref<2x80x32xf32, #tpu.memory_space<vmem>>, vector<2x64x32xf32>
    tpu.vector_store %arg5[%c0_39, %c8_40, %c0_41], %34 {strides = array<i32>} : memref<2x80x32xf32, #tpu.memory_space<vmem>>, vector<2x64x32xf32>,
    %c0_42 = arith.constant 0 : index
    %c4 = arith.constant 4 : index
    %c0_43 = arith.constant 0 : index
    %36 = vector.load %arg5[%c0_42, %c4, %c0_43] : memref<2x80x32xf32, #tpu.memory_space<vmem>>, vector<2x64x32xf32>
    %c0_44 = arith.constant 0 : index
    %c8_45 = arith.constant 8 : index
    %c0_46 = arith.constant 0 : index
    %37 = vector.load %arg5[%c0_44, %c8_45, %c0_46] : memref<2x80x32xf32, #tpu.memory_space<vmem>>, vector<2x64x32xf32>
    %c0_47 = arith.constant 0 : index
    %c12 = arith.constant 12 : index
    %c0_48 = arith.constant 0 : index
    %38 = vector.load %arg5[%c0_47, %c12, %c0_48] : memref<2x80x32xf32, #tpu.memory_space<vmem>>, vector<2x64x32xf32>
    %39 = tpu.concatenate %36, %37, %38 in 2 : vector<2x64x32xf32>, vector<2x64x32xf32>, vector<2x64x32xf32> -> vector<2x64x96xf32>
    %40 = vector.shape_cast %39 : vector<2x64x96xf32> to vector<128x96xf32>
    %c2 = arith.constant 2 : index
    %c0_49 = arith.constant 0 : index
    %c0_50 = arith.constant 0 : index
    %41 = vector.load %arg2[%c2, %c0_49, %c0_50] : memref<14x96x32xf32, #tpu.memory_space<vmem>>, vector<1x96x32xf32>
    %42 = vector.shape_cast %41 : vector<1x96x32xf32> to vector<96x32xf32>
    %cst_51 = arith.constant dense<0.000000e+00> : vector<128x32xf32>
    %43 = tpu.matmul %40, %42, %cst_51 {dimension_numbers = #tpu.dot_dimension_numbers<[1], [0], [0], [1], [0, 0, 1, 1], [], []>} : vector<128x96xf32>, vector<96x32xf32>, vector<128x32xf32> -> vector<128x32xf32>
    %c2_52 = arith.constant 2 : index
    %c0_53 = arith.constant 0 : index
    %c0_54 = arith.constant 0 : index
    %44 = vector.load %arg3[%c2_52, %c0_53, %c0_54] : memref<14x1x32xf32, #tpu.memory_space<vmem>>, vector<1x1x32xf32>
    %45 = vector.shape_cast %44 : vector<1x1x32xf32> to vector<1x32xf32>
    %46 = vector.broadcast %45 : vector<1x32xf32> to vector<128x32xf32>
    %47 = arith.addf %43, %46 : vector<128x32xf32>
    %cst_55 = arith.constant 0.000000e+00 : f32
    %48 = vector.broadcast %cst_55 : f32 to vector<128x32xf32>
    %49 = arith.maximumf %47, %48 : vector<128x32xf32>
    %50 = vector.shape_cast %49 : vector<128x32xf32> to vector<2x64x32xf32>
    %c0_56 = arith.constant 0 : index
    %c8_57 = arith.constant 8 : index
    %c0_58 = arith.constant 0 : index
    %51 = vector.load %arg5[%c0_56, %c8_57, %c0_58] : memref<2x80x32xf32, #tpu.memory_space<vmem>>, vector<2x64x32xf32>
    tpu.vector_store %arg5[%c0_56, %c8_57, %c0_58], %50 {strides = array<i32>} : memref<2x80x32xf32, #tpu.memory_space<vmem>>, vector<2x64x32xf32>,
    %c0_59 = arith.constant 0 : index
    %c0_60 = arith.constant 0 : index
    %c0_61 = arith.constant 0 : index
    %52 = vector.load %arg5[%c0_59, %c0_60, %c0_61] : memref<2x80x32xf32, #tpu.memory_space<vmem>>, vector<2x64x32xf32>
    %c0_62 = arith.constant 0 : index
    %c8_63 = arith.constant 8 : index
    %c0_64 = arith.constant 0 : index
    %53 = vector.load %arg5[%c0_62, %c8_63, %c0_64] : memref<2x80x32xf32, #tpu.memory_space<vmem>>, vector<2x64x32xf32>
    %c0_65 = arith.constant 0 : index
    %c16 = arith.constant 16 : index
    %c0_66 = arith.constant 0 : index
    %54 = vector.load %arg5[%c0_65, %c16, %c0_66] : memref<2x80x32xf32, #tpu.memory_space<vmem>>, vector<2x64x32xf32>
    %55 = tpu.concatenate %52, %53, %54 in 2 : vector<2x64x32xf32>, vector<2x64x32xf32>, vector<2x64x32xf32> -> vector<2x64x96xf32>
    %56 = vector.shape_cast %55 : vector<2x64x96xf32> to vector<128x96xf32>
    %c3 = arith.constant 3 : index
    %c0_67 = arith.constant 0 : index
    %c0_68 = arith.constant 0 : index
    %57 = vector.load %arg2[%c3, %c0_67, %c0_68] : memref<14x96x32xf32, #tpu.memory_space<vmem>>, vector<1x96x32xf32>
    %58 = vector.shape_cast %57 : vector<1x96x32xf32> to vector<96x32xf32>
    %cst_69 = arith.constant dense<0.000000e+00> : vector<128x32xf32>
    %59 = tpu.matmul %56, %58, %cst_69 {dimension_numbers = #tpu.dot_dimension_numbers<[1], [0], [0], [1], [0, 0, 1, 1], [], []>} : vector<128x96xf32>, vector<96x32xf32>, vector<128x32xf32> -> vector<128x32xf32>
    %c3_70 = arith.constant 3 : index
    %c0_71 = arith.constant 0 : index
    %c0_72 = arith.constant 0 : index
    %60 = vector.load %arg3[%c3_70, %c0_71, %c0_72] : memref<14x1x32xf32, #tpu.memory_space<vmem>>, vector<1x1x32xf32>
    %61 = vector.shape_cast %60 : vector<1x1x32xf32> to vector<1x32xf32>
    %62 = vector.broadcast %61 : vector<1x32xf32> to vector<128x32xf32>
    %63 = arith.addf %59, %62 : vector<128x32xf32>
    %cst_73 = arith.constant 0.000000e+00 : f32
    %64 = vector.broadcast %cst_73 : f32 to vector<128x32xf32>
    %65 = arith.maximumf %63, %64 : vector<128x32xf32>
    %66 = vector.shape_cast %65 : vector<128x32xf32> to vector<2x64x32xf32>
    %c0_74 = arith.constant 0 : index
    %c8_75 = arith.constant 8 : index
    %c0_76 = arith.constant 0 : index
    %67 = vector.load %arg5[%c0_74, %c8_75, %c0_76] : memref<2x80x32xf32, #tpu.memory_space<vmem>>, vector<2x64x32xf32>
    tpu.vector_store %arg5[%c0_74, %c8_75, %c0_76], %66 {strides = array<i32>} : memref<2x80x32xf32, #tpu.memory_space<vmem>>, vector<2x64x32xf32>,
    %c0_77 = arith.constant 0 : index
    %c4_78 = arith.constant 4 : index
    %c0_79 = arith.constant 0 : index
    %68 = vector.load %arg5[%c0_77, %c4_78, %c0_79] : memref<2x80x32xf32, #tpu.memory_space<vmem>>, vector<2x64x32xf32>
    %c0_80 = arith.constant 0 : index
    %c8_81 = arith.constant 8 : index
    %c0_82 = arith.constant 0 : index
    %69 = vector.load %arg5[%c0_80, %c8_81, %c0_82] : memref<2x80x32xf32, #tpu.memory_space<vmem>>, vector<2x64x32xf32>
    %c0_83 = arith.constant 0 : index
    %c12_84 = arith.constant 12 : index
    %c0_85 = arith.constant 0 : index
    %70 = vector.load %arg5[%c0_83, %c12_84, %c0_85] : memref<2x80x32xf32, #tpu.memory_space<vmem>>, vector<2x64x32xf32>
    %71 = tpu.concatenate %68, %69, %70 in 2 : vector<2x64x32xf32>, vector<2x64x32xf32>, vector<2x64x32xf32> -> vector<2x64x96xf32>
    %72 = vector.shape_cast %71 : vector<2x64x96xf32> to vector<128x96xf32>
    %c4_86 = arith.constant 4 : index
    %c0_87 = arith.constant 0 : index
    %c0_88 = arith.constant 0 : index
    %73 = vector.load %arg2[%c4_86, %c0_87, %c0_88] : memref<14x96x32xf32, #tpu.memory_space<vmem>>, vector<1x96x32xf32>
    %74 = vector.shape_cast %73 : vector<1x96x32xf32> to vector<96x32xf32>
    %cst_89 = arith.constant dense<0.000000e+00> : vector<128x32xf32>
    %75 = tpu.matmul %72, %74, %cst_89 {dimension_numbers = #tpu.dot_dimension_numbers<[1], [0], [0], [1], [0, 0, 1, 1], [], []>} : vector<128x96xf32>, vector<96x32xf32>, vector<128x32xf32> -> vector<128x32xf32>
    %c4_90 = arith.constant 4 : index
    %c0_91 = arith.constant 0 : index
    %c0_92 = arith.constant 0 : index
    %76 = vector.load %arg3[%c4_90, %c0_91, %c0_92] : memref<14x1x32xf32, #tpu.memory_space<vmem>>, vector<1x1x32xf32>
    %77 = vector.shape_cast %76 : vector<1x1x32xf32> to vector<1x32xf32>
    %78 = vector.broadcast %77 : vector<1x32xf32> to vector<128x32xf32>
    %79 = arith.addf %75, %78 : vector<128x32xf32>
    %cst_93 = arith.constant 0.000000e+00 : f32
    %80 = vector.broadcast %cst_93 : f32 to vector<128x32xf32>
    %81 = arith.maximumf %79, %80 : vector<128x32xf32>
    %82 = vector.shape_cast %81 : vector<128x32xf32> to vector<2x64x32xf32>
    %c0_94 = arith.constant 0 : index
    %c8_95 = arith.constant 8 : index
    %c0_96 = arith.constant 0 : index
    %83 = vector.load %arg5[%c0_94, %c8_95, %c0_96] : memref<2x80x32xf32, #tpu.memory_space<vmem>>, vector<2x64x32xf32>
    tpu.vector_store %arg5[%c0_94, %c8_95, %c0_96], %82 {strides = array<i32>} : memref<2x80x32xf32, #tpu.memory_space<vmem>>, vector<2x64x32xf32>,
    %c0_97 = arith.constant 0 : index
    %c6_98 = arith.constant 6 : index
    %c0_99 = arith.constant 0 : index
    %84 = vector.load %arg5[%c0_97, %c6_98, %c0_99] : memref<2x80x32xf32, #tpu.memory_space<vmem>>, vector<2x64x32xf32>
    %c0_100 = arith.constant 0 : index
    %c8_101 = arith.constant 8 : index
    %c0_102 = arith.constant 0 : index
    %85 = vector.load %arg5[%c0_100, %c8_101, %c0_102] : memref<2x80x32xf32, #tpu.memory_space<vmem>>, vector<2x64x32xf32>
    %c0_103 = arith.constant 0 : index
    %c10_104 = arith.constant 10 : index
    %c0_105 = arith.constant 0 : index
    %86 = vector.load %arg5[%c0_103, %c10_104, %c0_105] : memref<2x80x32xf32, #tpu.memory_space<vmem>>, vector<2x64x32xf32>
    %87 = tpu.concatenate %84, %85, %86 in 2 : vector<2x64x32xf32>, vector<2x64x32xf32>, vector<2x64x32xf32> -> vector<2x64x96xf32>
    %88 = vector.shape_cast %87 : vector<2x64x96xf32> to vector<128x96xf32>
    %c5 = arith.constant 5 : index
    %c0_106 = arith.constant 0 : index
    %c0_107 = arith.constant 0 : index
    %89 = vector.load %arg2[%c5, %c0_106, %c0_107] : memref<14x96x32xf32, #tpu.memory_space<vmem>>, vector<1x96x32xf32>
    %90 = vector.shape_cast %89 : vector<1x96x32xf32> to vector<96x32xf32>
    %cst_108 = arith.constant dense<0.000000e+00> : vector<128x32xf32>
    %91 = tpu.matmul %88, %90, %cst_108 {dimension_numbers = #tpu.dot_dimension_numbers<[1], [0], [0], [1], [0, 0, 1, 1], [], []>} : vector<128x96xf32>, vector<96x32xf32>, vector<128x32xf32> -> vector<128x32xf32>
    %c5_109 = arith.constant 5 : index
    %c0_110 = arith.constant 0 : index
    %c0_111 = arith.constant 0 : index
    %92 = vector.load %arg3[%c5_109, %c0_110, %c0_111] : memref<14x1x32xf32, #tpu.memory_space<vmem>>, vector<1x1x32xf32>
    %93 = vector.shape_cast %92 : vector<1x1x32xf32> to vector<1x32xf32>
    %94 = vector.broadcast %93 : vector<1x32xf32> to vector<128x32xf32>
    %95 = arith.addf %91, %94 : vector<128x32xf32>
    %cst_112 = arith.constant 0.000000e+00 : f32
    %96 = vector.broadcast %cst_112 : f32 to vector<128x32xf32>
    %97 = arith.maximumf %95, %96 : vector<128x32xf32>
    %98 = vector.shape_cast %97 : vector<128x32xf32> to vector<2x64x32xf32>
    %c0_113 = arith.constant 0 : index
    %c8_114 = arith.constant 8 : index
    %c0_115 = arith.constant 0 : index
    %99 = vector.load %arg5[%c0_113, %c8_114, %c0_115] : memref<2x80x32xf32, #tpu.memory_space<vmem>>, vector<2x64x32xf32>
    tpu.vector_store %arg5[%c0_113, %c8_114, %c0_115], %98 {strides = array<i32>} : memref<2x80x32xf32, #tpu.memory_space<vmem>>, vector<2x64x32xf32>,
    %c0_116 = arith.constant 0 : index
    %c7_117 = arith.constant 7 : index
    %c0_118 = arith.constant 0 : index
    %100 = vector.load %arg5[%c0_116, %c7_117, %c0_118] : memref<2x80x32xf32, #tpu.memory_space<vmem>>, vector<2x64x32xf32>
    %c0_119 = arith.constant 0 : index
    %c8_120 = arith.constant 8 : index
    %c0_121 = arith.constant 0 : index
    %101 = vector.load %arg5[%c0_119, %c8_120, %c0_121] : memref<2x80x32xf32, #tpu.memory_space<vmem>>, vector<2x64x32xf32>
    %c0_122 = arith.constant 0 : index
    %c9_123 = arith.constant 9 : index
    %c0_124 = arith.constant 0 : index
    %102 = vector.load %arg5[%c0_122, %c9_123, %c0_124] : memref<2x80x32xf32, #tpu.memory_space<vmem>>, vector<2x64x32xf32>
    %103 = tpu.concatenate %100, %101, %102 in 2 : vector<2x64x32xf32>, vector<2x64x32xf32>, vector<2x64x32xf32> -> vector<2x64x96xf32>
    %104 = vector.shape_cast %103 : vector<2x64x96xf32> to vector<128x96xf32>
    %c6_125 = arith.constant 6 : index
    %c0_126 = arith.constant 0 : index
    %c0_127 = arith.constant 0 : index
    %105 = vector.load %arg2[%c6_125, %c0_126, %c0_127] : memref<14x96x32xf32, #tpu.memory_space<vmem>>, vector<1x96x32xf32>
    %106 = vector.shape_cast %105 : vector<1x96x32xf32> to vector<96x32xf32>
    %cst_128 = arith.constant dense<0.000000e+00> : vector<128x32xf32>
    %107 = tpu.matmul %104, %106, %cst_128 {dimension_numbers = #tpu.dot_dimension_numbers<[1], [0], [0], [1], [0, 0, 1, 1], [], []>} : vector<128x96xf32>, vector<96x32xf32>, vector<128x32xf32> -> vector<128x32xf32>
    %c6_129 = arith.constant 6 : index
    %c0_130 = arith.constant 0 : index
    %c0_131 = arith.constant 0 : index
    %108 = vector.load %arg3[%c6_129, %c0_130, %c0_131] : memref<14x1x32xf32, #tpu.memory_space<vmem>>, vector<1x1x32xf32>
    %109 = vector.shape_cast %108 : vector<1x1x32xf32> to vector<1x32xf32>
    %110 = vector.broadcast %109 : vector<1x32xf32> to vector<128x32xf32>
    %111 = arith.addf %107, %110 : vector<128x32xf32>
    %cst_132 = arith.constant 0.000000e+00 : f32
    %112 = vector.broadcast %cst_132 : f32 to vector<128x32xf32>
    %113 = arith.maximumf %111, %112 : vector<128x32xf32>
    %114 = vector.shape_cast %113 : vector<128x32xf32> to vector<2x64x32xf32>
    %c0_133 = arith.constant 0 : index
    %c8_134 = arith.constant 8 : index
    %c0_135 = arith.constant 0 : index
    %115 = vector.load %arg5[%c0_133, %c8_134, %c0_135] : memref<2x80x32xf32, #tpu.memory_space<vmem>>, vector<2x64x32xf32>
    tpu.vector_store %arg5[%c0_133, %c8_134, %c0_135], %114 {strides = array<i32>} : memref<2x80x32xf32, #tpu.memory_space<vmem>>, vector<2x64x32xf32>,
    %116 = arith.addf %2, %114 : vector<2x64x32xf32>
    %c0_136 = arith.constant 0 : index
    %c8_137 = arith.constant 8 : index
    %c0_138 = arith.constant 0 : index
    %117 = vector.load %arg5[%c0_136, %c8_137, %c0_138] : memref<2x80x32xf32, #tpu.memory_space<vmem>>, vector<2x64x32xf32>
    tpu.vector_store %arg5[%c0_136, %c8_137, %c0_138], %116 {strides = array<i32>} : memref<2x80x32xf32, #tpu.memory_space<vmem>>, vector<2x64x32xf32>,
    %c0_139 = arith.constant 0 : index
    %c7_140 = arith.constant 7 : index
    %c0_141 = arith.constant 0 : index
    %118 = vector.load %arg5[%c0_139, %c7_140, %c0_141] : memref<2x80x32xf32, #tpu.memory_space<vmem>>, vector<2x64x32xf32>
    %c0_142 = arith.constant 0 : index
    %c8_143 = arith.constant 8 : index
    %c0_144 = arith.constant 0 : index
    %119 = vector.load %arg5[%c0_142, %c8_143, %c0_144] : memref<2x80x32xf32, #tpu.memory_space<vmem>>, vector<2x64x32xf32>
    %c0_145 = arith.constant 0 : index
    %c9_146 = arith.constant 9 : index
    %c0_147 = arith.constant 0 : index
    %120 = vector.load %arg5[%c0_145, %c9_146, %c0_147] : memref<2x80x32xf32, #tpu.memory_space<vmem>>, vector<2x64x32xf32>
    %121 = tpu.concatenate %118, %119, %120 in 2 : vector<2x64x32xf32>, vector<2x64x32xf32>, vector<2x64x32xf32> -> vector<2x64x96xf32>
    %122 = vector.shape_cast %121 : vector<2x64x96xf32> to vector<128x96xf32>
    %c7_148 = arith.constant 7 : index
    %c0_149 = arith.constant 0 : index
    %c0_150 = arith.constant 0 : index
    %123 = vector.load %arg2[%c7_148, %c0_149, %c0_150] : memref<14x96x32xf32, #tpu.memory_space<vmem>>, vector<1x96x32xf32>
    %124 = vector.shape_cast %123 : vector<1x96x32xf32> to vector<96x32xf32>
    %cst_151 = arith.constant dense<0.000000e+00> : vector<128x32xf32>
    %125 = tpu.matmul %122, %124, %cst_151 {dimension_numbers = #tpu.dot_dimension_numbers<[1], [0], [0], [1], [0, 0, 1, 1], [], []>} : vector<128x96xf32>, vector<96x32xf32>, vector<128x32xf32> -> vector<128x32xf32>
    %c7_152 = arith.constant 7 : index
    %c0_153 = arith.constant 0 : index
    %c0_154 = arith.constant 0 : index
    %126 = vector.load %arg3[%c7_152, %c0_153, %c0_154] : memref<14x1x32xf32, #tpu.memory_space<vmem>>, vector<1x1x32xf32>
    %127 = vector.shape_cast %126 : vector<1x1x32xf32> to vector<1x32xf32>
    %128 = vector.broadcast %127 : vector<1x32xf32> to vector<128x32xf32>
    %129 = arith.addf %125, %128 : vector<128x32xf32>
    %cst_155 = arith.constant 0.000000e+00 : f32
    %130 = vector.broadcast %cst_155 : f32 to vector<128x32xf32>
    %131 = arith.maximumf %129, %130 : vector<128x32xf32>
    %132 = vector.shape_cast %131 : vector<128x32xf32> to vector<2x64x32xf32>
    %c0_156 = arith.constant 0 : index
    %c8_157 = arith.constant 8 : index
    %c0_158 = arith.constant 0 : index
    %133 = vector.load %arg5[%c0_156, %c8_157, %c0_158] : memref<2x80x32xf32, #tpu.memory_space<vmem>>, vector<2x64x32xf32>
    tpu.vector_store %arg5[%c0_156, %c8_157, %c0_158], %132 {strides = array<i32>} : memref<2x80x32xf32, #tpu.memory_space<vmem>>, vector<2x64x32xf32>,
    %c0_159 = arith.constant 0 : index
    %c6_160 = arith.constant 6 : index
    %c0_161 = arith.constant 0 : index
    %134 = vector.load %arg5[%c0_159, %c6_160, %c0_161] : memref<2x80x32xf32, #tpu.memory_space<vmem>>, vector<2x64x32xf32>
    %c0_162 = arith.constant 0 : index
    %c8_163 = arith.constant 8 : index
    %c0_164 = arith.constant 0 : index
    %135 = vector.load %arg5[%c0_162, %c8_163, %c0_164] : memref<2x80x32xf32, #tpu.memory_space<vmem>>, vector<2x64x32xf32>
    %c0_165 = arith.constant 0 : index
    %c10_166 = arith.constant 10 : index
    %c0_167 = arith.constant 0 : index
    %136 = vector.load %arg5[%c0_165, %c10_166, %c0_167] : memref<2x80x32xf32, #tpu.memory_space<vmem>>, vector<2x64x32xf32>
    %137 = tpu.concatenate %134, %135, %136 in 2 : vector<2x64x32xf32>, vector<2x64x32xf32>, vector<2x64x32xf32> -> vector<2x64x96xf32>
    %138 = vector.shape_cast %137 : vector<2x64x96xf32> to vector<128x96xf32>
    %c8_168 = arith.constant 8 : index
    %c0_169 = arith.constant 0 : index
    %c0_170 = arith.constant 0 : index
    %139 = vector.load %arg2[%c8_168, %c0_169, %c0_170] : memref<14x96x32xf32, #tpu.memory_space<vmem>>, vector<1x96x32xf32>
    %140 = vector.shape_cast %139 : vector<1x96x32xf32> to vector<96x32xf32>
    %cst_171 = arith.constant dense<0.000000e+00> : vector<128x32xf32>
    %141 = tpu.matmul %138, %140, %cst_171 {dimension_numbers = #tpu.dot_dimension_numbers<[1], [0], [0], [1], [0, 0, 1, 1], [], []>} : vector<128x96xf32>, vector<96x32xf32>, vector<128x32xf32> -> vector<128x32xf32>
    %c8_172 = arith.constant 8 : index
    %c0_173 = arith.constant 0 : index
    %c0_174 = arith.constant 0 : index
    %142 = vector.load %arg3[%c8_172, %c0_173, %c0_174] : memref<14x1x32xf32, #tpu.memory_space<vmem>>, vector<1x1x32xf32>
    %143 = vector.shape_cast %142 : vector<1x1x32xf32> to vector<1x32xf32>
    %144 = vector.broadcast %143 : vector<1x32xf32> to vector<128x32xf32>
    %145 = arith.addf %141, %144 : vector<128x32xf32>
    %cst_175 = arith.constant 0.000000e+00 : f32
    %146 = vector.broadcast %cst_175 : f32 to vector<128x32xf32>
    %147 = arith.maximumf %145, %146 : vector<128x32xf32>
    %148 = vector.shape_cast %147 : vector<128x32xf32> to vector<2x64x32xf32>
    %c0_176 = arith.constant 0 : index
    %c8_177 = arith.constant 8 : index
    %c0_178 = arith.constant 0 : index
    %149 = vector.load %arg5[%c0_176, %c8_177, %c0_178] : memref<2x80x32xf32, #tpu.memory_space<vmem>>, vector<2x64x32xf32>
    tpu.vector_store %arg5[%c0_176, %c8_177, %c0_178], %148 {strides = array<i32>} : memref<2x80x32xf32, #tpu.memory_space<vmem>>, vector<2x64x32xf32>,
    %c0_179 = arith.constant 0 : index
    %c4_180 = arith.constant 4 : index
    %c0_181 = arith.constant 0 : index
    %150 = vector.load %arg5[%c0_179, %c4_180, %c0_181] : memref<2x80x32xf32, #tpu.memory_space<vmem>>, vector<2x64x32xf32>
    %c0_182 = arith.constant 0 : index
    %c8_183 = arith.constant 8 : index
    %c0_184 = arith.constant 0 : index
    %151 = vector.load %arg5[%c0_182, %c8_183, %c0_184] : memref<2x80x32xf32, #tpu.memory_space<vmem>>, vector<2x64x32xf32>
    %c0_185 = arith.constant 0 : index
    %c12_186 = arith.constant 12 : index
    %c0_187 = arith.constant 0 : index
    %152 = vector.load %arg5[%c0_185, %c12_186, %c0_187] : memref<2x80x32xf32, #tpu.memory_space<vmem>>, vector<2x64x32xf32>
    %153 = tpu.concatenate %150, %151, %152 in 2 : vector<2x64x32xf32>, vector<2x64x32xf32>, vector<2x64x32xf32> -> vector<2x64x96xf32>
    %154 = vector.shape_cast %153 : vector<2x64x96xf32> to vector<128x96xf32>
    %c9_188 = arith.constant 9 : index
    %c0_189 = arith.constant 0 : index
    %c0_190 = arith.constant 0 : index
    %155 = vector.load %arg2[%c9_188, %c0_189, %c0_190] : memref<14x96x32xf32, #tpu.memory_space<vmem>>, vector<1x96x32xf32>
    %156 = vector.shape_cast %155 : vector<1x96x32xf32> to vector<96x32xf32>
    %cst_191 = arith.constant dense<0.000000e+00> : vector<128x32xf32>
    %157 = tpu.matmul %154, %156, %cst_191 {dimension_numbers = #tpu.dot_dimension_numbers<[1], [0], [0], [1], [0, 0, 1, 1], [], []>} : vector<128x96xf32>, vector<96x32xf32>, vector<128x32xf32> -> vector<128x32xf32>
    %c9_192 = arith.constant 9 : index
    %c0_193 = arith.constant 0 : index
    %c0_194 = arith.constant 0 : index
    %158 = vector.load %arg3[%c9_192, %c0_193, %c0_194] : memref<14x1x32xf32, #tpu.memory_space<vmem>>, vector<1x1x32xf32>
    %159 = vector.shape_cast %158 : vector<1x1x32xf32> to vector<1x32xf32>
    %160 = vector.broadcast %159 : vector<1x32xf32> to vector<128x32xf32>
    %161 = arith.addf %157, %160 : vector<128x32xf32>
    %cst_195 = arith.constant 0.000000e+00 : f32
    %162 = vector.broadcast %cst_195 : f32 to vector<128x32xf32>
    %163 = arith.maximumf %161, %162 : vector<128x32xf32>
    %164 = vector.shape_cast %163 : vector<128x32xf32> to vector<2x64x32xf32>
    %c0_196 = arith.constant 0 : index
    %c8_197 = arith.constant 8 : index
    %c0_198 = arith.constant 0 : index
    %165 = vector.load %arg5[%c0_196, %c8_197, %c0_198] : memref<2x80x32xf32, #tpu.memory_space<vmem>>, vector<2x64x32xf32>
    tpu.vector_store %arg5[%c0_196, %c8_197, %c0_198], %164 {strides = array<i32>} : memref<2x80x32xf32, #tpu.memory_space<vmem>>, vector<2x64x32xf32>,
    %c0_199 = arith.constant 0 : index
    %c0_200 = arith.constant 0 : index
    %c0_201 = arith.constant 0 : index
    %166 = vector.load %arg5[%c0_199, %c0_200, %c0_201] : memref<2x80x32xf32, #tpu.memory_space<vmem>>, vector<2x64x32xf32>
    %c0_202 = arith.constant 0 : index
    %c8_203 = arith.constant 8 : index
    %c0_204 = arith.constant 0 : index
    %167 = vector.load %arg5[%c0_202, %c8_203, %c0_204] : memref<2x80x32xf32, #tpu.memory_space<vmem>>, vector<2x64x32xf32>
    %c0_205 = arith.constant 0 : index
    %c16_206 = arith.constant 16 : index
    %c0_207 = arith.constant 0 : index
    %168 = vector.load %arg5[%c0_205, %c16_206, %c0_207] : memref<2x80x32xf32, #tpu.memory_space<vmem>>, vector<2x64x32xf32>
    %169 = tpu.concatenate %166, %167, %168 in 2 : vector<2x64x32xf32>, vector<2x64x32xf32>, vector<2x64x32xf32> -> vector<2x64x96xf32>
    %170 = vector.shape_cast %169 : vector<2x64x96xf32> to vector<128x96xf32>
    %c10_208 = arith.constant 10 : index
    %c0_209 = arith.constant 0 : index
    %c0_210 = arith.constant 0 : index
    %171 = vector.load %arg2[%c10_208, %c0_209, %c0_210] : memref<14x96x32xf32, #tpu.memory_space<vmem>>, vector<1x96x32xf32>
    %172 = vector.shape_cast %171 : vector<1x96x32xf32> to vector<96x32xf32>
    %cst_211 = arith.constant dense<0.000000e+00> : vector<128x32xf32>
    %173 = tpu.matmul %170, %172, %cst_211 {dimension_numbers = #tpu.dot_dimension_numbers<[1], [0], [0], [1], [0, 0, 1, 1], [], []>} : vector<128x96xf32>, vector<96x32xf32>, vector<128x32xf32> -> vector<128x32xf32>
    %c10_212 = arith.constant 10 : index
    %c0_213 = arith.constant 0 : index
    %c0_214 = arith.constant 0 : index
    %174 = vector.load %arg3[%c10_212, %c0_213, %c0_214] : memref<14x1x32xf32, #tpu.memory_space<vmem>>, vector<1x1x32xf32>
    %175 = vector.shape_cast %174 : vector<1x1x32xf32> to vector<1x32xf32>
    %176 = vector.broadcast %175 : vector<1x32xf32> to vector<128x32xf32>
    %177 = arith.addf %173, %176 : vector<128x32xf32>
    %cst_215 = arith.constant 0.000000e+00 : f32
    %178 = vector.broadcast %cst_215 : f32 to vector<128x32xf32>
    %179 = arith.maximumf %177, %178 : vector<128x32xf32>
    %180 = vector.shape_cast %179 : vector<128x32xf32> to vector<2x64x32xf32>
    %c0_216 = arith.constant 0 : index
    %c8_217 = arith.constant 8 : index
    %c0_218 = arith.constant 0 : index
    %181 = vector.load %arg5[%c0_216, %c8_217, %c0_218] : memref<2x80x32xf32, #tpu.memory_space<vmem>>, vector<2x64x32xf32>
    tpu.vector_store %arg5[%c0_216, %c8_217, %c0_218], %180 {strides = array<i32>} : memref<2x80x32xf32, #tpu.memory_space<vmem>>, vector<2x64x32xf32>,
    %c0_219 = arith.constant 0 : index
    %c4_220 = arith.constant 4 : index
    %c0_221 = arith.constant 0 : index
    %182 = vector.load %arg5[%c0_219, %c4_220, %c0_221] : memref<2x80x32xf32, #tpu.memory_space<vmem>>, vector<2x64x32xf32>
    %c0_222 = arith.constant 0 : index
    %c8_223 = arith.constant 8 : index
    %c0_224 = arith.constant 0 : index
    %183 = vector.load %arg5[%c0_222, %c8_223, %c0_224] : memref<2x80x32xf32, #tpu.memory_space<vmem>>, vector<2x64x32xf32>
    %c0_225 = arith.constant 0 : index
    %c12_226 = arith.constant 12 : index
    %c0_227 = arith.constant 0 : index
    %184 = vector.load %arg5[%c0_225, %c12_226, %c0_227] : memref<2x80x32xf32, #tpu.memory_space<vmem>>, vector<2x64x32xf32>
    %185 = tpu.concatenate %182, %183, %184 in 2 : vector<2x64x32xf32>, vector<2x64x32xf32>, vector<2x64x32xf32> -> vector<2x64x96xf32>
    %186 = vector.shape_cast %185 : vector<2x64x96xf32> to vector<128x96xf32>
    %c11 = arith.constant 11 : index
    %c0_228 = arith.constant 0 : index
    %c0_229 = arith.constant 0 : index
    %187 = vector.load %arg2[%c11, %c0_228, %c0_229] : memref<14x96x32xf32, #tpu.memory_space<vmem>>, vector<1x96x32xf32>
    %188 = vector.shape_cast %187 : vector<1x96x32xf32> to vector<96x32xf32>
    %cst_230 = arith.constant dense<0.000000e+00> : vector<128x32xf32>
    %189 = tpu.matmul %186, %188, %cst_230 {dimension_numbers = #tpu.dot_dimension_numbers<[1], [0], [0], [1], [0, 0, 1, 1], [], []>} : vector<128x96xf32>, vector<96x32xf32>, vector<128x32xf32> -> vector<128x32xf32>
    %c11_231 = arith.constant 11 : index
    %c0_232 = arith.constant 0 : index
    %c0_233 = arith.constant 0 : index
    %190 = vector.load %arg3[%c11_231, %c0_232, %c0_233] : memref<14x1x32xf32, #tpu.memory_space<vmem>>, vector<1x1x32xf32>
    %191 = vector.shape_cast %190 : vector<1x1x32xf32> to vector<1x32xf32>
    %192 = vector.broadcast %191 : vector<1x32xf32> to vector<128x32xf32>
    %193 = arith.addf %189, %192 : vector<128x32xf32>
    %cst_234 = arith.constant 0.000000e+00 : f32
    %194 = vector.broadcast %cst_234 : f32 to vector<128x32xf32>
    %195 = arith.maximumf %193, %194 : vector<128x32xf32>
    %196 = vector.shape_cast %195 : vector<128x32xf32> to vector<2x64x32xf32>
    %c0_235 = arith.constant 0 : index
    %c8_236 = arith.constant 8 : index
    %c0_237 = arith.constant 0 : index
    %197 = vector.load %arg5[%c0_235, %c8_236, %c0_237] : memref<2x80x32xf32, #tpu.memory_space<vmem>>, vector<2x64x32xf32>
    tpu.vector_store %arg5[%c0_235, %c8_236, %c0_237], %196 {strides = array<i32>} : memref<2x80x32xf32, #tpu.memory_space<vmem>>, vector<2x64x32xf32>,
    %c0_238 = arith.constant 0 : index
    %c6_239 = arith.constant 6 : index
    %c0_240 = arith.constant 0 : index
    %198 = vector.load %arg5[%c0_238, %c6_239, %c0_240] : memref<2x80x32xf32, #tpu.memory_space<vmem>>, vector<2x64x32xf32>
    %c0_241 = arith.constant 0 : index
    %c8_242 = arith.constant 8 : index
    %c0_243 = arith.constant 0 : index
    %199 = vector.load %arg5[%c0_241, %c8_242, %c0_243] : memref<2x80x32xf32, #tpu.memory_space<vmem>>, vector<2x64x32xf32>
    %c0_244 = arith.constant 0 : index
    %c10_245 = arith.constant 10 : index
    %c0_246 = arith.constant 0 : index
    %200 = vector.load %arg5[%c0_244, %c10_245, %c0_246] : memref<2x80x32xf32, #tpu.memory_space<vmem>>, vector<2x64x32xf32>
    %201 = tpu.concatenate %198, %199, %200 in 2 : vector<2x64x32xf32>, vector<2x64x32xf32>, vector<2x64x32xf32> -> vector<2x64x96xf32>
    %202 = vector.shape_cast %201 : vector<2x64x96xf32> to vector<128x96xf32>
    %c12_247 = arith.constant 12 : index
    %c0_248 = arith.constant 0 : index
    %c0_249 = arith.constant 0 : index
    %203 = vector.load %arg2[%c12_247, %c0_248, %c0_249] : memref<14x96x32xf32, #tpu.memory_space<vmem>>, vector<1x96x32xf32>
    %204 = vector.shape_cast %203 : vector<1x96x32xf32> to vector<96x32xf32>
    %cst_250 = arith.constant dense<0.000000e+00> : vector<128x32xf32>
    %205 = tpu.matmul %202, %204, %cst_250 {dimension_numbers = #tpu.dot_dimension_numbers<[1], [0], [0], [1], [0, 0, 1, 1], [], []>} : vector<128x96xf32>, vector<96x32xf32>, vector<128x32xf32> -> vector<128x32xf32>
    %c12_251 = arith.constant 12 : index
    %c0_252 = arith.constant 0 : index
    %c0_253 = arith.constant 0 : index
    %206 = vector.load %arg3[%c12_251, %c0_252, %c0_253] : memref<14x1x32xf32, #tpu.memory_space<vmem>>, vector<1x1x32xf32>
    %207 = vector.shape_cast %206 : vector<1x1x32xf32> to vector<1x32xf32>
    %208 = vector.broadcast %207 : vector<1x32xf32> to vector<128x32xf32>
    %209 = arith.addf %205, %208 : vector<128x32xf32>
    %cst_254 = arith.constant 0.000000e+00 : f32
    %210 = vector.broadcast %cst_254 : f32 to vector<128x32xf32>
    %211 = arith.maximumf %209, %210 : vector<128x32xf32>
    %212 = vector.shape_cast %211 : vector<128x32xf32> to vector<2x64x32xf32>
    %c0_255 = arith.constant 0 : index
    %c8_256 = arith.constant 8 : index
    %c0_257 = arith.constant 0 : index
    %213 = vector.load %arg5[%c0_255, %c8_256, %c0_257] : memref<2x80x32xf32, #tpu.memory_space<vmem>>, vector<2x64x32xf32>
    tpu.vector_store %arg5[%c0_255, %c8_256, %c0_257], %212 {strides = array<i32>} : memref<2x80x32xf32, #tpu.memory_space<vmem>>, vector<2x64x32xf32>,
    %c0_258 = arith.constant 0 : index
    %c7_259 = arith.constant 7 : index
    %c0_260 = arith.constant 0 : index
    %214 = vector.load %arg5[%c0_258, %c7_259, %c0_260] : memref<2x80x32xf32, #tpu.memory_space<vmem>>, vector<2x64x32xf32>
    %c0_261 = arith.constant 0 : index
    %c8_262 = arith.constant 8 : index
    %c0_263 = arith.constant 0 : index
    %215 = vector.load %arg5[%c0_261, %c8_262, %c0_263] : memref<2x80x32xf32, #tpu.memory_space<vmem>>, vector<2x64x32xf32>
    %c0_264 = arith.constant 0 : index
    %c9_265 = arith.constant 9 : index
    %c0_266 = arith.constant 0 : index
    %216 = vector.load %arg5[%c0_264, %c9_265, %c0_266] : memref<2x80x32xf32, #tpu.memory_space<vmem>>, vector<2x64x32xf32>
    %217 = tpu.concatenate %214, %215, %216 in 2 : vector<2x64x32xf32>, vector<2x64x32xf32>, vector<2x64x32xf32> -> vector<2x64x96xf32>
    %218 = vector.shape_cast %217 : vector<2x64x96xf32> to vector<128x96xf32>
    %c13 = arith.constant 13 : index
    %c0_267 = arith.constant 0 : index
    %c0_268 = arith.constant 0 : index
    %219 = vector.load %arg2[%c13, %c0_267, %c0_268] : memref<14x96x32xf32, #tpu.memory_space<vmem>>, vector<1x96x32xf32>
    %220 = vector.shape_cast %219 : vector<1x96x32xf32> to vector<96x32xf32>
    %cst_269 = arith.constant dense<0.000000e+00> : vector<128x32xf32>
    %221 = tpu.matmul %218, %220, %cst_269 {dimension_numbers = #tpu.dot_dimension_numbers<[1], [0], [0], [1], [0, 0, 1, 1], [], []>} : vector<128x96xf32>, vector<96x32xf32>, vector<128x32xf32> -> vector<128x32xf32>
    %c13_270 = arith.constant 13 : index
    %c0_271 = arith.constant 0 : index
    %c0_272 = arith.constant 0 : index
    %222 = vector.load %arg3[%c13_270, %c0_271, %c0_272] : memref<14x1x32xf32, #tpu.memory_space<vmem>>, vector<1x1x32xf32>
    %223 = vector.shape_cast %222 : vector<1x1x32xf32> to vector<1x32xf32>
    %224 = vector.broadcast %223 : vector<1x32xf32> to vector<128x32xf32>
    %225 = arith.addf %221, %224 : vector<128x32xf32>
    %cst_273 = arith.constant 0.000000e+00 : f32
    %226 = vector.broadcast %cst_273 : f32 to vector<128x32xf32>
    %227 = arith.maximumf %225, %226 : vector<128x32xf32>
    %228 = vector.shape_cast %227 : vector<128x32xf32> to vector<2x64x32xf32>
    %c0_274 = arith.constant 0 : index
    %c8_275 = arith.constant 8 : index
    %c0_276 = arith.constant 0 : index
    %229 = vector.load %arg5[%c0_274, %c8_275, %c0_276] : memref<2x80x32xf32, #tpu.memory_space<vmem>>, vector<2x64x32xf32>
    tpu.vector_store %arg5[%c0_274, %c8_275, %c0_276], %228 {strides = array<i32>} : memref<2x80x32xf32, #tpu.memory_space<vmem>>, vector<2x64x32xf32>,
    %230 = arith.addf %116, %228 : vector<2x64x32xf32>
    %c0_277 = arith.constant 0 : index
    %c0_278 = arith.constant 0 : index
    %c0_279 = arith.constant 0 : index
    %231 = vector.load %arg4[%c0_277, %c0_278, %c0_279] : memref<2x64x32xf32, #tpu.memory_space<vmem>>, vector<2x64x32xf32>
    tpu.vector_store %arg4[%c0_277, %c0_278, %c0_279], %230 {strides = array<i32>} : memref<2x64x32xf32, #tpu.memory_space<vmem>>, vector<2x64x32xf32>,
    return
  }
  func.func @transform_0(%arg0: i32) -> (i32, i32, i32) {
    %c0_i32 = arith.constant 0 : i32
    %c0_i32_0 = arith.constant 0 : i32
    %c0_i32_1 = arith.constant 0 : i32
    %c0_i32_2 = arith.constant 0 : i32
    return %c0_i32, %c0_i32_0, %c0_i32_1 : i32, i32, i32
  }
  func.func @transform_1(%arg0: i32) -> (i32, i32, i32) {
    %c0_i32 = arith.constant 0 : i32
    %c0_i32_0 = arith.constant 0 : i32
    %c0_i32_1 = arith.constant 0 : i32
    %c0_i32_2 = arith.constant 0 : i32
    return %c0_i32, %c0_i32_0, %c0_i32_1 : i32, i32, i32
  }
  func.func @transform_2(%arg0: i32) -> (i32, i32, i32) {
    %c0_i32 = arith.constant 0 : i32
    %c0_i32_0 = arith.constant 0 : i32
    %c0_i32_1 = arith.constant 0 : i32
    %c0_i32_2 = arith.constant 0 : i32
    return %c0_i32, %c0_i32_0, %c0_i32_1 : i32, i32, i32
  }
  func.func @transform_3(%arg0: i32) -> (i32, i32, i32) {
    %c0_i32 = arith.constant 0 : i32
    %c0_i32_0 = arith.constant 0 : i32
    %c0_i32_1 = arith.constant 0 : i32
    %c0_i32_2 = arith.constant 0 : i32
    return %c0_i32, %c0_i32_0, %c0_i32_1 : i32, i32, i32
  }
}

</mosaic_0001>

<bundles_post_ra>
// kernel: tpu_custom_call.1
= control target key start
LH: loop header
LB: loop body
LE: loop exit
PB: predicated region body
PF: predicated region fallthrough
CT: control target
= control target key end

     0   :  { %vm14_vm0 = vcmask 261120   ;;  %v7825_v0 = vmov 0.0   ;;  %s7827_s23 = smov 32   ;;  %vm259_vm1 = vcmask 523264   ;;  %vm295_vm2 = vcmask 785408   ;;  %s10642_s0 = inlined_call_operand.vmem [shape: f32[2,64,32], index: 0, kind: input, shape index: {}]   ;;  %s10643_s1 = inlined_call_operand.vmem [shape: f32[14,96,32], index: 1, kind: input, shape index: {}]   ;;  %s10644_s2 = inlined_call_operand.vmem [shape: f32[14,1,32], index: 2, kind: input, shape index: {}]   ;;  %s10645_s3 = inlined_call_operand.vmem [shape: f32[2,64,32], index: 3, kind: output, shape index: {}]  }
   0x1   :  { %16 = vst.msk [vmem:[#allocation2 + $0x8] sm:$0xff] %vm14_vm0, %v7825_v0  ;;  %17 = vst.msk [vmem:[#allocation2 + $0x10] sm:$0xff] %vm14_vm0, %v7825_v0  ;;  %v7853_v1 = vld [vmem:[%s10642_s0] sm:$0xff]  ;;  %v7858_v2 = vld [vmem:[%s10642_s0 + $0x8] sm:$0xff] }
   0x2   :  { %15 = vst.msk [vmem:[#allocation2] sm:$0xff] %vm14_vm0, %v7825_v0  ;;  %18 = vst.msk [vmem:[#allocation2 + $0x18] sm:$0xff] %vm14_vm0, %v7825_v0  ;;  %v7881_v3 = vld [vmem:[%s10642_s0 + $0x10] sm:$0xff]  ;;  %v7892_v4 = vld [vmem:[%s10642_s0 + $0x18] sm:$0xff] }
   0x3   :  { %19 = vst.msk [vmem:[#allocation2 + $0x20] sm:$0xff] %vm14_vm0, %v7825_v0  ;;  %20 = vst.msk [vmem:[#allocation2 + $0x28] sm:$0xff] %vm14_vm0, %v7825_v0  ;;  %v7897_v5 = vld [vmem:[%s10642_s0 + $0x20] sm:$0xff]  ;;  %v7902_v6 = vld [vmem:[%s10642_s0 + $0x28] sm:$0xff] }
   0x4   :  { %21 = vst.msk [vmem:[#allocation2 + $0x30] sm:$0xff] %vm14_vm0, %v7825_v0  ;;  %22 = vst.msk [vmem:[#allocation2 + $0x38] sm:$0xff] %vm14_vm0, %v7825_v0  ;;  %v7911_v7 = vld [vmem:[%s10642_s0 + $0x30] sm:$0xff]  ;;  %v7918_v8 = vld [vmem:[%s10642_s0 + $0x38] sm:$0xff] }
   0x5   :  { %23 = vst.msk [vmem:[#allocation2 + $0x40] sm:$0xff] %vm14_vm0, %v7825_v0  ;;  %24 = vst.msk [vmem:[#allocation2 + $0x48] sm:$0xff] %vm14_vm0, %v7825_v0  ;;  %v7923_v9 = vld [vmem:[%s10642_s0 + $0x40] sm:$0xff]  ;;  %v7934_v10 = vld [vmem:[%s10642_s0 + $0x48] sm:$0xff] }
   0x6   :  { %25 = vst.msk [vmem:[#allocation2 + $0x50] sm:$0xff] %vm14_vm0, %v7825_v0  ;;  %26 = vst.msk [vmem:[#allocation2 + $0x58] sm:$0xff] %vm14_vm0, %v7825_v0  ;;  %v7939_v11 = vld [vmem:[%s10642_s0 + $0x50] sm:$0xff]  ;;  %v7944_v12 = vld [vmem:[%s10642_s0 + $0x58] sm:$0xff] }
   0x7   :  { %27 = vst.msk [vmem:[#allocation2 + $0x60] sm:$0xff] %vm14_vm0, %v7825_v0  ;;  %28 = vst.msk [vmem:[#allocation2 + $0x68] sm:$0xff] %vm14_vm0, %v7825_v0  ;;  %v7953_v13 = vld [vmem:[%s10642_s0 + $0x60] sm:$0xff]  ;;  %v7960_v14 = vld [vmem:[%s10642_s0 + $0x68] sm:$0xff] }
   0x8   :  { %29 = vst.msk [vmem:[#allocation2 + $0x70] sm:$0xff] %vm14_vm0, %v7825_v0  ;;  %30 = vst.msk [vmem:[#allocation2 + $0x78] sm:$0xff] %vm14_vm0, %v7825_v0  ;;  %v7965_v15 = vld [vmem:[%s10642_s0 + $0x70] sm:$0xff]  ;;  %v7976_v16 = vld [vmem:[%s10642_s0 + $0x78] sm:$0xff]  ;;  %s7826_s0 = smov 64  }
   0x9   :  { %31 = vst.msk [vmem:[#allocation2 + $0x80] sm:$0xff] %vm14_vm0, %v7825_v0  ;;  %32 = vst.msk [vmem:[#allocation2 + $0x88] sm:$0xff] %vm14_vm0, %v7825_v0  ;;  %v287_v17 = vld [vmem:[%s10643_s1 + $0x58] sm:$0xff]  ;;  %v286_v18 = vld [vmem:[%s10643_s1 + $0x50] sm:$0xff] }
   0xa   :  { %33 = vst.msk [vmem:[#allocation2 + $0x90] sm:$0xff] %vm14_vm0, %v7825_v0  ;;  %34 = vst.msk [vmem:[#allocation2 + $0x98] sm:$0xff] %vm14_vm0, %v7825_v0  ;;  %7150 = vmatprep.subr.mxu0 %v287_v17  ;;  %v285_v21 = vld [vmem:[%s10643_s1 + $0x48] sm:$0xff]  ;;  %v284_v24 = vld [vmem:[%s10643_s1 + $0x40] sm:$0xff] }
   0xb   :  { %51 = vst.msk [vmem:[#allocation2 + $0x8] sm:$0xff] %vm14_vm0, %v7853_v1  ;;  %52 = vst.msk [vmem:[#allocation2 + $0x10] sm:$0xff] %vm14_vm0, %v7858_v2  ;;  %7151 = vmatpush3.msra.mxu0 %v287_v17  ;;  %v283_v25 = vld [vmem:[%s10643_s1 + $0x38] sm:$0xff]  ;;  %v282_v28 = vld [vmem:[%s10643_s1 + $0x30] sm:$0xff] }
   0xc   :  { %53 = vst.msk [vmem:[#allocation2 + $0x18] sm:$0xff] %vm14_vm0, %v7881_v3  ;;  %54 = vst.msk [vmem:[#allocation2 + $0x20] sm:$0xff] %vm14_vm0, %v7892_v4  ;;  %7152 = vmatprep.subr.mxu0 %v286_v18  ;;  %v281_v31 = vld [vmem:[%s10643_s1 + $0x28] sm:$0xff]  ;;  %v280_v32 = vld [vmem:[%s10643_s1 + $0x20] sm:$0xff] }
   0xd   :  { %55 = vst.msk [vmem:[#allocation2 + $0x28] sm:$0xff] %vm14_vm0, %v7897_v5  ;;  %56 = vst.msk [vmem:[#allocation2 + $0x30] sm:$0xff] %vm14_vm0, %v7902_v6  ;;  %7153 = vmatpush3.msra.mxu0 %v286_v18  ;;  %v279_v35 = vld [vmem:[%s10643_s1 + $0x18] sm:$0xff]  ;;  %v278_v38 = vld [vmem:[%s10643_s1 + $0x10] sm:$0xff] }
   0xe   :  { %57 = vst.msk [vmem:[#allocation2 + $0x38] sm:$0xff] %vm14_vm0, %v7911_v7  ;;  %58 = vst.msk [vmem:[#allocation2 + $0x40] sm:$0xff] %vm14_vm0, %v7918_v8  ;;  %7154 = vmatprep.subr.mxu0 %v285_v21  ;;  %v277_v39 = vld [vmem:[%s10643_s1 + $0x8] sm:$0xff]  ;;  %v276_v42 = vld [vmem:[%s10643_s1] sm:$0xff] }
   0xf   :  { %59 = vst.msk [vmem:[#allocation2 + $0x58] sm:$0xff] %vm14_vm0, %v7923_v9  ;;  %60 = vst.msk [vmem:[#allocation2 + $0x60] sm:$0xff] %vm14_vm0, %v7934_v10  ;;  %7155 = vmatpush3.msra.mxu0 %v285_v21 }
  0x10   :  { %61 = vst.msk [vmem:[#allocation2 + $0x68] sm:$0xff] %vm14_vm0, %v7939_v11  ;;  %62 = vst.msk [vmem:[#allocation2 + $0x70] sm:$0xff] %vm14_vm0, %v7944_v12  ;;  %7156 = vmatprep.subr.mxu0 %v284_v24 }
  0x11   :  { %63 = vst.msk [vmem:[#allocation2 + $0x78] sm:$0xff] %vm14_vm0, %v7953_v13  ;;  %64 = vst.msk [vmem:[#allocation2 + $0x80] sm:$0xff] %vm14_vm0, %v7960_v14  ;;  %7157 = vmatpush3.msra.mxu0 %v284_v24 }
  0x12   :  { %65 = vst.msk [vmem:[#allocation2 + $0x88] sm:$0xff] %vm14_vm0, %v7965_v15  ;;  %66 = vst.msk [vmem:[#allocation2 + $0x90] sm:$0xff] %vm14_vm0, %v7976_v16  ;;  %v99_v19 = vld [vmem:[#allocation2 + $0x9] sm:$0xff]  ;;  %7158 = vmatprep.subr.mxu0 %v283_v25 }
  0x13   :  { %v83_v20 = vld [vmem:[#allocation2 + $0x8] sm:$0xff]  ;;  %195 = vrot.lane.b32.xlu1 %v99_v19, %s7826_s0  ;;  %v100_v22 = vld [vmem:[#allocation2 + $0x11] sm:$0xff]  ;;  %v86_v26 = vld [vmem:[#allocation2 + $0x20] sm:$0xff]  ;;  %7159 = vmatpush3.msra.mxu0 %v283_v25 }
  0x14   :  { %131 = vrot.lane.b32.xlu0 %v83_v20, %s7827_s23  ;;  %v84_v23 = vld [vmem:[#allocation2 + $0x10] sm:$0xff]  ;;  %v85_v27 = vld [vmem:[#allocation2 + $0x18] sm:$0xff]  ;;  %v102_v30 = vld [vmem:[#allocation2 + $0x21] sm:$0xff]  ;;  %7160 = vmatprep.subr.mxu0 %v282_v28 }
  0x15   :  { %v101_v29 = vld [vmem:[#allocation2 + $0x19] sm:$0xff]  ;;  %7161 = vmatpush3.msra.mxu0 %v282_v28  ;;  %v88_v33 = vld [vmem:[#allocation2 + $0x30] sm:$0xff]  ;;  %v87_v34 = vld [vmem:[#allocation2 + $0x28] sm:$0xff] }
  0x16   :  { %7162 = vmatprep.subr.mxu0 %v281_v31  ;;  %v103_v36 = vld [vmem:[#allocation2 + $0x29] sm:$0xff]  ;;  %v104_v37 = vld [vmem:[#allocation2 + $0x31] sm:$0xff]  ;;  %v90_v40 = vld [vmem:[#allocation2 + $0x40] sm:$0xff] }
  0x17   :  { %197 = vrot.lane.b32.xlu1 %v100_v22, %s7826_s0  ;;  %7163 = vmatpush3.msra.mxu0 %v281_v31  ;;  %v89_v41 = vld [vmem:[#allocation2 + $0x38] sm:$0xff]  ;;  %v106_v44 = vld [vmem:[#allocation2 + $0x41] sm:$0xff]  ;;  %v94_v50 = vld [vmem:[#allocation2 + $0x70] sm:$0xff] }
  0x18   :  { %133 = vrot.lane.b32.xlu0 %v84_v23, %s7827_s23  ;;  %7164 = vmatprep.subr.mxu0 %v280_v32  ;;  %v105_v43 = vld [vmem:[#allocation2 + $0x39] sm:$0xff]  ;;  %v108_v48 = vld [vmem:[#allocation2 + $0x61] sm:$0xff]  ;;  %v109_v51 = vld [vmem:[#allocation2 + $0x69] sm:$0xff] }
  0x19   :  { %7165 = vmatpush3.msra.mxu0 %v280_v32  ;;  %v91_v45 = vld [vmem:[#allocation2 + $0x58] sm:$0xff]  ;;  %v92_v46 = vld [vmem:[#allocation2 + $0x60] sm:$0xff]  ;;  %v93_v49 = vld [vmem:[#allocation2 + $0x68] sm:$0xff] }
  0x1a   :  { %7166 = vmatprep.subr.mxu0 %v279_v35  ;;  %v107_v47 = vld [vmem:[#allocation2 + $0x59] sm:$0xff]  ;;  %v110_v52 = vld [vmem:[#allocation2 + $0x71] sm:$0xff]  ;;  %v112_v56 = vld [vmem:[#allocation2 + $0x81] sm:$0xff] }
  0x1b   :  { %137 = vrot.lane.b32.xlu1 %v86_v26, %s7827_s23  ;;  %7167 = vmatpush3.msra.mxu0 %v279_v35  ;;  %v95_v53 = vld [vmem:[#allocation2 + $0x78] sm:$0xff]  ;;  %v96_v54 = vld [vmem:[#allocation2 + $0x80] sm:$0xff]  ;;  %v97_v57 = vld [vmem:[#allocation2 + $0x88] sm:$0xff] }
  0x1c   :  { %135 = vrot.lane.b32.xlu0 %v85_v27, %s7827_s23  ;;  %7168 = vmatprep.subr.mxu0 %v278_v38  ;;  %v111_v55 = vld [vmem:[#allocation2 + $0x79] sm:$0xff]  ;;  %v98_v58 = vld [vmem:[#allocation2 + $0x90] sm:$0xff]  ;;  %v67_v61 = vld [vmem:[#allocation2 + $0x7] sm:$0xff] }
  0x1d   :  { %7169 = vmatpush3.msra.mxu0 %v278_v38  ;;  %v113_v59 = vld [vmem:[#allocation2 + $0x89] sm:$0xff]  ;;  %v114_v60 = vld [vmem:[#allocation2 + $0x91] sm:$0xff]  ;;  %v70_v25 = vld [vmem:[#allocation2 + $0x1f] sm:$0xff] }
  0x1e   :  { %7170 = vmatprep.subr.mxu0 %v277_v39  ;;  %v68_v18 = vld [vmem:[#allocation2 + $0xf] sm:$0xff]  ;;  %v69_v26 = vld [vmem:[#allocation2 + $0x17] sm:$0xff]  ;;  %v71_v35 = vld [vmem:[#allocation2 + $0x27] sm:$0xff] }
  0x1f   :  { %201 = vrot.lane.b32.xlu1 %v102_v30, %s7826_s0  ;;  %7171 = vmatpush3.msra.mxu0 %v277_v39 }
  0x20   :  { %199 = vrot.lane.b32.xlu0 %v101_v29, %s7826_s0  ;;  %7172 = vmatprep.subr.mxu0 %v276_v42 }
  0x21   :  { %7173 = vmatpush3.msra.mxu0 %v276_v42 }
  0x23   :  { %141 = vrot.lane.b32.xlu1 %v88_v33, %s7827_s23 }
  0x24   :  { %139 = vrot.lane.b32.xlu0 %v87_v34, %s7827_s23 }
  0x27   :  { %205 = vrot.lane.b32.xlu1 %v104_v37, %s7826_s0 }
  0x28   :  { %203 = vrot.lane.b32.xlu0 %v103_v36, %s7826_s0  ;;  %v72_v36 = vld [vmem:[#allocation2 + $0x2f] sm:$0xff] }
  0x2b   :  { %145 = vrot.lane.b32.xlu1 %v90_v40, %s7827_s23 }
  0x2c   :  { %143 = vrot.lane.b32.xlu0 %v89_v41, %s7827_s23 }
  0x2f   :  { %209 = vrot.lane.b32.xlu1 %v106_v44, %s7826_s0 }
  0x30   :  { %207 = vrot.lane.b32.xlu0 %v105_v43, %s7826_s0 }
  0x33   :  { %149 = vrot.lane.b32.xlu1 %v92_v46, %s7827_s23  ;;  %v74_v46 = vld [vmem:[#allocation2 + $0x3f] sm:$0xff] }
  0x34   :  { %147 = vrot.lane.b32.xlu0 %v91_v45, %s7827_s23  ;;  %v73_v45 = vld [vmem:[#allocation2 + $0x37] sm:$0xff] }
  0x37   :  { %213 = vrot.lane.b32.xlu1 %v108_v48, %s7826_s0 }
  0x38   :  { %211 = vrot.lane.b32.xlu0 %v107_v47, %s7826_s0 }
  0x3b   :  { %153 = vrot.lane.b32.xlu1 %v94_v50, %s7827_s23 }
  0x3c   :  { %151 = vrot.lane.b32.xlu0 %v93_v49, %s7827_s23 }
  0x3f   :  { %217 = vrot.lane.b32.xlu1 %v110_v52, %s7826_s0 }
  0x40   :  { %215 = vrot.lane.b32.xlu0 %v109_v51, %s7826_s0 }
  0x43   :  { %157 = vrot.lane.b32.xlu1 %v96_v54, %s7827_s23  ;;  %v75_v54 = vld [vmem:[#allocation2 + $0x57] sm:$0xff] }
  0x44   :  { %155 = vrot.lane.b32.xlu0 %v95_v53, %s7827_s23  ;;  %v76_v53 = vld [vmem:[#allocation2 + $0x5f] sm:$0xff] }
  0x47   :  { %221 = vrot.lane.b32.xlu1 %v112_v56, %s7826_s0 }
  0x48   :  { %219 = vrot.lane.b32.xlu0 %v111_v55, %s7826_s0 }
  0x4b   :  { %161 = vrot.lane.b32.xlu1 %v98_v58, %s7827_s23 }
  0x4c   :  { %159 = vrot.lane.b32.xlu0 %v97_v57, %s7827_s23 }
  0x4f   :  { %225 = vrot.lane.b32.xlu1 %v114_v60, %s7826_s0 }
  0x50   :  { %223 = vrot.lane.b32.xlu0 %v113_v59, %s7826_s0 }
  0x85   :  { %v196_v62 = vpop.permute.xlu1 %195 }
  0x86   :  { %v132_v63 = vpop.permute.xlu0 %131 }
  0x87   :  { %v243_v0 = vsel %vm14_vm0, %v67_v61, %v132_v63  ;;  %v77_v63 = vld [vmem:[#allocation2 + $0x67] sm:$0xff] }
  0x88   :  { %v260_v17 = vsel %vm259_vm1, %v243_v0, %v196_v62  ;;  %v78_v0 = vld [vmem:[#allocation2 + $0x6f] sm:$0xff] }
  0x89   :  { %7174 = vmatprep.mubr.msk.f32.mxu0 %vm295_vm2, %v260_v17  ;;  %v198_v19 = vpop.permute.xlu1 %197 }
  0x8a   :  { %v134_v20 = vpop.permute.xlu0 %133 }
  0x8b   :  { %v244_v21 = vsel %vm14_vm0, %v68_v18, %v134_v20 }
  0x8c   :  { %v261_v22 = vsel %vm259_vm1, %v244_v21, %v198_v19 }
  0x8d   :  { %7175 = vmatmul.mubr.msk.f32.vlgmr.msra.gmra.mxu0 %vm295_vm2, %v261_v22  ;;  %v138_v23 = vpop.permute.xlu1 %137 }
  0x8e   :  { %v136_v24 = vpop.permute.xlu0 %135  ;;  %v246_v27 = vsel %vm14_vm0, %v70_v25, %v138_v23  ;;  %v79_v25 = vld [vmem:[#allocation2 + $0x77] sm:$0xff] }
  0x8f   :  { %v245_v28 = vsel %vm14_vm0, %v69_v26, %v136_v24  ;;  %v80_v26 = vld [vmem:[#allocation2 + $0x7f] sm:$0xff] }
  0x91   :  { %v202_v29 = vpop.permute.xlu1 %201 }
  0x92   :  { %v200_v30 = vpop.permute.xlu0 %199  ;;  %v263_v31 = vsel %vm259_vm1, %v246_v27, %v202_v29 }
  0x93   :  { %v262_v32 = vsel %vm259_vm1, %v245_v28, %v200_v30 }
  0x94   :  { %7177 = vmatprep.mubr.msk.f32.mxu0 %vm295_vm2, %v262_v32 }
  0x95   :  { %7178 = vmatmul.mubr.msk.f32.gmra.mxu0 %vm295_vm2, %v263_v31  ;;  %v142_v33 = vpop.permute.xlu1 %141 }
  0x96   :  { %v140_v34 = vpop.permute.xlu0 %139  ;;  %v248_v37 = vsel %vm14_vm0, %v72_v36, %v142_v33  ;;  %v82_v36 = vld [vmem:[#allocation2 + $0x8f] sm:$0xff] }
  0x97   :  { %v247_v38 = vsel %vm14_vm0, %v71_v35, %v140_v34  ;;  %v81_v35 = vld [vmem:[#allocation2 + $0x87] sm:$0xff] }
  0x99   :  { %v206_v39 = vpop.permute.xlu1 %205 }
  0x9a   :  { %v204_v40 = vpop.permute.xlu0 %203  ;;  %v265_v41 = vsel %vm259_vm1, %v248_v37, %v206_v39 }
  0x9b   :  { %v264_v42 = vsel %vm259_vm1, %v247_v38, %v204_v40 }
  0x9c   :  { %7180 = vmatprep.mubr.msk.f32.mxu0 %vm295_vm2, %v264_v42 }
  0x9d   :  { %7181 = vmatmul.mubr.msk.f32.gmra.mxu0 %vm295_vm2, %v265_v41  ;;  %v146_v43 = vpop.permute.xlu1 %145 }
  0x9e   :  { %v144_v44 = vpop.permute.xlu0 %143  ;;  %v250_v47 = vsel %vm14_vm0, %v74_v46, %v146_v43  ;;  %v6378_v46 = vld [vmem:[%s10643_s1 + $0xb0] sm:$0xff] }
  0x9f   :  { %v249_v48 = vsel %vm14_vm0, %v73_v45, %v144_v44  ;;  %v6379_v45 = vld [vmem:[%s10643_s1 + $0xb8] sm:$0xff] }
  0xa0   :  { %7198 = vmatprep.subr.mxu1 %v6379_v45 }
  0xa1   :  { %v210_v49 = vpop.permute.xlu1 %209  ;;  %7199 = vmatpush3.msra.mxu1 %v6379_v45 }
  0xa2   :  { %v208_v50 = vpop.permute.xlu0 %207  ;;  %v267_v51 = vsel %vm259_vm1, %v250_v47, %v210_v49  ;;  %v6377_v47 = vld [vmem:[%s10643_s1 + $0xa8] sm:$0xff]  ;;  %7200 = vmatprep.subr.mxu1 %v6378_v46  ;;  %v6375_v49 = vld [vmem:[%s10643_s1 + $0x98] sm:$0xff] }
  0xa3   :  { %v266_v52 = vsel %vm259_vm1, %v249_v48, %v208_v50  ;;  %7201 = vmatpush3.msra.mxu1 %v6378_v46  ;;  %v6376_v48 = vld [vmem:[%s10643_s1 + $0xa0] sm:$0xff]  ;;  %v6374_v50 = vld [vmem:[%s10643_s1 + $0x90] sm:$0xff] }
  0xa4   :  { %7183 = vmatprep.mubr.msk.f32.mxu0 %vm295_vm2, %v266_v52  ;;  %7202 = vmatprep.subr.mxu1 %v6377_v47 }
  0xa5   :  { %7184 = vmatmul.mubr.msk.f32.gmra.mxu0 %vm295_vm2, %v267_v51  ;;  %v150_v56 = vpop.permute.xlu1 %149  ;;  %7203 = vmatpush3.msra.mxu1 %v6377_v47  ;;  %v8117_v51 = vld [vmem:[%s10644_s2] ss:$0 sm:$0xff] }
  0xa6   :  { %v148_v55 = vpop.permute.xlu0 %147  ;;  %v252_v58 = vsel %vm14_vm0, %v76_v53, %v150_v56  ;;  %7204 = vmatprep.subr.mxu1 %v6376_v48  ;;  %v6373_v53 = vld [vmem:[%s10643_s1 + $0x88] sm:$0xff] }
  0xa7   :  { %v251_v57 = vsel %vm14_vm0, %v75_v54, %v148_v55  ;;  %7205 = vmatpush3.msra.mxu1 %v6376_v48 }
  0xa8   :  { %7206 = vmatprep.subr.mxu1 %v6375_v49 }
  0xa9   :  { %v214_v60 = vpop.permute.xlu1 %213  ;;  %7207 = vmatpush3.msra.mxu1 %v6375_v49 }
  0xaa   :  { %v212_v59 = vpop.permute.xlu0 %211  ;;  %v269_v62 = vsel %vm259_vm1, %v252_v58, %v214_v60  ;;  %7208 = vmatprep.subr.mxu1 %v6374_v50  ;;  %v6372_v58 = vld [vmem:[%s10643_s1 + $0x80] sm:$0xff] }
  0xab   :  { %v268_v61 = vsel %vm259_vm1, %v251_v57, %v212_v59  ;;  %7209 = vmatpush3.msra.mxu1 %v6374_v50  ;;  %v6371_v59 = vld [vmem:[%s10643_s1 + $0x78] sm:$0xff] }
  0xac   :  { %7186 = vmatprep.mubr.msk.f32.mxu0 %vm295_vm2, %v268_v61  ;;  %7210 = vmatprep.subr.mxu1 %v6373_v53  ;;  %v6370_v61 = vld [vmem:[%s10643_s1 + $0x70] sm:$0xff] }
  0xad   :  { %7187 = vmatmul.mubr.msk.f32.gmra.mxu0 %vm295_vm2, %v269_v62  ;;  %v154_v18 = vpop.permute.xlu1 %153  ;;  %7211 = vmatpush3.msra.mxu1 %v6373_v53 }
  0xae   :  { %v152_v17 = vpop.permute.xlu0 %151  ;;  %v254_v20 = vsel %vm14_vm0, %v78_v0, %v154_v18  ;;  %7212 = vmatprep.subr.mxu1 %v6372_v58 }
  0xaf   :  { %v253_v19 = vsel %vm14_vm0, %v77_v63, %v152_v17  ;;  %7213 = vmatpush3.msra.mxu1 %v6372_v58  ;;  %v6369_v63 = vld [vmem:[%s10643_s1 + $0x68] sm:$0xff] }
  0xb0   :  { %7214 = vmatprep.subr.mxu1 %v6371_v59 }
  0xb1   :  { %v218_v22 = vpop.permute.xlu1 %217  ;;  %7215 = vmatpush3.msra.mxu1 %v6371_v59 }
  0xb2   :  { %v216_v21 = vpop.permute.xlu0 %215  ;;  %v271_v24 = vsel %vm259_vm1, %v254_v20, %v218_v22  ;;  %7216 = vmatprep.subr.mxu1 %v6370_v61  ;;  %v6368_v20 = vld [vmem:[%s10643_s1 + $0x60] sm:$0xff] }
  0xb3   :  { %v270_v23 = vsel %vm259_vm1, %v253_v19, %v216_v21  ;;  %7217 = vmatpush3.msra.mxu1 %v6370_v61 }
  0xb4   :  { %7189 = vmatprep.mubr.msk.f32.mxu0 %vm295_vm2, %v270_v23  ;;  %7218 = vmatprep.subr.mxu1 %v6369_v63 }
  0xb5   :  { %7190 = vmatmul.mubr.msk.f32.gmra.mxu0 %vm295_vm2, %v271_v24  ;;  %v158_v28 = vpop.permute.xlu1 %157  ;;  %7219 = vmatpush3.msra.mxu1 %v6369_v63 }
  0xb6   :  { %v156_v27 = vpop.permute.xlu0 %155  ;;  %v256_v30 = vsel %vm14_vm0, %v80_v26, %v158_v28  ;;  %7220 = vmatprep.subr.mxu1 %v6368_v20 }
  0xb7   :  { %v255_v29 = vsel %vm14_vm0, %v79_v25, %v156_v27  ;;  %7221 = vmatpush3.msra.mxu1 %v6368_v20 }
  0xb9   :  { %v222_v32 = vpop.permute.xlu1 %221 }
  0xba   :  { %v220_v31 = vpop.permute.xlu0 %219  ;;  %v273_v34 = vsel %vm259_vm1, %v256_v30, %v222_v32 }
  0xbb   :  { %v272_v33 = vsel %vm259_vm1, %v255_v29, %v220_v31 }
  0xbc   :  { %7192 = vmatprep.mubr.msk.f32.mxu0 %vm295_vm2, %v272_v33 }
  0xbd   :  { %7193 = vmatmul.mubr.msk.f32.gmra.mxu0 %vm295_vm2, %v273_v34  ;;  %v162_v38 = vpop.permute.xlu1 %161 }
  0xbe   :  { %v160_v37 = vpop.permute.xlu0 %159  ;;  %v258_v40 = vsel %vm14_vm0, %v82_v36, %v162_v38 }
  0xbf   :  { %v257_v39 = vsel %vm14_vm0, %v81_v35, %v160_v37 }
  0xc1   :  { %v226_v42 = vpop.permute.xlu1 %225 }
  0xc2   :  { %v224_v41 = vpop.permute.xlu0 %223  ;;  %v275_v44 = vsel %vm259_vm1, %v258_v40, %v226_v42 }
  0xc3   :  { %v274_v43 = vsel %vm259_vm1, %v257_v39, %v224_v41 }
  0xc4   :  { %7195 = vmatprep.mubr.msk.f32.mxu0 %vm295_vm2, %v274_v43 }
  0xc5   :  { %7196 = vmatmul.mubr.msk.f32.gmra.mxu0 %vm295_vm2, %v275_v44 }
 0x14d   :  { %v7176_v52 = vpop.f32.mrf.mxu0 }
 0x14e   :  { %v416_v54 = vadd.f32 %v7176_v52, %v8117_v51 }
 0x14f   :  { %v410_v55 = vpop.f32.mrf.mxu0 }
 0x150   :  { %v490_v56 = vmax.f32 %v416_v54, 0.0  ;;  %v411_v57 = vadd.f32 %v8117_v51, %v410_v55 }
 0x152   :  { %506 = vst.msk [vmem:[#allocation2 + $0x10] sm:$0xff] %vm14_vm0, %v490_v56  ;;  %v489_v60 = vmax.f32 %v411_v57, 0.0 }
 0x154   :  { %505 = vst.msk [vmem:[#allocation2 + $0x8] sm:$0xff] %vm14_vm0, %v489_v60 }
 0x155   :  { %v7179_v62 = vpop.f32.mrf.mxu0 }
 0x156   :  { %v426_v0 = vadd.f32 %v7179_v62, %v8117_v51 }
 0x157   :  { %v420_v17 = vpop.f32.mrf.mxu0 }
 0x158   :  { %v492_v18 = vmax.f32 %v426_v0, 0.0  ;;  %v421_v19 = vadd.f32 %v8117_v51, %v420_v17 }
 0x159   :  { %v538_v21 = vld [vmem:[#allocation2 + $0x10] sm:$0xff] }
 0x15a   :  { %508 = vst.msk [vmem:[#allocation2 + $0x20] sm:$0xff] %vm14_vm0, %v492_v18  ;;  %v491_v22 = vmax.f32 %v421_v19, 0.0  ;;  %587 = vrot.lane.b32.xlu1 %v538_v21, %s7827_s23 }
 0x15b   :  { %v537_v23 = vld [vmem:[#allocation2 + $0x8] sm:$0xff] }
 0x15c   :  { %507 = vst.msk [vmem:[#allocation2 + $0x18] sm:$0xff] %vm14_vm0, %v491_v22  ;;  %585 = vrot.lane.b32.xlu0 %v537_v23, %s7827_s23  ;;  %v553_v27 = vld [vmem:[#allocation2 + $0xa] sm:$0xff] }
 0x15d   :  { %v7182_v24 = vpop.f32.mrf.mxu0 }
 0x15e   :  { %v436_v25 = vadd.f32 %v7182_v24, %v8117_v51 }
 0x15f   :  { %v430_v26 = vpop.f32.mrf.mxu0 }
 0x160   :  { %v494_v28 = vmax.f32 %v436_v25, 0.0  ;;  %v431_v29 = vadd.f32 %v8117_v51, %v430_v26  ;;  %649 = vrot.lane.b32.xlu0 %v553_v27, %s7826_s0 }
 0x161   :  { %v540_v30 = vld [vmem:[#allocation2 + $0x20] sm:$0xff] }
 0x162   :  { %510 = vst.msk [vmem:[#allocation2 + $0x30] sm:$0xff] %vm14_vm0, %v494_v28  ;;  %v493_v31 = vmax.f32 %v431_v29, 0.0  ;;  %591 = vrot.lane.b32.xlu1 %v540_v30, %s7827_s23 }
 0x163   :  { %v539_v32 = vld [vmem:[#allocation2 + $0x18] sm:$0xff] }
 0x164   :  { %509 = vst.msk [vmem:[#allocation2 + $0x28] sm:$0xff] %vm14_vm0, %v493_v31  ;;  %v554_v33 = vld [vmem:[#allocation2 + $0x12] sm:$0xff]  ;;  %589 = vrot.lane.b32.xlu0 %v539_v32, %s7827_s23  ;;  %v555_v37 = vld [vmem:[#allocation2 + $0x1a] sm:$0xff] }
 0x165   :  { %v7185_v34 = vpop.f32.mrf.mxu0 }
 0x166   :  { %v446_v35 = vadd.f32 %v7185_v34, %v8117_v51  ;;  %651 = vrot.lane.b32.xlu1 %v554_v33, %s7826_s0 }
 0x167   :  { %v440_v36 = vpop.f32.mrf.mxu0 }
 0x168   :  { %v496_v38 = vmax.f32 %v446_v35, 0.0  ;;  %v441_v39 = vadd.f32 %v8117_v51, %v440_v36  ;;  %653 = vrot.lane.b32.xlu0 %v555_v37, %s7826_s0 }
 0x169   :  { %v542_v40 = vld [vmem:[#allocation2 + $0x30] sm:$0xff] }
 0x16a   :  { %512 = vst.msk [vmem:[#allocation2 + $0x40] sm:$0xff] %vm14_vm0, %v496_v38  ;;  %v495_v41 = vmax.f32 %v441_v39, 0.0  ;;  %595 = vrot.lane.b32.xlu1 %v542_v40, %s7827_s23 }
 0x16b   :  { %v541_v42 = vld [vmem:[#allocation2 + $0x28] sm:$0xff] }
 0x16c   :  { %511 = vst.msk [vmem:[#allocation2 + $0x38] sm:$0xff] %vm14_vm0, %v495_v41  ;;  %v556_v43 = vld [vmem:[#allocation2 + $0x22] sm:$0xff]  ;;  %593 = vrot.lane.b32.xlu0 %v541_v42, %s7827_s23  ;;  %v557_v47 = vld [vmem:[#allocation2 + $0x2a] sm:$0xff] }
 0x16d   :  { %v7188_v44 = vpop.f32.mrf.mxu0 }
 0x16e   :  { %v456_v45 = vadd.f32 %v7188_v44, %v8117_v51  ;;  %655 = vrot.lane.b32.xlu1 %v556_v43, %s7826_s0  ;;  %v521_v44 = vld [vmem:[#allocation2 + $0x6] sm:$0xff] }
 0x16f   :  { %v450_v46 = vpop.f32.mrf.mxu0 }
 0x170   :  { %v498_v48 = vmax.f32 %v456_v45, 0.0  ;;  %v451_v49 = vadd.f32 %v8117_v51, %v450_v46  ;;  %657 = vrot.lane.b32.xlu0 %v557_v47, %s7826_s0 }
 0x171   :  { %v544_v50 = vld [vmem:[#allocation2 + $0x40] sm:$0xff] }
 0x172   :  { %514 = vst.msk [vmem:[#allocation2 + $0x60] sm:$0xff] %vm14_vm0, %v498_v48  ;;  %v497_v52 = vmax.f32 %v451_v49, 0.0  ;;  %599 = vrot.lane.b32.xlu1 %v544_v50, %s7827_s23  ;;  %v560_v55 = vld [vmem:[#allocation2 + $0x42] sm:$0xff]  ;;  %v522_v49 = vld [vmem:[#allocation2 + $0xe] sm:$0xff] }
 0x173   :  { %v543_v53 = vld [vmem:[#allocation2 + $0x38] sm:$0xff] }
 0x174   :  { %513 = vst.msk [vmem:[#allocation2 + $0x58] sm:$0xff] %vm14_vm0, %v497_v52  ;;  %597 = vrot.lane.b32.xlu0 %v543_v53, %s7827_s23  ;;  %v559_v58 = vld [vmem:[#allocation2 + $0x3a] sm:$0xff]  ;;  %v558_v61 = vld [vmem:[#allocation2 + $0x32] sm:$0xff] }
 0x175   :  { %v7191_v54 = vpop.f32.mrf.mxu0 }
 0x176   :  { %v466_v56 = vadd.f32 %v7191_v54, %v8117_v51  ;;  %663 = vrot.lane.b32.xlu1 %v560_v55, %s7826_s0  ;;  %v523_v55 = vld [vmem:[#allocation2 + $0x16] sm:$0xff] }
 0x177   :  { %v460_v57 = vpop.f32.mrf.mxu0 }
 0x178   :  { %v500_v59 = vmax.f32 %v466_v56, 0.0  ;;  %v461_v60 = vadd.f32 %v8117_v51, %v460_v57  ;;  %661 = vrot.lane.b32.xlu0 %v559_v58, %s7826_s0 }
 0x179   :  { %v546_v63 = vld [vmem:[#allocation2 + $0x60] sm:$0xff] }
 0x17a   :  { %516 = vst.msk [vmem:[#allocation2 + $0x70] sm:$0xff] %vm14_vm0, %v500_v59  ;;  %v499_v62 = vmax.f32 %v461_v60, 0.0  ;;  %659 = vrot.lane.b32.xlu1 %v558_v61, %s7826_s0  ;;  %v524_v60 = vld [vmem:[#allocation2 + $0x1e] sm:$0xff] }
 0x17b   :  { %v545_v0 = vld [vmem:[#allocation2 + $0x58] sm:$0xff] }
 0x17c   :  { %515 = vst.msk [vmem:[#allocation2 + $0x68] sm:$0xff] %vm14_vm0, %v499_v62  ;;  %601 = vrot.lane.b32.xlu0 %v545_v0, %s7827_s23  ;;  %v561_v18 = vld [vmem:[#allocation2 + $0x5a] sm:$0xff] }
 0x17d   :  { %v7194_v17 = vpop.f32.mrf.mxu0 }
 0x17e   :  { %v476_v19 = vadd.f32 %v7194_v17, %v8117_v51  ;;  %603 = vrot.lane.b32.xlu1 %v546_v63, %s7827_s23  ;;  %v525_v17 = vld [vmem:[#allocation2 + $0x26] sm:$0xff] }
 0x17f   :  { %v470_v20 = vpop.f32.mrf.mxu0 }
 0x180   :  { %v502_v21 = vmax.f32 %v476_v19, 0.0  ;;  %v471_v22 = vadd.f32 %v8117_v51, %v470_v20  ;;  %665 = vrot.lane.b32.xlu0 %v561_v18, %s7826_s0 }
 0x181   :  { %v548_v23 = vld [vmem:[#allocation2 + $0x70] sm:$0xff] }
 0x182   :  { %518 = vst.msk [vmem:[#allocation2 + $0x80] sm:$0xff] %vm14_vm0, %v502_v21  ;;  %v501_v24 = vmax.f32 %v471_v22, 0.0  ;;  %607 = vrot.lane.b32.xlu1 %v548_v23, %s7827_s23 }
 0x183   :  { %v562_v25 = vld [vmem:[#allocation2 + $0x62] sm:$0xff]  ;;  %v563_v28 = vld [vmem:[#allocation2 + $0x6a] sm:$0xff] }
 0x184   :  { %517 = vst.msk [vmem:[#allocation2 + $0x78] sm:$0xff] %vm14_vm0, %v501_v24  ;;  %v547_v26 = vld [vmem:[#allocation2 + $0x68] sm:$0xff] }
 0x185   :  { %605 = vrot.lane.b32.xlu0 %v547_v26, %s7827_s23  ;;  %v7197_v27 = vpop.f32.mrf.mxu0  ;;  %v526_v24 = vld [vmem:[#allocation2 + $0x2e] sm:$0xff]  ;;  %v527_v26 = vld [vmem:[#allocation2 + $0x36] sm:$0xff] }
 0x186   :  { %v486_v29 = vadd.f32 %v7197_v27, %v8117_v51  ;;  %667 = vrot.lane.b32.xlu1 %v562_v25, %s7826_s0 }
 0x187   :  { %v480_v30 = vpop.f32.mrf.mxu0 }
 0x188   :  { %v504_v31 = vmax.f32 %v486_v29, 0.0  ;;  %v481_v32 = vadd.f32 %v8117_v51, %v480_v30 }
 0x189   :  { %669 = vrot.lane.b32.xlu0 %v563_v28, %s7826_s0  ;;  %v550_v33 = vld [vmem:[#allocation2 + $0x80] sm:$0xff] }
 0x18a   :  { %520 = vst.msk [vmem:[#allocation2 + $0x90] sm:$0xff] %vm14_vm0, %v504_v31  ;;  %v503_v34 = vmax.f32 %v481_v32, 0.0  ;;  %611 = vrot.lane.b32.xlu1 %v550_v33, %s7827_s23  ;;  %v528_v32 = vld [vmem:[#allocation2 + $0x3e] sm:$0xff] }
 0x18b   :  { %v564_v35 = vld [vmem:[#allocation2 + $0x72] sm:$0xff]  ;;  %v565_v37 = vld [vmem:[#allocation2 + $0x7a] sm:$0xff] }
 0x18c   :  { %519 = vst.msk [vmem:[#allocation2 + $0x88] sm:$0xff] %vm14_vm0, %v503_v34  ;;  %v549_v36 = vld [vmem:[#allocation2 + $0x78] sm:$0xff] }
 0x18d   :  { %609 = vrot.lane.b32.xlu0 %v549_v36, %s7827_s23 }
 0x18e   :  { %671 = vrot.lane.b32.xlu1 %v564_v35, %s7826_s0 }
 0x191   :  { %673 = vrot.lane.b32.xlu0 %v565_v37, %s7826_s0  ;;  %v552_v51 = vld [vmem:[#allocation2 + $0x90] sm:$0xff] }
 0x192   :  { %615 = vrot.lane.b32.xlu1 %v552_v51, %s7827_s23  ;;  %v568_v41 = vld [vmem:[#allocation2 + $0x92] sm:$0xff] }
 0x193   :  { %v566_v38 = vld [vmem:[#allocation2 + $0x82] sm:$0xff]  ;;  %v567_v40 = vld [vmem:[#allocation2 + $0x8a] sm:$0xff]  ;;  %v529_v37 = vld [vmem:[#allocation2 + $0x56] sm:$0xff] }
 0x194   :  { %v551_v39 = vld [vmem:[#allocation2 + $0x88] sm:$0xff] }
 0x195   :  { %613 = vrot.lane.b32.xlu0 %v551_v39, %s7827_s23 }
 0x196   :  { %675 = vrot.lane.b32.xlu1 %v566_v38, %s7826_s0 }
 0x199   :  { %677 = vrot.lane.b32.xlu0 %v567_v40, %s7826_s0 }
 0x19a   :  { %679 = vrot.lane.b32.xlu1 %v568_v41, %s7826_s0  ;;  %v530_v41 = vld [vmem:[#allocation2 + $0x5e] sm:$0xff] }
 0x1cc   :  { %v588_v43 = vpop.permute.xlu1 %587 }
 0x1cd   :  { %v698_v52 = vsel %vm14_vm0, %v522_v49, %v588_v43 }
 0x1ce   :  { %v586_v42 = vpop.permute.xlu0 %585 }
 0x1cf   :  { %v697_v45 = vsel %vm14_vm0, %v521_v44, %v586_v42 }
 0x1d2   :  { %v650_v46 = vpop.permute.xlu0 %649 }
 0x1d3   :  { %v713_v48 = vsel %vm259_vm1, %v697_v45, %v650_v46  ;;  %v531_v46 = vld [vmem:[#allocation2 + $0x66] sm:$0xff] }
 0x1d4   :  { %v592_v47 = vpop.permute.xlu1 %591  ;;  %7222 = vmatprep.mubr.msk.f32.mxu1 %vm295_vm2, %v713_v48 }
 0x1d5   :  { %v700_v62 = vsel %vm14_vm0, %v524_v60, %v592_v47 }
 0x1d6   :  { %v590_v50 = vpop.permute.xlu0 %589 }
 0x1d7   :  { %v699_v56 = vsel %vm14_vm0, %v523_v55, %v590_v50 }
 0x1d8   :  { %v652_v53 = vpop.permute.xlu1 %651 }
 0x1d9   :  { %v714_v54 = vsel %vm259_vm1, %v698_v52, %v652_v53  ;;  %v532_v52 = vld [vmem:[#allocation2 + $0x6e] sm:$0xff] }
 0x1da   :  { %7223 = vmatmul.mubr.msk.f32.vlgmr.msra.gmra.mxu1 %vm295_vm2, %v714_v54  ;;  %v654_v57 = vpop.permute.xlu0 %653 }
 0x1db   :  { %v715_v58 = vsel %vm259_vm1, %v699_v56, %v654_v57  ;;  %v533_v57 = vld [vmem:[#allocation2 + $0x76] sm:$0xff] }
 0x1dc   :  { %v596_v59 = vpop.permute.xlu1 %595  ;;  %7225 = vmatprep.mubr.msk.f32.mxu1 %vm295_vm2, %v715_v58 }
 0x1dd   :  { %v702_v27 = vsel %vm14_vm0, %v526_v24, %v596_v59 }
 0x1de   :  { %v594_v61 = vpop.permute.xlu0 %593 }
 0x1df   :  { %v701_v18 = vsel %vm14_vm0, %v525_v17, %v594_v61 }
 0x1e0   :  { %v656_v63 = vpop.permute.xlu1 %655 }
 0x1e1   :  { %v716_v0 = vsel %vm259_vm1, %v700_v62, %v656_v63  ;;  %v534_v62 = vld [vmem:[#allocation2 + $0x7e] sm:$0xff] }
 0x1e2   :  { %7226 = vmatmul.mubr.msk.f32.gmra.mxu1 %vm295_vm2, %v716_v0  ;;  %v658_v19 = vpop.permute.xlu0 %657 }
 0x1e3   :  { %v717_v20 = vsel %vm259_vm1, %v701_v18, %v658_v19  ;;  %v535_v19 = vld [vmem:[#allocation2 + $0x86] sm:$0xff] }
 0x1e4   :  { %v600_v21 = vpop.permute.xlu1 %599  ;;  %7228 = vmatprep.mubr.msk.f32.mxu1 %vm295_vm2, %v717_v20  ;;  %v536_v20 = vld [vmem:[#allocation2 + $0x8e] sm:$0xff] }
 0x1e5   :  { %v704_v34 = vsel %vm14_vm0, %v528_v32, %v600_v21  ;;  %v6404_v32 = vld [vmem:[%s10643_s1 + $0xf0] sm:$0xff] }
 0x1e6   :  { %v598_v22 = vpop.permute.xlu0 %597 }
 0x1e7   :  { %v703_v29 = vsel %vm14_vm0, %v527_v26, %v598_v22 }
 0x1e8   :  { %v664_v23 = vpop.permute.xlu1 %663 }
 0x1e9   :  { %v720_v36 = vsel %vm259_vm1, %v704_v34, %v664_v23 }
 0x1ea   :  { %v662_v25 = vpop.permute.xlu0 %661 }
 0x1eb   :  { %v719_v31 = vsel %vm259_vm1, %v703_v29, %v662_v25  ;;  %v6407_v29 = vld [vmem:[%s10643_s1 + $0x108] sm:$0xff] }
 0x1ec   :  { %v660_v28 = vpop.permute.xlu1 %659 }
 0x1ed   :  { %v718_v30 = vsel %vm259_vm1, %v702_v27, %v660_v28  ;;  %v6409_v27 = vld [vmem:[%s10643_s1 + $0x118] sm:$0xff]  ;;  %v6408_v28 = vld [vmem:[%s10643_s1 + $0x110] sm:$0xff] }
 0x1ee   :  { %7229 = vmatmul.mubr.msk.f32.gmra.mxu1 %vm295_vm2, %v718_v30  ;;  %v602_v33 = vpop.permute.xlu0 %601  ;;  %7246 = vmatprep.subr.mxu0 %v6409_v27  ;;  %v6406_v30 = vld [vmem:[%s10643_s1 + $0x100] sm:$0xff] }
 0x1ef   :  { %7231 = vmatprep.mubr.msk.f32.mxu1 %vm295_vm2, %v719_v31  ;;  %v705_v51 = vsel %vm14_vm0, %v529_v37, %v602_v33  ;;  %7247 = vmatpush3.msra.mxu0 %v6409_v27  ;;  %v6405_v31 = vld [vmem:[%s10643_s1 + $0xf8] sm:$0xff]  ;;  %v8270_v33 = vld [vmem:[%s10644_s2 + $0x1] ss:$0 sm:$0xff] }
 0x1f0   :  { %v604_v35 = vpop.permute.xlu1 %603  ;;  %7248 = vmatprep.subr.mxu0 %v6408_v28 }
 0x1f1   :  { %v706_v43 = vsel %vm14_vm0, %v530_v41, %v604_v35  ;;  %7249 = vmatpush3.msra.mxu0 %v6408_v28  ;;  %v6403_v35 = vld [vmem:[%s10643_s1 + $0xe8] sm:$0xff] }
 0x1f2   :  { %7232 = vmatmul.mubr.msk.f32.gmra.mxu1 %vm295_vm2, %v720_v36  ;;  %v666_v38 = vpop.permute.xlu0 %665  ;;  %7250 = vmatprep.subr.mxu0 %v6407_v29 }
 0x1f3   :  { %v721_v39 = vsel %vm259_vm1, %v705_v51, %v666_v38  ;;  %7251 = vmatpush3.msra.mxu0 %v6407_v29  ;;  %v6402_v51 = vld [vmem:[%s10643_s1 + $0xe0] sm:$0xff]  ;;  %v6401_v38 = vld [vmem:[%s10643_s1 + $0xd8] sm:$0xff] }
 0x1f4   :  { %v608_v40 = vpop.permute.xlu1 %607  ;;  %7234 = vmatprep.mubr.msk.f32.mxu1 %vm295_vm2, %v721_v39  ;;  %7252 = vmatprep.subr.mxu0 %v6406_v30 }
 0x1f5   :  { %v708_v54 = vsel %vm14_vm0, %v532_v52, %v608_v40  ;;  %7253 = vmatpush3.msra.mxu0 %v6406_v30 }
 0x1f6   :  { %7254 = vmatprep.subr.mxu0 %v6405_v31 }
 0x1f7   :  { %v606_v42 = vpop.permute.xlu0 %605  ;;  %7255 = vmatpush3.msra.mxu0 %v6405_v31 }
 0x1f8   :  { %v668_v44 = vpop.permute.xlu1 %667  ;;  %v707_v47 = vsel %vm14_vm0, %v531_v46, %v606_v42  ;;  %7256 = vmatprep.subr.mxu0 %v6404_v32  ;;  %v6400_v42 = vld [vmem:[%s10643_s1 + $0xd0] sm:$0xff] }
 0x1f9   :  { %v722_v45 = vsel %vm259_vm1, %v706_v43, %v668_v44  ;;  %7257 = vmatpush3.msra.mxu0 %v6404_v32  ;;  %v6399_v44 = vld [vmem:[%s10643_s1 + $0xc8] sm:$0xff] }
 0x1fa   :  { %7235 = vmatmul.mubr.msk.f32.gmra.mxu1 %vm295_vm2, %v722_v45  ;;  %7258 = vmatprep.subr.mxu0 %v6403_v35 }
 0x1fb   :  { %v670_v48 = vpop.permute.xlu0 %669  ;;  %7259 = vmatpush3.msra.mxu0 %v6403_v35 }
 0x1fc   :  { %v723_v49 = vsel %vm259_vm1, %v707_v47, %v670_v48  ;;  %v612_v50 = vpop.permute.xlu1 %611  ;;  %7260 = vmatprep.subr.mxu0 %v6402_v51  ;;  %v6398_v47 = vld [vmem:[%s10643_s1 + $0xc0] sm:$0xff] }
 0x1fd   :  { %7237 = vmatprep.mubr.msk.f32.mxu1 %vm295_vm2, %v723_v49  ;;  %v710_v0 = vsel %vm14_vm0, %v534_v62, %v612_v50  ;;  %7261 = vmatpush3.msra.mxu0 %v6402_v51 }
 0x1fe   :  { %7262 = vmatprep.subr.mxu0 %v6401_v38 }
 0x1ff   :  { %v610_v53 = vpop.permute.xlu0 %609  ;;  %7263 = vmatpush3.msra.mxu0 %v6401_v38 }
 0x200   :  { %v672_v55 = vpop.permute.xlu1 %671  ;;  %v709_v58 = vsel %vm14_vm0, %v533_v57, %v610_v53  ;;  %7264 = vmatprep.subr.mxu0 %v6400_v42 }
 0x201   :  { %v724_v56 = vsel %vm259_vm1, %v708_v54, %v672_v55  ;;  %7265 = vmatpush3.msra.mxu0 %v6400_v42 }
 0x202   :  { %7238 = vmatmul.mubr.msk.f32.gmra.mxu1 %vm295_vm2, %v724_v56  ;;  %7266 = vmatprep.subr.mxu0 %v6399_v44 }
 0x203   :  { %v674_v59 = vpop.permute.xlu0 %673  ;;  %7267 = vmatpush3.msra.mxu0 %v6399_v44 }
 0x204   :  { %v725_v60 = vsel %vm259_vm1, %v709_v58, %v674_v59  ;;  %v616_v61 = vpop.permute.xlu1 %615  ;;  %7268 = vmatprep.subr.mxu0 %v6398_v47 }
 0x205   :  { %7240 = vmatprep.mubr.msk.f32.mxu1 %vm295_vm2, %v725_v60  ;;  %v712_v23 = vsel %vm14_vm0, %v536_v20, %v616_v61  ;;  %7269 = vmatpush3.msra.mxu0 %v6398_v47 }
 0x207   :  { %v614_v63 = vpop.permute.xlu0 %613 }
 0x208   :  { %v676_v17 = vpop.permute.xlu1 %675  ;;  %v711_v21 = vsel %vm14_vm0, %v535_v19, %v614_v63 }
 0x209   :  { %v726_v18 = vsel %vm259_vm1, %v710_v0, %v676_v17 }
 0x20a   :  { %7241 = vmatmul.mubr.msk.f32.gmra.mxu1 %vm295_vm2, %v726_v18 }
 0x20b   :  { %v678_v22 = vpop.permute.xlu0 %677 }
 0x20c   :  { %v727_v24 = vsel %vm259_vm1, %v711_v21, %v678_v22  ;;  %v680_v25 = vpop.permute.xlu1 %679 }
 0x20d   :  { %v728_v26 = vsel %vm259_vm1, %v712_v23, %v680_v25  ;;  %7243 = vmatprep.mubr.msk.f32.mxu1 %vm295_vm2, %v727_v24 }
 0x20e   :  { %7244 = vmatmul.mubr.msk.f32.gmra.mxu1 %vm295_vm2, %v728_v26 }
 0x29a   :  { %v7224_v34 = vpop.f32.mrf.mxu1 }
 0x29b   :  { %v870_v36 = vadd.f32 %v7224_v34, %v8270_v33 }
 0x29c   :  { %v864_v37 = vpop.f32.mrf.mxu1 }
 0x29d   :  { %v944_v39 = vmax.f32 %v870_v36, 0.0  ;;  %v865_v40 = vadd.f32 %v8270_v33, %v864_v37 }
 0x29f   :  { %960 = vst.msk [vmem:[#allocation2 + $0x10] sm:$0xff] %vm14_vm0, %v944_v39  ;;  %v943_v41 = vmax.f32 %v865_v40, 0.0 }
 0x2a1   :  { %959 = vst.msk [vmem:[#allocation2 + $0x8] sm:$0xff] %vm14_vm0, %v943_v41 }
 0x2a2   :  { %v7227_v43 = vpop.f32.mrf.mxu1 }
 0x2a3   :  { %v880_v45 = vadd.f32 %v7227_v43, %v8270_v33 }
 0x2a4   :  { %v874_v46 = vpop.f32.mrf.mxu1 }
 0x2a5   :  { %v946_v48 = vmax.f32 %v880_v45, 0.0  ;;  %v875_v49 = vadd.f32 %v8270_v33, %v874_v46 }
 0x2a6   :  { %v992_v50 = vld [vmem:[#allocation2 + $0x10] sm:$0xff] }
 0x2a7   :  { %962 = vst.msk [vmem:[#allocation2 + $0x20] sm:$0xff] %vm14_vm0, %v946_v48  ;;  %v945_v52 = vmax.f32 %v875_v49, 0.0  ;;  %1027 = vrot.lane.b32.xlu1 %v992_v50, %s7827_s23 }
 0x2a8   :  { %v991_v53 = vld [vmem:[#allocation2 + $0x8] sm:$0xff] }
 0x2a9   :  { %961 = vst.msk [vmem:[#allocation2 + $0x18] sm:$0xff] %vm14_vm0, %v945_v52  ;;  %1025 = vrot.lane.b32.xlu0 %v991_v53, %s7827_s23  ;;  %v8300_v54 = vld [vmem:[#allocation2 + $0xc] sm:$0xff] }
 0x2ad   :  { %1089 = vrot.lane.b32.xlu0 %v8300_v54, %s7826_s0 }
 0x2ae   :  { %v7230_v55 = vpop.f32.mrf.mxu1  ;;  %v994_v56 = vld [vmem:[#allocation2 + $0x20] sm:$0xff] }
 0x2af   :  { %v890_v57 = vadd.f32 %v7230_v55, %v8270_v33  ;;  %1031 = vrot.lane.b32.xlu1 %v994_v56, %s7827_s23 }
 0x2b0   :  { %v884_v58 = vpop.f32.mrf.mxu1  ;;  %v993_v59 = vld [vmem:[#allocation2 + $0x18] sm:$0xff] }
 0x2b1   :  { %v948_v60 = vmax.f32 %v890_v57, 0.0  ;;  %v885_v61 = vadd.f32 %v8270_v33, %v884_v58  ;;  %1029 = vrot.lane.b32.xlu0 %v993_v59, %s7827_s23  ;;  %v8308_v62 = vld [vmem:[#allocation2 + $0x14] sm:$0xff]  ;;  %v8314_v18 = vld [vmem:[#allocation2 + $0x1c] sm:$0xff] }
 0x2b2   :  { %v7233_v63 = vpop.f32.mrf.mxu1 }
 0x2b3   :  { %964 = vst.msk [vmem:[#allocation2 + $0x30] sm:$0xff] %vm14_vm0, %v948_v60  ;;  %v947_v0 = vmax.f32 %v885_v61, 0.0  ;;  %v900_v17 = vadd.f32 %v7233_v63, %v8270_v33  ;;  %1091 = vrot.lane.b32.xlu1 %v8308_v62, %s7826_s0 }
 0x2b4   :  { %v894_v19 = vpop.f32.mrf.mxu1 }
 0x2b5   :  { %963 = vst.msk [vmem:[#allocation2 + $0x28] sm:$0xff] %vm14_vm0, %v947_v0  ;;  %v950_v20 = vmax.f32 %v900_v17, 0.0  ;;  %v895_v21 = vadd.f32 %v8270_v33, %v894_v19  ;;  %1093 = vrot.lane.b32.xlu0 %v8314_v18, %s7826_s0 }
 0x2b7   :  { %966 = vst.msk [vmem:[#allocation2 + $0x40] sm:$0xff] %vm14_vm0, %v950_v20  ;;  %v949_v22 = vmax.f32 %v895_v21, 0.0 }
 0x2b9   :  { %965 = vst.msk [vmem:[#allocation2 + $0x38] sm:$0xff] %vm14_vm0, %v949_v22 }
 0x2ba   :  { %v7236_v23 = vpop.f32.mrf.mxu1  ;;  %v996_v24 = vld [vmem:[#allocation2 + $0x30] sm:$0xff] }
 0x2bb   :  { %v910_v25 = vadd.f32 %v7236_v23, %v8270_v33  ;;  %1035 = vrot.lane.b32.xlu1 %v996_v24, %s7827_s23 }
 0x2bc   :  { %v904_v26 = vpop.f32.mrf.mxu1  ;;  %v995_v27 = vld [vmem:[#allocation2 + $0x28] sm:$0xff] }
 0x2bd   :  { %v952_v28 = vmax.f32 %v910_v25, 0.0  ;;  %v905_v29 = vadd.f32 %v8270_v33, %v904_v26  ;;  %1033 = vrot.lane.b32.xlu0 %v995_v27, %s7827_s23  ;;  %v8326_v30 = vld [vmem:[#allocation2 + $0x24] sm:$0xff]  ;;  %v8331_v32 = vld [vmem:[#allocation2 + $0x2c] sm:$0xff] }
 0x2be   :  { %v998_v35 = vld [vmem:[#allocation2 + $0x40] sm:$0xff] }
 0x2bf   :  { %968 = vst.msk [vmem:[#allocation2 + $0x60] sm:$0xff] %vm14_vm0, %v952_v28  ;;  %v951_v31 = vmax.f32 %v905_v29, 0.0  ;;  %1095 = vrot.lane.b32.xlu1 %v8326_v30, %s7826_s0  ;;  %v1007_v40 = vld [vmem:[#allocation2 + $0x44] sm:$0xff] }
 0x2c0   :  { %v997_v51 = vld [vmem:[#allocation2 + $0x38] sm:$0xff]  ;;  %v975_v29 = vld [vmem:[#allocation2 + $0x4] sm:$0xff] }
 0x2c1   :  { %967 = vst.msk [vmem:[#allocation2 + $0x58] sm:$0xff] %vm14_vm0, %v951_v31  ;;  %1097 = vrot.lane.b32.xlu0 %v8331_v32, %s7826_s0  ;;  %v8342_v42 = vld [vmem:[#allocation2 + $0x3c] sm:$0xff]  ;;  %v8347_v43 = vld [vmem:[#allocation2 + $0x34] sm:$0xff] }
 0x2c2   :  { %v7239_v34 = vpop.f32.mrf.mxu1 }
 0x2c3   :  { %v920_v36 = vadd.f32 %v7239_v34, %v8270_v33  ;;  %1039 = vrot.lane.b32.xlu1 %v998_v35, %s7827_s23 }
 0x2c4   :  { %v914_v37 = vpop.f32.mrf.mxu1 }
 0x2c5   :  { %v954_v38 = vmax.f32 %v920_v36, 0.0  ;;  %v915_v39 = vadd.f32 %v8270_v33, %v914_v37  ;;  %1037 = vrot.lane.b32.xlu0 %v997_v51, %s7827_s23 }
 0x2c6   :  { %v1000_v52 = vld [vmem:[#allocation2 + $0x60] sm:$0xff] }
 0x2c7   :  { %970 = vst.msk [vmem:[#allocation2 + $0x70] sm:$0xff] %vm14_vm0, %v954_v38  ;;  %v953_v41 = vmax.f32 %v915_v39, 0.0  ;;  %1103 = vrot.lane.b32.xlu1 %v1007_v40, %s7826_s0 }
 0x2c8   :  { %v999_v47 = vld [vmem:[#allocation2 + $0x58] sm:$0xff] }
 0x2c9   :  { %969 = vst.msk [vmem:[#allocation2 + $0x68] sm:$0xff] %vm14_vm0, %v953_v41  ;;  %1101 = vrot.lane.b32.xlu0 %v8342_v42, %s7826_s0  ;;  %v8357_v56 = vld [vmem:[#allocation2 + $0x5c] sm:$0xff] }
 0x2ca   :  { %v7242_v44 = vpop.f32.mrf.mxu1 }
 0x2cb   :  { %v930_v45 = vadd.f32 %v7242_v44, %v8270_v33  ;;  %1099 = vrot.lane.b32.xlu1 %v8347_v43, %s7826_s0 }
 0x2cc   :  { %v924_v46 = vpop.f32.mrf.mxu1 }
 0x2cd   :  { %v956_v48 = vmax.f32 %v930_v45, 0.0  ;;  %v925_v49 = vadd.f32 %v8270_v33, %v924_v46  ;;  %1041 = vrot.lane.b32.xlu0 %v999_v47, %s7827_s23 }
 0x2ce   :  { %v7245_v50 = vpop.f32.mrf.mxu1  ;;  %v1002_v60 = vld [vmem:[#allocation2 + $0x70] sm:$0xff] }
 0x2cf   :  { %972 = vst.msk [vmem:[#allocation2 + $0x80] sm:$0xff] %vm14_vm0, %v956_v48  ;;  %v955_v53 = vmax.f32 %v925_v49, 0.0  ;;  %v940_v55 = vadd.f32 %v7245_v50, %v8270_v33  ;;  %1043 = vrot.lane.b32.xlu1 %v1000_v52, %s7827_s23 }
 0x2d0   :  { %v934_v57 = vpop.f32.mrf.mxu1  ;;  %v1001_v63 = vld [vmem:[#allocation2 + $0x68] sm:$0xff] }
 0x2d1   :  { %971 = vst.msk [vmem:[#allocation2 + $0x78] sm:$0xff] %vm14_vm0, %v955_v53  ;;  %v958_v58 = vmax.f32 %v940_v55, 0.0  ;;  %v935_v59 = vadd.f32 %v8270_v33, %v934_v57  ;;  %1105 = vrot.lane.b32.xlu0 %v8357_v56, %s7826_s0  ;;  %v8367_v0 = vld [vmem:[#allocation2 + $0x64] sm:$0xff]  ;;  %v8371_v33 = vld [vmem:[#allocation2 + $0x6c] sm:$0xff] }
 0x2d3   :  { %974 = vst.msk [vmem:[#allocation2 + $0x90] sm:$0xff] %vm14_vm0, %v958_v58  ;;  %v957_v61 = vmax.f32 %v935_v59, 0.0  ;;  %1047 = vrot.lane.b32.xlu1 %v1002_v60, %s7827_s23 }
 0x2d5   :  { %973 = vst.msk [vmem:[#allocation2 + $0x88] sm:$0xff] %vm14_vm0, %v957_v61  ;;  %1045 = vrot.lane.b32.xlu0 %v1001_v63, %s7827_s23 }
 0x2d6   :  { %v1004_v17 = vld [vmem:[#allocation2 + $0x80] sm:$0xff] }
 0x2d7   :  { %1107 = vrot.lane.b32.xlu1 %v8367_v0, %s7826_s0 }
 0x2d8   :  { %v1003_v19 = vld [vmem:[#allocation2 + $0x78] sm:$0xff] }
 0x2d9   :  { %1109 = vrot.lane.b32.xlu0 %v8371_v33, %s7826_s0  ;;  %v8377_v20 = vld [vmem:[#allocation2 + $0x74] sm:$0xff]  ;;  %v8381_v21 = vld [vmem:[#allocation2 + $0x7c] sm:$0xff] }
 0x2da   :  { %v1006_v22 = vld [vmem:[#allocation2 + $0x90] sm:$0xff] }
 0x2db   :  { %1051 = vrot.lane.b32.xlu1 %v1004_v17, %s7827_s23  ;;  %v1008_v26 = vld [vmem:[#allocation2 + $0x94] sm:$0xff] }
 0x2dc   :  { %v1005_v23 = vld [vmem:[#allocation2 + $0x88] sm:$0xff] }
 0x2dd   :  { %1049 = vrot.lane.b32.xlu0 %v1003_v19, %s7827_s23  ;;  %v8387_v24 = vld [vmem:[#allocation2 + $0x84] sm:$0xff]  ;;  %v8391_v25 = vld [vmem:[#allocation2 + $0x8c] sm:$0xff] }
 0x2df   :  { %1111 = vrot.lane.b32.xlu1 %v8377_v20, %s7826_s0 }
 0x2e1   :  { %1113 = vrot.lane.b32.xlu0 %v8381_v21, %s7826_s0 }
 0x2e3   :  { %1055 = vrot.lane.b32.xlu1 %v1006_v22, %s7827_s23 }
 0x2e5   :  { %1053 = vrot.lane.b32.xlu0 %v1005_v23, %s7827_s23 }
 0x2e7   :  { %1115 = vrot.lane.b32.xlu1 %v8387_v24, %s7826_s0 }
 0x2e9   :  { %1117 = vrot.lane.b32.xlu0 %v8391_v25, %s7826_s0 }
 0x2eb   :  { %1119 = vrot.lane.b32.xlu1 %v1008_v26, %s7826_s0 }
 0x319   :  { %v1028_v28 = vpop.permute.xlu1 %1027 }
 0x31a   :  { %v1138_v51 = vsel %vm14_vm0, %v8300_v54, %v1028_v28 }
 0x31b   :  { %v1026_v27 = vpop.permute.xlu0 %1025 }
 0x31c   :  { %v1137_v31 = vsel %vm14_vm0, %v975_v29, %v1026_v27 }
 0x31f   :  { %v1090_v34 = vpop.permute.xlu0 %1089 }
 0x320   :  { %v1153_v35 = vsel %vm259_vm1, %v1137_v31, %v1090_v34 }
 0x321   :  { %v1032_v36 = vpop.permute.xlu1 %1031  ;;  %7270 = vmatprep.mubr.msk.f32.mxu0 %vm295_vm2, %v1153_v35 }
 0x322   :  { %v1140_v47 = vsel %vm14_vm0, %v8314_v18, %v1032_v36 }
 0x323   :  { %v1030_v37 = vpop.permute.xlu0 %1029 }
 0x324   :  { %v1139_v40 = vsel %vm14_vm0, %v8308_v62, %v1030_v37 }
 0x325   :  { %v1092_v38 = vpop.permute.xlu1 %1091 }
 0x326   :  { %v1154_v39 = vsel %vm259_vm1, %v1138_v51, %v1092_v38 }
 0x327   :  { %v1094_v41 = vpop.permute.xlu0 %1093  ;;  %7271 = vmatmul.mubr.msk.f32.vlgmr.msra.gmra.mxu0 %vm295_vm2, %v1154_v39 }
 0x328   :  { %v1155_v44 = vsel %vm259_vm1, %v1139_v40, %v1094_v41 }
 0x329   :  { %7273 = vmatprep.mubr.msk.f32.mxu0 %vm295_vm2, %v1155_v44 }
 0x32d   :  { %v1036_v45 = vpop.permute.xlu1 %1035 }
 0x32e   :  { %v1142_v18 = vsel %vm14_vm0, %v8331_v32, %v1036_v45  ;;  %v983_v32 = vld [vmem:[#allocation2 + $0x54] sm:$0xff] }
 0x32f   :  { %v1034_v46 = vpop.permute.xlu0 %1033 }
 0x330   :  { %v1141_v49 = vsel %vm14_vm0, %v8326_v30, %v1034_v46 }
 0x331   :  { %v1096_v48 = vpop.permute.xlu1 %1095 }
 0x332   :  { %v1156_v54 = vsel %vm259_vm1, %v1140_v47, %v1096_v48 }
 0x333   :  { %v1098_v50 = vpop.permute.xlu0 %1097  ;;  %7274 = vmatmul.mubr.msk.f32.gmra.mxu0 %vm295_vm2, %v1156_v54 }
 0x334   :  { %v1157_v62 = vsel %vm259_vm1, %v1141_v49, %v1098_v50 }
 0x335   :  { %v1040_v52 = vpop.permute.xlu1 %1039  ;;  %7276 = vmatprep.mubr.msk.f32.mxu0 %vm295_vm2, %v1157_v62  ;;  %v6438_v62 = vld [vmem:[%s10643_s1 + $0x170] sm:$0xff] }
 0x336   :  { %v1144_v63 = vsel %vm14_vm0, %v8342_v42, %v1040_v52  ;;  %v6436_v52 = vld [vmem:[%s10643_s1 + $0x160] sm:$0xff] }
 0x337   :  { %v1038_v53 = vpop.permute.xlu0 %1037 }
 0x338   :  { %v1143_v59 = vsel %vm14_vm0, %v8347_v43, %v1038_v53  ;;  %v8474_v53 = vld [vmem:[%s10644_s2 + $0x2] ss:$0 sm:$0xff] }
 0x339   :  { %v1104_v55 = vpop.permute.xlu1 %1103 }
 0x33a   :  { %v1160_v19 = vsel %vm259_vm1, %v1144_v63, %v1104_v55 }
 0x33b   :  { %v1102_v57 = vpop.permute.xlu0 %1101 }
 0x33c   :  { %v1159_v60 = vsel %vm259_vm1, %v1143_v59, %v1102_v57  ;;  %v6435_v57 = vld [vmem:[%s10643_s1 + $0x158] sm:$0xff] }
 0x33d   :  { %v1100_v58 = vpop.permute.xlu1 %1099 }
 0x33e   :  { %v1158_v30 = vsel %vm259_vm1, %v1142_v18, %v1100_v58  ;;  %v6434_v18 = vld [vmem:[%s10643_s1 + $0x150] sm:$0xff] }
 0x33f   :  { %v1042_v61 = vpop.permute.xlu0 %1041  ;;  %7277 = vmatmul.mubr.msk.f32.gmra.mxu0 %vm295_vm2, %v1158_v30 }
 0x340   :  { %7279 = vmatprep.mubr.msk.f32.mxu0 %vm295_vm2, %v1159_v60  ;;  %v1145_v22 = vsel %vm14_vm0, %v983_v32, %v1042_v61  ;;  %v6433_v61 = vld [vmem:[%s10643_s1 + $0x148] sm:$0xff]  ;;  %v6430_v32 = vld [vmem:[%s10643_s1 + $0x130] sm:$0xff] }
 0x341   :  { %v1044_v17 = vpop.permute.xlu1 %1043 }
 0x342   :  { %v1146_v28 = vsel %vm14_vm0, %v8357_v56, %v1044_v17  ;;  %v6432_v17 = vld [vmem:[%s10643_s1 + $0x140] sm:$0xff] }
 0x343   :  { %v1106_v23 = vpop.permute.xlu0 %1105  ;;  %7280 = vmatmul.mubr.msk.f32.gmra.mxu0 %vm295_vm2, %v1160_v19  ;;  %v6431_v19 = vld [vmem:[%s10643_s1 + $0x138] sm:$0xff] }
 0x344   :  { %v1161_v43 = vsel %vm259_vm1, %v1145_v22, %v1106_v23 }
 0x345   :  { %v1048_v26 = vpop.permute.xlu1 %1047  ;;  %7282 = vmatprep.mubr.msk.f32.mxu0 %vm295_vm2, %v1161_v43  ;;  %v6429_v43 = vld [vmem:[%s10643_s1 + $0x128] sm:$0xff] }
 0x346   :  { %v1148_v51 = vsel %vm14_vm0, %v8371_v33, %v1048_v26 }
 0x347   :  { %v1046_v27 = vpop.permute.xlu0 %1045 }
 0x348   :  { %v1147_v31 = vsel %vm14_vm0, %v8367_v0, %v1046_v27  ;;  %v6428_v27 = vld [vmem:[%s10643_s1 + $0x120] sm:$0xff] }
 0x349   :  { %v1108_v29 = vpop.permute.xlu1 %1107 }
 0x34a   :  { %v1162_v42 = vsel %vm259_vm1, %v1146_v28, %v1108_v29 }
 0x34b   :  { %v1110_v34 = vpop.permute.xlu0 %1109  ;;  %7283 = vmatmul.mubr.msk.f32.gmra.mxu0 %vm295_vm2, %v1162_v42 }
 0x34c   :  { %v1163_v35 = vsel %vm259_vm1, %v1147_v31, %v1110_v34 }
 0x34d   :  { %v1052_v36 = vpop.permute.xlu1 %1051  ;;  %7285 = vmatprep.mubr.msk.f32.mxu0 %vm295_vm2, %v1163_v35 }
 0x34e   :  { %v1150_v45 = vsel %vm14_vm0, %v8381_v21, %v1052_v36  ;;  %v1433_v21 = vld [vmem:[#allocation2 + $0x48] sm:$0xff] }
 0x34f   :  { %v1050_v37 = vpop.permute.xlu0 %1049  ;;  %1515 = vrot.lane.b32.xlu1 %v1433_v21, %s7826_s0 }
 0x350   :  { %v1149_v39 = vsel %vm14_vm0, %v8377_v20, %v1050_v37 }
 0x351   :  { %v1112_v38 = vpop.permute.xlu1 %1111 }
 0x352   :  { %v1164_v56 = vsel %vm259_vm1, %v1148_v51, %v1112_v38 }
 0x353   :  { %v1114_v40 = vpop.permute.xlu0 %1113  ;;  %7286 = vmatmul.mubr.msk.f32.gmra.mxu0 %vm295_vm2, %v1164_v56 }
 0x354   :  { %v1165_v0 = vsel %vm259_vm1, %v1149_v39, %v1114_v40 }
 0x355   :  { %v1056_v41 = vpop.permute.xlu1 %1055  ;;  %7288 = vmatprep.mubr.msk.f32.mxu0 %vm295_vm2, %v1165_v0 }
 0x356   :  { %v1152_v54 = vsel %vm14_vm0, %v8391_v25, %v1056_v41  ;;  %v6437_v25 = vld [vmem:[%s10643_s1 + $0x168] sm:$0xff] }
 0x357   :  { %v1054_v44 = vpop.permute.xlu0 %1053 }
 0x358   :  { %v1151_v47 = vsel %vm14_vm0, %v8387_v24, %v1054_v44  ;;  %v6439_v24 = vld [vmem:[%s10643_s1 + $0x178] sm:$0xff] }
 0x359   :  { %v1116_v46 = vpop.permute.xlu1 %1115  ;;  %7294 = vmatprep.subr.mxu1 %v6439_v24 }
 0x35a   :  { %v1166_v33 = vsel %vm259_vm1, %v1150_v45, %v1116_v46  ;;  %7295 = vmatpush3.msra.mxu1 %v6439_v24 }
 0x35b   :  { %v1118_v48 = vpop.permute.xlu0 %1117  ;;  %7289 = vmatmul.mubr.msk.f32.gmra.mxu0 %vm295_vm2, %v1166_v33  ;;  %7296 = vmatprep.subr.mxu1 %v6438_v62 }
 0x35c   :  { %v1167_v20 = vsel %vm259_vm1, %v1151_v47, %v1118_v48  ;;  %7297 = vmatpush3.msra.mxu1 %v6438_v62 }
 0x35d   :  { %v1120_v49 = vpop.permute.xlu1 %1119  ;;  %7291 = vmatprep.mubr.msk.f32.mxu0 %vm295_vm2, %v1167_v20  ;;  %7298 = vmatprep.subr.mxu1 %v6437_v25 }
 0x35e   :  { %v1168_v50 = vsel %vm259_vm1, %v1152_v54, %v1120_v49  ;;  %7299 = vmatpush3.msra.mxu1 %v6437_v25 }
 0x35f   :  { %7292 = vmatmul.mubr.msk.f32.gmra.mxu0 %vm295_vm2, %v1168_v50  ;;  %7300 = vmatprep.subr.mxu1 %v6436_v52 }
 0x360   :  { %7301 = vmatpush3.msra.mxu1 %v6436_v52 }
 0x361   :  { %7302 = vmatprep.subr.mxu1 %v6435_v57 }
 0x362   :  { %7303 = vmatpush3.msra.mxu1 %v6435_v57 }
 0x363   :  { %7304 = vmatprep.subr.mxu1 %v6434_v18 }
 0x364   :  { %7305 = vmatpush3.msra.mxu1 %v6434_v18 }
 0x365   :  { %7306 = vmatprep.subr.mxu1 %v6433_v61 }
 0x366   :  { %7307 = vmatpush3.msra.mxu1 %v6433_v61 }
 0x367   :  { %7308 = vmatprep.subr.mxu1 %v6432_v17 }
 0x368   :  { %7309 = vmatpush3.msra.mxu1 %v6432_v17 }
 0x369   :  { %7310 = vmatprep.subr.mxu1 %v6431_v19 }
 0x36a   :  { %7311 = vmatpush3.msra.mxu1 %v6431_v19 }
 0x36b   :  { %7312 = vmatprep.subr.mxu1 %v6430_v32 }
 0x36c   :  { %7313 = vmatpush3.msra.mxu1 %v6430_v32 }
 0x36d   :  { %7314 = vmatprep.subr.mxu1 %v6429_v43 }
 0x36e   :  { %7315 = vmatpush3.msra.mxu1 %v6429_v43 }
 0x36f   :  { %7316 = vmatprep.subr.mxu1 %v6428_v27 }
 0x370   :  { %7317 = vmatpush3.msra.mxu1 %v6428_v27 }
 0x3e7   :  { %v7272_v55 = vpop.f32.mrf.mxu0 }
 0x3e8   :  { %v1310_v58 = vadd.f32 %v7272_v55, %v8474_v53 }
 0x3e9   :  { %v1304_v59 = vpop.f32.mrf.mxu0 }
 0x3ea   :  { %v1384_v30 = vmax.f32 %v1310_v58, 0.0  ;;  %v1305_v60 = vadd.f32 %v8474_v53, %v1304_v59 }
 0x3ec   :  { %1400 = vst.msk [vmem:[#allocation2 + $0x10] sm:$0xff] %vm14_vm0, %v1384_v30  ;;  %v1383_v63 = vmax.f32 %v1305_v60, 0.0 }
 0x3ee   :  { %1399 = vst.msk [vmem:[#allocation2 + $0x8] sm:$0xff] %vm14_vm0, %v1383_v63 }
 0x3f3   :  { %v7275_v22 = vpop.f32.mrf.mxu0  ;;  %v8498_v23 = vld [vmem:[#allocation2 + $0x10] sm:$0xff] }
 0x3f4   :  { %v1320_v26 = vadd.f32 %v7275_v22, %v8474_v53  ;;  %1501 = vrot.lane.b32.xlu0 %v8498_v23, %s7826_s0  ;;  %1453 = vrot.lane.b32.xlu1 %v8498_v23, %s7827_s23 }
 0x3f5   :  { %v1314_v28 = vpop.f32.mrf.mxu0  ;;  %v8512_v31 = vld [vmem:[#allocation2 + $0x8] sm:$0xff] }
 0x3f6   :  { %v1386_v29 = vmax.f32 %v1320_v26, 0.0  ;;  %v1315_v42 = vadd.f32 %v8474_v53, %v1314_v28 }
 0x3f8   :  { %1402 = vst.msk [vmem:[#allocation2 + $0x20] sm:$0xff] %vm14_vm0, %v1386_v29  ;;  %v1385_v34 = vmax.f32 %v1315_v42, 0.0  ;;  %1451 = vrot.lane.b32.xlu0 %v8512_v31, %s7827_s23 }
 0x3fa   :  { %1401 = vst.msk [vmem:[#allocation2 + $0x18] sm:$0xff] %vm14_vm0, %v1385_v34 }
 0x3ff   :  { %v7278_v35 = vpop.f32.mrf.mxu0  ;;  %v8518_v36 = vld [vmem:[#allocation2 + $0x20] sm:$0xff] }
 0x400   :  { %v1330_v37 = vadd.f32 %v7278_v35, %v8474_v53  ;;  %1457 = vrot.lane.b32.xlu1 %v8518_v36, %s7827_s23  ;;  %1505 = vrot.lane.b32.xlu0 %v8518_v36, %s7826_s0 }
 0x401   :  { %v1324_v51 = vpop.f32.mrf.mxu0  ;;  %v8526_v40 = vld [vmem:[#allocation2 + $0x18] sm:$0xff] }
 0x402   :  { %v1388_v38 = vmax.f32 %v1330_v37, 0.0  ;;  %v1325_v56 = vadd.f32 %v8474_v53, %v1324_v51 }
 0x403   :  { %v7281_v39 = vpop.f32.mrf.mxu0 }
 0x404   :  { %1404 = vst.msk [vmem:[#allocation2 + $0x30] sm:$0xff] %vm14_vm0, %v1388_v38  ;;  %v1387_v0 = vmax.f32 %v1325_v56, 0.0  ;;  %v1340_v41 = vadd.f32 %v7281_v39, %v8474_v53  ;;  %1503 = vrot.lane.b32.xlu1 %v8526_v40, %s7826_s0  ;;  %1455 = vrot.lane.b32.xlu0 %v8526_v40, %s7827_s23  ;;  %v1434_v56 = vld [vmem:[#allocation2 + $0x98] sm:$0xff] }
 0x405   :  { %v1334_v44 = vpop.f32.mrf.mxu0 }
 0x406   :  { %1403 = vst.msk [vmem:[#allocation2 + $0x28] sm:$0xff] %vm14_vm0, %v1387_v0  ;;  %v1390_v45 = vmax.f32 %v1340_v41, 0.0  ;;  %v1335_v46 = vadd.f32 %v8474_v53, %v1334_v44  ;;  %v1516_v0 = vpop.permute.xlu1 %1515  ;;  %v1415_v41 = vld [vmem:[#allocation2] sm:$0xff] }
 0x408   :  { %1406 = vst.msk [vmem:[#allocation2 + $0x40] sm:$0xff] %vm14_vm0, %v1390_v45  ;;  %v1389_v33 = vmax.f32 %v1335_v46, 0.0 }
 0x40a   :  { %1405 = vst.msk [vmem:[#allocation2 + $0x38] sm:$0xff] %vm14_vm0, %v1389_v33 }
 0x40b   :  { %v7284_v47 = vpop.f32.mrf.mxu0  ;;  %v8538_v48 = vld [vmem:[#allocation2 + $0x30] sm:$0xff] }
 0x40c   :  { %v1350_v20 = vadd.f32 %v7284_v47, %v8474_v53  ;;  %1461 = vrot.lane.b32.xlu1 %v8538_v48, %s7827_s23  ;;  %1509 = vrot.lane.b32.xlu0 %v8538_v48, %s7826_s0 }
 0x40d   :  { %v1344_v54 = vpop.f32.mrf.mxu0  ;;  %v8546_v21 = vld [vmem:[#allocation2 + $0x28] sm:$0xff] }
 0x40e   :  { %v1392_v49 = vmax.f32 %v1350_v20, 0.0  ;;  %v1345_v50 = vadd.f32 %v8474_v53, %v1344_v54 }
 0x40f   :  { %v1431_v25 = vld [vmem:[#allocation2 + $0x40] sm:$0xff] }
 0x410   :  { %1408 = vst.msk [vmem:[#allocation2 + $0x60] sm:$0xff] %vm14_vm0, %v1392_v49  ;;  %v1391_v24 = vmax.f32 %v1345_v50, 0.0  ;;  %1507 = vrot.lane.b32.xlu1 %v8546_v21, %s7826_s0  ;;  %1459 = vrot.lane.b32.xlu0 %v8546_v21, %s7827_s23 }
 0x411   :  { %v8558_v58 = vld [vmem:[#allocation2 + $0x38] sm:$0xff] }
 0x412   :  { %1407 = vst.msk [vmem:[#allocation2 + $0x58] sm:$0xff] %vm14_vm0, %v1391_v24 }
 0x413   :  { %v7287_v62 = vpop.f32.mrf.mxu0 }
 0x414   :  { %v1360_v52 = vadd.f32 %v7287_v62, %v8474_v53  ;;  %1465 = vrot.lane.b32.xlu1 %v1431_v25, %s7827_s23  ;;  %1513 = vrot.lane.b32.xlu0 %v1431_v25, %s7826_s0 }
 0x415   :  { %v1354_v55 = vpop.f32.mrf.mxu0 }
 0x416   :  { %v1394_v57 = vmax.f32 %v1360_v52, 0.0  ;;  %v1355_v18 = vadd.f32 %v8474_v53, %v1354_v55 }
 0x417   :  { %v8566_v60 = vld [vmem:[#allocation2 + $0x60] sm:$0xff] }
 0x418   :  { %1410 = vst.msk [vmem:[#allocation2 + $0x70] sm:$0xff] %vm14_vm0, %v1394_v57  ;;  %v1393_v59 = vmax.f32 %v1355_v18, 0.0  ;;  %1511 = vrot.lane.b32.xlu1 %v8558_v58, %s7826_s0  ;;  %1463 = vrot.lane.b32.xlu0 %v8558_v58, %s7827_s23 }
 0x419   :  { %v8576_v43 = vld [vmem:[#allocation2 + $0x58] sm:$0xff] }
 0x41a   :  { %1409 = vst.msk [vmem:[#allocation2 + $0x68] sm:$0xff] %vm14_vm0, %v1393_v59 }
 0x41b   :  { %v7290_v30 = vpop.f32.mrf.mxu0 }
 0x41c   :  { %v1370_v61 = vadd.f32 %v7290_v30, %v8474_v53  ;;  %1469 = vrot.lane.b32.xlu1 %v8566_v60, %s7827_s23  ;;  %1517 = vrot.lane.b32.xlu0 %v8566_v60, %s7826_s0 }
 0x41d   :  { %v1364_v63 = vpop.f32.mrf.mxu0 }
 0x41e   :  { %v1396_v17 = vmax.f32 %v1370_v61, 0.0  ;;  %v1365_v19 = vadd.f32 %v8474_v53, %v1364_v63 }
 0x41f   :  { %v7293_v32 = vpop.f32.mrf.mxu0  ;;  %v8574_v22 = vld [vmem:[#allocation2 + $0x70] sm:$0xff] }
 0x420   :  { %1412 = vst.msk [vmem:[#allocation2 + $0x80] sm:$0xff] %vm14_vm0, %v1396_v17  ;;  %v1395_v26 = vmax.f32 %v1365_v19, 0.0  ;;  %v1380_v27 = vadd.f32 %v7293_v32, %v8474_v53  ;;  %1473 = vrot.lane.b32.xlu1 %v8574_v22, %s7827_s23  ;;  %1467 = vrot.lane.b32.xlu0 %v8576_v43, %s7827_s23 }
 0x421   :  { %v1374_v28 = vpop.f32.mrf.mxu0  ;;  %v8586_v34 = vld [vmem:[#allocation2 + $0x68] sm:$0xff] }
 0x422   :  { %1411 = vst.msk [vmem:[#allocation2 + $0x78] sm:$0xff] %vm14_vm0, %v1395_v26  ;;  %v1398_v29 = vmax.f32 %v1380_v27, 0.0  ;;  %v1375_v42 = vadd.f32 %v8474_v53, %v1374_v28 }
 0x424   :  { %1414 = vst.msk [vmem:[#allocation2 + $0x90] sm:$0xff] %vm14_vm0, %v1398_v29  ;;  %v1397_v35 = vmax.f32 %v1375_v42, 0.0  ;;  %1519 = vrot.lane.b32.xlu1 %v8586_v34, %s7826_s0  ;;  %1521 = vrot.lane.b32.xlu0 %v8574_v22, %s7826_s0  ;;  %v1423_v42 = vld [vmem:[#allocation2 + $0x50] sm:$0xff] }
 0x426   :  { %1413 = vst.msk [vmem:[#allocation2 + $0x88] sm:$0xff] %vm14_vm0, %v1397_v35 }
 0x427   :  { %v8594_v37 = vld [vmem:[#allocation2 + $0x80] sm:$0xff] }
 0x428   :  { %1477 = vrot.lane.b32.xlu1 %v8594_v37, %s7827_s23  ;;  %1471 = vrot.lane.b32.xlu0 %v8586_v34, %s7827_s23 }
 0x429   :  { %v8600_v53 = vld [vmem:[#allocation2 + $0x78] sm:$0xff] }
 0x42b   :  { %v1432_v51 = vld [vmem:[#allocation2 + $0x90] sm:$0xff] }
 0x42c   :  { %1523 = vrot.lane.b32.xlu1 %v8600_v53, %s7826_s0  ;;  %1525 = vrot.lane.b32.xlu0 %v8594_v37, %s7826_s0 }
 0x42d   :  { %v8609_v38 = vld [vmem:[#allocation2 + $0x88] sm:$0xff] }
 0x430   :  { %1481 = vrot.lane.b32.xlu1 %v1432_v51, %s7827_s23  ;;  %1475 = vrot.lane.b32.xlu0 %v8600_v53, %s7827_s23 }
 0x434   :  { %1527 = vrot.lane.b32.xlu1 %v8609_v38, %s7826_s0  ;;  %1479 = vrot.lane.b32.xlu0 %v8609_v38, %s7827_s23 }
 0x438   :  { %1531 = vrot.lane.b32.xlu1 %v1434_v56, %s7826_s0  ;;  %1529 = vrot.lane.b32.xlu0 %v1432_v51, %s7826_s0 }
 0x466   :  { %v1502_v39 = vpop.permute.xlu0 %1501  ;;  %v1454_v33 = vpop.permute.xlu1 %1453 }
 0x467   :  { %v1550_v54 = vsel %vm14_vm0, %v8512_v31, %v1454_v33 }
 0x46a   :  { %v1452_v44 = vpop.permute.xlu0 %1451 }
 0x46b   :  { %v1549_v45 = vsel %vm14_vm0, %v1415_v41, %v1452_v44 }
 0x46c   :  { %v1565_v46 = vsel %vm259_vm1, %v1549_v45, %v1502_v39 }
 0x46d   :  { %7318 = vmatprep.mubr.msk.f32.mxu1 %vm295_vm2, %v1565_v46 }
 0x472   :  { %v1458_v47 = vpop.permute.xlu1 %1457  ;;  %v1506_v20 = vpop.permute.xlu0 %1505 }
 0x473   :  { %v1552_v57 = vsel %vm14_vm0, %v8526_v40, %v1458_v47 }
 0x476   :  { %v1504_v49 = vpop.permute.xlu1 %1503  ;;  %v1456_v50 = vpop.permute.xlu0 %1455 }
 0x477   :  { %v1566_v24 = vsel %vm259_vm1, %v1550_v54, %v1504_v49  ;;  %v1551_v62 = vsel %vm14_vm0, %v8498_v23, %v1456_v50 }
 0x478   :  { %7319 = vmatmul.mubr.msk.f32.vlgmr.msra.gmra.mxu1 %vm295_vm2, %v1566_v24  ;;  %v1567_v25 = vsel %vm259_vm1, %v1551_v62, %v1506_v20 }
 0x479   :  { %7321 = vmatprep.mubr.msk.f32.mxu1 %vm295_vm2, %v1567_v25 }
 0x47e   :  { %v1462_v52 = vpop.permute.xlu1 %1461  ;;  %v1510_v55 = vpop.permute.xlu0 %1509 }
 0x47f   :  { %v1554_v17 = vsel %vm14_vm0, %v8546_v21, %v1462_v52 }
 0x482   :  { %v1508_v18 = vpop.permute.xlu1 %1507  ;;  %v1460_v31 = vpop.permute.xlu0 %1459 }
 0x483   :  { %v1568_v59 = vsel %vm259_vm1, %v1552_v57, %v1508_v18  ;;  %v1553_v30 = vsel %vm14_vm0, %v8518_v36, %v1460_v31 }
 0x484   :  { %7322 = vmatmul.mubr.msk.f32.gmra.mxu1 %vm295_vm2, %v1568_v59  ;;  %v1569_v23 = vsel %vm259_vm1, %v1553_v30, %v1510_v55  ;;  %v6466_v30 = vld [vmem:[%s10643_s1 + $0x1c0] sm:$0xff] }
 0x485   :  { %7324 = vmatprep.mubr.msk.f32.mxu1 %vm295_vm2, %v1569_v23  ;;  %v8694_v23 = vld [vmem:[%s10644_s2 + $0x3] ss:$0 sm:$0xff] }
 0x486   :  { %v1466_v61 = vpop.permute.xlu1 %1465  ;;  %v1514_v63 = vpop.permute.xlu0 %1513 }
 0x487   :  { %v1556_v36 = vsel %vm14_vm0, %v8558_v58, %v1466_v61 }
 0x488   :  { %v1572_v21 = vsel %vm259_vm1, %v1556_v36, %v1516_v0 }
 0x48a   :  { %v1512_v19 = vpop.permute.xlu1 %1511  ;;  %v1464_v40 = vpop.permute.xlu0 %1463 }
 0x48b   :  { %v1570_v32 = vsel %vm259_vm1, %v1554_v17, %v1512_v19  ;;  %v1555_v26 = vsel %vm14_vm0, %v8538_v48, %v1464_v40  ;;  %v6464_v40 = vld [vmem:[%s10643_s1 + $0x1b0] sm:$0xff] }
 0x48c   :  { %7325 = vmatmul.mubr.msk.f32.gmra.mxu1 %vm295_vm2, %v1570_v32  ;;  %v1571_v27 = vsel %vm259_vm1, %v1555_v26, %v1514_v63  ;;  %v6465_v63 = vld [vmem:[%s10643_s1 + $0x1b8] sm:$0xff]  ;;  %v6463_v32 = vld [vmem:[%s10643_s1 + $0x1a8] sm:$0xff] }
 0x48d   :  { %7327 = vmatprep.mubr.msk.f32.mxu1 %vm295_vm2, %v1571_v27 }
 0x48e   :  { %v1470_v28 = vpop.permute.xlu1 %1469  ;;  %v1518_v29 = vpop.permute.xlu0 %1517 }
 0x48f   :  { %v1558_v58 = vsel %vm14_vm0, %v8576_v43, %v1470_v28  ;;  %v6462_v28 = vld [vmem:[%s10643_s1 + $0x1a0] sm:$0xff] }
 0x490   :  { %7328 = vmatmul.mubr.msk.f32.gmra.mxu1 %vm295_vm2, %v1572_v21  ;;  %v6460_v21 = vld [vmem:[%s10643_s1 + $0x190] sm:$0xff] }
 0x492   :  { %v1474_v35 = vpop.permute.xlu1 %1473  ;;  %v1468_v51 = vpop.permute.xlu0 %1467 }
 0x493   :  { %v1557_v48 = vsel %vm14_vm0, %v1423_v42, %v1468_v51  ;;  %v1560_v47 = vsel %vm14_vm0, %v8586_v34, %v1474_v35  ;;  %v6459_v51 = vld [vmem:[%s10643_s1 + $0x188] sm:$0xff] }
 0x494   :  { %v1573_v56 = vsel %vm259_vm1, %v1557_v48, %v1518_v29  ;;  %v6461_v29 = vld [vmem:[%s10643_s1 + $0x198] sm:$0xff] }
 0x495   :  { %7330 = vmatprep.mubr.msk.f32.mxu1 %vm295_vm2, %v1573_v56 }
 0x496   :  { %v1520_v39 = vpop.permute.xlu1 %1519  ;;  %v1522_v41 = vpop.permute.xlu0 %1521 }
 0x497   :  { %v1574_v44 = vsel %vm259_vm1, %v1558_v58, %v1520_v39 }
 0x498   :  { %7331 = vmatmul.mubr.msk.f32.gmra.mxu1 %vm295_vm2, %v1574_v44  ;;  %v6458_v44 = vld [vmem:[%s10643_s1 + $0x180] sm:$0xff] }
 0x49a   :  { %v1478_v0 = vpop.permute.xlu1 %1477  ;;  %v1472_v45 = vpop.permute.xlu0 %1471 }
 0x49b   :  { %v1559_v46 = vsel %vm14_vm0, %v8566_v60, %v1472_v45  ;;  %v1562_v62 = vsel %vm14_vm0, %v8600_v53, %v1478_v0  ;;  %v6469_v53 = vld [vmem:[%s10643_s1 + $0x1d8] sm:$0xff] }
 0x49c   :  { %v1575_v33 = vsel %vm259_vm1, %v1559_v46, %v1522_v41  ;;  %7342 = vmatprep.subr.mxu0 %v6469_v53 }
 0x49d   :  { %7333 = vmatprep.mubr.msk.f32.mxu1 %vm295_vm2, %v1575_v33  ;;  %7343 = vmatpush3.msra.mxu0 %v6469_v53 }
 0x49e   :  { %v1524_v20 = vpop.permute.xlu1 %1523  ;;  %v1526_v43 = vpop.permute.xlu0 %1525 }
 0x49f   :  { %v1576_v54 = vsel %vm259_vm1, %v1560_v47, %v1524_v20 }
 0x4a0   :  { %7334 = vmatmul.mubr.msk.f32.gmra.mxu1 %vm295_vm2, %v1576_v54 }
 0x4a2   :  { %v1482_v49 = vpop.permute.xlu1 %1481  ;;  %v1476_v50 = vpop.permute.xlu0 %1475 }
 0x4a3   :  { %v1561_v24 = vsel %vm14_vm0, %v8574_v22, %v1476_v50  ;;  %v1564_v55 = vsel %vm14_vm0, %v8609_v38, %v1482_v49  ;;  %v6468_v38 = vld [vmem:[%s10643_s1 + $0x1d0] sm:$0xff] }
 0x4a4   :  { %v1577_v60 = vsel %vm259_vm1, %v1561_v24, %v1526_v43  ;;  %7344 = vmatprep.subr.mxu0 %v6468_v38 }
 0x4a5   :  { %7336 = vmatprep.mubr.msk.f32.mxu1 %vm295_vm2, %v1577_v60  ;;  %7345 = vmatpush3.msra.mxu0 %v6468_v38 }
 0x4a6   :  { %v1528_v25 = vpop.permute.xlu1 %1527  ;;  %v1480_v34 = vpop.permute.xlu0 %1479 }
 0x4a7   :  { %v1578_v52 = vsel %vm259_vm1, %v1562_v62, %v1528_v25  ;;  %v1563_v57 = vsel %vm14_vm0, %v8594_v37, %v1480_v34  ;;  %v6467_v37 = vld [vmem:[%s10643_s1 + $0x1c8] sm:$0xff] }
 0x4a8   :  { %7337 = vmatmul.mubr.msk.f32.gmra.mxu1 %vm295_vm2, %v1578_v52  ;;  %7346 = vmatprep.subr.mxu0 %v6467_v37 }
 0x4a9   :  { %7347 = vmatpush3.msra.mxu0 %v6467_v37 }
 0x4aa   :  { %v1532_v22 = vpop.permute.xlu1 %1531  ;;  %v1530_v18 = vpop.permute.xlu0 %1529  ;;  %7348 = vmatprep.subr.mxu0 %v6466_v30 }
 0x4ab   :  { %v1580_v31 = vsel %vm259_vm1, %v1564_v55, %v1532_v22  ;;  %v1579_v59 = vsel %vm259_vm1, %v1563_v57, %v1530_v18  ;;  %7349 = vmatpush3.msra.mxu0 %v6466_v30 }
 0x4ac   :  { %7339 = vmatprep.mubr.msk.f32.mxu1 %vm295_vm2, %v1579_v59  ;;  %7350 = vmatprep.subr.mxu0 %v6465_v63 }
 0x4ad   :  { %7340 = vmatmul.mubr.msk.f32.gmra.mxu1 %vm295_vm2, %v1580_v31  ;;  %7351 = vmatpush3.msra.mxu0 %v6465_v63 }
 0x4ae   :  { %7352 = vmatprep.subr.mxu0 %v6464_v40 }
 0x4af   :  { %7353 = vmatpush3.msra.mxu0 %v6464_v40 }
 0x4b0   :  { %7354 = vmatprep.subr.mxu0 %v6463_v32 }
 0x4b1   :  { %7355 = vmatpush3.msra.mxu0 %v6463_v32 }
 0x4b2   :  { %7356 = vmatprep.subr.mxu0 %v6462_v28 }
 0x4b3   :  { %7357 = vmatpush3.msra.mxu0 %v6462_v28 }
 0x4b4   :  { %7358 = vmatprep.subr.mxu0 %v6461_v29 }
 0x4b5   :  { %7359 = vmatpush3.msra.mxu0 %v6461_v29 }
 0x4b6   :  { %7360 = vmatprep.subr.mxu0 %v6460_v21 }
 0x4b7   :  { %7361 = vmatpush3.msra.mxu0 %v6460_v21 }
 0x4b8   :  { %7362 = vmatprep.subr.mxu0 %v6459_v51 }
 0x4b9   :  { %7363 = vmatpush3.msra.mxu0 %v6459_v51 }
 0x4ba   :  { %7364 = vmatprep.subr.mxu0 %v6458_v44 }
 0x4bb   :  { %7365 = vmatpush3.msra.mxu0 %v6458_v44 }
 0x538   :  { %v7320_v61 = vpop.f32.mrf.mxu1 }
 0x539   :  { %v1722_v17 = vadd.f32 %v7320_v61, %v8694_v23 }
 0x53a   :  { %v1716_v19 = vpop.f32.mrf.mxu1 }
 0x53b   :  { %v1796_v26 = vmax.f32 %v1722_v17, 0.0  ;;  %v1717_v36 = vadd.f32 %v8694_v23, %v1716_v19 }
 0x53d   :  { %1812 = vst.msk [vmem:[#allocation2 + $0x10] sm:$0xff] %vm14_vm0, %v1796_v26  ;;  %v1795_v27 = vmax.f32 %v1717_v36, 0.0 }
 0x53f   :  { %1811 = vst.msk [vmem:[#allocation2 + $0x8] sm:$0xff] %vm14_vm0, %v1795_v27 }
 0x544   :  { %v7323_v42 = vpop.f32.mrf.mxu1  ;;  %v1844_v35 = vld [vmem:[#allocation2 + $0x10] sm:$0xff] }
 0x545   :  { %v1732_v48 = vadd.f32 %v7323_v42, %v8694_v23  ;;  %1879 = vrot.lane.b32.xlu1 %v1844_v35, %s7827_s23 }
 0x546   :  { %v1726_v56 = vpop.f32.mrf.mxu1  ;;  %v1843_v58 = vld [vmem:[#allocation2 + $0x8] sm:$0xff] }
 0x547   :  { %v1798_v39 = vmax.f32 %v1732_v48, 0.0  ;;  %v1727_v41 = vadd.f32 %v8694_v23, %v1726_v56  ;;  %1877 = vrot.lane.b32.xlu0 %v1843_v58, %s7827_s23  ;;  %v8729_v45 = vld [vmem:[#allocation2 + $0xc] sm:$0xff] }
 0x549   :  { %1814 = vst.msk [vmem:[#allocation2 + $0x20] sm:$0xff] %vm14_vm0, %v1798_v39  ;;  %v1797_v0 = vmax.f32 %v1727_v41, 0.0 }
 0x54b   :  { %1813 = vst.msk [vmem:[#allocation2 + $0x18] sm:$0xff] %vm14_vm0, %v1797_v0  ;;  %1941 = vrot.lane.b32.xlu0 %v8729_v45, %s7826_s0 }
 0x54c   :  { %v7326_v46 = vpop.f32.mrf.mxu1 }
 0x54d   :  { %v1742_v33 = vadd.f32 %v7326_v46, %v8694_v23 }
 0x54e   :  { %v1736_v47 = vpop.f32.mrf.mxu1 }
 0x54f   :  { %v1800_v20 = vmax.f32 %v1742_v33, 0.0  ;;  %v1737_v43 = vadd.f32 %v8694_v23, %v1736_v47 }
 0x550   :  { %v7329_v54 = vpop.f32.mrf.mxu1  ;;  %v1846_v49 = vld [vmem:[#allocation2 + $0x20] sm:$0xff] }
 0x551   :  { %1816 = vst.msk [vmem:[#allocation2 + $0x30] sm:$0xff] %vm14_vm0, %v1800_v20  ;;  %v1799_v50 = vmax.f32 %v1737_v43, 0.0  ;;  %v1752_v24 = vadd.f32 %v7329_v54, %v8694_v23  ;;  %1883 = vrot.lane.b32.xlu1 %v1846_v49, %s7827_s23 }
 0x552   :  { %v1746_v60 = vpop.f32.mrf.mxu1  ;;  %v1845_v62 = vld [vmem:[#allocation2 + $0x18] sm:$0xff] }
 0x553   :  { %1815 = vst.msk [vmem:[#allocation2 + $0x28] sm:$0xff] %vm14_vm0, %v1799_v50  ;;  %v1802_v25 = vmax.f32 %v1752_v24, 0.0  ;;  %v1747_v34 = vadd.f32 %v8694_v23, %v1746_v60  ;;  %1881 = vrot.lane.b32.xlu0 %v1845_v62, %s7827_s23  ;;  %v8742_v52 = vld [vmem:[#allocation2 + $0x14] sm:$0xff]  ;;  %v8747_v57 = vld [vmem:[#allocation2 + $0x1c] sm:$0xff] }
 0x555   :  { %1818 = vst.msk [vmem:[#allocation2 + $0x40] sm:$0xff] %vm14_vm0, %v1802_v25  ;;  %v1801_v55 = vmax.f32 %v1747_v34, 0.0  ;;  %1943 = vrot.lane.b32.xlu1 %v8742_v52, %s7826_s0 }
 0x557   :  { %1817 = vst.msk [vmem:[#allocation2 + $0x38] sm:$0xff] %vm14_vm0, %v1801_v55  ;;  %1945 = vrot.lane.b32.xlu0 %v8747_v57, %s7826_s0 }
 0x558   :  { %v7332_v22 = vpop.f32.mrf.mxu1  ;;  %v1848_v18 = vld [vmem:[#allocation2 + $0x30] sm:$0xff] }
 0x559   :  { %v1762_v31 = vadd.f32 %v7332_v22, %v8694_v23  ;;  %1887 = vrot.lane.b32.xlu1 %v1848_v18, %s7827_s23 }
 0x55a   :  { %v1756_v59 = vpop.f32.mrf.mxu1  ;;  %v1847_v53 = vld [vmem:[#allocation2 + $0x28] sm:$0xff] }
 0x55b   :  { %v1804_v38 = vmax.f32 %v1762_v31, 0.0  ;;  %v1757_v37 = vadd.f32 %v8694_v23, %v1756_v59  ;;  %1885 = vrot.lane.b32.xlu0 %v1847_v53, %s7827_s23  ;;  %v8756_v30 = vld [vmem:[#allocation2 + $0x24] sm:$0xff]  ;;  %v8761_v63 = vld [vmem:[#allocation2 + $0x2c] sm:$0xff] }
 0x55c   :  { %v1850_v19 = vld [vmem:[#allocation2 + $0x40] sm:$0xff] }
 0x55d   :  { %1820 = vst.msk [vmem:[#allocation2 + $0x60] sm:$0xff] %vm14_vm0, %v1804_v38  ;;  %v1803_v61 = vmax.f32 %v1757_v37, 0.0  ;;  %1947 = vrot.lane.b32.xlu1 %v8756_v30, %s7826_s0  ;;  %v1859_v28 = vld [vmem:[#allocation2 + $0x44] sm:$0xff] }
 0x55e   :  { %v1849_v26 = vld [vmem:[#allocation2 + $0x38] sm:$0xff]  ;;  %v1827_v38 = vld [vmem:[#allocation2 + $0x4] sm:$0xff] }
 0x55f   :  { %1819 = vst.msk [vmem:[#allocation2 + $0x58] sm:$0xff] %vm14_vm0, %v1803_v61  ;;  %1949 = vrot.lane.b32.xlu0 %v8761_v63, %s7826_s0  ;;  %v8772_v21 = vld [vmem:[#allocation2 + $0x3c] sm:$0xff]  ;;  %v8777_v42 = vld [vmem:[#allocation2 + $0x34] sm:$0xff] }
 0x560   :  { %v7335_v17 = vpop.f32.mrf.mxu1 }
 0x561   :  { %v1772_v40 = vadd.f32 %v7335_v17, %v8694_v23  ;;  %1891 = vrot.lane.b32.xlu1 %v1850_v19, %s7827_s23 }
 0x562   :  { %v1766_v32 = vpop.f32.mrf.mxu1 }
 0x563   :  { %v1806_v36 = vmax.f32 %v1772_v40, 0.0  ;;  %v1767_v27 = vadd.f32 %v8694_v23, %v1766_v32  ;;  %1889 = vrot.lane.b32.xlu0 %v1849_v26, %s7827_s23 }
 0x564   :  { %v1852_v41 = vld [vmem:[#allocation2 + $0x60] sm:$0xff] }
 0x565   :  { %1822 = vst.msk [vmem:[#allocation2 + $0x70] sm:$0xff] %vm14_vm0, %v1806_v36  ;;  %v1805_v29 = vmax.f32 %v1767_v27, 0.0  ;;  %1955 = vrot.lane.b32.xlu1 %v1859_v28, %s7826_s0 }
 0x566   :  { %v1851_v56 = vld [vmem:[#allocation2 + $0x58] sm:$0xff] }
 0x567   :  { %1821 = vst.msk [vmem:[#allocation2 + $0x68] sm:$0xff] %vm14_vm0, %v1805_v29  ;;  %1953 = vrot.lane.b32.xlu0 %v8772_v21, %s7826_s0  ;;  %v8787_v33 = vld [vmem:[#allocation2 + $0x5c] sm:$0xff] }
 0x568   :  { %v7338_v35 = vpop.f32.mrf.mxu1 }
 0x569   :  { %v1782_v51 = vadd.f32 %v7338_v35, %v8694_v23  ;;  %1951 = vrot.lane.b32.xlu1 %v8777_v42, %s7826_s0 }
 0x56a   :  { %v1776_v48 = vpop.f32.mrf.mxu1 }
 0x56b   :  { %v1808_v58 = vmax.f32 %v1782_v51, 0.0  ;;  %v1777_v39 = vadd.f32 %v8694_v23, %v1776_v48  ;;  %1893 = vrot.lane.b32.xlu0 %v1851_v56, %s7827_s23 }
 0x56c   :  { %v1854_v54 = vld [vmem:[#allocation2 + $0x70] sm:$0xff] }
 0x56d   :  { %1824 = vst.msk [vmem:[#allocation2 + $0x80] sm:$0xff] %vm14_vm0, %v1808_v58  ;;  %v1807_v44 = vmax.f32 %v1777_v39, 0.0  ;;  %v7341_v0 = vpop.f32.mrf.mxu1  ;;  %1895 = vrot.lane.b32.xlu1 %v1852_v41, %s7827_s23 }
 0x56e   :  { %v1792_v46 = vadd.f32 %v7341_v0, %v8694_v23  ;;  %v1853_v50 = vld [vmem:[#allocation2 + $0x68] sm:$0xff] }
 0x56f   :  { %1823 = vst.msk [vmem:[#allocation2 + $0x78] sm:$0xff] %vm14_vm0, %v1807_v44  ;;  %v1786_v47 = vpop.f32.mrf.mxu1  ;;  %1957 = vrot.lane.b32.xlu0 %v8787_v33, %s7826_s0  ;;  %v8797_v24 = vld [vmem:[#allocation2 + $0x64] sm:$0xff]  ;;  %v8801_v60 = vld [vmem:[#allocation2 + $0x6c] sm:$0xff] }
 0x570   :  { %v1810_v20 = vmax.f32 %v1792_v46, 0.0  ;;  %v1787_v43 = vadd.f32 %v8694_v23, %v1786_v47 }
 0x571   :  { %1899 = vrot.lane.b32.xlu1 %v1854_v54, %s7827_s23 }
 0x572   :  { %1826 = vst.msk [vmem:[#allocation2 + $0x90] sm:$0xff] %vm14_vm0, %v1810_v20  ;;  %v1809_v49 = vmax.f32 %v1787_v43, 0.0 }
 0x573   :  { %1897 = vrot.lane.b32.xlu0 %v1853_v50, %s7827_s23 }
 0x574   :  { %1825 = vst.msk [vmem:[#allocation2 + $0x88] sm:$0xff] %vm14_vm0, %v1809_v49  ;;  %v1856_v23 = vld [vmem:[#allocation2 + $0x80] sm:$0xff] }
 0x575   :  { %1959 = vrot.lane.b32.xlu1 %v8797_v24, %s7826_s0 }
 0x576   :  { %v1855_v62 = vld [vmem:[#allocation2 + $0x78] sm:$0xff] }
 0x577   :  { %1961 = vrot.lane.b32.xlu0 %v8801_v60, %s7826_s0  ;;  %v8807_v25 = vld [vmem:[#allocation2 + $0x74] sm:$0xff]  ;;  %v8811_v34 = vld [vmem:[#allocation2 + $0x7c] sm:$0xff] }
 0x579   :  { %1903 = vrot.lane.b32.xlu1 %v1856_v23, %s7827_s23  ;;  %v1858_v55 = vld [vmem:[#allocation2 + $0x90] sm:$0xff] }
 0x57a   :  { %v1860_v59 = vld [vmem:[#allocation2 + $0x94] sm:$0xff] }
 0x57b   :  { %1901 = vrot.lane.b32.xlu0 %v1855_v62, %s7827_s23  ;;  %v1857_v22 = vld [vmem:[#allocation2 + $0x88] sm:$0xff] }
 0x57c   :  { %v8817_v18 = vld [vmem:[#allocation2 + $0x84] sm:$0xff]  ;;  %v8821_v31 = vld [vmem:[#allocation2 + $0x8c] sm:$0xff] }
 0x57d   :  { %1963 = vrot.lane.b32.xlu1 %v8807_v25, %s7826_s0 }
 0x57f   :  { %1965 = vrot.lane.b32.xlu0 %v8811_v34, %s7826_s0 }
 0x581   :  { %1907 = vrot.lane.b32.xlu1 %v1858_v55, %s7827_s23 }
 0x583   :  { %1905 = vrot.lane.b32.xlu0 %v1857_v22, %s7827_s23 }
 0x585   :  { %1967 = vrot.lane.b32.xlu1 %v8817_v18, %s7826_s0 }
 0x587   :  { %1969 = vrot.lane.b32.xlu0 %v8821_v31, %s7826_s0 }
 0x589   :  { %1971 = vrot.lane.b32.xlu1 %v1860_v59, %s7826_s0 }
 0x5b7   :  { %v1880_v19 = vpop.permute.xlu1 %1879 }
 0x5b8   :  { %v1990_v26 = vsel %vm14_vm0, %v8729_v45, %v1880_v19 }
 0x5b9   :  { %v1878_v53 = vpop.permute.xlu0 %1877 }
 0x5ba   :  { %v1989_v37 = vsel %vm14_vm0, %v1827_v38, %v1878_v53 }
 0x5bd   :  { %v1942_v61 = vpop.permute.xlu0 %1941 }
 0x5be   :  { %v2005_v17 = vsel %vm259_vm1, %v1989_v37, %v1942_v61 }
 0x5bf   :  { %7366 = vmatprep.mubr.msk.f32.mxu0 %vm295_vm2, %v2005_v17 }
 0x5c3   :  { %v1884_v40 = vpop.permute.xlu1 %1883 }
 0x5c4   :  { %v1992_v56 = vsel %vm14_vm0, %v8747_v57, %v1884_v40 }
 0x5c5   :  { %v1882_v32 = vpop.permute.xlu0 %1881 }
 0x5c6   :  { %v1991_v28 = vsel %vm14_vm0, %v8742_v52, %v1882_v32 }
 0x5c7   :  { %v1944_v36 = vpop.permute.xlu1 %1943 }
 0x5c8   :  { %v2006_v27 = vsel %vm259_vm1, %v1990_v26, %v1944_v36 }
 0x5c9   :  { %v1946_v29 = vpop.permute.xlu0 %1945  ;;  %7367 = vmatmul.mubr.msk.f32.vlgmr.msra.gmra.mxu0 %vm295_vm2, %v2006_v27 }
 0x5ca   :  { %v2007_v35 = vsel %vm259_vm1, %v1991_v28, %v1946_v29 }
 0x5cb   :  { %v1888_v51 = vpop.permute.xlu1 %1887  ;;  %7369 = vmatprep.mubr.msk.f32.mxu0 %vm295_vm2, %v2007_v35 }
 0x5cc   :  { %v1994_v57 = vsel %vm14_vm0, %v8761_v63, %v1888_v51  ;;  %v1835_v63 = vld [vmem:[#allocation2 + $0x54] sm:$0xff] }
 0x5cd   :  { %v1886_v48 = vpop.permute.xlu0 %1885 }
 0x5ce   :  { %v1993_v39 = vsel %vm14_vm0, %v8756_v30, %v1886_v48 }
 0x5cf   :  { %v1948_v58 = vpop.permute.xlu1 %1947 }
 0x5d0   :  { %v2008_v45 = vsel %vm259_vm1, %v1992_v56, %v1948_v58 }
 0x5d1   :  { %v1950_v41 = vpop.permute.xlu0 %1949  ;;  %7370 = vmatmul.mubr.msk.f32.gmra.mxu0 %vm295_vm2, %v2008_v45 }
 0x5d2   :  { %v2009_v52 = vsel %vm259_vm1, %v1993_v39, %v1950_v41 }
 0x5d3   :  { %v1892_v44 = vpop.permute.xlu1 %1891  ;;  %7372 = vmatprep.mubr.msk.f32.mxu0 %vm295_vm2, %v2009_v52  ;;  %v6496_v52 = vld [vmem:[%s10643_s1 + $0x220] sm:$0xff] }
 0x5d4   :  { %v1996_v50 = vsel %vm14_vm0, %v8772_v21, %v1892_v44  ;;  %v6495_v44 = vld [vmem:[%s10643_s1 + $0x218] sm:$0xff] }
 0x5d5   :  { %v1890_v0 = vpop.permute.xlu0 %1889 }
 0x5d6   :  { %v1995_v43 = vsel %vm14_vm0, %v8777_v42, %v1890_v0  ;;  %v6494_v0 = vld [vmem:[%s10643_s1 + $0x210] sm:$0xff] }
 0x5d7   :  { %v1956_v46 = vpop.permute.xlu1 %1955 }
 0x5d8   :  { %v2012_v62 = vsel %vm259_vm1, %v1996_v50, %v1956_v46  ;;  %v8909_v46 = vld [vmem:[%s10644_s2 + $0x4] ss:$0 sm:$0xff] }
 0x5d9   :  { %v1954_v47 = vpop.permute.xlu0 %1953 }
 0x5da   :  { %v2011_v54 = vsel %vm259_vm1, %v1995_v43, %v1954_v47 }
 0x5db   :  { %v1952_v20 = vpop.permute.xlu1 %1951 }
 0x5dc   :  { %v2010_v30 = vsel %vm259_vm1, %v1994_v57, %v1952_v20  ;;  %v6493_v57 = vld [vmem:[%s10643_s1 + $0x208] sm:$0xff] }
 0x5dd   :  { %v1894_v49 = vpop.permute.xlu0 %1893  ;;  %7373 = vmatmul.mubr.msk.f32.gmra.mxu0 %vm295_vm2, %v2010_v30  ;;  %v6492_v30 = vld [vmem:[%s10643_s1 + $0x200] sm:$0xff] }
 0x5de   :  { %7375 = vmatprep.mubr.msk.f32.mxu0 %vm295_vm2, %v2011_v54  ;;  %v1997_v55 = vsel %vm14_vm0, %v1835_v63, %v1894_v49  ;;  %v6491_v54 = vld [vmem:[%s10643_s1 + $0x1f8] sm:$0xff] }
 0x5df   :  { %v1896_v23 = vpop.permute.xlu1 %1895 }
 0x5e0   :  { %v1998_v38 = vsel %vm14_vm0, %v8787_v33, %v1896_v23 }
 0x5e1   :  { %v1958_v22 = vpop.permute.xlu0 %1957  ;;  %7376 = vmatmul.mubr.msk.f32.gmra.mxu0 %vm295_vm2, %v2012_v62  ;;  %v6490_v62 = vld [vmem:[%s10643_s1 + $0x1f0] sm:$0xff] }
 0x5e2   :  { %v2013_v42 = vsel %vm259_vm1, %v1997_v55, %v1958_v22  ;;  %v6489_v55 = vld [vmem:[%s10643_s1 + $0x1e8] sm:$0xff] }
 0x5e3   :  { %v1900_v59 = vpop.permute.xlu1 %1899  ;;  %7378 = vmatprep.mubr.msk.f32.mxu0 %vm295_vm2, %v2013_v42 }
 0x5e4   :  { %v2000_v26 = vsel %vm14_vm0, %v8801_v60, %v1900_v59  ;;  %v6488_v59 = vld [vmem:[%s10643_s1 + $0x1e0] sm:$0xff] }
 0x5e5   :  { %v1898_v53 = vpop.permute.xlu0 %1897 }
 0x5e6   :  { %v1999_v61 = vsel %vm14_vm0, %v8797_v24, %v1898_v53 }
 0x5e7   :  { %v1960_v37 = vpop.permute.xlu1 %1959 }
 0x5e8   :  { %v2014_v21 = vsel %vm259_vm1, %v1998_v38, %v1960_v37 }
 0x5e9   :  { %v1962_v17 = vpop.permute.xlu0 %1961  ;;  %7379 = vmatmul.mubr.msk.f32.gmra.mxu0 %vm295_vm2, %v2014_v21 }
 0x5ea   :  { %v2015_v19 = vsel %vm259_vm1, %v1999_v61, %v1962_v17 }
 0x5eb   :  { %v1904_v40 = vpop.permute.xlu1 %1903  ;;  %7381 = vmatprep.mubr.msk.f32.mxu0 %vm295_vm2, %v2015_v19 }
 0x5ec   :  { %v2002_v51 = vsel %vm14_vm0, %v8811_v34, %v1904_v40  ;;  %v6499_v34 = vld [vmem:[%s10643_s1 + $0x238] sm:$0xff] }
 0x5ed   :  { %v1902_v32 = vpop.permute.xlu0 %1901  ;;  %7390 = vmatprep.subr.mxu1 %v6499_v34 }
 0x5ee   :  { %v2001_v27 = vsel %vm14_vm0, %v8807_v25, %v1902_v32  ;;  %7391 = vmatpush3.msra.mxu1 %v6499_v34 }
 0x5ef   :  { %v1964_v36 = vpop.permute.xlu1 %1963 }
 0x5f0   :  { %v2016_v33 = vsel %vm259_vm1, %v2000_v26, %v1964_v36 }
 0x5f1   :  { %v1966_v28 = vpop.permute.xlu0 %1965  ;;  %7382 = vmatmul.mubr.msk.f32.gmra.mxu0 %vm295_vm2, %v2016_v33 }
 0x5f2   :  { %v2017_v24 = vsel %vm259_vm1, %v2001_v27, %v1966_v28 }
 0x5f3   :  { %v1908_v29 = vpop.permute.xlu1 %1907  ;;  %7384 = vmatprep.mubr.msk.f32.mxu0 %vm295_vm2, %v2017_v24 }
 0x5f4   :  { %v2004_v45 = vsel %vm14_vm0, %v8821_v31, %v1908_v29  ;;  %v6497_v31 = vld [vmem:[%s10643_s1 + $0x228] sm:$0xff] }
 0x5f5   :  { %v1906_v35 = vpop.permute.xlu0 %1905 }
 0x5f6   :  { %v2003_v56 = vsel %vm14_vm0, %v8817_v18, %v1906_v35  ;;  %v6498_v18 = vld [vmem:[%s10643_s1 + $0x230] sm:$0xff] }
 0x5f7   :  { %v1968_v48 = vpop.permute.xlu1 %1967  ;;  %7392 = vmatprep.subr.mxu1 %v6498_v18 }
 0x5f8   :  { %v2018_v60 = vsel %vm259_vm1, %v2002_v51, %v1968_v48  ;;  %7393 = vmatpush3.msra.mxu1 %v6498_v18 }
 0x5f9   :  { %v1970_v58 = vpop.permute.xlu0 %1969  ;;  %7385 = vmatmul.mubr.msk.f32.gmra.mxu0 %vm295_vm2, %v2018_v60  ;;  %7394 = vmatprep.subr.mxu1 %v6497_v31 }
 0x5fa   :  { %v2019_v25 = vsel %vm259_vm1, %v2003_v56, %v1970_v58  ;;  %7395 = vmatpush3.msra.mxu1 %v6497_v31 }
 0x5fb   :  { %v1972_v39 = vpop.permute.xlu1 %1971  ;;  %7387 = vmatprep.mubr.msk.f32.mxu0 %vm295_vm2, %v2019_v25  ;;  %7396 = vmatprep.subr.mxu1 %v6496_v52 }
 0x5fc   :  { %v2020_v41 = vsel %vm259_vm1, %v2004_v45, %v1972_v39  ;;  %7397 = vmatpush3.msra.mxu1 %v6496_v52 }
 0x5fd   :  { %7388 = vmatmul.mubr.msk.f32.gmra.mxu0 %vm295_vm2, %v2020_v41  ;;  %7398 = vmatprep.subr.mxu1 %v6495_v44 }
 0x5fe   :  { %7399 = vmatpush3.msra.mxu1 %v6495_v44 }
 0x5ff   :  { %7400 = vmatprep.subr.mxu1 %v6494_v0 }
 0x600   :  { %7401 = vmatpush3.msra.mxu1 %v6494_v0 }
 0x601   :  { %7402 = vmatprep.subr.mxu1 %v6493_v57 }
 0x602   :  { %7403 = vmatpush3.msra.mxu1 %v6493_v57 }
 0x603   :  { %7404 = vmatprep.subr.mxu1 %v6492_v30 }
 0x604   :  { %7405 = vmatpush3.msra.mxu1 %v6492_v30 }
 0x605   :  { %7406 = vmatprep.subr.mxu1 %v6491_v54 }
 0x606   :  { %7407 = vmatpush3.msra.mxu1 %v6491_v54 }
 0x607   :  { %7408 = vmatprep.subr.mxu1 %v6490_v62 }
 0x608   :  { %7409 = vmatpush3.msra.mxu1 %v6490_v62 }
 0x609   :  { %7410 = vmatprep.subr.mxu1 %v6489_v55 }
 0x60a   :  { %7411 = vmatpush3.msra.mxu1 %v6489_v55 }
 0x60b   :  { %7412 = vmatprep.subr.mxu1 %v6488_v59 }
 0x60c   :  { %7413 = vmatpush3.msra.mxu1 %v6488_v59 }
 0x689   :  { %v7368_v47 = vpop.f32.mrf.mxu0 }
 0x68a   :  { %v2162_v20 = vadd.f32 %v7368_v47, %v8909_v46 }
 0x68b   :  { %v2156_v43 = vpop.f32.mrf.mxu0 }
 0x68c   :  { %v2236_v49 = vmax.f32 %v2162_v20, 0.0  ;;  %v2157_v50 = vadd.f32 %v8909_v46, %v2156_v43 }
 0x68e   :  { %2252 = vst.msk [vmem:[#allocation2 + $0x10] sm:$0xff] %vm14_vm0, %v2236_v49  ;;  %v2235_v23 = vmax.f32 %v2157_v50, 0.0 }
 0x690   :  { %2251 = vst.msk [vmem:[#allocation2 + $0x8] sm:$0xff] %vm14_vm0, %v2235_v23 }
 0x691   :  { %v7371_v63 = vpop.f32.mrf.mxu0 }
 0x692   :  { %v2172_v22 = vadd.f32 %v7371_v63, %v8909_v46 }
 0x693   :  { %v2166_v42 = vpop.f32.mrf.mxu0 }
 0x694   :  { %v2238_v53 = vmax.f32 %v2172_v22, 0.0  ;;  %v2167_v38 = vadd.f32 %v8909_v46, %v2166_v42 }
 0x695   :  { %v2284_v37 = vld [vmem:[#allocation2 + $0x10] sm:$0xff] }
 0x696   :  { %2254 = vst.msk [vmem:[#allocation2 + $0x20] sm:$0xff] %vm14_vm0, %v2238_v53  ;;  %v2237_v21 = vmax.f32 %v2167_v38, 0.0  ;;  %2333 = vrot.lane.b32.xlu1 %v2284_v37, %s7827_s23 }
 0x697   :  { %v2283_v61 = vld [vmem:[#allocation2 + $0x8] sm:$0xff] }
 0x698   :  { %2253 = vst.msk [vmem:[#allocation2 + $0x18] sm:$0xff] %vm14_vm0, %v2237_v21  ;;  %2331 = vrot.lane.b32.xlu0 %v2283_v61, %s7827_s23  ;;  %v2299_v17 = vld [vmem:[#allocation2 + $0xa] sm:$0xff] }
 0x69c   :  { %2395 = vrot.lane.b32.xlu0 %v2299_v17, %s7826_s0 }
 0x69d   :  { %v7374_v19 = vpop.f32.mrf.mxu0  ;;  %v2286_v40 = vld [vmem:[#allocation2 + $0x20] sm:$0xff] }
 0x69e   :  { %v2182_v32 = vadd.f32 %v7374_v19, %v8909_v46  ;;  %2337 = vrot.lane.b32.xlu1 %v2286_v40, %s7827_s23 }
 0x69f   :  { %v2176_v26 = vpop.f32.mrf.mxu0  ;;  %v2285_v36 = vld [vmem:[#allocation2 + $0x18] sm:$0xff] }
 0x6a0   :  { %v2240_v33 = vmax.f32 %v2182_v32, 0.0  ;;  %v2177_v27 = vadd.f32 %v8909_v46, %v2176_v26  ;;  %2335 = vrot.lane.b32.xlu0 %v2285_v36, %s7827_s23  ;;  %v2300_v28 = vld [vmem:[#allocation2 + $0x12] sm:$0xff]  ;;  %v2301_v51 = vld [vmem:[#allocation2 + $0x1a] sm:$0xff] }
 0x6a1   :  { %v7377_v24 = vpop.f32.mrf.mxu0 }
 0x6a2   :  { %2256 = vst.msk [vmem:[#allocation2 + $0x30] sm:$0xff] %vm14_vm0, %v2240_v33  ;;  %v2239_v29 = vmax.f32 %v2177_v27, 0.0  ;;  %v2192_v35 = vadd.f32 %v7377_v24, %v8909_v46  ;;  %2397 = vrot.lane.b32.xlu1 %v2300_v28, %s7826_s0 }
 0x6a3   :  { %v2186_v48 = vpop.f32.mrf.mxu0 }
 0x6a4   :  { %2255 = vst.msk [vmem:[#allocation2 + $0x28] sm:$0xff] %vm14_vm0, %v2239_v29  ;;  %v2242_v60 = vmax.f32 %v2192_v35, 0.0  ;;  %v2187_v56 = vadd.f32 %v8909_v46, %v2186_v48  ;;  %2399 = vrot.lane.b32.xlu0 %v2301_v51, %s7826_s0 }
 0x6a6   :  { %2258 = vst.msk [vmem:[#allocation2 + $0x40] sm:$0xff] %vm14_vm0, %v2242_v60  ;;  %v2241_v58 = vmax.f32 %v2187_v56, 0.0 }
 0x6a8   :  { %2257 = vst.msk [vmem:[#allocation2 + $0x38] sm:$0xff] %vm14_vm0, %v2241_v58 }
 0x6a9   :  { %v7380_v25 = vpop.f32.mrf.mxu0  ;;  %v2288_v45 = vld [vmem:[#allocation2 + $0x30] sm:$0xff] }
 0x6aa   :  { %v2202_v39 = vadd.f32 %v7380_v25, %v8909_v46  ;;  %2341 = vrot.lane.b32.xlu1 %v2288_v45, %s7827_s23 }
 0x6ab   :  { %v2196_v41 = vpop.f32.mrf.mxu0  ;;  %v2287_v34 = vld [vmem:[#allocation2 + $0x28] sm:$0xff] }
 0x6ac   :  { %v2244_v18 = vmax.f32 %v2202_v39, 0.0  ;;  %v2197_v31 = vadd.f32 %v8909_v46, %v2196_v41  ;;  %2339 = vrot.lane.b32.xlu0 %v2287_v34, %s7827_s23  ;;  %v2302_v52 = vld [vmem:[#allocation2 + $0x22] sm:$0xff]  ;;  %v2303_v0 = vld [vmem:[#allocation2 + $0x2a] sm:$0xff] }
 0x6ad   :  { %v2290_v57 = vld [vmem:[#allocation2 + $0x40] sm:$0xff] }
 0x6ae   :  { %2260 = vst.msk [vmem:[#allocation2 + $0x60] sm:$0xff] %vm14_vm0, %v2244_v18  ;;  %v2243_v44 = vmax.f32 %v2197_v31, 0.0  ;;  %2401 = vrot.lane.b32.xlu1 %v2302_v52, %s7826_s0  ;;  %v2306_v50 = vld [vmem:[#allocation2 + $0x42] sm:$0xff] }
 0x6af   :  { %v2289_v30 = vld [vmem:[#allocation2 + $0x38] sm:$0xff]  ;;  %v2267_v41 = vld [vmem:[#allocation2 + $0x6] sm:$0xff] }
 0x6b0   :  { %2259 = vst.msk [vmem:[#allocation2 + $0x58] sm:$0xff] %vm14_vm0, %v2243_v44  ;;  %2403 = vrot.lane.b32.xlu0 %v2303_v0, %s7826_s0  ;;  %v2305_v62 = vld [vmem:[#allocation2 + $0x3a] sm:$0xff]  ;;  %v2304_v63 = vld [vmem:[#allocation2 + $0x32] sm:$0xff] }
 0x6b1   :  { %v7383_v47 = vpop.f32.mrf.mxu0  ;;  %v2268_v0 = vld [vmem:[#allocation2 + $0xe] sm:$0xff] }
 0x6b2   :  { %v2212_v20 = vadd.f32 %v7383_v47, %v8909_v46  ;;  %2345 = vrot.lane.b32.xlu1 %v2290_v57, %s7827_s23 }
 0x6b3   :  { %v2206_v43 = vpop.f32.mrf.mxu0 }
 0x6b4   :  { %v2246_v54 = vmax.f32 %v2212_v20, 0.0  ;;  %v2207_v49 = vadd.f32 %v8909_v46, %v2206_v43  ;;  %2343 = vrot.lane.b32.xlu0 %v2289_v30, %s7827_s23  ;;  %v2269_v20 = vld [vmem:[#allocation2 + $0x16] sm:$0xff] }
 0x6b5   :  { %v2292_v21 = vld [vmem:[#allocation2 + $0x60] sm:$0xff] }
 0x6b6   :  { %2262 = vst.msk [vmem:[#allocation2 + $0x70] sm:$0xff] %vm14_vm0, %v2246_v54  ;;  %v2245_v23 = vmax.f32 %v2207_v49, 0.0  ;;  %2409 = vrot.lane.b32.xlu1 %v2306_v50, %s7826_s0 }
 0x6b7   :  { %v2291_v59 = vld [vmem:[#allocation2 + $0x58] sm:$0xff] }
 0x6b8   :  { %2261 = vst.msk [vmem:[#allocation2 + $0x68] sm:$0xff] %vm14_vm0, %v2245_v23  ;;  %2407 = vrot.lane.b32.xlu0 %v2305_v62, %s7826_s0  ;;  %v2307_v19 = vld [vmem:[#allocation2 + $0x5a] sm:$0xff] }
 0x6b9   :  { %v7386_v55 = vpop.f32.mrf.mxu0  ;;  %v2270_v62 = vld [vmem:[#allocation2 + $0x1e] sm:$0xff] }
 0x6ba   :  { %v2222_v22 = vadd.f32 %v7386_v55, %v8909_v46  ;;  %2405 = vrot.lane.b32.xlu1 %v2304_v63, %s7826_s0 }
 0x6bb   :  { %v2216_v42 = vpop.f32.mrf.mxu0 }
 0x6bc   :  { %v2248_v53 = vmax.f32 %v2222_v22, 0.0  ;;  %v2217_v38 = vadd.f32 %v8909_v46, %v2216_v42  ;;  %2347 = vrot.lane.b32.xlu0 %v2291_v59, %s7827_s23  ;;  %v2271_v22 = vld [vmem:[#allocation2 + $0x26] sm:$0xff] }
 0x6bd   :  { %v7389_v37 = vpop.f32.mrf.mxu0  ;;  %v2294_v36 = vld [vmem:[#allocation2 + $0x70] sm:$0xff] }
 0x6be   :  { %2264 = vst.msk [vmem:[#allocation2 + $0x80] sm:$0xff] %vm14_vm0, %v2248_v53  ;;  %v2247_v61 = vmax.f32 %v2217_v38, 0.0  ;;  %v2232_v17 = vadd.f32 %v7389_v37, %v8909_v46  ;;  %2349 = vrot.lane.b32.xlu1 %v2292_v21, %s7827_s23 }
 0x6bf   :  { %v2226_v40 = vpop.f32.mrf.mxu0  ;;  %v2293_v27 = vld [vmem:[#allocation2 + $0x68] sm:$0xff] }
 0x6c0   :  { %2263 = vst.msk [vmem:[#allocation2 + $0x78] sm:$0xff] %vm14_vm0, %v2247_v61  ;;  %v2250_v32 = vmax.f32 %v2232_v17, 0.0  ;;  %v2227_v26 = vadd.f32 %v8909_v46, %v2226_v40  ;;  %2411 = vrot.lane.b32.xlu0 %v2307_v19, %s7826_s0  ;;  %v2308_v28 = vld [vmem:[#allocation2 + $0x62] sm:$0xff]  ;;  %v2309_v24 = vld [vmem:[#allocation2 + $0x6a] sm:$0xff]  ;;  %v2273_v40 = vld [vmem:[#allocation2 + $0x36] sm:$0xff] }
 0x6c1   :  { %v2272_v19 = vld [vmem:[#allocation2 + $0x2e] sm:$0xff] }
 0x6c2   :  { %2266 = vst.msk [vmem:[#allocation2 + $0x90] sm:$0xff] %vm14_vm0, %v2250_v32  ;;  %v2249_v33 = vmax.f32 %v2227_v26, 0.0  ;;  %2353 = vrot.lane.b32.xlu1 %v2294_v36, %s7827_s23 }
 0x6c4   :  { %2265 = vst.msk [vmem:[#allocation2 + $0x88] sm:$0xff] %vm14_vm0, %v2249_v33  ;;  %2351 = vrot.lane.b32.xlu0 %v2293_v27, %s7827_s23 }
 0x6c5   :  { %v2296_v46 = vld [vmem:[#allocation2 + $0x80] sm:$0xff] }
 0x6c6   :  { %2413 = vrot.lane.b32.xlu1 %v2308_v28, %s7826_s0 }
 0x6c7   :  { %v2295_v29 = vld [vmem:[#allocation2 + $0x78] sm:$0xff] }
 0x6c8   :  { %2415 = vrot.lane.b32.xlu0 %v2309_v24, %s7826_s0  ;;  %v2310_v35 = vld [vmem:[#allocation2 + $0x72] sm:$0xff]  ;;  %v2311_v51 = vld [vmem:[#allocation2 + $0x7a] sm:$0xff] }
 0x6c9   :  { %v2298_v48 = vld [vmem:[#allocation2 + $0x90] sm:$0xff]  ;;  %v2274_v24 = vld [vmem:[#allocation2 + $0x3e] sm:$0xff] }
 0x6ca   :  { %2357 = vrot.lane.b32.xlu1 %v2296_v46, %s7827_s23  ;;  %v2314_v25 = vld [vmem:[#allocation2 + $0x92] sm:$0xff] }
 0x6cb   :  { %v2297_v60 = vld [vmem:[#allocation2 + $0x88] sm:$0xff] }
 0x6cc   :  { %2355 = vrot.lane.b32.xlu0 %v2295_v29, %s7827_s23  ;;  %v2312_v56 = vld [vmem:[#allocation2 + $0x82] sm:$0xff]  ;;  %v2313_v58 = vld [vmem:[#allocation2 + $0x8a] sm:$0xff] }
 0x6ce   :  { %2417 = vrot.lane.b32.xlu1 %v2310_v35, %s7826_s0 }
 0x6d0   :  { %2419 = vrot.lane.b32.xlu0 %v2311_v51, %s7826_s0  ;;  %v2275_v51 = vld [vmem:[#allocation2 + $0x56] sm:$0xff] }
 0x6d2   :  { %2361 = vrot.lane.b32.xlu1 %v2298_v48, %s7827_s23 }
 0x6d4   :  { %2359 = vrot.lane.b32.xlu0 %v2297_v60, %s7827_s23 }
 0x6d6   :  { %2421 = vrot.lane.b32.xlu1 %v2312_v56, %s7826_s0 }
 0x6d8   :  { %2423 = vrot.lane.b32.xlu0 %v2313_v58, %s7826_s0 }
 0x6da   :  { %2425 = vrot.lane.b32.xlu1 %v2314_v25, %s7826_s0 }
 0x708   :  { %v2334_v39 = vpop.permute.xlu1 %2333 }
 0x709   :  { %v2444_v47 = vsel %vm14_vm0, %v2268_v0, %v2334_v39 }
 0x70a   :  { %v2332_v45 = vpop.permute.xlu0 %2331 }
 0x70b   :  { %v2443_v34 = vsel %vm14_vm0, %v2267_v41, %v2332_v45  ;;  %v2276_v45 = vld [vmem:[#allocation2 + $0x5e] sm:$0xff] }
 0x70e   :  { %v2396_v18 = vpop.permute.xlu0 %2395 }
 0x70f   :  { %v2459_v31 = vsel %vm259_vm1, %v2443_v34, %v2396_v18  ;;  %v2277_v34 = vld [vmem:[#allocation2 + $0x66] sm:$0xff] }
 0x710   :  { %v2338_v52 = vpop.permute.xlu1 %2337  ;;  %7414 = vmatprep.mubr.msk.f32.mxu1 %vm295_vm2, %v2459_v31 }
 0x711   :  { %v2446_v63 = vsel %vm14_vm0, %v2270_v62, %v2338_v52 }
 0x712   :  { %v2336_v44 = vpop.permute.xlu0 %2335 }
 0x713   :  { %v2445_v30 = vsel %vm14_vm0, %v2269_v20, %v2336_v44 }
 0x714   :  { %v2398_v57 = vpop.permute.xlu1 %2397 }
 0x715   :  { %v2460_v43 = vsel %vm259_vm1, %v2444_v47, %v2398_v57  ;;  %v2278_v57 = vld [vmem:[#allocation2 + $0x6e] sm:$0xff] }
 0x716   :  { %v2400_v54 = vpop.permute.xlu0 %2399  ;;  %7415 = vmatmul.mubr.msk.f32.vlgmr.msra.gmra.mxu1 %vm295_vm2, %v2460_v43 }
 0x717   :  { %v2461_v49 = vsel %vm259_vm1, %v2445_v30, %v2400_v54  ;;  %v2279_v30 = vld [vmem:[#allocation2 + $0x76] sm:$0xff] }
 0x718   :  { %7417 = vmatprep.mubr.msk.f32.mxu1 %vm295_vm2, %v2461_v49 }
 0x71c   :  { %v2342_v50 = vpop.permute.xlu1 %2341 }
 0x71d   :  { %v2448_v32 = vsel %vm14_vm0, %v2272_v19, %v2342_v50 }
 0x71e   :  { %v2340_v23 = vpop.permute.xlu0 %2339 }
 0x71f   :  { %v2447_v59 = vsel %vm14_vm0, %v2271_v22, %v2340_v23 }
 0x720   :  { %v2402_v55 = vpop.permute.xlu1 %2401 }
 0x721   :  { %v2462_v42 = vsel %vm259_vm1, %v2446_v63, %v2402_v55  ;;  %v2280_v55 = vld [vmem:[#allocation2 + $0x7e] sm:$0xff] }
 0x722   :  { %v2404_v53 = vpop.permute.xlu0 %2403  ;;  %7418 = vmatmul.mubr.msk.f32.gmra.mxu1 %vm295_vm2, %v2462_v42 }
 0x723   :  { %v2463_v38 = vsel %vm259_vm1, %v2447_v59, %v2404_v53  ;;  %v2281_v59 = vld [vmem:[#allocation2 + $0x86] sm:$0xff] }
 0x724   :  { %v2346_v37 = vpop.permute.xlu1 %2345  ;;  %7420 = vmatprep.mubr.msk.f32.mxu1 %vm295_vm2, %v2463_v38 }
 0x725   :  { %v2450_v46 = vsel %vm14_vm0, %v2274_v24, %v2346_v37  ;;  %v6525_v24 = vld [vmem:[%s10643_s1 + $0x278] sm:$0xff] }
 0x726   :  { %v2344_v21 = vpop.permute.xlu0 %2343 }
 0x727   :  { %v2449_v36 = vsel %vm14_vm0, %v2273_v40, %v2344_v21  ;;  %v2282_v21 = vld [vmem:[#allocation2 + $0x8e] sm:$0xff] }
 0x728   :  { %v2410_v61 = vpop.permute.xlu1 %2409 }
 0x729   :  { %v2466_v35 = vsel %vm259_vm1, %v2450_v46, %v2410_v61 }
 0x72a   :  { %v2408_v17 = vpop.permute.xlu0 %2407 }
 0x72b   :  { %v2465_v27 = vsel %vm259_vm1, %v2449_v36, %v2408_v17  ;;  %v6527_v36 = vld [vmem:[%s10643_s1 + $0x288] sm:$0xff] }
 0x72c   :  { %v2406_v26 = vpop.permute.xlu1 %2405 }
 0x72d   :  { %v2464_v33 = vsel %vm259_vm1, %v2448_v32, %v2406_v26  ;;  %v6529_v32 = vld [vmem:[%s10643_s1 + $0x298] sm:$0xff]  ;;  %v6528_v26 = vld [vmem:[%s10643_s1 + $0x290] sm:$0xff] }
 0x72e   :  { %v2348_v28 = vpop.permute.xlu0 %2347  ;;  %7421 = vmatmul.mubr.msk.f32.gmra.mxu1 %vm295_vm2, %v2464_v33  ;;  %7438 = vmatprep.subr.mxu0 %v6529_v32  ;;  %v6526_v33 = vld [vmem:[%s10643_s1 + $0x280] sm:$0xff] }
 0x72f   :  { %7423 = vmatprep.mubr.msk.f32.mxu1 %vm295_vm2, %v2465_v27  ;;  %v2451_v48 = vsel %vm14_vm0, %v2275_v51, %v2348_v28  ;;  %7439 = vmatpush3.msra.mxu0 %v6529_v32  ;;  %v9056_v27 = vld [vmem:[%s10644_s2 + $0x5] ss:$0 sm:$0xff]  ;;  %v6523_v51 = vld [vmem:[%s10643_s1 + $0x268] sm:$0xff] }
 0x730   :  { %v2350_v29 = vpop.permute.xlu1 %2349  ;;  %7440 = vmatprep.subr.mxu0 %v6528_v26 }
 0x731   :  { %v2452_v39 = vsel %vm14_vm0, %v2276_v45, %v2350_v29  ;;  %7441 = vmatpush3.msra.mxu0 %v6528_v26  ;;  %v6520_v45 = vld [vmem:[%s10643_s1 + $0x250] sm:$0xff] }
 0x732   :  { %v2412_v60 = vpop.permute.xlu0 %2411  ;;  %7424 = vmatmul.mubr.msk.f32.gmra.mxu1 %vm295_vm2, %v2466_v35  ;;  %7442 = vmatprep.subr.mxu0 %v6527_v36  ;;  %v6524_v35 = vld [vmem:[%s10643_s1 + $0x270] sm:$0xff] }
 0x733   :  { %v2467_v56 = vsel %vm259_vm1, %v2451_v48, %v2412_v60  ;;  %7443 = vmatpush3.msra.mxu0 %v6527_v36 }
 0x734   :  { %v2354_v58 = vpop.permute.xlu1 %2353  ;;  %7426 = vmatprep.mubr.msk.f32.mxu1 %vm295_vm2, %v2467_v56  ;;  %7444 = vmatprep.subr.mxu0 %v6526_v33 }
 0x735   :  { %v2454_v20 = vsel %vm14_vm0, %v2278_v57, %v2354_v58  ;;  %7445 = vmatpush3.msra.mxu0 %v6526_v33  ;;  %v6522_v58 = vld [vmem:[%s10643_s1 + $0x260] sm:$0xff] }
 0x736   :  { %v2352_v25 = vpop.permute.xlu0 %2351  ;;  %7446 = vmatprep.subr.mxu0 %v6525_v24 }
 0x737   :  { %v2453_v31 = vsel %vm14_vm0, %v2277_v34, %v2352_v25  ;;  %7447 = vmatpush3.msra.mxu0 %v6525_v24  ;;  %v6521_v25 = vld [vmem:[%s10643_s1 + $0x258] sm:$0xff]  ;;  %v6519_v34 = vld [vmem:[%s10643_s1 + $0x248] sm:$0xff] }
 0x738   :  { %v2414_v41 = vpop.permute.xlu1 %2413  ;;  %7448 = vmatprep.subr.mxu0 %v6524_v35 }
 0x739   :  { %v2468_v18 = vsel %vm259_vm1, %v2452_v39, %v2414_v41  ;;  %7449 = vmatpush3.msra.mxu0 %v6524_v35 }
 0x73a   :  { %v2416_v52 = vpop.permute.xlu0 %2415  ;;  %7427 = vmatmul.mubr.msk.f32.gmra.mxu1 %vm295_vm2, %v2468_v18  ;;  %7450 = vmatprep.subr.mxu0 %v6523_v51 }
 0x73b   :  { %v2469_v44 = vsel %vm259_vm1, %v2453_v31, %v2416_v52  ;;  %7451 = vmatpush3.msra.mxu0 %v6523_v51 }
 0x73c   :  { %v2358_v0 = vpop.permute.xlu1 %2357  ;;  %7429 = vmatprep.mubr.msk.f32.mxu1 %vm295_vm2, %v2469_v44  ;;  %7452 = vmatprep.subr.mxu0 %v6522_v58 }
 0x73d   :  { %v2456_v22 = vsel %vm14_vm0, %v2280_v55, %v2358_v0  ;;  %7453 = vmatpush3.msra.mxu0 %v6522_v58 }
 0x73e   :  { %v2356_v47 = vpop.permute.xlu0 %2355  ;;  %7454 = vmatprep.subr.mxu0 %v6521_v25 }
 0x73f   :  { %v2455_v49 = vsel %vm14_vm0, %v2279_v30, %v2356_v47  ;;  %7455 = vmatpush3.msra.mxu0 %v6521_v25  ;;  %v6518_v47 = vld [vmem:[%s10643_s1 + $0x240] sm:$0xff] }
 0x740   :  { %v2418_v43 = vpop.permute.xlu1 %2417  ;;  %7456 = vmatprep.subr.mxu0 %v6520_v45 }
 0x741   :  { %v2470_v54 = vsel %vm259_vm1, %v2454_v20, %v2418_v43  ;;  %7457 = vmatpush3.msra.mxu0 %v6520_v45 }
 0x742   :  { %v2420_v50 = vpop.permute.xlu0 %2419  ;;  %7430 = vmatmul.mubr.msk.f32.gmra.mxu1 %vm295_vm2, %v2470_v54  ;;  %7458 = vmatprep.subr.mxu0 %v6519_v34 }
 0x743   :  { %v2471_v23 = vsel %vm259_vm1, %v2455_v49, %v2420_v50  ;;  %7459 = vmatpush3.msra.mxu0 %v6519_v34 }
 0x744   :  { %v2362_v62 = vpop.permute.xlu1 %2361  ;;  %7432 = vmatprep.mubr.msk.f32.mxu1 %vm295_vm2, %v2471_v23  ;;  %7460 = vmatprep.subr.mxu0 %v6518_v47 }
 0x745   :  { %v2458_v17 = vsel %vm14_vm0, %v2282_v21, %v2362_v62  ;;  %7461 = vmatpush3.msra.mxu0 %v6518_v47 }
 0x746   :  { %v2360_v63 = vpop.permute.xlu0 %2359 }
 0x747   :  { %v2457_v38 = vsel %vm14_vm0, %v2281_v59, %v2360_v63 }
 0x748   :  { %v2422_v42 = vpop.permute.xlu1 %2421 }
 0x749   :  { %v2472_v53 = vsel %vm259_vm1, %v2456_v22, %v2422_v42 }
 0x74a   :  { %v2424_v37 = vpop.permute.xlu0 %2423  ;;  %7433 = vmatmul.mubr.msk.f32.gmra.mxu1 %vm295_vm2, %v2472_v53 }
 0x74b   :  { %v2473_v61 = vsel %vm259_vm1, %v2457_v38, %v2424_v37 }
 0x74c   :  { %v2426_v19 = vpop.permute.xlu1 %2425  ;;  %7435 = vmatprep.mubr.msk.f32.mxu1 %vm295_vm2, %v2473_v61 }
 0x74d   :  { %v2474_v40 = vsel %vm259_vm1, %v2458_v17, %v2426_v19 }
 0x74e   :  { %7436 = vmatmul.mubr.msk.f32.gmra.mxu1 %vm295_vm2, %v2474_v40 }
 0x7d6   :  { %v7416_v28 = vpop.f32.mrf.mxu1 }
 0x7d7   :  { %v2616_v46 = vadd.f32 %v7416_v28, %v9056_v27 }
 0x7d8   :  { %v2610_v29 = vpop.f32.mrf.mxu1 }
 0x7d9   :  { %v2690_v48 = vmax.f32 %v2616_v46, 0.0  ;;  %v2611_v60 = vadd.f32 %v9056_v27, %v2610_v29 }
 0x7db   :  { %2706 = vst.msk [vmem:[#allocation2 + $0x10] sm:$0xff] %vm14_vm0, %v2690_v48  ;;  %v2689_v56 = vmax.f32 %v2611_v60, 0.0 }
 0x7dd   :  { %2705 = vst.msk [vmem:[#allocation2 + $0x8] sm:$0xff] %vm14_vm0, %v2689_v56 }
 0x7e2   :  { %v7419_v39 = vpop.f32.mrf.mxu1  ;;  %v2738_v41 = vld [vmem:[#allocation2 + $0x10] sm:$0xff] }
 0x7e3   :  { %v2626_v18 = vadd.f32 %v7419_v39, %v9056_v27  ;;  %2787 = vrot.lane.b32.xlu1 %v2738_v41, %s7827_s23 }
 0x7e4   :  { %v2620_v31 = vpop.f32.mrf.mxu1  ;;  %v2737_v52 = vld [vmem:[#allocation2 + $0x8] sm:$0xff] }
 0x7e5   :  { %v2692_v44 = vmax.f32 %v2626_v18, 0.0  ;;  %v2621_v0 = vadd.f32 %v9056_v27, %v2620_v31  ;;  %2785 = vrot.lane.b32.xlu0 %v2737_v52, %s7827_s23  ;;  %v2753_v20 = vld [vmem:[#allocation2 + $0x9] sm:$0xff] }
 0x7e7   :  { %2708 = vst.msk [vmem:[#allocation2 + $0x20] sm:$0xff] %vm14_vm0, %v2692_v44  ;;  %v2691_v57 = vmax.f32 %v2621_v0, 0.0 }
 0x7e9   :  { %2707 = vst.msk [vmem:[#allocation2 + $0x18] sm:$0xff] %vm14_vm0, %v2691_v57  ;;  %2849 = vrot.lane.b32.xlu0 %v2753_v20, %s7826_s0 }
 0x7ee   :  { %v7422_v43 = vpop.f32.mrf.mxu1  ;;  %v2740_v30 = vld [vmem:[#allocation2 + $0x20] sm:$0xff] }
 0x7ef   :  { %v2636_v54 = vadd.f32 %v7422_v43, %v9056_v27  ;;  %2791 = vrot.lane.b32.xlu1 %v2740_v30, %s7827_s23 }
 0x7f0   :  { %v2630_v49 = vpop.f32.mrf.mxu1  ;;  %v2739_v50 = vld [vmem:[#allocation2 + $0x18] sm:$0xff] }
 0x7f1   :  { %v2694_v23 = vmax.f32 %v2636_v54, 0.0  ;;  %v2631_v62 = vadd.f32 %v9056_v27, %v2630_v49  ;;  %2789 = vrot.lane.b32.xlu0 %v2739_v50, %s7827_s23  ;;  %v2754_v63 = vld [vmem:[#allocation2 + $0x11] sm:$0xff]  ;;  %v2755_v59 = vld [vmem:[#allocation2 + $0x19] sm:$0xff] }
 0x7f2   :  { %v7425_v55 = vpop.f32.mrf.mxu1 }
 0x7f3   :  { %2710 = vst.msk [vmem:[#allocation2 + $0x30] sm:$0xff] %vm14_vm0, %v2694_v23  ;;  %v2693_v22 = vmax.f32 %v2631_v62, 0.0  ;;  %v2646_v42 = vadd.f32 %v7425_v55, %v9056_v27  ;;  %2851 = vrot.lane.b32.xlu1 %v2754_v63, %s7826_s0 }
 0x7f4   :  { %v2640_v53 = vpop.f32.mrf.mxu1 }
 0x7f5   :  { %2709 = vst.msk [vmem:[#allocation2 + $0x28] sm:$0xff] %vm14_vm0, %v2693_v22  ;;  %v2696_v38 = vmax.f32 %v2646_v42, 0.0  ;;  %v2641_v37 = vadd.f32 %v9056_v27, %v2640_v53  ;;  %2853 = vrot.lane.b32.xlu0 %v2755_v59, %s7826_s0 }
 0x7f7   :  { %2712 = vst.msk [vmem:[#allocation2 + $0x40] sm:$0xff] %vm14_vm0, %v2696_v38  ;;  %v2695_v21 = vmax.f32 %v2641_v37, 0.0 }
 0x7f9   :  { %2711 = vst.msk [vmem:[#allocation2 + $0x38] sm:$0xff] %vm14_vm0, %v2695_v21 }
 0x7fa   :  { %v7428_v61 = vpop.f32.mrf.mxu1  ;;  %v2742_v17 = vld [vmem:[#allocation2 + $0x30] sm:$0xff] }
 0x7fb   :  { %v2656_v19 = vadd.f32 %v7428_v61, %v9056_v27  ;;  %2795 = vrot.lane.b32.xlu1 %v2742_v17, %s7827_s23 }
 0x7fc   :  { %v2650_v40 = vpop.f32.mrf.mxu1  ;;  %v2741_v32 = vld [vmem:[#allocation2 + $0x28] sm:$0xff] }
 0x7fd   :  { %v2698_v26 = vmax.f32 %v2656_v19, 0.0  ;;  %v2651_v36 = vadd.f32 %v9056_v27, %v2650_v40  ;;  %2793 = vrot.lane.b32.xlu0 %v2741_v32, %s7827_s23  ;;  %v2756_v33 = vld [vmem:[#allocation2 + $0x21] sm:$0xff]  ;;  %v2757_v24 = vld [vmem:[#allocation2 + $0x29] sm:$0xff] }
 0x7fe   :  { %v2744_v29 = vld [vmem:[#allocation2 + $0x40] sm:$0xff] }
 0x7ff   :  { %2714 = vst.msk [vmem:[#allocation2 + $0x60] sm:$0xff] %vm14_vm0, %v2698_v26  ;;  %v2697_v28 = vmax.f32 %v2651_v36, 0.0  ;;  %2855 = vrot.lane.b32.xlu1 %v2756_v33, %s7826_s0  ;;  %v2760_v58 = vld [vmem:[#allocation2 + $0x41] sm:$0xff] }
 0x800   :  { %v2743_v48 = vld [vmem:[#allocation2 + $0x38] sm:$0xff]  ;;  %v2721_v19 = vld [vmem:[#allocation2 + $0x7] sm:$0xff] }
 0x801   :  { %2713 = vst.msk [vmem:[#allocation2 + $0x58] sm:$0xff] %vm14_vm0, %v2697_v28  ;;  %2857 = vrot.lane.b32.xlu0 %v2757_v24, %s7826_s0  ;;  %v2759_v45 = vld [vmem:[#allocation2 + $0x39] sm:$0xff]  ;;  %v2758_v41 = vld [vmem:[#allocation2 + $0x31] sm:$0xff] }
 0x802   :  { %v7431_v46 = vpop.f32.mrf.mxu1  ;;  %v2722_v24 = vld [vmem:[#allocation2 + $0xf] sm:$0xff] }
 0x803   :  { %v2666_v35 = vadd.f32 %v7431_v46, %v9056_v27  ;;  %2799 = vrot.lane.b32.xlu1 %v2744_v29, %s7827_s23 }
 0x804   :  { %v2660_v51 = vpop.f32.mrf.mxu1 }
 0x805   :  { %v2700_v60 = vmax.f32 %v2666_v35, 0.0  ;;  %v2661_v56 = vadd.f32 %v9056_v27, %v2660_v51  ;;  %2797 = vrot.lane.b32.xlu0 %v2743_v48, %s7827_s23  ;;  %v2723_v35 = vld [vmem:[#allocation2 + $0x17] sm:$0xff] }
 0x806   :  { %v2746_v47 = vld [vmem:[#allocation2 + $0x60] sm:$0xff] }
 0x807   :  { %2716 = vst.msk [vmem:[#allocation2 + $0x70] sm:$0xff] %vm14_vm0, %v2700_v60  ;;  %v2699_v25 = vmax.f32 %v2661_v56, 0.0  ;;  %2863 = vrot.lane.b32.xlu1 %v2760_v58, %s7826_s0 }
 0x808   :  { %v2745_v31 = vld [vmem:[#allocation2 + $0x58] sm:$0xff] }
 0x809   :  { %2715 = vst.msk [vmem:[#allocation2 + $0x68] sm:$0xff] %vm14_vm0, %v2699_v25  ;;  %2861 = vrot.lane.b32.xlu0 %v2759_v45, %s7826_s0  ;;  %v2761_v43 = vld [vmem:[#allocation2 + $0x59] sm:$0xff] }
 0x80a   :  { %v7434_v39 = vpop.f32.mrf.mxu1  ;;  %v2724_v45 = vld [vmem:[#allocation2 + $0x1f] sm:$0xff] }
 0x80b   :  { %v2676_v34 = vadd.f32 %v7434_v39, %v9056_v27  ;;  %2859 = vrot.lane.b32.xlu1 %v2758_v41, %s7826_s0 }
 0x80c   :  { %v2670_v18 = vpop.f32.mrf.mxu1 }
 0x80d   :  { %v2702_v52 = vmax.f32 %v2676_v34, 0.0  ;;  %v2671_v44 = vadd.f32 %v9056_v27, %v2670_v18  ;;  %2801 = vrot.lane.b32.xlu0 %v2745_v31, %s7827_s23  ;;  %v2725_v34 = vld [vmem:[#allocation2 + $0x27] sm:$0xff] }
 0x80e   :  { %v7437_v0 = vpop.f32.mrf.mxu1  ;;  %v2748_v50 = vld [vmem:[#allocation2 + $0x70] sm:$0xff] }
 0x80f   :  { %2718 = vst.msk [vmem:[#allocation2 + $0x80] sm:$0xff] %vm14_vm0, %v2702_v52  ;;  %v2701_v57 = vmax.f32 %v2671_v44, 0.0  ;;  %v2686_v20 = vadd.f32 %v7437_v0, %v9056_v27  ;;  %2803 = vrot.lane.b32.xlu1 %v2746_v47, %s7827_s23 }
 0x810   :  { %v2680_v30 = vpop.f32.mrf.mxu1  ;;  %v2747_v62 = vld [vmem:[#allocation2 + $0x68] sm:$0xff] }
 0x811   :  { %2717 = vst.msk [vmem:[#allocation2 + $0x78] sm:$0xff] %vm14_vm0, %v2701_v57  ;;  %v2704_v54 = vmax.f32 %v2686_v20, 0.0  ;;  %v2681_v49 = vadd.f32 %v9056_v27, %v2680_v30  ;;  %2865 = vrot.lane.b32.xlu0 %v2761_v43, %s7826_s0  ;;  %v2762_v63 = vld [vmem:[#allocation2 + $0x61] sm:$0xff]  ;;  %v2763_v55 = vld [vmem:[#allocation2 + $0x69] sm:$0xff] }
 0x812   :  { %v2726_v43 = vld [vmem:[#allocation2 + $0x2f] sm:$0xff] }
 0x813   :  { %2720 = vst.msk [vmem:[#allocation2 + $0x90] sm:$0xff] %vm14_vm0, %v2704_v54  ;;  %v2703_v23 = vmax.f32 %v2681_v49, 0.0  ;;  %2807 = vrot.lane.b32.xlu1 %v2748_v50, %s7827_s23  ;;  %v2727_v54 = vld [vmem:[#allocation2 + $0x37] sm:$0xff] }
 0x815   :  { %2719 = vst.msk [vmem:[#allocation2 + $0x88] sm:$0xff] %vm14_vm0, %v2703_v23  ;;  %2805 = vrot.lane.b32.xlu0 %v2747_v62, %s7827_s23 }
 0x816   :  { %v2750_v27 = vld [vmem:[#allocation2 + $0x80] sm:$0xff] }
 0x817   :  { %2867 = vrot.lane.b32.xlu1 %v2762_v63, %s7826_s0 }
 0x818   :  { %v2749_v22 = vld [vmem:[#allocation2 + $0x78] sm:$0xff] }
 0x819   :  { %2869 = vrot.lane.b32.xlu0 %v2763_v55, %s7826_s0  ;;  %v2764_v42 = vld [vmem:[#allocation2 + $0x71] sm:$0xff]  ;;  %v2765_v59 = vld [vmem:[#allocation2 + $0x79] sm:$0xff] }
 0x81a   :  { %v2752_v53 = vld [vmem:[#allocation2 + $0x90] sm:$0xff]  ;;  %v2728_v55 = vld [vmem:[#allocation2 + $0x3f] sm:$0xff] }
 0x81b   :  { %2811 = vrot.lane.b32.xlu1 %v2750_v27, %s7827_s23  ;;  %v2768_v61 = vld [vmem:[#allocation2 + $0x91] sm:$0xff] }
 0x81c   :  { %v2751_v38 = vld [vmem:[#allocation2 + $0x88] sm:$0xff] }
 0x81d   :  { %2809 = vrot.lane.b32.xlu0 %v2749_v22, %s7827_s23  ;;  %v2766_v37 = vld [vmem:[#allocation2 + $0x81] sm:$0xff]  ;;  %v2767_v21 = vld [vmem:[#allocation2 + $0x89] sm:$0xff] }
 0x81f   :  { %2871 = vrot.lane.b32.xlu1 %v2764_v42, %s7826_s0 }
 0x821   :  { %2873 = vrot.lane.b32.xlu0 %v2765_v59, %s7826_s0  ;;  %v2729_v59 = vld [vmem:[#allocation2 + $0x57] sm:$0xff] }
 0x823   :  { %2815 = vrot.lane.b32.xlu1 %v2752_v53, %s7827_s23 }
 0x825   :  { %2813 = vrot.lane.b32.xlu0 %v2751_v38, %s7827_s23 }
 0x827   :  { %2875 = vrot.lane.b32.xlu1 %v2766_v37, %s7826_s0 }
 0x829   :  { %2877 = vrot.lane.b32.xlu0 %v2767_v21, %s7826_s0 }
 0x82b   :  { %2879 = vrot.lane.b32.xlu1 %v2768_v61, %s7826_s0 }
 0x855   :  { %v2788_v36 = vpop.permute.xlu1 %2787 }
 0x856   :  { %v2898_v46 = vsel %vm14_vm0, %v2722_v24, %v2788_v36 }
 0x857   :  { %v2786_v17 = vpop.permute.xlu0 %2785 }
 0x858   :  { %v2897_v40 = vsel %vm14_vm0, %v2721_v19, %v2786_v17  ;;  %v2730_v17 = vld [vmem:[#allocation2 + $0x5f] sm:$0xff] }
 0x85b   :  { %v2850_v32 = vpop.permute.xlu0 %2849 }
 0x85c   :  { %v2913_v26 = vsel %vm259_vm1, %v2897_v40, %v2850_v32  ;;  %v2731_v32 = vld [vmem:[#allocation2 + $0x67] sm:$0xff] }
 0x85d   :  { %7462 = vmatprep.mubr.msk.f32.mxu0 %vm295_vm2, %v2913_v26 }
 0x861   :  { %v2792_v33 = vpop.permute.xlu1 %2791 }
 0x862   :  { %v2900_v39 = vsel %vm14_vm0, %v2724_v45, %v2792_v33 }
 0x863   :  { %v2790_v28 = vpop.permute.xlu0 %2789 }
 0x864   :  { %v2899_v48 = vsel %vm14_vm0, %v2723_v35, %v2790_v28 }
 0x865   :  { %v2852_v29 = vpop.permute.xlu1 %2851 }
 0x866   :  { %v2914_v51 = vsel %vm259_vm1, %v2898_v46, %v2852_v29  ;;  %v2732_v29 = vld [vmem:[#allocation2 + $0x6f] sm:$0xff] }
 0x867   :  { %v2854_v60 = vpop.permute.xlu0 %2853  ;;  %7463 = vmatmul.mubr.msk.f32.vlgmr.msra.gmra.mxu0 %vm295_vm2, %v2914_v51 }
 0x868   :  { %v2915_v56 = vsel %vm259_vm1, %v2899_v48, %v2854_v60  ;;  %v2733_v48 = vld [vmem:[#allocation2 + $0x77] sm:$0xff] }
 0x869   :  { %7465 = vmatprep.mubr.msk.f32.mxu0 %vm295_vm2, %v2915_v56 }
 0x86d   :  { %v2796_v58 = vpop.permute.xlu1 %2795 }
 0x86e   :  { %v2902_v30 = vsel %vm14_vm0, %v2726_v43, %v2796_v58 }
 0x86f   :  { %v2794_v25 = vpop.permute.xlu0 %2793 }
 0x870   :  { %v2901_v31 = vsel %vm14_vm0, %v2725_v34, %v2794_v25 }
 0x871   :  { %v2856_v41 = vpop.permute.xlu1 %2855 }
 0x872   :  { %v2916_v18 = vsel %vm259_vm1, %v2900_v39, %v2856_v41  ;;  %v2734_v41 = vld [vmem:[#allocation2 + $0x7f] sm:$0xff] }
 0x873   :  { %v2858_v52 = vpop.permute.xlu0 %2857  ;;  %7466 = vmatmul.mubr.msk.f32.gmra.mxu0 %vm295_vm2, %v2916_v18 }
 0x874   :  { %v2917_v44 = vsel %vm259_vm1, %v2901_v31, %v2858_v52  ;;  %v2735_v31 = vld [vmem:[#allocation2 + $0x87] sm:$0xff] }
 0x875   :  { %v2800_v0 = vpop.permute.xlu1 %2799  ;;  %7468 = vmatprep.mubr.msk.f32.mxu0 %vm295_vm2, %v2917_v44 }
 0x876   :  { %v2904_v27 = vsel %vm14_vm0, %v2728_v55, %v2800_v0 }
 0x877   :  { %v2798_v47 = vpop.permute.xlu0 %2797 }
 0x878   :  { %v2903_v50 = vsel %vm14_vm0, %v2727_v54, %v2798_v47  ;;  %v2736_v47 = vld [vmem:[#allocation2 + $0x8f] sm:$0xff]  ;;  %v6559_v54 = vld [vmem:[%s10643_s1 + $0x2f8] sm:$0xff] }
 0x879   :  { %v2864_v57 = vpop.permute.xlu1 %2863  ;;  %7486 = vmatprep.subr.mxu1 %v6559_v54 }
 0x87a   :  { %v2920_v42 = vsel %vm259_vm1, %v2904_v27, %v2864_v57  ;;  %7487 = vmatpush3.msra.mxu1 %v6559_v54 }
 0x87b   :  { %v2862_v20 = vpop.permute.xlu0 %2861 }
 0x87c   :  { %v2919_v62 = vsel %vm259_vm1, %v2903_v50, %v2862_v20  ;;  %v6557_v50 = vld [vmem:[%s10643_s1 + $0x2e8] sm:$0xff] }
 0x87d   :  { %v2860_v49 = vpop.permute.xlu1 %2859 }
 0x87e   :  { %v2918_v23 = vsel %vm259_vm1, %v2902_v30, %v2860_v49  ;;  %v6558_v49 = vld [vmem:[%s10643_s1 + $0x2f0] sm:$0xff] }
 0x87f   :  { %v2802_v63 = vpop.permute.xlu0 %2801  ;;  %7469 = vmatmul.mubr.msk.f32.gmra.mxu0 %vm295_vm2, %v2918_v23  ;;  %7488 = vmatprep.subr.mxu1 %v6558_v49  ;;  %v6556_v23 = vld [vmem:[%s10643_s1 + $0x2e0] sm:$0xff] }
 0x880   :  { %7471 = vmatprep.mubr.msk.f32.mxu0 %vm295_vm2, %v2919_v62  ;;  %v2905_v53 = vsel %vm14_vm0, %v2729_v59, %v2802_v63  ;;  %7489 = vmatpush3.msra.mxu1 %v6558_v49  ;;  %v9209_v62 = vld [vmem:[%s10644_s2 + $0x6] ss:$0 sm:$0xff] }
 0x881   :  { %v2804_v22 = vpop.permute.xlu1 %2803  ;;  %7490 = vmatprep.subr.mxu1 %v6557_v50 }
 0x882   :  { %v2906_v19 = vsel %vm14_vm0, %v2730_v17, %v2804_v22  ;;  %7491 = vmatpush3.msra.mxu1 %v6557_v50  ;;  %v6555_v22 = vld [vmem:[%s10643_s1 + $0x2d8] sm:$0xff]  ;;  %v6550_v17 = vld [vmem:[%s10643_s1 + $0x2b0] sm:$0xff] }
 0x883   :  { %v2866_v38 = vpop.permute.xlu0 %2865  ;;  %7472 = vmatmul.mubr.msk.f32.gmra.mxu0 %vm295_vm2, %v2920_v42  ;;  %7492 = vmatprep.subr.mxu1 %v6556_v23 }
 0x884   :  { %v2921_v37 = vsel %vm259_vm1, %v2905_v53, %v2866_v38  ;;  %7493 = vmatpush3.msra.mxu1 %v6556_v23  ;;  %v6554_v53 = vld [vmem:[%s10643_s1 + $0x2d0] sm:$0xff]  ;;  %v6553_v38 = vld [vmem:[%s10643_s1 + $0x2c8] sm:$0xff] }
 0x885   :  { %v2808_v21 = vpop.permute.xlu1 %2807  ;;  %7474 = vmatprep.mubr.msk.f32.mxu0 %vm295_vm2, %v2921_v37  ;;  %7494 = vmatprep.subr.mxu1 %v6555_v22 }
 0x886   :  { %v2908_v35 = vsel %vm14_vm0, %v2732_v29, %v2808_v21  ;;  %7495 = vmatpush3.msra.mxu1 %v6555_v22 }
 0x887   :  { %v2806_v61 = vpop.permute.xlu0 %2805  ;;  %7496 = vmatprep.subr.mxu1 %v6554_v53 }
 0x888   :  { %v2907_v36 = vsel %vm14_vm0, %v2731_v32, %v2806_v61  ;;  %7497 = vmatpush3.msra.mxu1 %v6554_v53 }
 0x889   :  { %v2868_v40 = vpop.permute.xlu1 %2867  ;;  %7498 = vmatprep.subr.mxu1 %v6553_v38 }
 0x88a   :  { %v2922_v26 = vsel %vm259_vm1, %v2906_v19, %v2868_v40  ;;  %7499 = vmatpush3.msra.mxu1 %v6553_v38 }
 0x88b   :  { %v2870_v33 = vpop.permute.xlu0 %2869  ;;  %7475 = vmatmul.mubr.msk.f32.gmra.mxu0 %vm295_vm2, %v2922_v26 }
 0x88c   :  { %v2923_v28 = vsel %vm259_vm1, %v2907_v36, %v2870_v33  ;;  %v6549_v36 = vld [vmem:[%s10643_s1 + $0x2a8] sm:$0xff] }
 0x88d   :  { %v2812_v24 = vpop.permute.xlu1 %2811  ;;  %7477 = vmatprep.mubr.msk.f32.mxu0 %vm295_vm2, %v2923_v28 }
 0x88e   :  { %v2910_v34 = vsel %vm14_vm0, %v2734_v41, %v2812_v24 }
 0x88f   :  { %v2810_v46 = vpop.permute.xlu0 %2809 }
 0x890   :  { %v2909_v56 = vsel %vm14_vm0, %v2733_v48, %v2810_v46 }
 0x891   :  { %v2872_v51 = vpop.permute.xlu1 %2871 }
 0x892   :  { %v2924_v60 = vsel %vm259_vm1, %v2908_v35, %v2872_v51  ;;  %v6548_v35 = vld [vmem:[%s10643_s1 + $0x2a0] sm:$0xff] }
 0x893   :  { %v2874_v58 = vpop.permute.xlu0 %2873  ;;  %7478 = vmatmul.mubr.msk.f32.gmra.mxu0 %vm295_vm2, %v2924_v60 }
 0x894   :  { %v2925_v25 = vsel %vm259_vm1, %v2909_v56, %v2874_v58 }
 0x895   :  { %v2816_v45 = vpop.permute.xlu1 %2815  ;;  %7480 = vmatprep.mubr.msk.f32.mxu0 %vm295_vm2, %v2925_v25 }
 0x896   :  { %v2912_v20 = vsel %vm14_vm0, %v2736_v47, %v2816_v45 }
 0x897   :  { %v2814_v39 = vpop.permute.xlu0 %2813 }
 0x898   :  { %v2911_v44 = vsel %vm14_vm0, %v2735_v31, %v2814_v39 }
 0x899   :  { %v2876_v18 = vpop.permute.xlu1 %2875 }
 0x89a   :  { %v2926_v52 = vsel %vm259_vm1, %v2910_v34, %v2876_v18 }
 0x89b   :  { %v2878_v0 = vpop.permute.xlu0 %2877  ;;  %7481 = vmatmul.mubr.msk.f32.gmra.mxu0 %vm295_vm2, %v2926_v52 }
 0x89c   :  { %v2927_v57 = vsel %vm259_vm1, %v2911_v44, %v2878_v0 }
 0x89d   :  { %v2880_v43 = vpop.permute.xlu1 %2879  ;;  %7483 = vmatprep.mubr.msk.f32.mxu0 %vm295_vm2, %v2927_v57 }
 0x89e   :  { %v2928_v30 = vsel %vm259_vm1, %v2912_v20, %v2880_v43 }
 0x89f   :  { %7484 = vmatmul.mubr.msk.f32.gmra.mxu0 %vm295_vm2, %v2928_v30 }
 0x927   :  { %v7464_v63 = vpop.f32.mrf.mxu0 }
 0x928   :  { %v3070_v55 = vadd.f32 %v7464_v63, %v9209_v62 }
 0x929   :  { %v3064_v27 = vpop.f32.mrf.mxu0 }
 0x92a   :  { %v3144_v42 = vmax.f32 %v3070_v55, 0.0  ;;  %v3065_v59 = vadd.f32 %v9209_v62, %v3064_v27 }
 0x92c   :  { %v9223_v37 = vadd.f32 %v3144_v42, %v7858_v2  ;;  %3160 = vst.msk [vmem:[#allocation2 + $0x10] sm:$0xff] %vm14_vm0, %v3144_v42  ;;  %v3143_v21 = vmax.f32 %v3065_v59, 0.0  ;;  %v6552_v2 = vld [vmem:[%s10643_s1 + $0x2c0] sm:$0xff] }
 0x92d   :  { %7500 = vmatprep.subr.mxu1 %v6552_v2 }
 0x92e   :  { %v9227_v61 = vadd.f32 %v3143_v21, %v7853_v1  ;;  %3159 = vst.msk [vmem:[#allocation2 + $0x8] sm:$0xff] %vm14_vm0, %v3143_v21  ;;  %3192 = vst.msk [vmem:[#allocation2 + $0x10] sm:$0xff] %vm14_vm0, %v9223_v37  ;;  %v6551_v1 = vld [vmem:[%s10643_s1 + $0x2b8] sm:$0xff]  ;;  %7501 = vmatpush3.msra.mxu1 %v6552_v2 }
 0x92f   :  { %7502 = vmatprep.subr.mxu1 %v6551_v1 }
 0x930   :  { %3191 = vst.msk [vmem:[#allocation2 + $0x8] sm:$0xff] %vm14_vm0, %v9227_v61  ;;  %7503 = vmatpush3.msra.mxu1 %v6551_v1 }
 0x931   :  { %7504 = vmatprep.subr.mxu1 %v6550_v17 }
 0x932   :  { %7505 = vmatpush3.msra.mxu1 %v6550_v17 }
 0x933   :  { %v7467_v19 = vpop.f32.mrf.mxu0  ;;  %7506 = vmatprep.subr.mxu1 %v6549_v36 }
 0x934   :  { %v3080_v40 = vadd.f32 %v7467_v19, %v9209_v62  ;;  %7507 = vmatpush3.msra.mxu1 %v6549_v36 }
 0x935   :  { %v3074_v32 = vpop.f32.mrf.mxu0  ;;  %v3224_v26 = vld [vmem:[#allocation2 + $0x10] sm:$0xff]  ;;  %7508 = vmatprep.subr.mxu1 %v6548_v35 }
 0x936   :  { %v3146_v33 = vmax.f32 %v3080_v40, 0.0  ;;  %v3075_v28 = vadd.f32 %v9209_v62, %v3074_v32  ;;  %3273 = vrot.lane.b32.xlu1 %v3224_v26, %s7827_s23  ;;  %7509 = vmatpush3.msra.mxu1 %v6548_v35 }
 0x937   :  { %v3223_v24 = vld [vmem:[#allocation2 + $0x8] sm:$0xff] }
 0x938   :  { %v9250_v46 = vadd.f32 %v3146_v33, %v7892_v4  ;;  %3162 = vst.msk [vmem:[#allocation2 + $0x20] sm:$0xff] %vm14_vm0, %v3146_v33  ;;  %v3145_v29 = vmax.f32 %v3075_v28, 0.0  ;;  %3271 = vrot.lane.b32.xlu0 %v3223_v24, %s7827_s23  ;;  %v3239_v4 = vld [vmem:[#allocation2 + $0x9] sm:$0xff] }
 0x93a   :  { %v9258_v51 = vadd.f32 %v3145_v29, %v7881_v3  ;;  %3161 = vst.msk [vmem:[#allocation2 + $0x18] sm:$0xff] %vm14_vm0, %v3145_v29  ;;  %3194 = vst.msk [vmem:[#allocation2 + $0x20] sm:$0xff] %vm14_vm0, %v9250_v46 }
 0x93c   :  { %3193 = vst.msk [vmem:[#allocation2 + $0x18] sm:$0xff] %vm14_vm0, %v9258_v51  ;;  %3335 = vrot.lane.b32.xlu0 %v3239_v4, %s7826_s0 }
 0x93f   :  { %v7470_v48 = vpop.f32.mrf.mxu0 }
 0x940   :  { %v3090_v60 = vadd.f32 %v7470_v48, %v9209_v62 }
 0x941   :  { %v3084_v56 = vpop.f32.mrf.mxu0  ;;  %v3226_v58 = vld [vmem:[#allocation2 + $0x20] sm:$0xff] }
 0x942   :  { %v3148_v25 = vmax.f32 %v3090_v60, 0.0  ;;  %v3085_v3 = vadd.f32 %v9209_v62, %v3084_v56  ;;  %3277 = vrot.lane.b32.xlu1 %v3226_v58, %s7827_s23 }
 0x943   :  { %v7473_v45 = vpop.f32.mrf.mxu0  ;;  %v3225_v39 = vld [vmem:[#allocation2 + $0x18] sm:$0xff] }
 0x944   :  { %v9270_v41 = vadd.f32 %v3148_v25, %v7902_v6  ;;  %3164 = vst.msk [vmem:[#allocation2 + $0x30] sm:$0xff] %vm14_vm0, %v3148_v25  ;;  %v3147_v34 = vmax.f32 %v3085_v3, 0.0  ;;  %v3100_v18 = vadd.f32 %v7473_v45, %v9209_v62  ;;  %3275 = vrot.lane.b32.xlu0 %v3225_v39, %s7827_s23  ;;  %v3240_v52 = vld [vmem:[#allocation2 + $0x11] sm:$0xff]  ;;  %v3241_v47 = vld [vmem:[#allocation2 + $0x19] sm:$0xff] }
 0x945   :  { %v3094_v31 = vpop.f32.mrf.mxu0 }
 0x946   :  { %v9276_v44 = vadd.f32 %v3147_v34, %v7897_v5  ;;  %3163 = vst.msk [vmem:[#allocation2 + $0x28] sm:$0xff] %vm14_vm0, %v3147_v34  ;;  %3196 = vst.msk [vmem:[#allocation2 + $0x30] sm:$0xff] %vm14_vm0, %v9270_v41  ;;  %v3150_v0 = vmax.f32 %v3100_v18, 0.0  ;;  %v3095_v6 = vadd.f32 %v9209_v62, %v3094_v31  ;;  %3337 = vrot.lane.b32.xlu1 %v3240_v52, %s7826_s0 }
 0x948   :  { %3195 = vst.msk [vmem:[#allocation2 + $0x28] sm:$0xff] %vm14_vm0, %v9276_v44  ;;  %v9286_v57 = vadd.f32 %v3150_v0, %v7918_v8  ;;  %3166 = vst.msk [vmem:[#allocation2 + $0x40] sm:$0xff] %vm14_vm0, %v3150_v0  ;;  %v3149_v5 = vmax.f32 %v3095_v6, 0.0  ;;  %3339 = vrot.lane.b32.xlu0 %v3241_v47, %s7826_s0 }
 0x94a   :  { %3198 = vst.msk [vmem:[#allocation2 + $0x40] sm:$0xff] %vm14_vm0, %v9286_v57  ;;  %v9293_v20 = vadd.f32 %v3149_v5, %v7911_v7  ;;  %3165 = vst.msk [vmem:[#allocation2 + $0x38] sm:$0xff] %vm14_vm0, %v3149_v5 }
 0x94b   :  { %v7476_v43 = vpop.f32.mrf.mxu0 }
 0x94c   :  { %3197 = vst.msk [vmem:[#allocation2 + $0x38] sm:$0xff] %vm14_vm0, %v9293_v20  ;;  %v3110_v8 = vadd.f32 %v7476_v43, %v9209_v62 }
 0x94d   :  { %v3104_v30 = vpop.f32.mrf.mxu0  ;;  %v3228_v54 = vld [vmem:[#allocation2 + $0x30] sm:$0xff] }
 0x94e   :  { %v3152_v49 = vmax.f32 %v3110_v8, 0.0  ;;  %v3105_v50 = vadd.f32 %v9209_v62, %v3104_v30  ;;  %3281 = vrot.lane.b32.xlu1 %v3228_v54, %s7827_s23  ;;  %v3207_v30 = vld [vmem:[#allocation2 + $0x7] sm:$0xff] }
 0x94f   :  { %v3227_v23 = vld [vmem:[#allocation2 + $0x28] sm:$0xff] }
 0x950   :  { %v9302_v63 = vadd.f32 %v3152_v49, %v7934_v10  ;;  %3168 = vst.msk [vmem:[#allocation2 + $0x60] sm:$0xff] %vm14_vm0, %v3152_v49  ;;  %v3151_v7 = vmax.f32 %v3105_v50, 0.0  ;;  %3279 = vrot.lane.b32.xlu0 %v3227_v23, %s7827_s23  ;;  %v3242_v55 = vld [vmem:[#allocation2 + $0x21] sm:$0xff]  ;;  %v3243_v42 = vld [vmem:[#allocation2 + $0x29] sm:$0xff] }
 0x951   :  { %v3230_v53 = vld [vmem:[#allocation2 + $0x40] sm:$0xff] }
 0x952   :  { %v9307_v27 = vadd.f32 %v3151_v7, %v7923_v9  ;;  %3167 = vst.msk [vmem:[#allocation2 + $0x58] sm:$0xff] %vm14_vm0, %v3151_v7  ;;  %3200 = vst.msk [vmem:[#allocation2 + $0x60] sm:$0xff] %vm14_vm0, %v9302_v63  ;;  %3341 = vrot.lane.b32.xlu1 %v3242_v55, %s7826_s0  ;;  %v3246_v17 = vld [vmem:[#allocation2 + $0x41] sm:$0xff] }
 0x953   :  { %v7479_v22 = vpop.f32.mrf.mxu0  ;;  %v3229_v21 = vld [vmem:[#allocation2 + $0x38] sm:$0xff] }
 0x954   :  { %3199 = vst.msk [vmem:[#allocation2 + $0x58] sm:$0xff] %vm14_vm0, %v9307_v27  ;;  %v3120_v10 = vadd.f32 %v7479_v22, %v9209_v62  ;;  %3343 = vrot.lane.b32.xlu0 %v3243_v42, %s7826_s0  ;;  %v3245_v32 = vld [vmem:[#allocation2 + $0x39] sm:$0xff]  ;;  %v3244_v36 = vld [vmem:[#allocation2 + $0x31] sm:$0xff] }
 0x955   :  { %v3114_v59 = vpop.f32.mrf.mxu0  ;;  %v3208_v22 = vld [vmem:[#allocation2 + $0xf] sm:$0xff] }
 0x956   :  { %v3154_v9 = vmax.f32 %v3120_v10, 0.0  ;;  %v3115_v38 = vadd.f32 %v9209_v62, %v3114_v59  ;;  %3285 = vrot.lane.b32.xlu1 %v3230_v53, %s7827_s23  ;;  %v3209_v59 = vld [vmem:[#allocation2 + $0x17] sm:$0xff] }
 0x958   :  { %v9320_v2 = vadd.f32 %v3154_v9, %v7944_v12  ;;  %3170 = vst.msk [vmem:[#allocation2 + $0x70] sm:$0xff] %vm14_vm0, %v3154_v9  ;;  %v3153_v1 = vmax.f32 %v3115_v38, 0.0  ;;  %3283 = vrot.lane.b32.xlu0 %v3229_v21, %s7827_s23 }
 0x959   :  { %v3232_v60 = vld [vmem:[#allocation2 + $0x60] sm:$0xff] }
 0x95a   :  { %3202 = vst.msk [vmem:[#allocation2 + $0x70] sm:$0xff] %vm14_vm0, %v9320_v2  ;;  %v9327_v19 = vadd.f32 %v3153_v1, %v7939_v11  ;;  %3169 = vst.msk [vmem:[#allocation2 + $0x68] sm:$0xff] %vm14_vm0, %v3153_v1  ;;  %3349 = vrot.lane.b32.xlu1 %v3246_v17, %s7826_s0 }
 0x95b   :  { %v7482_v40 = vpop.f32.mrf.mxu0  ;;  %v3231_v24 = vld [vmem:[#allocation2 + $0x58] sm:$0xff] }
 0x95c   :  { %3201 = vst.msk [vmem:[#allocation2 + $0x68] sm:$0xff] %vm14_vm0, %v9327_v19  ;;  %v3130_v12 = vadd.f32 %v7482_v40, %v9209_v62  ;;  %3347 = vrot.lane.b32.xlu0 %v3245_v32, %s7826_s0  ;;  %v3247_v25 = vld [vmem:[#allocation2 + $0x59] sm:$0xff] }
 0x95d   :  { %v3124_v26 = vpop.f32.mrf.mxu0  ;;  %v3210_v40 = vld [vmem:[#allocation2 + $0x1f] sm:$0xff] }
 0x95e   :  { %v3156_v33 = vmax.f32 %v3130_v12, 0.0  ;;  %v3125_v28 = vadd.f32 %v9209_v62, %v3124_v26  ;;  %3345 = vrot.lane.b32.xlu1 %v3244_v36, %s7826_s0  ;;  %v3211_v26 = vld [vmem:[#allocation2 + $0x27] sm:$0xff] }
 0x95f   :  { %v7485_v11 = vpop.f32.mrf.mxu0 }
 0x960   :  { %v9338_v29 = vadd.f32 %v3156_v33, %v7960_v14  ;;  %3172 = vst.msk [vmem:[#allocation2 + $0x80] sm:$0xff] %vm14_vm0, %v3156_v33  ;;  %v3155_v35 = vmax.f32 %v3125_v28, 0.0  ;;  %v3140_v4 = vadd.f32 %v7485_v11, %v9209_v62  ;;  %3287 = vrot.lane.b32.xlu0 %v3231_v24, %s7827_s23 }
 0x961   :  { %v3134_v48 = vpop.f32.mrf.mxu0 }
 0x962   :  { %3204 = vst.msk [vmem:[#allocation2 + $0x80] sm:$0xff] %vm14_vm0, %v9338_v29  ;;  %v9346_v56 = vadd.f32 %v3155_v35, %v7953_v13  ;;  %3171 = vst.msk [vmem:[#allocation2 + $0x78] sm:$0xff] %vm14_vm0, %v3155_v35  ;;  %v3158_v58 = vmax.f32 %v3140_v4, 0.0  ;;  %v3135_v14 = vadd.f32 %v9209_v62, %v3134_v48  ;;  %3289 = vrot.lane.b32.xlu1 %v3232_v60, %s7827_s23  ;;  %v3234_v13 = vld [vmem:[#allocation2 + $0x70] sm:$0xff] }
 0x963   :  { %v3233_v39 = vld [vmem:[#allocation2 + $0x68] sm:$0xff] }
 0x964   :  { %3203 = vst.msk [vmem:[#allocation2 + $0x78] sm:$0xff] %vm14_vm0, %v9346_v56  ;;  %v9354_v3 = vadd.f32 %v3158_v58, %v7976_v16  ;;  %3174 = vst.msk [vmem:[#allocation2 + $0x90] sm:$0xff] %vm14_vm0, %v3158_v58  ;;  %v3157_v45 = vmax.f32 %v3135_v14, 0.0  ;;  %3351 = vrot.lane.b32.xlu0 %v3247_v25, %s7826_s0  ;;  %v3248_v16 = vld [vmem:[#allocation2 + $0x61] sm:$0xff]  ;;  %v3249_v34 = vld [vmem:[#allocation2 + $0x69] sm:$0xff] }
 0x965   :  { %v3212_v60 = vld [vmem:[#allocation2 + $0x2f] sm:$0xff]  ;;  %v3213_v14 = vld [vmem:[#allocation2 + $0x37] sm:$0xff] }
 0x966   :  { %3206 = vst.msk [vmem:[#allocation2 + $0x90] sm:$0xff] %vm14_vm0, %v9354_v3  ;;  %v9361_v62 = vadd.f32 %v3157_v45, %v7965_v15  ;;  %3173 = vst.msk [vmem:[#allocation2 + $0x88] sm:$0xff] %vm14_vm0, %v3157_v45  ;;  %3293 = vrot.lane.b32.xlu1 %v3234_v13, %s7827_s23 }
 0x968   :  { %3205 = vst.msk [vmem:[#allocation2 + $0x88] sm:$0xff] %vm14_vm0, %v9361_v62  ;;  %3291 = vrot.lane.b32.xlu0 %v3233_v39, %s7827_s23 }
 0x969   :  { %v3236_v18 = vld [vmem:[#allocation2 + $0x80] sm:$0xff] }
 0x96a   :  { %3353 = vrot.lane.b32.xlu1 %v3248_v16, %s7826_s0 }
 0x96b   :  { %v3235_v15 = vld [vmem:[#allocation2 + $0x78] sm:$0xff] }
 0x96c   :  { %3355 = vrot.lane.b32.xlu0 %v3249_v34, %s7826_s0  ;;  %v3250_v31 = vld [vmem:[#allocation2 + $0x71] sm:$0xff]  ;;  %v3251_v52 = vld [vmem:[#allocation2 + $0x79] sm:$0xff] }
 0x96d   :  { %v3238_v0 = vld [vmem:[#allocation2 + $0x90] sm:$0xff]  ;;  %v3214_v34 = vld [vmem:[#allocation2 + $0x3f] sm:$0xff] }
 0x96e   :  { %3297 = vrot.lane.b32.xlu1 %v3236_v18, %s7827_s23  ;;  %v3254_v43 = vld [vmem:[#allocation2 + $0x91] sm:$0xff] }
 0x96f   :  { %v3237_v6 = vld [vmem:[#allocation2 + $0x88] sm:$0xff] }
 0x970   :  { %3295 = vrot.lane.b32.xlu0 %v3235_v15, %s7827_s23  ;;  %v3252_v47 = vld [vmem:[#allocation2 + $0x81] sm:$0xff]  ;;  %v3253_v5 = vld [vmem:[#allocation2 + $0x89] sm:$0xff] }
 0x972   :  { %3357 = vrot.lane.b32.xlu1 %v3250_v31, %s7826_s0 }
 0x974   :  { %3359 = vrot.lane.b32.xlu0 %v3251_v52, %s7826_s0  ;;  %v3215_v52 = vld [vmem:[#allocation2 + $0x57] sm:$0xff] }
 0x976   :  { %3301 = vrot.lane.b32.xlu1 %v3238_v0, %s7827_s23 }
 0x978   :  { %3299 = vrot.lane.b32.xlu0 %v3237_v6, %s7827_s23 }
 0x97a   :  { %3361 = vrot.lane.b32.xlu1 %v3252_v47, %s7826_s0 }
 0x97c   :  { %3363 = vrot.lane.b32.xlu0 %v3253_v5, %s7826_s0 }
 0x97e   :  { %3365 = vrot.lane.b32.xlu1 %v3254_v43, %s7826_s0 }
 0x9a8   :  { %v3274_v23 = vpop.permute.xlu1 %3273 }
 0x9a9   :  { %v3384_v42 = vsel %vm14_vm0, %v3208_v22, %v3274_v23 }
 0x9aa   :  { %v3272_v8 = vpop.permute.xlu0 %3271 }
 0x9ab   :  { %v3383_v54 = vsel %vm14_vm0, %v3207_v30, %v3272_v8  ;;  %v3216_v8 = vld [vmem:[#allocation2 + $0x5f] sm:$0xff] }
 0x9ae   :  { %v3336_v49 = vpop.permute.xlu0 %3335 }
 0x9af   :  { %v3399_v50 = vsel %vm259_vm1, %v3383_v54, %v3336_v49  ;;  %v3217_v49 = vld [vmem:[#allocation2 + $0x67] sm:$0xff] }
 0x9b0   :  { %7510 = vmatprep.mubr.msk.f32.mxu1 %vm295_vm2, %v3399_v50 }
 0x9b4   :  { %v3278_v7 = vpop.permute.xlu1 %3277 }
 0x9b5   :  { %v3386_v32 = vsel %vm14_vm0, %v3210_v40, %v3278_v7 }
 0x9b6   :  { %v3276_v55 = vpop.permute.xlu0 %3275 }
 0x9b7   :  { %v3385_v9 = vsel %vm14_vm0, %v3209_v59, %v3276_v55 }
 0x9b8   :  { %v3338_v10 = vpop.permute.xlu1 %3337 }
 0x9b9   :  { %v3400_v53 = vsel %vm259_vm1, %v3384_v42, %v3338_v10  ;;  %v3218_v10 = vld [vmem:[#allocation2 + $0x6f] sm:$0xff] }
 0x9ba   :  { %v3340_v38 = vpop.permute.xlu0 %3339  ;;  %7511 = vmatmul.mubr.msk.f32.vlgmr.msra.gmra.mxu1 %vm295_vm2, %v3400_v53 }
 0x9bb   :  { %v3401_v21 = vsel %vm259_vm1, %v3385_v9, %v3340_v38  ;;  %v3219_v9 = vld [vmem:[#allocation2 + $0x77] sm:$0xff] }
 0x9bc   :  { %7513 = vmatprep.mubr.msk.f32.mxu1 %vm295_vm2, %v3401_v21 }
 0x9c0   :  { %v3282_v1 = vpop.permute.xlu1 %3281 }
 0x9c1   :  { %v3388_v58 = vsel %vm14_vm0, %v3212_v60, %v3282_v1 }
 0x9c2   :  { %v3280_v17 = vpop.permute.xlu0 %3279 }
 0x9c3   :  { %v3387_v33 = vsel %vm14_vm0, %v3211_v26, %v3280_v17 }
 0x9c4   :  { %v3342_v12 = vpop.permute.xlu1 %3341 }
 0x9c5   :  { %v3402_v36 = vsel %vm259_vm1, %v3386_v32, %v3342_v12  ;;  %v3220_v12 = vld [vmem:[#allocation2 + $0x7f] sm:$0xff] }
 0x9c6   :  { %v3344_v28 = vpop.permute.xlu0 %3343  ;;  %7514 = vmatmul.mubr.msk.f32.gmra.mxu1 %vm295_vm2, %v3402_v36 }
 0x9c7   :  { %v3403_v11 = vsel %vm259_vm1, %v3387_v33, %v3344_v28  ;;  %v3221_v33 = vld [vmem:[#allocation2 + $0x87] sm:$0xff] }
 0x9c8   :  { %v3286_v24 = vpop.permute.xlu1 %3285  ;;  %7516 = vmatprep.mubr.msk.f32.mxu1 %vm295_vm2, %v3403_v11 }
 0x9c9   :  { %v3390_v18 = vsel %vm14_vm0, %v3214_v34, %v3286_v24  ;;  %v6585_v34 = vld [vmem:[%s10643_s1 + $0x338] sm:$0xff] }
 0x9ca   :  { %v3284_v35 = vpop.permute.xlu0 %3283 }
 0x9cb   :  { %v3389_v45 = vsel %vm14_vm0, %v3213_v14, %v3284_v35  ;;  %v3222_v35 = vld [vmem:[#allocation2 + $0x8f] sm:$0xff]  ;;  %v6589_v14 = vld [vmem:[%s10643_s1 + $0x358] sm:$0xff] }
 0x9cc   :  { %v3350_v4 = vpop.permute.xlu1 %3349  ;;  %7534 = vmatprep.subr.mxu0 %v6589_v14 }
 0x9cd   :  { %v3406_v31 = vsel %vm259_vm1, %v3390_v18, %v3350_v4  ;;  %7535 = vmatpush3.msra.mxu0 %v6589_v14 }
 0x9ce   :  { %v3348_v48 = vpop.permute.xlu0 %3347 }
 0x9cf   :  { %v3405_v39 = vsel %vm259_vm1, %v3389_v45, %v3348_v48  ;;  %v6587_v45 = vld [vmem:[%s10643_s1 + $0x348] sm:$0xff] }
 0x9d0   :  { %v3346_v25 = vpop.permute.xlu1 %3345 }
 0x9d1   :  { %v3404_v13 = vsel %vm259_vm1, %v3388_v58, %v3346_v25  ;;  %v6588_v25 = vld [vmem:[%s10643_s1 + $0x350] sm:$0xff] }
 0x9d2   :  { %v3288_v16 = vpop.permute.xlu0 %3287  ;;  %7517 = vmatmul.mubr.msk.f32.gmra.mxu1 %vm295_vm2, %v3404_v13  ;;  %7536 = vmatprep.subr.mxu0 %v6588_v25  ;;  %v6586_v13 = vld [vmem:[%s10643_s1 + $0x340] sm:$0xff] }
 0x9d3   :  { %7519 = vmatprep.mubr.msk.f32.mxu1 %vm295_vm2, %v3405_v39  ;;  %v3391_v0 = vsel %vm14_vm0, %v3215_v52, %v3288_v16  ;;  %7537 = vmatpush3.msra.mxu0 %v6588_v25  ;;  %v9442_v39 = vld [vmem:[%s10644_s2 + $0x7] ss:$0 sm:$0xff]  ;;  %v6583_v52 = vld [vmem:[%s10643_s1 + $0x328] sm:$0xff] }
 0x9d4   :  { %v3290_v15 = vpop.permute.xlu1 %3289  ;;  %7538 = vmatprep.subr.mxu0 %v6587_v45 }
 0x9d5   :  { %v3392_v30 = vsel %vm14_vm0, %v3216_v8, %v3290_v15  ;;  %7539 = vmatpush3.msra.mxu0 %v6587_v45  ;;  %v6580_v8 = vld [vmem:[%s10643_s1 + $0x310] sm:$0xff] }
 0x9d6   :  { %v3352_v6 = vpop.permute.xlu0 %3351  ;;  %7520 = vmatmul.mubr.msk.f32.gmra.mxu1 %vm295_vm2, %v3406_v31  ;;  %7540 = vmatprep.subr.mxu0 %v6586_v13  ;;  %v6584_v31 = vld [vmem:[%s10643_s1 + $0x330] sm:$0xff] }
 0x9d7   :  { %v3407_v47 = vsel %vm259_vm1, %v3391_v0, %v3352_v6  ;;  %7541 = vmatpush3.msra.mxu0 %v6586_v13 }
 0x9d8   :  { %v3294_v5 = vpop.permute.xlu1 %3293  ;;  %7522 = vmatprep.mubr.msk.f32.mxu1 %vm295_vm2, %v3407_v47  ;;  %7542 = vmatprep.subr.mxu0 %v6585_v34 }
 0x9d9   :  { %v3394_v59 = vsel %vm14_vm0, %v3218_v10, %v3294_v5  ;;  %7543 = vmatpush3.msra.mxu0 %v6585_v34  ;;  %v6582_v5 = vld [vmem:[%s10643_s1 + $0x320] sm:$0xff] }
 0x9da   :  { %v3292_v43 = vpop.permute.xlu0 %3291  ;;  %7544 = vmatprep.subr.mxu0 %v6584_v31 }
 0x9db   :  { %v3393_v23 = vsel %vm14_vm0, %v3217_v49, %v3292_v43  ;;  %7545 = vmatpush3.msra.mxu0 %v6584_v31  ;;  %v6581_v43 = vld [vmem:[%s10643_s1 + $0x318] sm:$0xff]  ;;  %v6579_v49 = vld [vmem:[%s10643_s1 + $0x308] sm:$0xff] }
 0x9dc   :  { %v3354_v54 = vpop.permute.xlu1 %3353  ;;  %7546 = vmatprep.subr.mxu0 %v6583_v52 }
 0x9dd   :  { %v3408_v50 = vsel %vm259_vm1, %v3392_v30, %v3354_v54  ;;  %7547 = vmatpush3.msra.mxu0 %v6583_v52 }
 0x9de   :  { %v3356_v7 = vpop.permute.xlu0 %3355  ;;  %7523 = vmatmul.mubr.msk.f32.gmra.mxu1 %vm295_vm2, %v3408_v50  ;;  %7548 = vmatprep.subr.mxu0 %v6582_v5 }
 0x9df   :  { %v3409_v55 = vsel %vm259_vm1, %v3393_v23, %v3356_v7  ;;  %7549 = vmatpush3.msra.mxu0 %v6582_v5 }
 0x9e0   :  { %v3298_v22 = vpop.permute.xlu1 %3297  ;;  %7525 = vmatprep.mubr.msk.f32.mxu1 %vm295_vm2, %v3409_v55  ;;  %7550 = vmatprep.subr.mxu0 %v6581_v43 }
 0x9e1   :  { %v3396_v26 = vsel %vm14_vm0, %v3220_v12, %v3298_v22  ;;  %7551 = vmatpush3.msra.mxu0 %v6581_v43 }
 0x9e2   :  { %v3296_v42 = vpop.permute.xlu0 %3295  ;;  %7552 = vmatprep.subr.mxu0 %v6580_v8 }
 0x9e3   :  { %v3395_v21 = vsel %vm14_vm0, %v3219_v9, %v3296_v42  ;;  %7553 = vmatpush3.msra.mxu0 %v6580_v8  ;;  %v6578_v42 = vld [vmem:[%s10643_s1 + $0x300] sm:$0xff] }
 0x9e4   :  { %v3358_v53 = vpop.permute.xlu1 %3357  ;;  %7554 = vmatprep.subr.mxu0 %v6579_v49 }
 0x9e5   :  { %v3410_v38 = vsel %vm259_vm1, %v3394_v59, %v3358_v53  ;;  %7555 = vmatpush3.msra.mxu0 %v6579_v49 }
 0x9e6   :  { %v3360_v1 = vpop.permute.xlu0 %3359  ;;  %7526 = vmatmul.mubr.msk.f32.gmra.mxu1 %vm295_vm2, %v3410_v38  ;;  %7556 = vmatprep.subr.mxu0 %v6578_v42 }
 0x9e7   :  { %v3411_v17 = vsel %vm259_vm1, %v3395_v21, %v3360_v1  ;;  %7557 = vmatpush3.msra.mxu0 %v6578_v42 }
 0x9e8   :  { %v3302_v40 = vpop.permute.xlu1 %3301  ;;  %7528 = vmatprep.mubr.msk.f32.mxu1 %vm295_vm2, %v3411_v17 }
 0x9e9   :  { %v3398_v48 = vsel %vm14_vm0, %v3222_v35, %v3302_v40 }
 0x9ea   :  { %v3300_v32 = vpop.permute.xlu0 %3299 }
 0x9eb   :  { %v3397_v11 = vsel %vm14_vm0, %v3221_v33, %v3300_v32 }
 0x9ec   :  { %v3362_v36 = vpop.permute.xlu1 %3361 }
 0x9ed   :  { %v3412_v28 = vsel %vm259_vm1, %v3396_v26, %v3362_v36 }
 0x9ee   :  { %v3364_v24 = vpop.permute.xlu0 %3363  ;;  %7529 = vmatmul.mubr.msk.f32.gmra.mxu1 %vm295_vm2, %v3412_v28 }
 0x9ef   :  { %v3413_v4 = vsel %vm259_vm1, %v3397_v11, %v3364_v24 }
 0x9f0   :  { %v3366_v60 = vpop.permute.xlu1 %3365  ;;  %7531 = vmatprep.mubr.msk.f32.mxu1 %vm295_vm2, %v3413_v4 }
 0x9f1   :  { %v3414_v58 = vsel %vm259_vm1, %v3398_v48, %v3366_v60 }
 0x9f2   :  { %7532 = vmatmul.mubr.msk.f32.gmra.mxu1 %vm295_vm2, %v3414_v58 }
 0xa7a   :  { %v7512_v16 = vpop.f32.mrf.mxu1 }
 0xa7b   :  { %v3556_v18 = vadd.f32 %v7512_v16, %v9442_v39 }
 0xa7c   :  { %v3550_v15 = vpop.f32.mrf.mxu1 }
 0xa7d   :  { %v3630_v0 = vmax.f32 %v3556_v18, 0.0  ;;  %v3551_v6 = vadd.f32 %v9442_v39, %v3550_v15 }
 0xa7f   :  { %3646 = vst.msk [vmem:[#allocation2 + $0x10] sm:$0xff] %vm14_vm0, %v3630_v0  ;;  %v3629_v47 = vmax.f32 %v3551_v6, 0.0 }
 0xa81   :  { %3645 = vst.msk [vmem:[#allocation2 + $0x8] sm:$0xff] %vm14_vm0, %v3629_v47 }
 0xa86   :  { %v7515_v30 = vpop.f32.mrf.mxu1  ;;  %v3678_v54 = vld [vmem:[#allocation2 + $0x10] sm:$0xff] }
 0xa87   :  { %v3566_v50 = vadd.f32 %v7515_v30, %v9442_v39  ;;  %3727 = vrot.lane.b32.xlu1 %v3678_v54, %s7827_s23 }
 0xa88   :  { %v3560_v23 = vpop.f32.mrf.mxu1  ;;  %v3677_v7 = vld [vmem:[#allocation2 + $0x8] sm:$0xff] }
 0xa89   :  { %v3632_v55 = vmax.f32 %v3566_v50, 0.0  ;;  %v3561_v22 = vadd.f32 %v9442_v39, %v3560_v23  ;;  %3725 = vrot.lane.b32.xlu0 %v3677_v7, %s7827_s23  ;;  %v3693_v59 = vld [vmem:[#allocation2 + $0xa] sm:$0xff] }
 0xa8b   :  { %3648 = vst.msk [vmem:[#allocation2 + $0x20] sm:$0xff] %vm14_vm0, %v3632_v55  ;;  %v3631_v10 = vmax.f32 %v3561_v22, 0.0 }
 0xa8d   :  { %3647 = vst.msk [vmem:[#allocation2 + $0x18] sm:$0xff] %vm14_vm0, %v3631_v10  ;;  %3789 = vrot.lane.b32.xlu0 %v3693_v59, %s7826_s0 }
 0xa92   :  { %v7518_v53 = vpop.f32.mrf.mxu1  ;;  %v3680_v9 = vld [vmem:[#allocation2 + $0x20] sm:$0xff] }
 0xa93   :  { %v3576_v38 = vadd.f32 %v7518_v53, %v9442_v39  ;;  %3731 = vrot.lane.b32.xlu1 %v3680_v9, %s7827_s23 }
 0xa94   :  { %v3570_v21 = vpop.f32.mrf.mxu1  ;;  %v3679_v1 = vld [vmem:[#allocation2 + $0x18] sm:$0xff] }
 0xa95   :  { %v3634_v17 = vmax.f32 %v3576_v38, 0.0  ;;  %v3571_v40 = vadd.f32 %v9442_v39, %v3570_v21  ;;  %3729 = vrot.lane.b32.xlu0 %v3679_v1, %s7827_s23  ;;  %v3694_v12 = vld [vmem:[#allocation2 + $0x12] sm:$0xff]  ;;  %v3695_v28 = vld [vmem:[#allocation2 + $0x1a] sm:$0xff] }
 0xa96   :  { %v7521_v32 = vpop.f32.mrf.mxu1 }
 0xa97   :  { %3650 = vst.msk [vmem:[#allocation2 + $0x30] sm:$0xff] %vm14_vm0, %v3634_v17  ;;  %v3633_v26 = vmax.f32 %v3571_v40, 0.0  ;;  %v3586_v36 = vadd.f32 %v7521_v32, %v9442_v39  ;;  %3791 = vrot.lane.b32.xlu1 %v3694_v12, %s7826_s0 }
 0xa98   :  { %v3580_v33 = vpop.f32.mrf.mxu1 }
 0xa99   :  { %3649 = vst.msk [vmem:[#allocation2 + $0x28] sm:$0xff] %vm14_vm0, %v3633_v26  ;;  %v3636_v11 = vmax.f32 %v3586_v36, 0.0  ;;  %v3581_v24 = vadd.f32 %v9442_v39, %v3580_v33  ;;  %3793 = vrot.lane.b32.xlu0 %v3695_v28, %s7826_s0 }
 0xa9b   :  { %3652 = vst.msk [vmem:[#allocation2 + $0x40] sm:$0xff] %vm14_vm0, %v3636_v11  ;;  %v3635_v35 = vmax.f32 %v3581_v24, 0.0 }
 0xa9d   :  { %3651 = vst.msk [vmem:[#allocation2 + $0x38] sm:$0xff] %vm14_vm0, %v3635_v35 }
 0xa9e   :  { %v7524_v4 = vpop.f32.mrf.mxu1  ;;  %v3682_v48 = vld [vmem:[#allocation2 + $0x30] sm:$0xff] }
 0xa9f   :  { %v3596_v60 = vadd.f32 %v7524_v4, %v9442_v39  ;;  %3735 = vrot.lane.b32.xlu1 %v3682_v48, %s7827_s23 }
 0xaa0   :  { %v3590_v58 = vpop.f32.mrf.mxu1  ;;  %v3681_v14 = vld [vmem:[#allocation2 + $0x28] sm:$0xff] }
 0xaa1   :  { %v3638_v25 = vmax.f32 %v3596_v60, 0.0  ;;  %v3591_v45 = vadd.f32 %v9442_v39, %v3590_v58  ;;  %3733 = vrot.lane.b32.xlu0 %v3681_v14, %s7827_s23  ;;  %v3696_v13 = vld [vmem:[#allocation2 + $0x22] sm:$0xff]  ;;  %v3697_v34 = vld [vmem:[#allocation2 + $0x2a] sm:$0xff] }
 0xaa2   :  { %v3684_v15 = vld [vmem:[#allocation2 + $0x40] sm:$0xff] }
 0xaa3   :  { %3654 = vst.msk [vmem:[#allocation2 + $0x60] sm:$0xff] %vm14_vm0, %v3638_v25  ;;  %v3637_v16 = vmax.f32 %v3591_v45, 0.0  ;;  %3795 = vrot.lane.b32.xlu1 %v3696_v13, %s7826_s0  ;;  %v3700_v5 = vld [vmem:[#allocation2 + $0x42] sm:$0xff] }
 0xaa4   :  { %v3683_v0 = vld [vmem:[#allocation2 + $0x38] sm:$0xff]  ;;  %v3661_v60 = vld [vmem:[#allocation2 + $0x6] sm:$0xff] }
 0xaa5   :  { %3653 = vst.msk [vmem:[#allocation2 + $0x58] sm:$0xff] %vm14_vm0, %v3637_v16  ;;  %3797 = vrot.lane.b32.xlu0 %v3697_v34, %s7826_s0  ;;  %v3699_v8 = vld [vmem:[#allocation2 + $0x3a] sm:$0xff]  ;;  %v3698_v54 = vld [vmem:[#allocation2 + $0x32] sm:$0xff] }
 0xaa6   :  { %v7527_v18 = vpop.f32.mrf.mxu1  ;;  %v3662_v34 = vld [vmem:[#allocation2 + $0xe] sm:$0xff] }
 0xaa7   :  { %v3606_v31 = vadd.f32 %v7527_v18, %v9442_v39  ;;  %3739 = vrot.lane.b32.xlu1 %v3684_v15, %s7827_s23 }
 0xaa8   :  { %v3600_v52 = vpop.f32.mrf.mxu1 }
 0xaa9   :  { %v3640_v6 = vmax.f32 %v3606_v31, 0.0  ;;  %v3601_v47 = vadd.f32 %v9442_v39, %v3600_v52  ;;  %3737 = vrot.lane.b32.xlu0 %v3683_v0, %s7827_s23  ;;  %v3663_v31 = vld [vmem:[#allocation2 + $0x16] sm:$0xff] }
 0xaaa   :  { %v3686_v42 = vld [vmem:[#allocation2 + $0x60] sm:$0xff] }
 0xaab   :  { %3656 = vst.msk [vmem:[#allocation2 + $0x70] sm:$0xff] %vm14_vm0, %v3640_v6  ;;  %v3639_v43 = vmax.f32 %v3601_v47, 0.0  ;;  %3803 = vrot.lane.b32.xlu1 %v3700_v5, %s7826_s0 }
 0xaac   :  { %v3685_v23 = vld [vmem:[#allocation2 + $0x58] sm:$0xff] }
 0xaad   :  { %3655 = vst.msk [vmem:[#allocation2 + $0x68] sm:$0xff] %vm14_vm0, %v3639_v43  ;;  %3801 = vrot.lane.b32.xlu0 %v3699_v8, %s7826_s0  ;;  %v3701_v9 = vld [vmem:[#allocation2 + $0x5a] sm:$0xff] }
 0xaae   :  { %v7530_v30 = vpop.f32.mrf.mxu1  ;;  %v3664_v8 = vld [vmem:[#allocation2 + $0x1e] sm:$0xff] }
 0xaaf   :  { %v3616_v49 = vadd.f32 %v7530_v30, %v9442_v39  ;;  %3799 = vrot.lane.b32.xlu1 %v3698_v54, %s7826_s0 }
 0xab0   :  { %v3610_v50 = vpop.f32.mrf.mxu1 }
 0xab1   :  { %v3642_v7 = vmax.f32 %v3616_v49, 0.0  ;;  %v3611_v55 = vadd.f32 %v9442_v39, %v3610_v50  ;;  %3741 = vrot.lane.b32.xlu0 %v3685_v23, %s7827_s23  ;;  %v3665_v49 = vld [vmem:[#allocation2 + $0x26] sm:$0xff] }
 0xab2   :  { %v7533_v22 = vpop.f32.mrf.mxu1  ;;  %v3688_v1 = vld [vmem:[#allocation2 + $0x70] sm:$0xff] }
 0xab3   :  { %3658 = vst.msk [vmem:[#allocation2 + $0x80] sm:$0xff] %vm14_vm0, %v3642_v7  ;;  %v3641_v10 = vmax.f32 %v3611_v55, 0.0  ;;  %v3626_v59 = vadd.f32 %v7533_v22, %v9442_v39  ;;  %3743 = vrot.lane.b32.xlu1 %v3686_v42, %s7827_s23 }
 0xab4   :  { %v3620_v53 = vpop.f32.mrf.mxu1  ;;  %v3687_v40 = vld [vmem:[#allocation2 + $0x68] sm:$0xff] }
 0xab5   :  { %3657 = vst.msk [vmem:[#allocation2 + $0x78] sm:$0xff] %vm14_vm0, %v3641_v10  ;;  %v3644_v38 = vmax.f32 %v3626_v59, 0.0  ;;  %v3621_v21 = vadd.f32 %v9442_v39, %v3620_v53  ;;  %3805 = vrot.lane.b32.xlu0 %v3701_v9, %s7826_s0  ;;  %v3702_v32 = vld [vmem:[#allocation2 + $0x62] sm:$0xff]  ;;  %v3703_v12 = vld [vmem:[#allocation2 + $0x6a] sm:$0xff] }
 0xab6   :  { %v3666_v53 = vld [vmem:[#allocation2 + $0x2e] sm:$0xff] }
 0xab7   :  { %3660 = vst.msk [vmem:[#allocation2 + $0x90] sm:$0xff] %vm14_vm0, %v3644_v38  ;;  %v3643_v17 = vmax.f32 %v3621_v21, 0.0  ;;  %3747 = vrot.lane.b32.xlu1 %v3688_v1, %s7827_s23  ;;  %v3667_v38 = vld [vmem:[#allocation2 + $0x36] sm:$0xff] }
 0xab9   :  { %3659 = vst.msk [vmem:[#allocation2 + $0x88] sm:$0xff] %vm14_vm0, %v3643_v17  ;;  %3745 = vrot.lane.b32.xlu0 %v3687_v40, %s7827_s23 }
 0xaba   :  { %v3690_v39 = vld [vmem:[#allocation2 + $0x80] sm:$0xff] }
 0xabb   :  { %3807 = vrot.lane.b32.xlu1 %v3702_v32, %s7826_s0 }
 0xabc   :  { %v3689_v26 = vld [vmem:[#allocation2 + $0x78] sm:$0xff] }
 0xabd   :  { %3809 = vrot.lane.b32.xlu0 %v3703_v12, %s7826_s0  ;;  %v3704_v36 = vld [vmem:[#allocation2 + $0x72] sm:$0xff]  ;;  %v3705_v33 = vld [vmem:[#allocation2 + $0x7a] sm:$0xff] }
 0xabe   :  { %v3692_v28 = vld [vmem:[#allocation2 + $0x90] sm:$0xff]  ;;  %v3668_v12 = vld [vmem:[#allocation2 + $0x3e] sm:$0xff] }
 0xabf   :  { %3751 = vrot.lane.b32.xlu1 %v3690_v39, %s7827_s23  ;;  %v3708_v4 = vld [vmem:[#allocation2 + $0x92] sm:$0xff] }
 0xac0   :  { %v3691_v11 = vld [vmem:[#allocation2 + $0x88] sm:$0xff] }
 0xac1   :  { %3749 = vrot.lane.b32.xlu0 %v3689_v26, %s7827_s23  ;;  %v3706_v24 = vld [vmem:[#allocation2 + $0x82] sm:$0xff]  ;;  %v3707_v35 = vld [vmem:[#allocation2 + $0x8a] sm:$0xff] }
 0xac3   :  { %3811 = vrot.lane.b32.xlu1 %v3704_v36, %s7826_s0 }
 0xac5   :  { %3813 = vrot.lane.b32.xlu0 %v3705_v33, %s7826_s0  ;;  %v3669_v33 = vld [vmem:[#allocation2 + $0x56] sm:$0xff] }
 0xac7   :  { %3755 = vrot.lane.b32.xlu1 %v3692_v28, %s7827_s23 }
 0xac9   :  { %3753 = vrot.lane.b32.xlu0 %v3691_v11, %s7827_s23 }
 0xacb   :  { %3815 = vrot.lane.b32.xlu1 %v3706_v24, %s7826_s0 }
 0xacd   :  { %3817 = vrot.lane.b32.xlu0 %v3707_v35, %s7826_s0 }
 0xacf   :  { %3819 = vrot.lane.b32.xlu1 %v3708_v4, %s7826_s0 }
 0xaf9   :  { %v3728_v45 = vpop.permute.xlu1 %3727 }
 0xafa   :  { %v3838_v18 = vsel %vm14_vm0, %v3662_v34, %v3728_v45 }
 0xafb   :  { %v3726_v48 = vpop.permute.xlu0 %3725 }
 0xafc   :  { %v3837_v58 = vsel %vm14_vm0, %v3661_v60, %v3726_v48  ;;  %v3670_v48 = vld [vmem:[#allocation2 + $0x5e] sm:$0xff] }
 0xaff   :  { %v3790_v14 = vpop.permute.xlu0 %3789 }
 0xb00   :  { %v3853_v25 = vsel %vm259_vm1, %v3837_v58, %v3790_v14  ;;  %v3671_v14 = vld [vmem:[#allocation2 + $0x66] sm:$0xff] }
 0xb01   :  { %7558 = vmatprep.mubr.msk.f32.mxu0 %vm295_vm2, %v3853_v25 }
 0xb05   :  { %v3732_v13 = vpop.permute.xlu1 %3731 }
 0xb06   :  { %v3840_v30 = vsel %vm14_vm0, %v3664_v8, %v3732_v13 }
 0xb07   :  { %v3730_v16 = vpop.permute.xlu0 %3729 }
 0xb08   :  { %v3839_v0 = vsel %vm14_vm0, %v3663_v31, %v3730_v16 }
 0xb09   :  { %v3792_v15 = vpop.permute.xlu1 %3791 }
 0xb0a   :  { %v3854_v52 = vsel %vm259_vm1, %v3838_v18, %v3792_v15  ;;  %v3672_v15 = vld [vmem:[#allocation2 + $0x6e] sm:$0xff] }
 0xb0b   :  { %v3794_v6 = vpop.permute.xlu0 %3793  ;;  %7559 = vmatmul.mubr.msk.f32.vlgmr.msra.gmra.mxu0 %vm295_vm2, %v3854_v52 }
 0xb0c   :  { %v3855_v47 = vsel %vm259_vm1, %v3839_v0, %v3794_v6  ;;  %v3673_v0 = vld [vmem:[#allocation2 + $0x76] sm:$0xff] }
 0xb0d   :  { %7561 = vmatprep.mubr.msk.f32.mxu0 %vm295_vm2, %v3855_v47 }
 0xb11   :  { %v3736_v5 = vpop.permute.xlu1 %3735 }
 0xb12   :  { %v3842_v9 = vsel %vm14_vm0, %v3666_v53, %v3736_v5 }
 0xb13   :  { %v3734_v43 = vpop.permute.xlu0 %3733 }
 0xb14   :  { %v3841_v23 = vsel %vm14_vm0, %v3665_v49, %v3734_v43 }
 0xb15   :  { %v3796_v54 = vpop.permute.xlu1 %3795 }
 0xb16   :  { %v3856_v50 = vsel %vm259_vm1, %v3840_v30, %v3796_v54  ;;  %v3674_v54 = vld [vmem:[#allocation2 + $0x7e] sm:$0xff] }
 0xb17   :  { %v3798_v7 = vpop.permute.xlu0 %3797  ;;  %7562 = vmatmul.mubr.msk.f32.gmra.mxu0 %vm295_vm2, %v3856_v50 }
 0xb18   :  { %v3857_v55 = vsel %vm259_vm1, %v3841_v23, %v3798_v7  ;;  %v3675_v23 = vld [vmem:[#allocation2 + $0x86] sm:$0xff] }
 0xb19   :  { %v3740_v22 = vpop.permute.xlu1 %3739  ;;  %7564 = vmatprep.mubr.msk.f32.mxu0 %vm295_vm2, %v3857_v55 }
 0xb1a   :  { %v3844_v39 = vsel %vm14_vm0, %v3668_v12, %v3740_v22  ;;  %v6615_v12 = vld [vmem:[%s10643_s1 + $0x398] sm:$0xff] }
 0xb1b   :  { %v3738_v42 = vpop.permute.xlu0 %3737 }
 0xb1c   :  { %v3843_v1 = vsel %vm14_vm0, %v3667_v38, %v3738_v42  ;;  %v3676_v42 = vld [vmem:[#allocation2 + $0x8e] sm:$0xff]  ;;  %v6619_v38 = vld [vmem:[%s10643_s1 + $0x3b8] sm:$0xff] }
 0xb1d   :  { %v3804_v10 = vpop.permute.xlu1 %3803  ;;  %7582 = vmatprep.subr.mxu1 %v6619_v38 }
 0xb1e   :  { %v3860_v36 = vsel %vm259_vm1, %v3844_v39, %v3804_v10  ;;  %7583 = vmatpush3.msra.mxu1 %v6619_v38 }
 0xb1f   :  { %v3802_v59 = vpop.permute.xlu0 %3801 }
 0xb20   :  { %v3859_v40 = vsel %vm259_vm1, %v3843_v1, %v3802_v59  ;;  %v6617_v1 = vld [vmem:[%s10643_s1 + $0x3a8] sm:$0xff] }
 0xb21   :  { %v3800_v21 = vpop.permute.xlu1 %3799 }
 0xb22   :  { %v3858_v17 = vsel %vm259_vm1, %v3842_v9, %v3800_v21  ;;  %v6618_v21 = vld [vmem:[%s10643_s1 + $0x3b0] sm:$0xff] }
 0xb23   :  { %v3742_v32 = vpop.permute.xlu0 %3741  ;;  %7565 = vmatmul.mubr.msk.f32.gmra.mxu0 %vm295_vm2, %v3858_v17  ;;  %7584 = vmatprep.subr.mxu1 %v6618_v21  ;;  %v6616_v17 = vld [vmem:[%s10643_s1 + $0x3a0] sm:$0xff] }
 0xb24   :  { %7567 = vmatprep.mubr.msk.f32.mxu0 %vm295_vm2, %v3859_v40  ;;  %v3845_v28 = vsel %vm14_vm0, %v3669_v33, %v3742_v32  ;;  %7585 = vmatpush3.msra.mxu1 %v6618_v21  ;;  %v9595_v40 = vld [vmem:[%s10644_s2 + $0x8] ss:$0 sm:$0xff] }
 0xb25   :  { %v3744_v26 = vpop.permute.xlu1 %3743  ;;  %7586 = vmatprep.subr.mxu1 %v6617_v1  ;;  %v6613_v33 = vld [vmem:[%s10643_s1 + $0x388] sm:$0xff] }
 0xb26   :  { %v3846_v60 = vsel %vm14_vm0, %v3670_v48, %v3744_v26  ;;  %7587 = vmatpush3.msra.mxu1 %v6617_v1  ;;  %v6610_v48 = vld [vmem:[%s10643_s1 + $0x370] sm:$0xff] }
 0xb27   :  { %v3806_v11 = vpop.permute.xlu0 %3805  ;;  %7568 = vmatmul.mubr.msk.f32.gmra.mxu0 %vm295_vm2, %v3860_v36  ;;  %7588 = vmatprep.subr.mxu1 %v6616_v17  ;;  %v6614_v36 = vld [vmem:[%s10643_s1 + $0x390] sm:$0xff] }
 0xb28   :  { %v3861_v24 = vsel %vm259_vm1, %v3845_v28, %v3806_v11  ;;  %7589 = vmatpush3.msra.mxu1 %v6616_v17 }
 0xb29   :  { %v3748_v35 = vpop.permute.xlu1 %3747  ;;  %7570 = vmatprep.mubr.msk.f32.mxu0 %vm295_vm2, %v3861_v24  ;;  %7590 = vmatprep.subr.mxu1 %v6615_v12 }
 0xb2a   :  { %v3848_v31 = vsel %vm14_vm0, %v3672_v15, %v3748_v35  ;;  %7591 = vmatpush3.msra.mxu1 %v6615_v12  ;;  %v6612_v35 = vld [vmem:[%s10643_s1 + $0x380] sm:$0xff] }
 0xb2b   :  { %v3746_v4 = vpop.permute.xlu0 %3745  ;;  %7592 = vmatprep.subr.mxu1 %v6614_v36 }
 0xb2c   :  { %v3847_v45 = vsel %vm14_vm0, %v3671_v14, %v3746_v4  ;;  %7593 = vmatpush3.msra.mxu1 %v6614_v36  ;;  %v6611_v4 = vld [vmem:[%s10643_s1 + $0x378] sm:$0xff]  ;;  %v6609_v14 = vld [vmem:[%s10643_s1 + $0x368] sm:$0xff] }
 0xb2d   :  { %v3808_v58 = vpop.permute.xlu1 %3807  ;;  %7594 = vmatprep.subr.mxu1 %v6613_v33 }
 0xb2e   :  { %v3862_v25 = vsel %vm259_vm1, %v3846_v60, %v3808_v58  ;;  %7595 = vmatpush3.msra.mxu1 %v6613_v33 }
 0xb2f   :  { %v3810_v13 = vpop.permute.xlu0 %3809  ;;  %7571 = vmatmul.mubr.msk.f32.gmra.mxu0 %vm295_vm2, %v3862_v25  ;;  %7596 = vmatprep.subr.mxu1 %v6612_v35 }
 0xb30   :  { %v3863_v16 = vsel %vm259_vm1, %v3847_v45, %v3810_v13  ;;  %7597 = vmatpush3.msra.mxu1 %v6612_v35 }
 0xb31   :  { %v3752_v34 = vpop.permute.xlu1 %3751  ;;  %7573 = vmatprep.mubr.msk.f32.mxu0 %vm295_vm2, %v3863_v16  ;;  %7598 = vmatprep.subr.mxu1 %v6611_v4 }
 0xb32   :  { %v3850_v49 = vsel %vm14_vm0, %v3674_v54, %v3752_v34  ;;  %7599 = vmatpush3.msra.mxu1 %v6611_v4 }
 0xb33   :  { %v3750_v18 = vpop.permute.xlu0 %3749  ;;  %7600 = vmatprep.subr.mxu1 %v6610_v48 }
 0xb34   :  { %v3849_v47 = vsel %vm14_vm0, %v3673_v0, %v3750_v18  ;;  %7601 = vmatpush3.msra.mxu1 %v6610_v48  ;;  %v6608_v18 = vld [vmem:[%s10643_s1 + $0x360] sm:$0xff] }
 0xb35   :  { %v3812_v52 = vpop.permute.xlu1 %3811  ;;  %7602 = vmatprep.subr.mxu1 %v6609_v14 }
 0xb36   :  { %v3864_v6 = vsel %vm259_vm1, %v3848_v31, %v3812_v52  ;;  %7603 = vmatpush3.msra.mxu1 %v6609_v14 }
 0xb37   :  { %v3814_v5 = vpop.permute.xlu0 %3813  ;;  %7574 = vmatmul.mubr.msk.f32.gmra.mxu0 %vm295_vm2, %v3864_v6  ;;  %7604 = vmatprep.subr.mxu1 %v6608_v18 }
 0xb38   :  { %v3865_v43 = vsel %vm259_vm1, %v3849_v47, %v3814_v5  ;;  %7605 = vmatpush3.msra.mxu1 %v6608_v18 }
 0xb39   :  { %v3756_v8 = vpop.permute.xlu1 %3755  ;;  %7576 = vmatprep.mubr.msk.f32.mxu0 %vm295_vm2, %v3865_v43 }
 0xb3a   :  { %v3852_v59 = vsel %vm14_vm0, %v3676_v42, %v3756_v8 }
 0xb3b   :  { %v3754_v30 = vpop.permute.xlu0 %3753 }
 0xb3c   :  { %v3851_v55 = vsel %vm14_vm0, %v3675_v23, %v3754_v30 }
 0xb3d   :  { %v3816_v50 = vpop.permute.xlu1 %3815 }
 0xb3e   :  { %v3866_v7 = vsel %vm259_vm1, %v3850_v49, %v3816_v50 }
 0xb3f   :  { %v3818_v22 = vpop.permute.xlu0 %3817  ;;  %7577 = vmatmul.mubr.msk.f32.gmra.mxu0 %vm295_vm2, %v3866_v7 }
 0xb40   :  { %v3867_v10 = vsel %vm259_vm1, %v3851_v55, %v3818_v22 }
 0xb41   :  { %v3820_v53 = vpop.permute.xlu1 %3819  ;;  %7579 = vmatprep.mubr.msk.f32.mxu0 %vm295_vm2, %v3867_v10 }
 0xb42   :  { %v3868_v9 = vsel %vm259_vm1, %v3852_v59, %v3820_v53 }
 0xb43   :  { %7580 = vmatmul.mubr.msk.f32.gmra.mxu0 %vm295_vm2, %v3868_v9 }
 0xbcb   :  { %v7560_v32 = vpop.f32.mrf.mxu0 }
 0xbcc   :  { %v4010_v39 = vadd.f32 %v7560_v32, %v9595_v40 }
 0xbcd   :  { %v4004_v26 = vpop.f32.mrf.mxu0 }
 0xbce   :  { %v4084_v28 = vmax.f32 %v4010_v39, 0.0  ;;  %v4005_v11 = vadd.f32 %v9595_v40, %v4004_v26 }
 0xbd0   :  { %4100 = vst.msk [vmem:[#allocation2 + $0x10] sm:$0xff] %vm14_vm0, %v4084_v28  ;;  %v4083_v24 = vmax.f32 %v4005_v11, 0.0 }
 0xbd2   :  { %4099 = vst.msk [vmem:[#allocation2 + $0x8] sm:$0xff] %vm14_vm0, %v4083_v24 }
 0xbd7   :  { %v7563_v60 = vpop.f32.mrf.mxu0  ;;  %v4132_v58 = vld [vmem:[#allocation2 + $0x10] sm:$0xff] }
 0xbd8   :  { %v4020_v25 = vadd.f32 %v7563_v60, %v9595_v40  ;;  %4167 = vrot.lane.b32.xlu1 %v4132_v58, %s7827_s23 }
 0xbd9   :  { %v4014_v45 = vpop.f32.mrf.mxu0  ;;  %v4131_v13 = vld [vmem:[#allocation2 + $0x8] sm:$0xff] }
 0xbda   :  { %v4086_v16 = vmax.f32 %v4020_v25, 0.0  ;;  %v4015_v34 = vadd.f32 %v9595_v40, %v4014_v45  ;;  %4165 = vrot.lane.b32.xlu0 %v4131_v13, %s7827_s23  ;;  %v9630_v31 = vld [vmem:[#allocation2 + $0xc] sm:$0xff] }
 0xbdc   :  { %4102 = vst.msk [vmem:[#allocation2 + $0x20] sm:$0xff] %vm14_vm0, %v4086_v16  ;;  %v4085_v15 = vmax.f32 %v4015_v34, 0.0 }
 0xbde   :  { %4101 = vst.msk [vmem:[#allocation2 + $0x18] sm:$0xff] %vm14_vm0, %v4085_v15  ;;  %4229 = vrot.lane.b32.xlu0 %v9630_v31, %s7826_s0 }
 0xbe3   :  { %v7566_v52 = vpop.f32.mrf.mxu0  ;;  %v4134_v0 = vld [vmem:[#allocation2 + $0x20] sm:$0xff] }
 0xbe4   :  { %v4030_v6 = vadd.f32 %v7566_v52, %v9595_v40  ;;  %4171 = vrot.lane.b32.xlu1 %v4134_v0, %s7827_s23 }
 0xbe5   :  { %v4024_v47 = vpop.f32.mrf.mxu0  ;;  %v4133_v5 = vld [vmem:[#allocation2 + $0x18] sm:$0xff] }
 0xbe6   :  { %v4088_v43 = vmax.f32 %v4030_v6, 0.0  ;;  %v4025_v8 = vadd.f32 %v9595_v40, %v4024_v47  ;;  %4169 = vrot.lane.b32.xlu0 %v4133_v5, %s7827_s23  ;;  %v9639_v54 = vld [vmem:[#allocation2 + $0x14] sm:$0xff]  ;;  %v9645_v7 = vld [vmem:[#allocation2 + $0x1c] sm:$0xff] }
 0xbe7   :  { %v7569_v30 = vpop.f32.mrf.mxu0 }
 0xbe8   :  { %4104 = vst.msk [vmem:[#allocation2 + $0x30] sm:$0xff] %vm14_vm0, %v4088_v43  ;;  %v4087_v49 = vmax.f32 %v4025_v8, 0.0  ;;  %v4040_v50 = vadd.f32 %v7569_v30, %v9595_v40  ;;  %4231 = vrot.lane.b32.xlu1 %v9639_v54, %s7826_s0 }
 0xbe9   :  { %v4034_v23 = vpop.f32.mrf.mxu0 }
 0xbea   :  { %4103 = vst.msk [vmem:[#allocation2 + $0x28] sm:$0xff] %vm14_vm0, %v4087_v49  ;;  %v4090_v55 = vmax.f32 %v4040_v50, 0.0  ;;  %v4035_v22 = vadd.f32 %v9595_v40, %v4034_v23  ;;  %4233 = vrot.lane.b32.xlu0 %v9645_v7, %s7826_s0 }
 0xbec   :  { %4106 = vst.msk [vmem:[#allocation2 + $0x40] sm:$0xff] %vm14_vm0, %v4090_v55  ;;  %v4089_v42 = vmax.f32 %v4035_v22, 0.0 }
 0xbee   :  { %4105 = vst.msk [vmem:[#allocation2 + $0x38] sm:$0xff] %vm14_vm0, %v4089_v42 }
 0xbef   :  { %v7572_v10 = vpop.f32.mrf.mxu0  ;;  %v4136_v59 = vld [vmem:[#allocation2 + $0x30] sm:$0xff] }
 0xbf0   :  { %v4050_v53 = vadd.f32 %v7572_v10, %v9595_v40  ;;  %4175 = vrot.lane.b32.xlu1 %v4136_v59, %s7827_s23 }
 0xbf1   :  { %v4044_v9 = vpop.f32.mrf.mxu0  ;;  %v4135_v38 = vld [vmem:[#allocation2 + $0x28] sm:$0xff] }
 0xbf2   :  { %v4092_v21 = vmax.f32 %v4050_v53, 0.0  ;;  %v4045_v1 = vadd.f32 %v9595_v40, %v4044_v9  ;;  %4173 = vrot.lane.b32.xlu0 %v4135_v38, %s7827_s23  ;;  %v9657_v17 = vld [vmem:[#allocation2 + $0x24] sm:$0xff]  ;;  %v9662_v12 = vld [vmem:[#allocation2 + $0x2c] sm:$0xff] }
 0xbf3   :  { %v4138_v26 = vld [vmem:[#allocation2 + $0x40] sm:$0xff] }
 0xbf4   :  { %4108 = vst.msk [vmem:[#allocation2 + $0x60] sm:$0xff] %vm14_vm0, %v4092_v21  ;;  %v4091_v32 = vmax.f32 %v4045_v1, 0.0  ;;  %4235 = vrot.lane.b32.xlu1 %v9657_v17, %s7826_s0  ;;  %v4147_v35 = vld [vmem:[#allocation2 + $0x44] sm:$0xff] }
 0xbf5   :  { %v4137_v28 = vld [vmem:[#allocation2 + $0x38] sm:$0xff]  ;;  %v4115_v21 = vld [vmem:[#allocation2 + $0x4] sm:$0xff] }
 0xbf6   :  { %4107 = vst.msk [vmem:[#allocation2 + $0x58] sm:$0xff] %vm14_vm0, %v4091_v32  ;;  %4237 = vrot.lane.b32.xlu0 %v9662_v12, %s7826_s0  ;;  %v9673_v48 = vld [vmem:[#allocation2 + $0x3c] sm:$0xff]  ;;  %v9678_v58 = vld [vmem:[#allocation2 + $0x34] sm:$0xff] }
 0xbf7   :  { %v7575_v39 = vpop.f32.mrf.mxu0 }
 0xbf8   :  { %v4060_v36 = vadd.f32 %v7575_v39, %v9595_v40  ;;  %4179 = vrot.lane.b32.xlu1 %v4138_v26, %s7827_s23 }
 0xbf9   :  { %v4054_v33 = vpop.f32.mrf.mxu0 }
 0xbfa   :  { %v4094_v11 = vmax.f32 %v4060_v36, 0.0  ;;  %v4055_v24 = vadd.f32 %v9595_v40, %v4054_v33  ;;  %4177 = vrot.lane.b32.xlu0 %v4137_v28, %s7827_s23 }
 0xbfb   :  { %v4140_v18 = vld [vmem:[#allocation2 + $0x60] sm:$0xff] }
 0xbfc   :  { %4110 = vst.msk [vmem:[#allocation2 + $0x70] sm:$0xff] %vm14_vm0, %v4094_v11  ;;  %v4093_v4 = vmax.f32 %v4055_v24, 0.0  ;;  %4243 = vrot.lane.b32.xlu1 %v4147_v35, %s7826_s0 }
 0xbfd   :  { %v4139_v45 = vld [vmem:[#allocation2 + $0x58] sm:$0xff] }
 0xbfe   :  { %4109 = vst.msk [vmem:[#allocation2 + $0x68] sm:$0xff] %vm14_vm0, %v4093_v4  ;;  %4241 = vrot.lane.b32.xlu0 %v9673_v48, %s7826_s0  ;;  %v9688_v6 = vld [vmem:[#allocation2 + $0x5c] sm:$0xff] }
 0xbff   :  { %v7578_v60 = vpop.f32.mrf.mxu0 }
 0xc00   :  { %v4070_v14 = vadd.f32 %v7578_v60, %v9595_v40  ;;  %4239 = vrot.lane.b32.xlu1 %v9678_v58, %s7826_s0 }
 0xc01   :  { %v4064_v25 = vpop.f32.mrf.mxu0 }
 0xc02   :  { %v4096_v13 = vmax.f32 %v4070_v14, 0.0  ;;  %v4065_v16 = vadd.f32 %v9595_v40, %v4064_v25  ;;  %4181 = vrot.lane.b32.xlu0 %v4139_v45, %s7827_s23 }
 0xc03   :  { %v7581_v34 = vpop.f32.mrf.mxu0  ;;  %v4142_v43 = vld [vmem:[#allocation2 + $0x70] sm:$0xff] }
 0xc04   :  { %4112 = vst.msk [vmem:[#allocation2 + $0x80] sm:$0xff] %vm14_vm0, %v4096_v13  ;;  %v4095_v15 = vmax.f32 %v4065_v16, 0.0  ;;  %v4080_v52 = vadd.f32 %v7581_v34, %v9595_v40  ;;  %4183 = vrot.lane.b32.xlu1 %v4140_v18, %s7827_s23 }
 0xc05   :  { %v4074_v0 = vpop.f32.mrf.mxu0  ;;  %v4141_v30 = vld [vmem:[#allocation2 + $0x68] sm:$0xff] }
 0xc06   :  { %4111 = vst.msk [vmem:[#allocation2 + $0x78] sm:$0xff] %vm14_vm0, %v4095_v15  ;;  %v4098_v47 = vmax.f32 %v4080_v52, 0.0  ;;  %v4075_v5 = vadd.f32 %v9595_v40, %v4074_v0  ;;  %4245 = vrot.lane.b32.xlu0 %v9688_v6, %s7826_s0  ;;  %v9698_v49 = vld [vmem:[#allocation2 + $0x64] sm:$0xff]  ;;  %v9702_v40 = vld [vmem:[#allocation2 + $0x6c] sm:$0xff] }
 0xc08   :  { %4114 = vst.msk [vmem:[#allocation2 + $0x90] sm:$0xff] %vm14_vm0, %v4098_v47  ;;  %v4097_v8 = vmax.f32 %v4075_v5, 0.0  ;;  %4187 = vrot.lane.b32.xlu1 %v4142_v43, %s7827_s23 }
 0xc0a   :  { %4113 = vst.msk [vmem:[#allocation2 + $0x88] sm:$0xff] %vm14_vm0, %v4097_v8  ;;  %4185 = vrot.lane.b32.xlu0 %v4141_v30, %s7827_s23 }
 0xc0b   :  { %v4144_v50 = vld [vmem:[#allocation2 + $0x80] sm:$0xff] }
 0xc0c   :  { %4247 = vrot.lane.b32.xlu1 %v9698_v49, %s7826_s0 }
 0xc0d   :  { %v4143_v23 = vld [vmem:[#allocation2 + $0x78] sm:$0xff] }
 0xc0e   :  { %4249 = vrot.lane.b32.xlu0 %v9702_v40, %s7826_s0  ;;  %v9708_v55 = vld [vmem:[#allocation2 + $0x74] sm:$0xff]  ;;  %v9712_v22 = vld [vmem:[#allocation2 + $0x7c] sm:$0xff] }
 0xc0f   :  { %v4146_v42 = vld [vmem:[#allocation2 + $0x90] sm:$0xff] }
 0xc10   :  { %4191 = vrot.lane.b32.xlu1 %v4144_v50, %s7827_s23  ;;  %v4148_v9 = vld [vmem:[#allocation2 + $0x94] sm:$0xff] }
 0xc11   :  { %v4145_v10 = vld [vmem:[#allocation2 + $0x88] sm:$0xff] }
 0xc12   :  { %4189 = vrot.lane.b32.xlu0 %v4143_v23, %s7827_s23  ;;  %v9718_v59 = vld [vmem:[#allocation2 + $0x84] sm:$0xff]  ;;  %v9722_v53 = vld [vmem:[#allocation2 + $0x8c] sm:$0xff] }
 0xc14   :  { %4251 = vrot.lane.b32.xlu1 %v9708_v55, %s7826_s0 }
 0xc16   :  { %4253 = vrot.lane.b32.xlu0 %v9712_v22, %s7826_s0 }
 0xc18   :  { %4195 = vrot.lane.b32.xlu1 %v4146_v42, %s7827_s23 }
 0xc1a   :  { %4193 = vrot.lane.b32.xlu0 %v4145_v10, %s7827_s23 }
 0xc1c   :  { %4255 = vrot.lane.b32.xlu1 %v9718_v59, %s7826_s0 }
 0xc1e   :  { %4257 = vrot.lane.b32.xlu0 %v9722_v53, %s7826_s0 }
 0xc20   :  { %4259 = vrot.lane.b32.xlu1 %v4148_v9, %s7826_s0 }
 0xc4a   :  { %v4168_v26 = vpop.permute.xlu1 %4167 }
 0xc4b   :  { %v4278_v28 = vsel %vm14_vm0, %v9630_v31, %v4168_v26 }
 0xc4c   :  { %v4166_v38 = vpop.permute.xlu0 %4165 }
 0xc4d   :  { %v4277_v1 = vsel %vm14_vm0, %v4115_v21, %v4166_v38 }
 0xc50   :  { %v4230_v32 = vpop.permute.xlu0 %4229 }
 0xc51   :  { %v4293_v39 = vsel %vm259_vm1, %v4277_v1, %v4230_v32 }
 0xc52   :  { %7606 = vmatprep.mubr.msk.f32.mxu1 %vm295_vm2, %v4293_v39 }
 0xc56   :  { %v4172_v36 = vpop.permute.xlu1 %4171 }
 0xc57   :  { %v4280_v45 = vsel %vm14_vm0, %v9645_v7, %v4172_v36 }
 0xc58   :  { %v4170_v33 = vpop.permute.xlu0 %4169 }
 0xc59   :  { %v4279_v35 = vsel %vm14_vm0, %v9639_v54, %v4170_v33 }
 0xc5a   :  { %v4232_v11 = vpop.permute.xlu1 %4231 }
 0xc5b   :  { %v4294_v24 = vsel %vm259_vm1, %v4278_v28, %v4232_v11 }
 0xc5c   :  { %v4234_v4 = vpop.permute.xlu0 %4233  ;;  %7607 = vmatmul.mubr.msk.f32.vlgmr.msra.gmra.mxu1 %vm295_vm2, %v4294_v24 }
 0xc5d   :  { %v4295_v60 = vsel %vm259_vm1, %v4279_v35, %v4234_v4 }
 0xc5e   :  { %7609 = vmatprep.mubr.msk.f32.mxu1 %vm295_vm2, %v4295_v60 }
 0xc62   :  { %v4176_v14 = vpop.permute.xlu1 %4175 }
 0xc63   :  { %v4282_v7 = vsel %vm14_vm0, %v9662_v12, %v4176_v14  ;;  %v4123_v12 = vld [vmem:[#allocation2 + $0x54] sm:$0xff] }
 0xc64   :  { %v4174_v25 = vpop.permute.xlu0 %4173 }
 0xc65   :  { %v4281_v16 = vsel %vm14_vm0, %v9657_v17, %v4174_v25 }
 0xc66   :  { %v4236_v13 = vpop.permute.xlu1 %4235 }
 0xc67   :  { %v4296_v31 = vsel %vm259_vm1, %v4280_v45, %v4236_v13 }
 0xc68   :  { %v4238_v34 = vpop.permute.xlu0 %4237  ;;  %7610 = vmatmul.mubr.msk.f32.gmra.mxu1 %vm295_vm2, %v4296_v31 }
 0xc69   :  { %v4297_v54 = vsel %vm259_vm1, %v4281_v16, %v4238_v34 }
 0xc6a   :  { %v4180_v18 = vpop.permute.xlu1 %4179  ;;  %7612 = vmatprep.mubr.msk.f32.mxu1 %vm295_vm2, %v4297_v54  ;;  %v6648_v54 = vld [vmem:[%s10643_s1 + $0x410] sm:$0xff] }
 0xc6b   :  { %v4284_v30 = vsel %vm14_vm0, %v9673_v48, %v4180_v18  ;;  %v6646_v18 = vld [vmem:[%s10643_s1 + $0x400] sm:$0xff] }
 0xc6c   :  { %v4178_v15 = vpop.permute.xlu0 %4177 }
 0xc6d   :  { %v4283_v5 = vsel %vm14_vm0, %v9678_v58, %v4178_v15  ;;  %v9805_v15 = vld [vmem:[%s10644_s2 + $0x9] ss:$0 sm:$0xff] }
 0xc6e   :  { %v4244_v52 = vpop.permute.xlu1 %4243 }
 0xc6f   :  { %v4300_v23 = vsel %vm259_vm1, %v4284_v30, %v4244_v52 }
 0xc70   :  { %v4242_v0 = vpop.permute.xlu0 %4241 }
 0xc71   :  { %v4299_v43 = vsel %vm259_vm1, %v4283_v5, %v4242_v0  ;;  %v6645_v0 = vld [vmem:[%s10643_s1 + $0x3f8] sm:$0xff] }
 0xc72   :  { %v4240_v47 = vpop.permute.xlu1 %4239 }
 0xc73   :  { %v4298_v17 = vsel %vm259_vm1, %v4282_v7, %v4240_v47  ;;  %v6644_v7 = vld [vmem:[%s10643_s1 + $0x3f0] sm:$0xff] }
 0xc74   :  { %v4182_v8 = vpop.permute.xlu0 %4181  ;;  %7613 = vmatmul.mubr.msk.f32.gmra.mxu1 %vm295_vm2, %v4298_v17 }
 0xc75   :  { %7615 = vmatprep.mubr.msk.f32.mxu1 %vm295_vm2, %v4299_v43  ;;  %v4285_v42 = vsel %vm14_vm0, %v4123_v12, %v4182_v8  ;;  %v6643_v8 = vld [vmem:[%s10643_s1 + $0x3e8] sm:$0xff]  ;;  %v6640_v12 = vld [vmem:[%s10643_s1 + $0x3d0] sm:$0xff] }
 0xc76   :  { %v4184_v50 = vpop.permute.xlu1 %4183 }
 0xc77   :  { %v4286_v21 = vsel %vm14_vm0, %v9688_v6, %v4184_v50  ;;  %v6642_v50 = vld [vmem:[%s10643_s1 + $0x3e0] sm:$0xff] }
 0xc78   :  { %v4246_v10 = vpop.permute.xlu0 %4245  ;;  %7616 = vmatmul.mubr.msk.f32.gmra.mxu1 %vm295_vm2, %v4300_v23  ;;  %v6641_v23 = vld [vmem:[%s10643_s1 + $0x3d8] sm:$0xff] }
 0xc79   :  { %v4301_v58 = vsel %vm259_vm1, %v4285_v42, %v4246_v10 }
 0xc7a   :  { %v4188_v9 = vpop.permute.xlu1 %4187  ;;  %7618 = vmatprep.mubr.msk.f32.mxu1 %vm295_vm2, %v4301_v58  ;;  %v6639_v58 = vld [vmem:[%s10643_s1 + $0x3c8] sm:$0xff] }
 0xc7b   :  { %v4288_v28 = vsel %vm14_vm0, %v9702_v40, %v4188_v9 }
 0xc7c   :  { %v4186_v38 = vpop.permute.xlu0 %4185 }
 0xc7d   :  { %v4287_v32 = vsel %vm14_vm0, %v9698_v49, %v4186_v38  ;;  %v6638_v38 = vld [vmem:[%s10643_s1 + $0x3c0] sm:$0xff] }
 0xc7e   :  { %v4248_v1 = vpop.permute.xlu1 %4247 }
 0xc7f   :  { %v4302_v48 = vsel %vm259_vm1, %v4286_v21, %v4248_v1 }
 0xc80   :  { %v4250_v39 = vpop.permute.xlu0 %4249  ;;  %7619 = vmatmul.mubr.msk.f32.gmra.mxu1 %vm295_vm2, %v4302_v48 }
 0xc81   :  { %v4303_v26 = vsel %vm259_vm1, %v4287_v32, %v4250_v39 }
 0xc82   :  { %v4192_v36 = vpop.permute.xlu1 %4191  ;;  %7621 = vmatprep.mubr.msk.f32.mxu1 %vm295_vm2, %v4303_v26 }
 0xc83   :  { %v4290_v14 = vsel %vm14_vm0, %v9712_v22, %v4192_v36  ;;  %v4573_v22 = vld [vmem:[#allocation2 + $0x48] sm:$0xff] }
 0xc84   :  { %v4190_v33 = vpop.permute.xlu0 %4189  ;;  %4655 = vrot.lane.b32.xlu1 %v4573_v22, %s7826_s0 }
 0xc85   :  { %v4289_v24 = vsel %vm14_vm0, %v9708_v55, %v4190_v33 }
 0xc86   :  { %v4252_v11 = vpop.permute.xlu1 %4251 }
 0xc87   :  { %v4304_v6 = vsel %vm259_vm1, %v4288_v28, %v4252_v11 }
 0xc88   :  { %v4254_v35 = vpop.permute.xlu0 %4253  ;;  %7622 = vmatmul.mubr.msk.f32.gmra.mxu1 %vm295_vm2, %v4304_v6 }
 0xc89   :  { %v4305_v49 = vsel %vm259_vm1, %v4289_v24, %v4254_v35 }
 0xc8a   :  { %v4196_v4 = vpop.permute.xlu1 %4195  ;;  %7624 = vmatprep.mubr.msk.f32.mxu1 %vm295_vm2, %v4305_v49 }
 0xc8b   :  { %v4292_v31 = vsel %vm14_vm0, %v9722_v53, %v4196_v4  ;;  %v6647_v53 = vld [vmem:[%s10643_s1 + $0x408] sm:$0xff] }
 0xc8c   :  { %v4194_v60 = vpop.permute.xlu0 %4193 }
 0xc8d   :  { %v4291_v45 = vsel %vm14_vm0, %v9718_v59, %v4194_v60  ;;  %v6649_v59 = vld [vmem:[%s10643_s1 + $0x418] sm:$0xff] }
 0xc8e   :  { %v4256_v25 = vpop.permute.xlu1 %4255  ;;  %7630 = vmatprep.subr.mxu0 %v6649_v59 }
 0xc8f   :  { %v4306_v40 = vsel %vm259_vm1, %v4290_v14, %v4256_v25  ;;  %7631 = vmatpush3.msra.mxu0 %v6649_v59 }
 0xc90   :  { %v4258_v13 = vpop.permute.xlu0 %4257  ;;  %7625 = vmatmul.mubr.msk.f32.gmra.mxu1 %vm295_vm2, %v4306_v40  ;;  %7632 = vmatprep.subr.mxu0 %v6648_v54 }
 0xc91   :  { %v4307_v55 = vsel %vm259_vm1, %v4291_v45, %v4258_v13  ;;  %7633 = vmatpush3.msra.mxu0 %v6648_v54 }
 0xc92   :  { %v4260_v16 = vpop.permute.xlu1 %4259  ;;  %7627 = vmatprep.mubr.msk.f32.mxu1 %vm295_vm2, %v4307_v55  ;;  %7634 = vmatprep.subr.mxu0 %v6647_v53 }
 0xc93   :  { %v4308_v34 = vsel %vm259_vm1, %v4292_v31, %v4260_v16  ;;  %7635 = vmatpush3.msra.mxu0 %v6647_v53 }
 0xc94   :  { %7628 = vmatmul.mubr.msk.f32.gmra.mxu1 %vm295_vm2, %v4308_v34  ;;  %7636 = vmatprep.subr.mxu0 %v6646_v18 }
 0xc95   :  { %7637 = vmatpush3.msra.mxu0 %v6646_v18 }
 0xc96   :  { %7638 = vmatprep.subr.mxu0 %v6645_v0 }
 0xc97   :  { %7639 = vmatpush3.msra.mxu0 %v6645_v0 }
 0xc98   :  { %7640 = vmatprep.subr.mxu0 %v6644_v7 }
 0xc99   :  { %7641 = vmatpush3.msra.mxu0 %v6644_v7 }
 0xc9a   :  { %7642 = vmatprep.subr.mxu0 %v6643_v8 }
 0xc9b   :  { %7643 = vmatpush3.msra.mxu0 %v6643_v8 }
 0xc9c   :  { %7644 = vmatprep.subr.mxu0 %v6642_v50 }
 0xc9d   :  { %7645 = vmatpush3.msra.mxu0 %v6642_v50 }
 0xc9e   :  { %7646 = vmatprep.subr.mxu0 %v6641_v23 }
 0xc9f   :  { %7647 = vmatpush3.msra.mxu0 %v6641_v23 }
 0xca0   :  { %7648 = vmatprep.subr.mxu0 %v6640_v12 }
 0xca1   :  { %7649 = vmatpush3.msra.mxu0 %v6640_v12 }
 0xca2   :  { %7650 = vmatprep.subr.mxu0 %v6639_v58 }
 0xca3   :  { %7651 = vmatpush3.msra.mxu0 %v6639_v58 }
 0xca4   :  { %7652 = vmatprep.subr.mxu0 %v6638_v38 }
 0xca5   :  { %7653 = vmatpush3.msra.mxu0 %v6638_v38 }
 0xd1c   :  { %v7608_v52 = vpop.f32.mrf.mxu1 }
 0xd1d   :  { %v4450_v47 = vadd.f32 %v7608_v52, %v9805_v15 }
 0xd1e   :  { %v4444_v5 = vpop.f32.mrf.mxu1 }
 0xd1f   :  { %v4524_v17 = vmax.f32 %v4450_v47, 0.0  ;;  %v4445_v43 = vadd.f32 %v9805_v15, %v4444_v5 }
 0xd21   :  { %4540 = vst.msk [vmem:[#allocation2 + $0x10] sm:$0xff] %vm14_vm0, %v4524_v17  ;;  %v4523_v30 = vmax.f32 %v4445_v43, 0.0 }
 0xd23   :  { %4539 = vst.msk [vmem:[#allocation2 + $0x8] sm:$0xff] %vm14_vm0, %v4523_v30 }
 0xd28   :  { %v7611_v42 = vpop.f32.mrf.mxu1  ;;  %v9829_v10 = vld [vmem:[#allocation2 + $0x10] sm:$0xff] }
 0xd29   :  { %v4460_v9 = vadd.f32 %v7611_v42, %v9805_v15  ;;  %4641 = vrot.lane.b32.xlu0 %v9829_v10, %s7826_s0  ;;  %4593 = vrot.lane.b32.xlu1 %v9829_v10, %s7827_s23 }
 0xd2a   :  { %v4454_v21 = vpop.f32.mrf.mxu1  ;;  %v9843_v32 = vld [vmem:[#allocation2 + $0x8] sm:$0xff] }
 0xd2b   :  { %v4526_v1 = vmax.f32 %v4460_v9, 0.0  ;;  %v4455_v48 = vadd.f32 %v9805_v15, %v4454_v21 }
 0xd2d   :  { %4542 = vst.msk [vmem:[#allocation2 + $0x20] sm:$0xff] %vm14_vm0, %v4526_v1  ;;  %v4525_v39 = vmax.f32 %v4455_v48, 0.0  ;;  %4591 = vrot.lane.b32.xlu0 %v9843_v32, %s7827_s23 }
 0xd2f   :  { %4541 = vst.msk [vmem:[#allocation2 + $0x18] sm:$0xff] %vm14_vm0, %v4525_v39 }
 0xd34   :  { %v7614_v26 = vpop.f32.mrf.mxu1  ;;  %v9849_v36 = vld [vmem:[#allocation2 + $0x20] sm:$0xff] }
 0xd35   :  { %v4470_v33 = vadd.f32 %v7614_v26, %v9805_v15  ;;  %4597 = vrot.lane.b32.xlu1 %v9849_v36, %s7827_s23  ;;  %4645 = vrot.lane.b32.xlu0 %v9849_v36, %s7826_s0 }
 0xd36   :  { %v4464_v28 = vpop.f32.mrf.mxu1  ;;  %v9857_v35 = vld [vmem:[#allocation2 + $0x18] sm:$0xff] }
 0xd37   :  { %v4528_v11 = vmax.f32 %v4470_v33, 0.0  ;;  %v4465_v6 = vadd.f32 %v9805_v15, %v4464_v28 }
 0xd38   :  { %v7617_v24 = vpop.f32.mrf.mxu1 }
 0xd39   :  { %4544 = vst.msk [vmem:[#allocation2 + $0x30] sm:$0xff] %vm14_vm0, %v4528_v11  ;;  %v4527_v49 = vmax.f32 %v4465_v6, 0.0  ;;  %v4480_v4 = vadd.f32 %v7617_v24, %v9805_v15  ;;  %4643 = vrot.lane.b32.xlu1 %v9857_v35, %s7826_s0  ;;  %4595 = vrot.lane.b32.xlu0 %v9857_v35, %s7827_s23  ;;  %v4574_v6 = vld [vmem:[#allocation2 + $0x98] sm:$0xff] }
 0xd3a   :  { %v4474_v60 = vpop.f32.mrf.mxu1 }
 0xd3b   :  { %4543 = vst.msk [vmem:[#allocation2 + $0x28] sm:$0xff] %vm14_vm0, %v4527_v49  ;;  %v4530_v14 = vmax.f32 %v4480_v4, 0.0  ;;  %v4475_v25 = vadd.f32 %v9805_v15, %v4474_v60  ;;  %v4656_v49 = vpop.permute.xlu1 %4655  ;;  %v4555_v4 = vld [vmem:[#allocation2] sm:$0xff] }
 0xd3d   :  { %4546 = vst.msk [vmem:[#allocation2 + $0x40] sm:$0xff] %vm14_vm0, %v4530_v14  ;;  %v4529_v40 = vmax.f32 %v4475_v25, 0.0 }
 0xd3f   :  { %4545 = vst.msk [vmem:[#allocation2 + $0x38] sm:$0xff] %vm14_vm0, %v4529_v40 }
 0xd40   :  { %v7620_v45 = vpop.f32.mrf.mxu1  ;;  %v9869_v13 = vld [vmem:[#allocation2 + $0x30] sm:$0xff] }
 0xd41   :  { %v4490_v55 = vadd.f32 %v7620_v45, %v9805_v15  ;;  %4601 = vrot.lane.b32.xlu1 %v9869_v13, %s7827_s23  ;;  %4649 = vrot.lane.b32.xlu0 %v9869_v13, %s7826_s0 }
 0xd42   :  { %v4484_v31 = vpop.f32.mrf.mxu1  ;;  %v9877_v22 = vld [vmem:[#allocation2 + $0x28] sm:$0xff] }
 0xd43   :  { %v4532_v16 = vmax.f32 %v4490_v55, 0.0  ;;  %v4485_v34 = vadd.f32 %v9805_v15, %v4484_v31 }
 0xd44   :  { %v4571_v53 = vld [vmem:[#allocation2 + $0x40] sm:$0xff] }
 0xd45   :  { %4548 = vst.msk [vmem:[#allocation2 + $0x60] sm:$0xff] %vm14_vm0, %v4532_v16  ;;  %v4531_v59 = vmax.f32 %v4485_v34, 0.0  ;;  %4647 = vrot.lane.b32.xlu1 %v9877_v22, %s7826_s0  ;;  %4599 = vrot.lane.b32.xlu0 %v9877_v22, %s7827_s23 }
 0xd46   :  { %v9889_v47 = vld [vmem:[#allocation2 + $0x38] sm:$0xff] }
 0xd47   :  { %4547 = vst.msk [vmem:[#allocation2 + $0x58] sm:$0xff] %vm14_vm0, %v4531_v59 }
 0xd48   :  { %v7623_v54 = vpop.f32.mrf.mxu1 }
 0xd49   :  { %v4500_v18 = vadd.f32 %v7623_v54, %v9805_v15  ;;  %4605 = vrot.lane.b32.xlu1 %v4571_v53, %s7827_s23  ;;  %4653 = vrot.lane.b32.xlu0 %v4571_v53, %s7826_s0 }
 0xd4a   :  { %v4494_v52 = vpop.f32.mrf.mxu1 }
 0xd4b   :  { %v4534_v0 = vmax.f32 %v4500_v18, 0.0  ;;  %v4495_v7 = vadd.f32 %v9805_v15, %v4494_v52 }
 0xd4c   :  { %v9897_v43 = vld [vmem:[#allocation2 + $0x60] sm:$0xff] }
 0xd4d   :  { %4550 = vst.msk [vmem:[#allocation2 + $0x70] sm:$0xff] %vm14_vm0, %v4534_v0  ;;  %v4533_v5 = vmax.f32 %v4495_v7, 0.0  ;;  %4651 = vrot.lane.b32.xlu1 %v9889_v47, %s7826_s0  ;;  %4603 = vrot.lane.b32.xlu0 %v9889_v47, %s7827_s23 }
 0xd4e   :  { %v9907_v58 = vld [vmem:[#allocation2 + $0x58] sm:$0xff] }
 0xd4f   :  { %4549 = vst.msk [vmem:[#allocation2 + $0x68] sm:$0xff] %vm14_vm0, %v4533_v5 }
 0xd50   :  { %v7626_v17 = vpop.f32.mrf.mxu1 }
 0xd51   :  { %v4510_v8 = vadd.f32 %v7626_v17, %v9805_v15  ;;  %4609 = vrot.lane.b32.xlu1 %v9897_v43, %s7827_s23  ;;  %4657 = vrot.lane.b32.xlu0 %v9897_v43, %s7826_s0 }
 0xd52   :  { %v4504_v30 = vpop.f32.mrf.mxu1 }
 0xd53   :  { %v4536_v50 = vmax.f32 %v4510_v8, 0.0  ;;  %v4505_v23 = vadd.f32 %v9805_v15, %v4504_v30 }
 0xd54   :  { %v7629_v12 = vpop.f32.mrf.mxu1  ;;  %v9905_v42 = vld [vmem:[#allocation2 + $0x70] sm:$0xff] }
 0xd55   :  { %4552 = vst.msk [vmem:[#allocation2 + $0x80] sm:$0xff] %vm14_vm0, %v4536_v50  ;;  %v4535_v9 = vmax.f32 %v4505_v23, 0.0  ;;  %v4520_v38 = vadd.f32 %v7629_v12, %v9805_v15  ;;  %4613 = vrot.lane.b32.xlu1 %v9905_v42, %s7827_s23  ;;  %4607 = vrot.lane.b32.xlu0 %v9907_v58, %s7827_s23 }
 0xd56   :  { %v4514_v21 = vpop.f32.mrf.mxu1  ;;  %v9917_v39 = vld [vmem:[#allocation2 + $0x68] sm:$0xff] }
 0xd57   :  { %4551 = vst.msk [vmem:[#allocation2 + $0x78] sm:$0xff] %vm14_vm0, %v4535_v9  ;;  %v4538_v1 = vmax.f32 %v4520_v38, 0.0  ;;  %v4515_v48 = vadd.f32 %v9805_v15, %v4514_v21 }
 0xd59   :  { %4554 = vst.msk [vmem:[#allocation2 + $0x90] sm:$0xff] %vm14_vm0, %v4538_v1  ;;  %v4537_v26 = vmax.f32 %v4515_v48, 0.0  ;;  %4659 = vrot.lane.b32.xlu1 %v9917_v39, %s7826_s0  ;;  %4661 = vrot.lane.b32.xlu0 %v9905_v42, %s7826_s0  ;;  %v4563_v48 = vld [vmem:[#allocation2 + $0x50] sm:$0xff] }
 0xd5b   :  { %4553 = vst.msk [vmem:[#allocation2 + $0x88] sm:$0xff] %vm14_vm0, %v4537_v26 }
 0xd5c   :  { %v9925_v33 = vld [vmem:[#allocation2 + $0x80] sm:$0xff] }
 0xd5d   :  { %4617 = vrot.lane.b32.xlu1 %v9925_v33, %s7827_s23  ;;  %4611 = vrot.lane.b32.xlu0 %v9917_v39, %s7827_s23 }
 0xd5e   :  { %v9931_v15 = vld [vmem:[#allocation2 + $0x78] sm:$0xff] }
 0xd60   :  { %v4572_v28 = vld [vmem:[#allocation2 + $0x90] sm:$0xff] }
 0xd61   :  { %4663 = vrot.lane.b32.xlu1 %v9931_v15, %s7826_s0  ;;  %4665 = vrot.lane.b32.xlu0 %v9925_v33, %s7826_s0 }
 0xd62   :  { %v9940_v11 = vld [vmem:[#allocation2 + $0x88] sm:$0xff] }
 0xd65   :  { %4621 = vrot.lane.b32.xlu1 %v4572_v28, %s7827_s23  ;;  %4615 = vrot.lane.b32.xlu0 %v9931_v15, %s7827_s23 }
 0xd69   :  { %4667 = vrot.lane.b32.xlu1 %v9940_v11, %s7826_s0  ;;  %4619 = vrot.lane.b32.xlu0 %v9940_v11, %s7827_s23 }
 0xd6d   :  { %4671 = vrot.lane.b32.xlu1 %v4574_v6, %s7826_s0  ;;  %4669 = vrot.lane.b32.xlu0 %v4572_v28, %s7826_s0 }
 0xd9b   :  { %v4642_v24 = vpop.permute.xlu0 %4641  ;;  %v4594_v40 = vpop.permute.xlu1 %4593 }
 0xd9c   :  { %v4690_v31 = vsel %vm14_vm0, %v9843_v32, %v4594_v40 }
 0xd9f   :  { %v4592_v60 = vpop.permute.xlu0 %4591 }
 0xda0   :  { %v4689_v14 = vsel %vm14_vm0, %v4555_v4, %v4592_v60 }
 0xda1   :  { %v4705_v25 = vsel %vm259_vm1, %v4689_v14, %v4642_v24 }
 0xda2   :  { %7654 = vmatprep.mubr.msk.f32.mxu0 %vm295_vm2, %v4705_v25 }
 0xda7   :  { %v4598_v45 = vpop.permute.xlu1 %4597  ;;  %v4646_v55 = vpop.permute.xlu0 %4645 }
 0xda8   :  { %v4692_v0 = vsel %vm14_vm0, %v9857_v35, %v4598_v45 }
 0xdab   :  { %v4644_v16 = vpop.permute.xlu1 %4643  ;;  %v4596_v34 = vpop.permute.xlu0 %4595 }
 0xdac   :  { %v4706_v59 = vsel %vm259_vm1, %v4690_v31, %v4644_v16  ;;  %v4691_v54 = vsel %vm14_vm0, %v9829_v10, %v4596_v34 }
 0xdad   :  { %7655 = vmatmul.mubr.msk.f32.vlgmr.msra.gmra.mxu0 %vm295_vm2, %v4706_v59  ;;  %v4707_v53 = vsel %vm259_vm1, %v4691_v54, %v4646_v55 }
 0xdae   :  { %7657 = vmatprep.mubr.msk.f32.mxu0 %vm295_vm2, %v4707_v53 }
 0xdb3   :  { %v4602_v18 = vpop.permute.xlu1 %4601  ;;  %v4650_v52 = vpop.permute.xlu0 %4649 }
 0xdb4   :  { %v4694_v50 = vsel %vm14_vm0, %v9877_v22, %v4602_v18 }
 0xdb7   :  { %v4648_v7 = vpop.permute.xlu1 %4647  ;;  %v4600_v32 = vpop.permute.xlu0 %4599 }
 0xdb8   :  { %v4708_v5 = vsel %vm259_vm1, %v4692_v0, %v4648_v7  ;;  %v4693_v17 = vsel %vm14_vm0, %v9849_v36, %v4600_v32 }
 0xdb9   :  { %7658 = vmatmul.mubr.msk.f32.gmra.mxu0 %vm295_vm2, %v4708_v5  ;;  %v4709_v10 = vsel %vm259_vm1, %v4693_v17, %v4650_v52  ;;  %v6676_v17 = vld [vmem:[%s10643_s1 + $0x460] sm:$0xff] }
 0xdba   :  { %7660 = vmatprep.mubr.msk.f32.mxu0 %vm295_vm2, %v4709_v10  ;;  %v10025_v10 = vld [vmem:[%s10644_s2 + $0xa] ss:$0 sm:$0xff] }
 0xdbb   :  { %v4606_v8 = vpop.permute.xlu1 %4605  ;;  %v4654_v30 = vpop.permute.xlu0 %4653 }
 0xdbc   :  { %v4696_v36 = vsel %vm14_vm0, %v9889_v47, %v4606_v8 }
 0xdbd   :  { %v4712_v22 = vsel %vm259_vm1, %v4696_v36, %v4656_v49 }
 0xdbf   :  { %v4652_v23 = vpop.permute.xlu1 %4651  ;;  %v4604_v35 = vpop.permute.xlu0 %4603 }
 0xdc0   :  { %v4710_v12 = vsel %vm259_vm1, %v4694_v50, %v4652_v23  ;;  %v4695_v9 = vsel %vm14_vm0, %v9869_v13, %v4604_v35  ;;  %v6674_v35 = vld [vmem:[%s10643_s1 + $0x450] sm:$0xff] }
 0xdc1   :  { %7661 = vmatmul.mubr.msk.f32.gmra.mxu0 %vm295_vm2, %v4710_v12  ;;  %v4711_v38 = vsel %vm259_vm1, %v4695_v9, %v4654_v30  ;;  %v6675_v30 = vld [vmem:[%s10643_s1 + $0x458] sm:$0xff]  ;;  %v6673_v12 = vld [vmem:[%s10643_s1 + $0x448] sm:$0xff] }
 0xdc2   :  { %7663 = vmatprep.mubr.msk.f32.mxu0 %vm295_vm2, %v4711_v38 }
 0xdc3   :  { %v4610_v21 = vpop.permute.xlu1 %4609  ;;  %v4658_v1 = vpop.permute.xlu0 %4657 }
 0xdc4   :  { %v4698_v47 = vsel %vm14_vm0, %v9907_v58, %v4610_v21  ;;  %v6672_v21 = vld [vmem:[%s10643_s1 + $0x440] sm:$0xff] }
 0xdc5   :  { %7664 = vmatmul.mubr.msk.f32.gmra.mxu0 %vm295_vm2, %v4712_v22  ;;  %v6670_v22 = vld [vmem:[%s10643_s1 + $0x430] sm:$0xff] }
 0xdc7   :  { %v4614_v26 = vpop.permute.xlu1 %4613  ;;  %v4608_v28 = vpop.permute.xlu0 %4607 }
 0xdc8   :  { %v4697_v13 = vsel %vm14_vm0, %v4563_v48, %v4608_v28  ;;  %v4700_v45 = vsel %vm14_vm0, %v9917_v39, %v4614_v26  ;;  %v6669_v28 = vld [vmem:[%s10643_s1 + $0x428] sm:$0xff] }
 0xdc9   :  { %v4713_v6 = vsel %vm259_vm1, %v4697_v13, %v4658_v1  ;;  %v6671_v1 = vld [vmem:[%s10643_s1 + $0x438] sm:$0xff] }
 0xdca   :  { %7666 = vmatprep.mubr.msk.f32.mxu0 %vm295_vm2, %v4713_v6 }
 0xdcb   :  { %v4660_v24 = vpop.permute.xlu1 %4659  ;;  %v4662_v4 = vpop.permute.xlu0 %4661 }
 0xdcc   :  { %v4714_v60 = vsel %vm259_vm1, %v4698_v47, %v4660_v24 }
 0xdcd   :  { %7667 = vmatmul.mubr.msk.f32.gmra.mxu0 %vm295_vm2, %v4714_v60  ;;  %v6668_v60 = vld [vmem:[%s10643_s1 + $0x420] sm:$0xff] }
 0xdcf   :  { %v4618_v49 = vpop.permute.xlu1 %4617  ;;  %v4612_v14 = vpop.permute.xlu0 %4611 }
 0xdd0   :  { %v4699_v25 = vsel %vm14_vm0, %v9897_v43, %v4612_v14  ;;  %v4702_v54 = vsel %vm14_vm0, %v9931_v15, %v4618_v49  ;;  %v6679_v15 = vld [vmem:[%s10643_s1 + $0x478] sm:$0xff] }
 0xdd1   :  { %v4715_v40 = vsel %vm259_vm1, %v4699_v25, %v4662_v4  ;;  %7678 = vmatprep.subr.mxu1 %v6679_v15 }
 0xdd2   :  { %7669 = vmatprep.mubr.msk.f32.mxu0 %vm295_vm2, %v4715_v40  ;;  %7679 = vmatpush3.msra.mxu1 %v6679_v15 }
 0xdd3   :  { %v4664_v55 = vpop.permute.xlu1 %4663  ;;  %v4666_v58 = vpop.permute.xlu0 %4665 }
 0xdd4   :  { %v4716_v31 = vsel %vm259_vm1, %v4700_v45, %v4664_v55 }
 0xdd5   :  { %7670 = vmatmul.mubr.msk.f32.gmra.mxu0 %vm295_vm2, %v4716_v31 }
 0xdd7   :  { %v4622_v16 = vpop.permute.xlu1 %4621  ;;  %v4616_v34 = vpop.permute.xlu0 %4615 }
 0xdd8   :  { %v4701_v59 = vsel %vm14_vm0, %v9905_v42, %v4616_v34  ;;  %v4704_v52 = vsel %vm14_vm0, %v9940_v11, %v4622_v16  ;;  %v6678_v11 = vld [vmem:[%s10643_s1 + $0x470] sm:$0xff] }
 0xdd9   :  { %v4717_v43 = vsel %vm259_vm1, %v4701_v59, %v4666_v58  ;;  %7680 = vmatprep.subr.mxu1 %v6678_v11 }
 0xdda   :  { %7672 = vmatprep.mubr.msk.f32.mxu0 %vm295_vm2, %v4717_v43  ;;  %7681 = vmatpush3.msra.mxu1 %v6678_v11 }
 0xddb   :  { %v4668_v53 = vpop.permute.xlu1 %4667  ;;  %v4620_v39 = vpop.permute.xlu0 %4619 }
 0xddc   :  { %v4718_v18 = vsel %vm259_vm1, %v4702_v54, %v4668_v53  ;;  %v4703_v0 = vsel %vm14_vm0, %v9925_v33, %v4620_v39  ;;  %v6677_v33 = vld [vmem:[%s10643_s1 + $0x468] sm:$0xff] }
 0xddd   :  { %7673 = vmatmul.mubr.msk.f32.gmra.mxu0 %vm295_vm2, %v4718_v18  ;;  %7682 = vmatprep.subr.mxu1 %v6677_v33 }
 0xdde   :  { %7683 = vmatpush3.msra.mxu1 %v6677_v33 }
 0xddf   :  { %v4672_v42 = vpop.permute.xlu1 %4671  ;;  %v4670_v7 = vpop.permute.xlu0 %4669  ;;  %7684 = vmatprep.subr.mxu1 %v6676_v17 }
 0xde0   :  { %v4720_v32 = vsel %vm259_vm1, %v4704_v52, %v4672_v42  ;;  %v4719_v5 = vsel %vm259_vm1, %v4703_v0, %v4670_v7  ;;  %7685 = vmatpush3.msra.mxu1 %v6676_v17 }
 0xde1   :  { %7675 = vmatprep.mubr.msk.f32.mxu0 %vm295_vm2, %v4719_v5  ;;  %7686 = vmatprep.subr.mxu1 %v6675_v30 }
 0xde2   :  { %7676 = vmatmul.mubr.msk.f32.gmra.mxu0 %vm295_vm2, %v4720_v32  ;;  %7687 = vmatpush3.msra.mxu1 %v6675_v30 }
 0xde3   :  { %7688 = vmatprep.subr.mxu1 %v6674_v35 }
 0xde4   :  { %7689 = vmatpush3.msra.mxu1 %v6674_v35 }
 0xde5   :  { %7690 = vmatprep.subr.mxu1 %v6673_v12 }
 0xde6   :  { %7691 = vmatpush3.msra.mxu1 %v6673_v12 }
 0xde7   :  { %7692 = vmatprep.subr.mxu1 %v6672_v21 }
 0xde8   :  { %7693 = vmatpush3.msra.mxu1 %v6672_v21 }
 0xde9   :  { %7694 = vmatprep.subr.mxu1 %v6671_v1 }
 0xdea   :  { %7695 = vmatpush3.msra.mxu1 %v6671_v1 }
 0xdeb   :  { %7696 = vmatprep.subr.mxu1 %v6670_v22 }
 0xdec   :  { %7697 = vmatpush3.msra.mxu1 %v6670_v22 }
 0xded   :  { %7698 = vmatprep.subr.mxu1 %v6669_v28 }
 0xdee   :  { %7699 = vmatpush3.msra.mxu1 %v6669_v28 }
 0xdef   :  { %7700 = vmatprep.subr.mxu1 %v6668_v60 }
 0xdf0   :  { %7701 = vmatpush3.msra.mxu1 %v6668_v60 }
 0xe6d   :  { %v7656_v8 = vpop.f32.mrf.mxu0 }
 0xe6e   :  { %v4862_v50 = vadd.f32 %v7656_v8, %v10025_v10 }
 0xe6f   :  { %v4856_v23 = vpop.f32.mrf.mxu0 }
 0xe70   :  { %v4936_v9 = vmax.f32 %v4862_v50, 0.0  ;;  %v4857_v36 = vadd.f32 %v10025_v10, %v4856_v23 }
 0xe72   :  { %4952 = vst.msk [vmem:[#allocation2 + $0x10] sm:$0xff] %vm14_vm0, %v4936_v9  ;;  %v4935_v38 = vmax.f32 %v4857_v36, 0.0 }
 0xe74   :  { %4951 = vst.msk [vmem:[#allocation2 + $0x8] sm:$0xff] %vm14_vm0, %v4935_v38 }
 0xe79   :  { %v7659_v48 = vpop.f32.mrf.mxu0  ;;  %v4984_v26 = vld [vmem:[#allocation2 + $0x10] sm:$0xff] }
 0xe7a   :  { %v4872_v13 = vadd.f32 %v7659_v48, %v10025_v10  ;;  %5019 = vrot.lane.b32.xlu1 %v4984_v26, %s7827_s23 }
 0xe7b   :  { %v4866_v6 = vpop.f32.mrf.mxu0  ;;  %v4983_v47 = vld [vmem:[#allocation2 + $0x8] sm:$0xff] }
 0xe7c   :  { %v4938_v24 = vmax.f32 %v4872_v13, 0.0  ;;  %v4867_v4 = vadd.f32 %v10025_v10, %v4866_v6  ;;  %5017 = vrot.lane.b32.xlu0 %v4983_v47, %s7827_s23  ;;  %v10060_v14 = vld [vmem:[#allocation2 + $0xc] sm:$0xff] }
 0xe7e   :  { %4954 = vst.msk [vmem:[#allocation2 + $0x20] sm:$0xff] %vm14_vm0, %v4938_v24  ;;  %v4937_v49 = vmax.f32 %v4867_v4, 0.0 }
 0xe80   :  { %4953 = vst.msk [vmem:[#allocation2 + $0x18] sm:$0xff] %vm14_vm0, %v4937_v49  ;;  %5081 = vrot.lane.b32.xlu0 %v10060_v14, %s7826_s0 }
 0xe81   :  { %v7662_v25 = vpop.f32.mrf.mxu0 }
 0xe82   :  { %v4882_v40 = vadd.f32 %v7662_v25, %v10025_v10 }
 0xe83   :  { %v4876_v45 = vpop.f32.mrf.mxu0 }
 0xe84   :  { %v4940_v55 = vmax.f32 %v4882_v40, 0.0  ;;  %v4877_v58 = vadd.f32 %v10025_v10, %v4876_v45 }
 0xe85   :  { %v7665_v31 = vpop.f32.mrf.mxu0  ;;  %v4986_v16 = vld [vmem:[#allocation2 + $0x20] sm:$0xff] }
 0xe86   :  { %4956 = vst.msk [vmem:[#allocation2 + $0x30] sm:$0xff] %vm14_vm0, %v4940_v55  ;;  %v4939_v34 = vmax.f32 %v4877_v58, 0.0  ;;  %v4892_v59 = vadd.f32 %v7665_v31, %v10025_v10  ;;  %5023 = vrot.lane.b32.xlu1 %v4986_v16, %s7827_s23 }
 0xe87   :  { %v4886_v43 = vpop.f32.mrf.mxu0  ;;  %v4985_v54 = vld [vmem:[#allocation2 + $0x18] sm:$0xff] }
 0xe88   :  { %4955 = vst.msk [vmem:[#allocation2 + $0x28] sm:$0xff] %vm14_vm0, %v4939_v34  ;;  %v4942_v53 = vmax.f32 %v4892_v59, 0.0  ;;  %v4887_v39 = vadd.f32 %v10025_v10, %v4886_v43  ;;  %5021 = vrot.lane.b32.xlu0 %v4985_v54, %s7827_s23  ;;  %v10073_v18 = vld [vmem:[#allocation2 + $0x14] sm:$0xff]  ;;  %v10078_v0 = vld [vmem:[#allocation2 + $0x1c] sm:$0xff] }
 0xe8a   :  { %4958 = vst.msk [vmem:[#allocation2 + $0x40] sm:$0xff] %vm14_vm0, %v4942_v53  ;;  %v4941_v52 = vmax.f32 %v4887_v39, 0.0  ;;  %5083 = vrot.lane.b32.xlu1 %v10073_v18, %s7826_s0 }
 0xe8c   :  { %4957 = vst.msk [vmem:[#allocation2 + $0x38] sm:$0xff] %vm14_vm0, %v4941_v52  ;;  %5085 = vrot.lane.b32.xlu0 %v10078_v0, %s7826_s0 }
 0xe8d   :  { %v7668_v42 = vpop.f32.mrf.mxu0  ;;  %v4988_v7 = vld [vmem:[#allocation2 + $0x30] sm:$0xff] }
 0xe8e   :  { %v4902_v32 = vadd.f32 %v7668_v42, %v10025_v10  ;;  %5027 = vrot.lane.b32.xlu1 %v4988_v7, %s7827_s23 }
 0xe8f   :  { %v4896_v5 = vpop.f32.mrf.mxu0  ;;  %v4987_v15 = vld [vmem:[#allocation2 + $0x28] sm:$0xff] }
 0xe90   :  { %v4944_v11 = vmax.f32 %v4902_v32, 0.0  ;;  %v4897_v33 = vadd.f32 %v10025_v10, %v4896_v5  ;;  %5025 = vrot.lane.b32.xlu0 %v4987_v15, %s7827_s23  ;;  %v10087_v17 = vld [vmem:[#allocation2 + $0x24] sm:$0xff]  ;;  %v10092_v30 = vld [vmem:[#allocation2 + $0x2c] sm:$0xff] }
 0xe91   :  { %v4990_v23 = vld [vmem:[#allocation2 + $0x40] sm:$0xff] }
 0xe92   :  { %4960 = vst.msk [vmem:[#allocation2 + $0x60] sm:$0xff] %vm14_vm0, %v4944_v11  ;;  %v4943_v8 = vmax.f32 %v4897_v33, 0.0  ;;  %5087 = vrot.lane.b32.xlu1 %v10087_v17, %s7826_s0  ;;  %v4999_v21 = vld [vmem:[#allocation2 + $0x44] sm:$0xff] }
 0xe93   :  { %v4989_v9 = vld [vmem:[#allocation2 + $0x38] sm:$0xff]  ;;  %v4967_v11 = vld [vmem:[#allocation2 + $0x4] sm:$0xff] }
 0xe94   :  { %4959 = vst.msk [vmem:[#allocation2 + $0x58] sm:$0xff] %vm14_vm0, %v4943_v8  ;;  %5089 = vrot.lane.b32.xlu0 %v10092_v30, %s7826_s0  ;;  %v10103_v22 = vld [vmem:[#allocation2 + $0x3c] sm:$0xff]  ;;  %v10108_v26 = vld [vmem:[#allocation2 + $0x34] sm:$0xff] }
 0xe95   :  { %v7671_v50 = vpop.f32.mrf.mxu0 }
 0xe96   :  { %v4912_v35 = vadd.f32 %v7671_v50, %v10025_v10  ;;  %5031 = vrot.lane.b32.xlu1 %v4990_v23, %s7827_s23 }
 0xe97   :  { %v4906_v12 = vpop.f32.mrf.mxu0 }
 0xe98   :  { %v4946_v36 = vmax.f32 %v4912_v35, 0.0  ;;  %v4907_v38 = vadd.f32 %v10025_v10, %v4906_v12  ;;  %5029 = vrot.lane.b32.xlu0 %v4989_v9, %s7827_s23 }
 0xe99   :  { %v4992_v4 = vld [vmem:[#allocation2 + $0x60] sm:$0xff] }
 0xe9a   :  { %4962 = vst.msk [vmem:[#allocation2 + $0x70] sm:$0xff] %vm14_vm0, %v4946_v36  ;;  %v4945_v1 = vmax.f32 %v4907_v38, 0.0  ;;  %5095 = vrot.lane.b32.xlu1 %v4999_v21, %s7826_s0 }
 0xe9b   :  { %v4991_v6 = vld [vmem:[#allocation2 + $0x58] sm:$0xff] }
 0xe9c   :  { %4961 = vst.msk [vmem:[#allocation2 + $0x68] sm:$0xff] %vm14_vm0, %v4945_v1  ;;  %5093 = vrot.lane.b32.xlu0 %v10103_v22, %s7826_s0  ;;  %v10118_v40 = vld [vmem:[#allocation2 + $0x5c] sm:$0xff] }
 0xe9d   :  { %v7674_v48 = vpop.f32.mrf.mxu0 }
 0xe9e   :  { %v4922_v28 = vadd.f32 %v7674_v48, %v10025_v10  ;;  %5091 = vrot.lane.b32.xlu1 %v10108_v26, %s7826_s0 }
 0xe9f   :  { %v4916_v13 = vpop.f32.mrf.mxu0 }
 0xea0   :  { %v4948_v47 = vmax.f32 %v4922_v28, 0.0  ;;  %v4917_v24 = vadd.f32 %v10025_v10, %v4916_v13  ;;  %5033 = vrot.lane.b32.xlu0 %v4991_v6, %s7827_s23 }
 0xea1   :  { %v4994_v31 = vld [vmem:[#allocation2 + $0x70] sm:$0xff] }
 0xea2   :  { %4964 = vst.msk [vmem:[#allocation2 + $0x80] sm:$0xff] %vm14_vm0, %v4948_v47  ;;  %v4947_v60 = vmax.f32 %v4917_v24, 0.0  ;;  %v7677_v49 = vpop.f32.mrf.mxu0  ;;  %5035 = vrot.lane.b32.xlu1 %v4992_v4, %s7827_s23 }
 0xea3   :  { %v4932_v25 = vadd.f32 %v7677_v49, %v10025_v10  ;;  %v4993_v34 = vld [vmem:[#allocation2 + $0x68] sm:$0xff] }
 0xea4   :  { %4963 = vst.msk [vmem:[#allocation2 + $0x78] sm:$0xff] %vm14_vm0, %v4947_v60  ;;  %v4926_v45 = vpop.f32.mrf.mxu0  ;;  %5097 = vrot.lane.b32.xlu0 %v10118_v40, %s7826_s0  ;;  %v10128_v59 = vld [vmem:[#allocation2 + $0x64] sm:$0xff]  ;;  %v10132_v43 = vld [vmem:[#allocation2 + $0x6c] sm:$0xff] }
 0xea5   :  { %v4950_v55 = vmax.f32 %v4932_v25, 0.0  ;;  %v4927_v58 = vadd.f32 %v10025_v10, %v4926_v45 }
 0xea6   :  { %5039 = vrot.lane.b32.xlu1 %v4994_v31, %s7827_s23 }
 0xea7   :  { %4966 = vst.msk [vmem:[#allocation2 + $0x90] sm:$0xff] %vm14_vm0, %v4950_v55  ;;  %v4949_v16 = vmax.f32 %v4927_v58, 0.0 }
 0xea8   :  { %5037 = vrot.lane.b32.xlu0 %v4993_v34, %s7827_s23 }
 0xea9   :  { %4965 = vst.msk [vmem:[#allocation2 + $0x88] sm:$0xff] %vm14_vm0, %v4949_v16  ;;  %v4996_v10 = vld [vmem:[#allocation2 + $0x80] sm:$0xff] }
 0xeaa   :  { %5099 = vrot.lane.b32.xlu1 %v10128_v59, %s7826_s0 }
 0xeab   :  { %v4995_v54 = vld [vmem:[#allocation2 + $0x78] sm:$0xff] }
 0xeac   :  { %5101 = vrot.lane.b32.xlu0 %v10132_v43, %s7826_s0  ;;  %v10138_v53 = vld [vmem:[#allocation2 + $0x74] sm:$0xff]  ;;  %v10142_v39 = vld [vmem:[#allocation2 + $0x7c] sm:$0xff] }
 0xeae   :  { %5043 = vrot.lane.b32.xlu1 %v4996_v10, %s7827_s23  ;;  %v4998_v52 = vld [vmem:[#allocation2 + $0x90] sm:$0xff] }
 0xeaf   :  { %v5000_v5 = vld [vmem:[#allocation2 + $0x94] sm:$0xff] }
 0xeb0   :  { %5041 = vrot.lane.b32.xlu0 %v4995_v54, %s7827_s23  ;;  %v4997_v42 = vld [vmem:[#allocation2 + $0x88] sm:$0xff] }
 0xeb1   :  { %v10148_v7 = vld [vmem:[#allocation2 + $0x84] sm:$0xff]  ;;  %v10152_v32 = vld [vmem:[#allocation2 + $0x8c] sm:$0xff] }
 0xeb2   :  { %5103 = vrot.lane.b32.xlu1 %v10138_v53, %s7826_s0 }
 0xeb4   :  { %5105 = vrot.lane.b32.xlu0 %v10142_v39, %s7826_s0 }
 0xeb6   :  { %5047 = vrot.lane.b32.xlu1 %v4998_v52, %s7827_s23 }
 0xeb8   :  { %5045 = vrot.lane.b32.xlu0 %v4997_v42, %s7827_s23 }
 0xeba   :  { %5107 = vrot.lane.b32.xlu1 %v10148_v7, %s7826_s0 }
 0xebc   :  { %5109 = vrot.lane.b32.xlu0 %v10152_v32, %s7826_s0 }
 0xebe   :  { %5111 = vrot.lane.b32.xlu1 %v5000_v5, %s7826_s0 }
 0xeec   :  { %v5020_v23 = vpop.permute.xlu1 %5019 }
 0xeed   :  { %v5130_v9 = vsel %vm14_vm0, %v10060_v14, %v5020_v23 }
 0xeee   :  { %v5018_v15 = vpop.permute.xlu0 %5017 }
 0xeef   :  { %v5129_v33 = vsel %vm14_vm0, %v4967_v11, %v5018_v15 }
 0xef2   :  { %v5082_v8 = vpop.permute.xlu0 %5081 }
 0xef3   :  { %v5145_v50 = vsel %vm259_vm1, %v5129_v33, %v5082_v8 }
 0xef4   :  { %7702 = vmatprep.mubr.msk.f32.mxu1 %vm295_vm2, %v5145_v50 }
 0xef8   :  { %v5024_v35 = vpop.permute.xlu1 %5023 }
 0xef9   :  { %v5132_v6 = vsel %vm14_vm0, %v10078_v0, %v5024_v35 }
 0xefa   :  { %v5022_v12 = vpop.permute.xlu0 %5021 }
 0xefb   :  { %v5131_v21 = vsel %vm14_vm0, %v10073_v18, %v5022_v12 }
 0xefc   :  { %v5084_v36 = vpop.permute.xlu1 %5083 }
 0xefd   :  { %v5146_v38 = vsel %vm259_vm1, %v5130_v9, %v5084_v36 }
 0xefe   :  { %v5086_v1 = vpop.permute.xlu0 %5085  ;;  %7703 = vmatmul.mubr.msk.f32.vlgmr.msra.gmra.mxu1 %vm295_vm2, %v5146_v38 }
 0xeff   :  { %v5147_v48 = vsel %vm259_vm1, %v5131_v21, %v5086_v1 }
 0xf00   :  { %v5028_v28 = vpop.permute.xlu1 %5027  ;;  %7705 = vmatprep.mubr.msk.f32.mxu1 %vm295_vm2, %v5147_v48 }
 0xf01   :  { %v5134_v0 = vsel %vm14_vm0, %v10092_v30, %v5028_v28  ;;  %v4975_v30 = vld [vmem:[#allocation2 + $0x54] sm:$0xff] }
 0xf02   :  { %v5026_v13 = vpop.permute.xlu0 %5025 }
 0xf03   :  { %v5133_v24 = vsel %vm14_vm0, %v10087_v17, %v5026_v13 }
 0xf04   :  { %v5088_v47 = vpop.permute.xlu1 %5087 }
 0xf05   :  { %v5148_v14 = vsel %vm259_vm1, %v5132_v6, %v5088_v47 }
 0xf06   :  { %v5090_v4 = vpop.permute.xlu0 %5089  ;;  %7706 = vmatmul.mubr.msk.f32.gmra.mxu1 %vm295_vm2, %v5148_v14 }
 0xf07   :  { %v5149_v18 = vsel %vm259_vm1, %v5133_v24, %v5090_v4 }
 0xf08   :  { %v5032_v60 = vpop.permute.xlu1 %5031  ;;  %7708 = vmatprep.mubr.msk.f32.mxu1 %vm295_vm2, %v5149_v18  ;;  %v6706_v18 = vld [vmem:[%s10643_s1 + $0x4c0] sm:$0xff] }
 0xf09   :  { %v5136_v34 = vsel %vm14_vm0, %v10103_v22, %v5032_v60  ;;  %v6705_v60 = vld [vmem:[%s10643_s1 + $0x4b8] sm:$0xff] }
 0xf0a   :  { %v5030_v49 = vpop.permute.xlu0 %5029 }
 0xf0b   :  { %v5135_v58 = vsel %vm14_vm0, %v10108_v26, %v5030_v49  ;;  %v6704_v49 = vld [vmem:[%s10643_s1 + $0x4b0] sm:$0xff] }
 0xf0c   :  { %v5096_v25 = vpop.permute.xlu1 %5095 }
 0xf0d   :  { %v5152_v54 = vsel %vm259_vm1, %v5136_v34, %v5096_v25  ;;  %v10240_v25 = vld [vmem:[%s10644_s2 + $0xb] ss:$0 sm:$0xff] }
 0xf0e   :  { %v5094_v45 = vpop.permute.xlu0 %5093 }
 0xf0f   :  { %v5151_v31 = vsel %vm259_vm1, %v5135_v58, %v5094_v45 }
 0xf10   :  { %v5092_v55 = vpop.permute.xlu1 %5091 }
 0xf11   :  { %v5150_v17 = vsel %vm259_vm1, %v5134_v0, %v5092_v55  ;;  %v6703_v0 = vld [vmem:[%s10643_s1 + $0x4a8] sm:$0xff] }
 0xf12   :  { %v5034_v16 = vpop.permute.xlu0 %5033  ;;  %7709 = vmatmul.mubr.msk.f32.gmra.mxu1 %vm295_vm2, %v5150_v17  ;;  %v6702_v17 = vld [vmem:[%s10643_s1 + $0x4a0] sm:$0xff] }
 0xf13   :  { %7711 = vmatprep.mubr.msk.f32.mxu1 %vm295_vm2, %v5151_v31  ;;  %v5137_v52 = vsel %vm14_vm0, %v4975_v30, %v5034_v16  ;;  %v6701_v31 = vld [vmem:[%s10643_s1 + $0x498] sm:$0xff] }
 0xf14   :  { %v5036_v10 = vpop.permute.xlu1 %5035 }
 0xf15   :  { %v5138_v11 = vsel %vm14_vm0, %v10118_v40, %v5036_v10 }
 0xf16   :  { %v5098_v42 = vpop.permute.xlu0 %5097  ;;  %7712 = vmatmul.mubr.msk.f32.gmra.mxu1 %vm295_vm2, %v5152_v54  ;;  %v6700_v54 = vld [vmem:[%s10643_s1 + $0x490] sm:$0xff] }
 0xf17   :  { %v5153_v26 = vsel %vm259_vm1, %v5137_v52, %v5098_v42  ;;  %v6699_v52 = vld [vmem:[%s10643_s1 + $0x488] sm:$0xff] }
 0xf18   :  { %v5040_v5 = vpop.permute.xlu1 %5039  ;;  %7714 = vmatprep.mubr.msk.f32.mxu1 %vm295_vm2, %v5153_v26 }
 0xf19   :  { %v5140_v9 = vsel %vm14_vm0, %v10132_v43, %v5040_v5  ;;  %v6698_v5 = vld [vmem:[%s10643_s1 + $0x480] sm:$0xff] }
 0xf1a   :  { %v5038_v15 = vpop.permute.xlu0 %5037 }
 0xf1b   :  { %v5139_v8 = vsel %vm14_vm0, %v10128_v59, %v5038_v15 }
 0xf1c   :  { %v5100_v33 = vpop.permute.xlu1 %5099 }
 0xf1d   :  { %v5154_v22 = vsel %vm259_vm1, %v5138_v11, %v5100_v33 }
 0xf1e   :  { %v5102_v50 = vpop.permute.xlu0 %5101  ;;  %7715 = vmatmul.mubr.msk.f32.gmra.mxu1 %vm295_vm2, %v5154_v22 }
 0xf1f   :  { %v5155_v23 = vsel %vm259_vm1, %v5139_v8, %v5102_v50 }
 0xf20   :  { %v5044_v35 = vpop.permute.xlu1 %5043  ;;  %7717 = vmatprep.mubr.msk.f32.mxu1 %vm295_vm2, %v5155_v23 }
 0xf21   :  { %v5142_v28 = vsel %vm14_vm0, %v10142_v39, %v5044_v35  ;;  %v6709_v39 = vld [vmem:[%s10643_s1 + $0x4d8] sm:$0xff] }
 0xf22   :  { %v5042_v12 = vpop.permute.xlu0 %5041  ;;  %7726 = vmatprep.subr.mxu0 %v6709_v39 }
 0xf23   :  { %v5141_v38 = vsel %vm14_vm0, %v10138_v53, %v5042_v12  ;;  %7727 = vmatpush3.msra.mxu0 %v6709_v39 }
 0xf24   :  { %v5104_v36 = vpop.permute.xlu1 %5103 }
 0xf25   :  { %v5156_v40 = vsel %vm259_vm1, %v5140_v9, %v5104_v36 }
 0xf26   :  { %v5106_v21 = vpop.permute.xlu0 %5105  ;;  %7718 = vmatmul.mubr.msk.f32.gmra.mxu1 %vm295_vm2, %v5156_v40 }
 0xf27   :  { %v5157_v59 = vsel %vm259_vm1, %v5141_v38, %v5106_v21 }
 0xf28   :  { %v5048_v1 = vpop.permute.xlu1 %5047  ;;  %7720 = vmatprep.mubr.msk.f32.mxu1 %vm295_vm2, %v5157_v59 }
 0xf29   :  { %v5144_v14 = vsel %vm14_vm0, %v10152_v32, %v5048_v1  ;;  %v6707_v32 = vld [vmem:[%s10643_s1 + $0x4c8] sm:$0xff] }
 0xf2a   :  { %v5046_v48 = vpop.permute.xlu0 %5045 }
 0xf2b   :  { %v5143_v6 = vsel %vm14_vm0, %v10148_v7, %v5046_v48  ;;  %v6708_v7 = vld [vmem:[%s10643_s1 + $0x4d0] sm:$0xff] }
 0xf2c   :  { %v5108_v13 = vpop.permute.xlu1 %5107  ;;  %7728 = vmatprep.subr.mxu0 %v6708_v7 }
 0xf2d   :  { %v5158_v43 = vsel %vm259_vm1, %v5142_v28, %v5108_v13  ;;  %7729 = vmatpush3.msra.mxu0 %v6708_v7 }
 0xf2e   :  { %v5110_v47 = vpop.permute.xlu0 %5109  ;;  %7721 = vmatmul.mubr.msk.f32.gmra.mxu1 %vm295_vm2, %v5158_v43  ;;  %7730 = vmatprep.subr.mxu0 %v6707_v32 }
 0xf2f   :  { %v5159_v53 = vsel %vm259_vm1, %v5143_v6, %v5110_v47  ;;  %7731 = vmatpush3.msra.mxu0 %v6707_v32 }
 0xf30   :  { %v5112_v24 = vpop.permute.xlu1 %5111  ;;  %7723 = vmatprep.mubr.msk.f32.mxu1 %vm295_vm2, %v5159_v53  ;;  %7732 = vmatprep.subr.mxu0 %v6706_v18 }
 0xf31   :  { %v5160_v4 = vsel %vm259_vm1, %v5144_v14, %v5112_v24  ;;  %7733 = vmatpush3.msra.mxu0 %v6706_v18 }
 0xf32   :  { %7724 = vmatmul.mubr.msk.f32.gmra.mxu1 %vm295_vm2, %v5160_v4  ;;  %7734 = vmatprep.subr.mxu0 %v6705_v60 }
 0xf33   :  { %7735 = vmatpush3.msra.mxu0 %v6705_v60 }
 0xf34   :  { %7736 = vmatprep.subr.mxu0 %v6704_v49 }
 0xf35   :  { %7737 = vmatpush3.msra.mxu0 %v6704_v49 }
 0xf36   :  { %7738 = vmatprep.subr.mxu0 %v6703_v0 }
 0xf37   :  { %7739 = vmatpush3.msra.mxu0 %v6703_v0 }
 0xf38   :  { %7740 = vmatprep.subr.mxu0 %v6702_v17 }
 0xf39   :  { %7741 = vmatpush3.msra.mxu0 %v6702_v17 }
 0xf3a   :  { %7742 = vmatprep.subr.mxu0 %v6701_v31 }
 0xf3b   :  { %7743 = vmatpush3.msra.mxu0 %v6701_v31 }
 0xf3c   :  { %7744 = vmatprep.subr.mxu0 %v6700_v54 }
 0xf3d   :  { %7745 = vmatpush3.msra.mxu0 %v6700_v54 }
 0xf3e   :  { %7746 = vmatprep.subr.mxu0 %v6699_v52 }
 0xf3f   :  { %7747 = vmatpush3.msra.mxu0 %v6699_v52 }
 0xf40   :  { %7748 = vmatprep.subr.mxu0 %v6698_v5 }
 0xf41   :  { %7749 = vmatpush3.msra.mxu0 %v6698_v5 }
 0xfbe   :  { %v7704_v45 = vpop.f32.mrf.mxu1 }
 0xfbf   :  { %v5302_v55 = vadd.f32 %v7704_v45, %v10240_v25 }
 0xfc0   :  { %v5296_v58 = vpop.f32.mrf.mxu1 }
 0xfc1   :  { %v5376_v16 = vmax.f32 %v5302_v55, 0.0  ;;  %v5297_v34 = vadd.f32 %v10240_v25, %v5296_v58 }
 0xfc3   :  { %5392 = vst.msk [vmem:[#allocation2 + $0x10] sm:$0xff] %vm14_vm0, %v5376_v16  ;;  %v5375_v10 = vmax.f32 %v5297_v34, 0.0 }
 0xfc5   :  { %5391 = vst.msk [vmem:[#allocation2 + $0x8] sm:$0xff] %vm14_vm0, %v5375_v10 }
 0xfc6   :  { %v7707_v30 = vpop.f32.mrf.mxu1 }
 0xfc7   :  { %v5312_v42 = vadd.f32 %v7707_v30, %v10240_v25 }
 0xfc8   :  { %v5306_v26 = vpop.f32.mrf.mxu1 }
 0xfc9   :  { %v5378_v15 = vmax.f32 %v5312_v42, 0.0  ;;  %v5307_v11 = vadd.f32 %v10240_v25, %v5306_v26 }
 0xfca   :  { %v5424_v33 = vld [vmem:[#allocation2 + $0x10] sm:$0xff] }
 0xfcb   :  { %5394 = vst.msk [vmem:[#allocation2 + $0x20] sm:$0xff] %vm14_vm0, %v5378_v15  ;;  %v5377_v22 = vmax.f32 %v5307_v11, 0.0  ;;  %5473 = vrot.lane.b32.xlu1 %v5424_v33, %s7827_s23 }
 0xfcc   :  { %v5423_v8 = vld [vmem:[#allocation2 + $0x8] sm:$0xff] }
 0xfcd   :  { %5393 = vst.msk [vmem:[#allocation2 + $0x18] sm:$0xff] %vm14_vm0, %v5377_v22  ;;  %5471 = vrot.lane.b32.xlu0 %v5423_v8, %s7827_s23  ;;  %v5439_v50 = vld [vmem:[#allocation2 + $0xa] sm:$0xff] }
 0xfd1   :  { %5535 = vrot.lane.b32.xlu0 %v5439_v50, %s7826_s0 }
 0xfd2   :  { %v7710_v23 = vpop.f32.mrf.mxu1  ;;  %v5426_v35 = vld [vmem:[#allocation2 + $0x20] sm:$0xff] }
 0xfd3   :  { %v5322_v12 = vadd.f32 %v7710_v23, %v10240_v25  ;;  %5477 = vrot.lane.b32.xlu1 %v5426_v35, %s7827_s23 }
 0xfd4   :  { %v5316_v9 = vpop.f32.mrf.mxu1  ;;  %v5425_v36 = vld [vmem:[#allocation2 + $0x18] sm:$0xff] }
 0xfd5   :  { %v5380_v40 = vmax.f32 %v5322_v12, 0.0  ;;  %v5317_v38 = vadd.f32 %v10240_v25, %v5316_v9  ;;  %5475 = vrot.lane.b32.xlu0 %v5425_v36, %s7827_s23  ;;  %v5440_v59 = vld [vmem:[#allocation2 + $0x12] sm:$0xff]  ;;  %v5441_v13 = vld [vmem:[#allocation2 + $0x1a] sm:$0xff] }
 0xfd6   :  { %v7713_v21 = vpop.f32.mrf.mxu1 }
 0xfd7   :  { %5396 = vst.msk [vmem:[#allocation2 + $0x30] sm:$0xff] %vm14_vm0, %v5380_v40  ;;  %v5379_v1 = vmax.f32 %v5317_v38, 0.0  ;;  %v5332_v48 = vadd.f32 %v7713_v21, %v10240_v25  ;;  %5537 = vrot.lane.b32.xlu1 %v5440_v59, %s7826_s0 }
 0xfd8   :  { %v5326_v28 = vpop.f32.mrf.mxu1 }
 0xfd9   :  { %5395 = vst.msk [vmem:[#allocation2 + $0x28] sm:$0xff] %vm14_vm0, %v5379_v1  ;;  %v5382_v43 = vmax.f32 %v5332_v48, 0.0  ;;  %v5327_v6 = vadd.f32 %v10240_v25, %v5326_v28  ;;  %5539 = vrot.lane.b32.xlu0 %v5441_v13, %s7826_s0 }
 0xfdb   :  { %5398 = vst.msk [vmem:[#allocation2 + $0x40] sm:$0xff] %vm14_vm0, %v5382_v43  ;;  %v5381_v47 = vmax.f32 %v5327_v6, 0.0 }
 0xfdd   :  { %5397 = vst.msk [vmem:[#allocation2 + $0x38] sm:$0xff] %vm14_vm0, %v5381_v47 }
 0xfde   :  { %v7716_v53 = vpop.f32.mrf.mxu1  ;;  %v5428_v14 = vld [vmem:[#allocation2 + $0x30] sm:$0xff] }
 0xfdf   :  { %v5342_v24 = vadd.f32 %v7716_v53, %v10240_v25  ;;  %5481 = vrot.lane.b32.xlu1 %v5428_v14, %s7827_s23 }
 0xfe0   :  { %v5336_v4 = vpop.f32.mrf.mxu1  ;;  %v5427_v39 = vld [vmem:[#allocation2 + $0x28] sm:$0xff] }
 0xfe1   :  { %v5384_v7 = vmax.f32 %v5342_v24, 0.0  ;;  %v5337_v32 = vadd.f32 %v10240_v25, %v5336_v4  ;;  %5479 = vrot.lane.b32.xlu0 %v5427_v39, %s7827_s23  ;;  %v5442_v18 = vld [vmem:[#allocation2 + $0x22] sm:$0xff]  ;;  %v5443_v49 = vld [vmem:[#allocation2 + $0x2a] sm:$0xff] }
 0xfe2   :  { %v5430_v0 = vld [vmem:[#allocation2 + $0x40] sm:$0xff] }
 0xfe3   :  { %5400 = vst.msk [vmem:[#allocation2 + $0x60] sm:$0xff] %vm14_vm0, %v5384_v7  ;;  %v5383_v60 = vmax.f32 %v5337_v32, 0.0  ;;  %5541 = vrot.lane.b32.xlu1 %v5442_v18, %s7826_s0  ;;  %v5446_v34 = vld [vmem:[#allocation2 + $0x42] sm:$0xff] }
 0xfe4   :  { %v5429_v17 = vld [vmem:[#allocation2 + $0x38] sm:$0xff]  ;;  %v5407_v4 = vld [vmem:[#allocation2 + $0x6] sm:$0xff] }
 0xfe5   :  { %5399 = vst.msk [vmem:[#allocation2 + $0x58] sm:$0xff] %vm14_vm0, %v5383_v60  ;;  %5543 = vrot.lane.b32.xlu0 %v5443_v49, %s7826_s0  ;;  %v5445_v54 = vld [vmem:[#allocation2 + $0x3a] sm:$0xff]  ;;  %v5444_v52 = vld [vmem:[#allocation2 + $0x32] sm:$0xff] }
 0xfe6   :  { %v7719_v45 = vpop.f32.mrf.mxu1  ;;  %v5408_v49 = vld [vmem:[#allocation2 + $0xe] sm:$0xff] }
 0xfe7   :  { %v5352_v55 = vadd.f32 %v7719_v45, %v10240_v25  ;;  %5485 = vrot.lane.b32.xlu1 %v5430_v0, %s7827_s23 }
 0xfe8   :  { %v5346_v58 = vpop.f32.mrf.mxu1 }
 0xfe9   :  { %v5386_v31 = vmax.f32 %v5352_v55, 0.0  ;;  %v5347_v16 = vadd.f32 %v10240_v25, %v5346_v58  ;;  %5483 = vrot.lane.b32.xlu0 %v5429_v17, %s7827_s23  ;;  %v5409_v55 = vld [vmem:[#allocation2 + $0x16] sm:$0xff] }
 0xfea   :  { %v5432_v22 = vld [vmem:[#allocation2 + $0x60] sm:$0xff] }
 0xfeb   :  { %5402 = vst.msk [vmem:[#allocation2 + $0x70] sm:$0xff] %vm14_vm0, %v5386_v31  ;;  %v5385_v10 = vmax.f32 %v5347_v16, 0.0  ;;  %5549 = vrot.lane.b32.xlu1 %v5446_v34, %s7826_s0 }
 0xfec   :  { %v5431_v5 = vld [vmem:[#allocation2 + $0x58] sm:$0xff] }
 0xfed   :  { %5401 = vst.msk [vmem:[#allocation2 + $0x68] sm:$0xff] %vm14_vm0, %v5385_v10  ;;  %5547 = vrot.lane.b32.xlu0 %v5445_v54, %s7826_s0  ;;  %v5447_v35 = vld [vmem:[#allocation2 + $0x5a] sm:$0xff] }
 0xfee   :  { %v7722_v30 = vpop.f32.mrf.mxu1  ;;  %v5410_v54 = vld [vmem:[#allocation2 + $0x1e] sm:$0xff] }
 0xfef   :  { %v5362_v42 = vadd.f32 %v7722_v30, %v10240_v25  ;;  %5545 = vrot.lane.b32.xlu1 %v5444_v52, %s7826_s0 }
 0xff0   :  { %v5356_v26 = vpop.f32.mrf.mxu1 }
 0xff1   :  { %v5388_v15 = vmax.f32 %v5362_v42, 0.0  ;;  %v5357_v11 = vadd.f32 %v10240_v25, %v5356_v26  ;;  %5487 = vrot.lane.b32.xlu0 %v5431_v5, %s7827_s23  ;;  %v5411_v42 = vld [vmem:[#allocation2 + $0x26] sm:$0xff] }
 0xff2   :  { %v7725_v33 = vpop.f32.mrf.mxu1  ;;  %v5434_v36 = vld [vmem:[#allocation2 + $0x70] sm:$0xff] }
 0xff3   :  { %5404 = vst.msk [vmem:[#allocation2 + $0x80] sm:$0xff] %vm14_vm0, %v5388_v15  ;;  %v5387_v8 = vmax.f32 %v5357_v11, 0.0  ;;  %v5372_v50 = vadd.f32 %v7725_v33, %v10240_v25  ;;  %5489 = vrot.lane.b32.xlu1 %v5432_v22, %s7827_s23 }
 0xff4   :  { %v5366_v23 = vpop.f32.mrf.mxu1  ;;  %v5433_v38 = vld [vmem:[#allocation2 + $0x68] sm:$0xff] }
 0xff5   :  { %5403 = vst.msk [vmem:[#allocation2 + $0x78] sm:$0xff] %vm14_vm0, %v5387_v8  ;;  %v5390_v12 = vmax.f32 %v5372_v50, 0.0  ;;  %v5367_v9 = vadd.f32 %v10240_v25, %v5366_v23  ;;  %5551 = vrot.lane.b32.xlu0 %v5447_v35, %s7826_s0  ;;  %v5448_v21 = vld [vmem:[#allocation2 + $0x62] sm:$0xff]  ;;  %v5449_v59 = vld [vmem:[#allocation2 + $0x6a] sm:$0xff] }
 0xff6   :  { %v5412_v23 = vld [vmem:[#allocation2 + $0x2e] sm:$0xff] }
 0xff7   :  { %5406 = vst.msk [vmem:[#allocation2 + $0x90] sm:$0xff] %vm14_vm0, %v5390_v12  ;;  %v5389_v40 = vmax.f32 %v5367_v9, 0.0  ;;  %5493 = vrot.lane.b32.xlu1 %v5434_v36, %s7827_s23  ;;  %v5413_v12 = vld [vmem:[#allocation2 + $0x36] sm:$0xff] }
 0xff9   :  { %5405 = vst.msk [vmem:[#allocation2 + $0x88] sm:$0xff] %vm14_vm0, %v5389_v40  ;;  %5491 = vrot.lane.b32.xlu0 %v5433_v38, %s7827_s23 }
 0xffa   :  { %v5436_v25 = vld [vmem:[#allocation2 + $0x80] sm:$0xff] }
 0xffb   :  { %5553 = vrot.lane.b32.xlu1 %v5448_v21, %s7826_s0 }
 0xffc   :  { %v5435_v1 = vld [vmem:[#allocation2 + $0x78] sm:$0xff] }
 0xffd   :  { %5555 = vrot.lane.b32.xlu0 %v5449_v59, %s7826_s0  ;;  %v5450_v48 = vld [vmem:[#allocation2 + $0x72] sm:$0xff]  ;;  %v5451_v28 = vld [vmem:[#allocation2 + $0x7a] sm:$0xff] }
 0xffe   :  { %v5438_v13 = vld [vmem:[#allocation2 + $0x90] sm:$0xff]  ;;  %v5414_v59 = vld [vmem:[#allocation2 + $0x3e] sm:$0xff] }
 0xfff   :  { %5497 = vrot.lane.b32.xlu1 %v5436_v25, %s7827_s23  ;;  %v5454_v53 = vld [vmem:[#allocation2 + $0x92] sm:$0xff] }
0x1000   :  { %v5437_v43 = vld [vmem:[#allocation2 + $0x88] sm:$0xff] }
0x1001   :  { %5495 = vrot.lane.b32.xlu0 %v5435_v1, %s7827_s23  ;;  %v5452_v6 = vld [vmem:[#allocation2 + $0x82] sm:$0xff]  ;;  %v5453_v47 = vld [vmem:[#allocation2 + $0x8a] sm:$0xff] }
0x1003   :  { %5557 = vrot.lane.b32.xlu1 %v5450_v48, %s7826_s0 }
0x1005   :  { %5559 = vrot.lane.b32.xlu0 %v5451_v28, %s7826_s0  ;;  %v5415_v28 = vld [vmem:[#allocation2 + $0x56] sm:$0xff] }
0x1007   :  { %5501 = vrot.lane.b32.xlu1 %v5438_v13, %s7827_s23 }
0x1009   :  { %5499 = vrot.lane.b32.xlu0 %v5437_v43, %s7827_s23 }
0x100b   :  { %5561 = vrot.lane.b32.xlu1 %v5452_v6, %s7826_s0 }
0x100d   :  { %5563 = vrot.lane.b32.xlu0 %v5453_v47, %s7826_s0 }
0x100f   :  { %5565 = vrot.lane.b32.xlu1 %v5454_v53, %s7826_s0 }
0x103d   :  { %v5474_v24 = vpop.permute.xlu1 %5473 }
0x103e   :  { %v5584_v45 = vsel %vm14_vm0, %v5408_v49, %v5474_v24 }
0x103f   :  { %v5472_v14 = vpop.permute.xlu0 %5471 }
0x1040   :  { %v5583_v39 = vsel %vm14_vm0, %v5407_v4, %v5472_v14  ;;  %v5416_v14 = vld [vmem:[#allocation2 + $0x5e] sm:$0xff] }
0x1043   :  { %v5536_v7 = vpop.permute.xlu0 %5535 }
0x1044   :  { %v5599_v32 = vsel %vm259_vm1, %v5583_v39, %v5536_v7  ;;  %v5417_v39 = vld [vmem:[#allocation2 + $0x66] sm:$0xff] }
0x1045   :  { %v5478_v18 = vpop.permute.xlu1 %5477  ;;  %7750 = vmatprep.mubr.msk.f32.mxu0 %vm295_vm2, %v5599_v32 }
0x1046   :  { %v5586_v30 = vsel %vm14_vm0, %v5410_v54, %v5478_v18 }
0x1047   :  { %v5476_v60 = vpop.permute.xlu0 %5475 }
0x1048   :  { %v5585_v17 = vsel %vm14_vm0, %v5409_v55, %v5476_v60 }
0x1049   :  { %v5538_v0 = vpop.permute.xlu1 %5537 }
0x104a   :  { %v5600_v58 = vsel %vm259_vm1, %v5584_v45, %v5538_v0  ;;  %v5418_v0 = vld [vmem:[#allocation2 + $0x6e] sm:$0xff] }
0x104b   :  { %v5540_v31 = vpop.permute.xlu0 %5539  ;;  %7751 = vmatmul.mubr.msk.f32.vlgmr.msra.gmra.mxu0 %vm295_vm2, %v5600_v58 }
0x104c   :  { %v5601_v16 = vsel %vm259_vm1, %v5585_v17, %v5540_v31  ;;  %v5419_v17 = vld [vmem:[#allocation2 + $0x76] sm:$0xff] }
0x104d   :  { %7753 = vmatprep.mubr.msk.f32.mxu0 %vm295_vm2, %v5601_v16 }
0x1051   :  { %v5482_v34 = vpop.permute.xlu1 %5481 }
0x1052   :  { %v5588_v35 = vsel %vm14_vm0, %v5412_v23, %v5482_v34 }
0x1053   :  { %v5480_v10 = vpop.permute.xlu0 %5479 }
0x1054   :  { %v5587_v5 = vsel %vm14_vm0, %v5411_v42, %v5480_v10 }
0x1055   :  { %v5542_v52 = vpop.permute.xlu1 %5541 }
0x1056   :  { %v5602_v26 = vsel %vm259_vm1, %v5586_v30, %v5542_v52  ;;  %v5420_v52 = vld [vmem:[#allocation2 + $0x7e] sm:$0xff] }
0x1057   :  { %v5544_v15 = vpop.permute.xlu0 %5543  ;;  %7754 = vmatmul.mubr.msk.f32.gmra.mxu0 %vm295_vm2, %v5602_v26 }
0x1058   :  { %v5603_v11 = vsel %vm259_vm1, %v5587_v5, %v5544_v15  ;;  %v5421_v5 = vld [vmem:[#allocation2 + $0x86] sm:$0xff] }
0x1059   :  { %v5486_v33 = vpop.permute.xlu1 %5485  ;;  %7756 = vmatprep.mubr.msk.f32.mxu0 %vm295_vm2, %v5603_v11 }
0x105a   :  { %v5590_v25 = vsel %vm14_vm0, %v5414_v59, %v5486_v33  ;;  %v6735_v59 = vld [vmem:[%s10643_s1 + $0x518] sm:$0xff] }
0x105b   :  { %v5484_v22 = vpop.permute.xlu0 %5483 }
0x105c   :  { %v5589_v36 = vsel %vm14_vm0, %v5413_v12, %v5484_v22  ;;  %v5422_v22 = vld [vmem:[#allocation2 + $0x8e] sm:$0xff]  ;;  %v6739_v12 = vld [vmem:[%s10643_s1 + $0x538] sm:$0xff] }
0x105d   :  { %v5550_v8 = vpop.permute.xlu1 %5549  ;;  %7774 = vmatprep.subr.mxu1 %v6739_v12 }
0x105e   :  { %v5606_v48 = vsel %vm259_vm1, %v5590_v25, %v5550_v8  ;;  %7775 = vmatpush3.msra.mxu1 %v6739_v12 }
0x105f   :  { %v5548_v50 = vpop.permute.xlu0 %5547 }
0x1060   :  { %v5605_v38 = vsel %vm259_vm1, %v5589_v36, %v5548_v50  ;;  %v6737_v36 = vld [vmem:[%s10643_s1 + $0x528] sm:$0xff] }
0x1061   :  { %v5546_v9 = vpop.permute.xlu1 %5545 }
0x1062   :  { %v5604_v40 = vsel %vm259_vm1, %v5588_v35, %v5546_v9  ;;  %v6738_v9 = vld [vmem:[%s10643_s1 + $0x530] sm:$0xff] }
0x1063   :  { %v5488_v21 = vpop.permute.xlu0 %5487  ;;  %7757 = vmatmul.mubr.msk.f32.gmra.mxu0 %vm295_vm2, %v5604_v40  ;;  %7776 = vmatprep.subr.mxu1 %v6738_v9  ;;  %v6736_v40 = vld [vmem:[%s10643_s1 + $0x520] sm:$0xff] }
0x1064   :  { %7759 = vmatprep.mubr.msk.f32.mxu0 %vm295_vm2, %v5605_v38  ;;  %v5591_v13 = vsel %vm14_vm0, %v5415_v28, %v5488_v21  ;;  %7777 = vmatpush3.msra.mxu1 %v6738_v9  ;;  %v10387_v38 = vld [vmem:[%s10644_s2 + $0xc] ss:$0 sm:$0xff] }
0x1065   :  { %v5490_v1 = vpop.permute.xlu1 %5489  ;;  %7778 = vmatprep.subr.mxu1 %v6737_v36  ;;  %v6733_v28 = vld [vmem:[%s10643_s1 + $0x508] sm:$0xff] }
0x1066   :  { %v5592_v24 = vsel %vm14_vm0, %v5416_v14, %v5490_v1  ;;  %7779 = vmatpush3.msra.mxu1 %v6737_v36  ;;  %v6730_v14 = vld [vmem:[%s10643_s1 + $0x4f0] sm:$0xff] }
0x1067   :  { %v5552_v43 = vpop.permute.xlu0 %5551  ;;  %7760 = vmatmul.mubr.msk.f32.gmra.mxu0 %vm295_vm2, %v5606_v48  ;;  %7780 = vmatprep.subr.mxu1 %v6736_v40  ;;  %v6734_v48 = vld [vmem:[%s10643_s1 + $0x510] sm:$0xff] }
0x1068   :  { %v5607_v6 = vsel %vm259_vm1, %v5591_v13, %v5552_v43  ;;  %7781 = vmatpush3.msra.mxu1 %v6736_v40 }
0x1069   :  { %v5494_v47 = vpop.permute.xlu1 %5493  ;;  %7762 = vmatprep.mubr.msk.f32.mxu0 %vm295_vm2, %v5607_v6  ;;  %7782 = vmatprep.subr.mxu1 %v6735_v59 }
0x106a   :  { %v5594_v55 = vsel %vm14_vm0, %v5418_v0, %v5494_v47  ;;  %7783 = vmatpush3.msra.mxu1 %v6735_v59  ;;  %v6732_v47 = vld [vmem:[%s10643_s1 + $0x500] sm:$0xff] }
0x106b   :  { %v5492_v53 = vpop.permute.xlu0 %5491  ;;  %7784 = vmatprep.subr.mxu1 %v6734_v48 }
0x106c   :  { %v5593_v32 = vsel %vm14_vm0, %v5417_v39, %v5492_v53  ;;  %7785 = vmatpush3.msra.mxu1 %v6734_v48  ;;  %v6731_v53 = vld [vmem:[%s10643_s1 + $0x4f8] sm:$0xff]  ;;  %v6729_v39 = vld [vmem:[%s10643_s1 + $0x4e8] sm:$0xff] }
0x106d   :  { %v5554_v4 = vpop.permute.xlu1 %5553  ;;  %7786 = vmatprep.subr.mxu1 %v6733_v28 }
0x106e   :  { %v5608_v7 = vsel %vm259_vm1, %v5592_v24, %v5554_v4  ;;  %7787 = vmatpush3.msra.mxu1 %v6733_v28 }
0x106f   :  { %v5556_v18 = vpop.permute.xlu0 %5555  ;;  %7763 = vmatmul.mubr.msk.f32.gmra.mxu0 %vm295_vm2, %v5608_v7  ;;  %7788 = vmatprep.subr.mxu1 %v6732_v47 }
0x1070   :  { %v5609_v60 = vsel %vm259_vm1, %v5593_v32, %v5556_v18  ;;  %7789 = vmatpush3.msra.mxu1 %v6732_v47 }
0x1071   :  { %v5498_v49 = vpop.permute.xlu1 %5497  ;;  %7765 = vmatprep.mubr.msk.f32.mxu0 %vm295_vm2, %v5609_v60  ;;  %7790 = vmatprep.subr.mxu1 %v6731_v53 }
0x1072   :  { %v5596_v42 = vsel %vm14_vm0, %v5420_v52, %v5498_v49  ;;  %7791 = vmatpush3.msra.mxu1 %v6731_v53 }
0x1073   :  { %v5496_v45 = vpop.permute.xlu0 %5495  ;;  %7792 = vmatprep.subr.mxu1 %v6730_v14 }
0x1074   :  { %v5595_v16 = vsel %vm14_vm0, %v5419_v17, %v5496_v45  ;;  %7793 = vmatpush3.msra.mxu1 %v6730_v14  ;;  %v6728_v45 = vld [vmem:[%s10643_s1 + $0x4e0] sm:$0xff] }
0x1075   :  { %v5558_v58 = vpop.permute.xlu1 %5557  ;;  %7794 = vmatprep.subr.mxu1 %v6729_v39 }
0x1076   :  { %v5610_v31 = vsel %vm259_vm1, %v5594_v55, %v5558_v58  ;;  %7795 = vmatpush3.msra.mxu1 %v6729_v39 }
0x1077   :  { %v5560_v34 = vpop.permute.xlu0 %5559  ;;  %7766 = vmatmul.mubr.msk.f32.gmra.mxu0 %vm295_vm2, %v5610_v31  ;;  %7796 = vmatprep.subr.mxu1 %v6728_v45 }
0x1078   :  { %v5611_v10 = vsel %vm259_vm1, %v5595_v16, %v5560_v34  ;;  %7797 = vmatpush3.msra.mxu1 %v6728_v45 }
0x1079   :  { %v5502_v54 = vpop.permute.xlu1 %5501  ;;  %7768 = vmatprep.mubr.msk.f32.mxu0 %vm295_vm2, %v5611_v10 }
0x107a   :  { %v5598_v50 = vsel %vm14_vm0, %v5422_v22, %v5502_v54 }
0x107b   :  { %v5500_v30 = vpop.permute.xlu0 %5499 }
0x107c   :  { %v5597_v11 = vsel %vm14_vm0, %v5421_v5, %v5500_v30 }
0x107d   :  { %v5562_v26 = vpop.permute.xlu1 %5561 }
0x107e   :  { %v5612_v15 = vsel %vm259_vm1, %v5596_v42, %v5562_v26 }
0x107f   :  { %v5564_v33 = vpop.permute.xlu0 %5563  ;;  %7769 = vmatmul.mubr.msk.f32.gmra.mxu0 %vm295_vm2, %v5612_v15 }
0x1080   :  { %v5613_v8 = vsel %vm259_vm1, %v5597_v11, %v5564_v33 }
0x1081   :  { %v5566_v23 = vpop.permute.xlu1 %5565  ;;  %7771 = vmatprep.mubr.msk.f32.mxu0 %vm295_vm2, %v5613_v8 }
0x1082   :  { %v5614_v35 = vsel %vm259_vm1, %v5598_v50, %v5566_v23 }
0x1083   :  { %7772 = vmatmul.mubr.msk.f32.gmra.mxu0 %vm295_vm2, %v5614_v35 }
0x110b   :  { %v7752_v21 = vpop.f32.mrf.mxu0 }
0x110c   :  { %v5756_v25 = vadd.f32 %v7752_v21, %v10387_v38 }
0x110d   :  { %v5750_v1 = vpop.f32.mrf.mxu0 }
0x110e   :  { %v5830_v13 = vmax.f32 %v5756_v25, 0.0  ;;  %v5751_v43 = vadd.f32 %v10387_v38, %v5750_v1 }
0x1110   :  { %5846 = vst.msk [vmem:[#allocation2 + $0x10] sm:$0xff] %vm14_vm0, %v5830_v13  ;;  %v5829_v6 = vmax.f32 %v5751_v43, 0.0 }
0x1112   :  { %5845 = vst.msk [vmem:[#allocation2 + $0x8] sm:$0xff] %vm14_vm0, %v5829_v6 }
0x1117   :  { %v7755_v24 = vpop.f32.mrf.mxu0  ;;  %v5878_v4 = vld [vmem:[#allocation2 + $0x10] sm:$0xff] }
0x1118   :  { %v5766_v7 = vadd.f32 %v7755_v24, %v10387_v38  ;;  %5927 = vrot.lane.b32.xlu1 %v5878_v4, %s7827_s23 }
0x1119   :  { %v5760_v32 = vpop.f32.mrf.mxu0  ;;  %v5877_v18 = vld [vmem:[#allocation2 + $0x8] sm:$0xff] }
0x111a   :  { %v5832_v60 = vmax.f32 %v5766_v7, 0.0  ;;  %v5761_v49 = vadd.f32 %v10387_v38, %v5760_v32  ;;  %5925 = vrot.lane.b32.xlu0 %v5877_v18, %s7827_s23  ;;  %v5893_v55 = vld [vmem:[#allocation2 + $0x9] sm:$0xff] }
0x111c   :  { %5848 = vst.msk [vmem:[#allocation2 + $0x20] sm:$0xff] %vm14_vm0, %v5832_v60  ;;  %v5831_v0 = vmax.f32 %v5761_v49, 0.0 }
0x111e   :  { %5847 = vst.msk [vmem:[#allocation2 + $0x18] sm:$0xff] %vm14_vm0, %v5831_v0  ;;  %5989 = vrot.lane.b32.xlu0 %v5893_v55, %s7826_s0 }
0x1123   :  { %v7758_v58 = vpop.f32.mrf.mxu0  ;;  %v5880_v17 = vld [vmem:[#allocation2 + $0x20] sm:$0xff] }
0x1124   :  { %v5776_v31 = vadd.f32 %v7758_v58, %v10387_v38  ;;  %5931 = vrot.lane.b32.xlu1 %v5880_v17, %s7827_s23 }
0x1125   :  { %v5770_v16 = vpop.f32.mrf.mxu0  ;;  %v5879_v34 = vld [vmem:[#allocation2 + $0x18] sm:$0xff] }
0x1126   :  { %v5834_v10 = vmax.f32 %v5776_v31, 0.0  ;;  %v5771_v54 = vadd.f32 %v10387_v38, %v5770_v16  ;;  %5929 = vrot.lane.b32.xlu0 %v5879_v34, %s7827_s23  ;;  %v5894_v52 = vld [vmem:[#allocation2 + $0x11] sm:$0xff]  ;;  %v5895_v15 = vld [vmem:[#allocation2 + $0x19] sm:$0xff] }
0x1127   :  { %v7761_v30 = vpop.f32.mrf.mxu0 }
0x1128   :  { %5850 = vst.msk [vmem:[#allocation2 + $0x30] sm:$0xff] %vm14_vm0, %v5834_v10  ;;  %v5833_v42 = vmax.f32 %v5771_v54, 0.0  ;;  %v5786_v26 = vadd.f32 %v7761_v30, %v10387_v38  ;;  %5991 = vrot.lane.b32.xlu1 %v5894_v52, %s7826_s0 }
0x1129   :  { %v5780_v5 = vpop.f32.mrf.mxu0 }
0x112a   :  { %5849 = vst.msk [vmem:[#allocation2 + $0x28] sm:$0xff] %vm14_vm0, %v5833_v42  ;;  %v5836_v11 = vmax.f32 %v5786_v26, 0.0  ;;  %v5781_v33 = vadd.f32 %v10387_v38, %v5780_v5  ;;  %5993 = vrot.lane.b32.xlu0 %v5895_v15, %s7826_s0 }
0x112c   :  { %5852 = vst.msk [vmem:[#allocation2 + $0x40] sm:$0xff] %vm14_vm0, %v5836_v11  ;;  %v5835_v22 = vmax.f32 %v5781_v33, 0.0 }
0x112e   :  { %5851 = vst.msk [vmem:[#allocation2 + $0x38] sm:$0xff] %vm14_vm0, %v5835_v22 }
0x112f   :  { %v7764_v8 = vpop.f32.mrf.mxu0  ;;  %v5882_v50 = vld [vmem:[#allocation2 + $0x30] sm:$0xff] }
0x1130   :  { %v5796_v23 = vadd.f32 %v7764_v8, %v10387_v38  ;;  %5935 = vrot.lane.b32.xlu1 %v5882_v50, %s7827_s23 }
0x1131   :  { %v5790_v35 = vpop.f32.mrf.mxu0  ;;  %v5881_v12 = vld [vmem:[#allocation2 + $0x28] sm:$0xff] }
0x1132   :  { %v5838_v9 = vmax.f32 %v5796_v23, 0.0  ;;  %v5791_v36 = vadd.f32 %v10387_v38, %v5790_v35  ;;  %5933 = vrot.lane.b32.xlu0 %v5881_v12, %s7827_s23  ;;  %v5896_v40 = vld [vmem:[#allocation2 + $0x21] sm:$0xff]  ;;  %v5897_v59 = vld [vmem:[#allocation2 + $0x29] sm:$0xff] }
0x1133   :  { %v5884_v1 = vld [vmem:[#allocation2 + $0x40] sm:$0xff] }
0x1134   :  { %5854 = vst.msk [vmem:[#allocation2 + $0x60] sm:$0xff] %vm14_vm0, %v5838_v9  ;;  %v5837_v21 = vmax.f32 %v5791_v36, 0.0  ;;  %5995 = vrot.lane.b32.xlu1 %v5896_v40, %s7826_s0  ;;  %v5900_v47 = vld [vmem:[#allocation2 + $0x41] sm:$0xff] }
0x1135   :  { %v5883_v13 = vld [vmem:[#allocation2 + $0x38] sm:$0xff]  ;;  %v5861_v23 = vld [vmem:[#allocation2 + $0x7] sm:$0xff] }
0x1136   :  { %5853 = vst.msk [vmem:[#allocation2 + $0x58] sm:$0xff] %vm14_vm0, %v5837_v21  ;;  %5997 = vrot.lane.b32.xlu0 %v5897_v59, %s7826_s0  ;;  %v5899_v14 = vld [vmem:[#allocation2 + $0x39] sm:$0xff]  ;;  %v5898_v4 = vld [vmem:[#allocation2 + $0x31] sm:$0xff] }
0x1137   :  { %v7767_v25 = vpop.f32.mrf.mxu0  ;;  %v5862_v59 = vld [vmem:[#allocation2 + $0xf] sm:$0xff] }
0x1138   :  { %v5806_v48 = vadd.f32 %v7767_v25, %v10387_v38  ;;  %5939 = vrot.lane.b32.xlu1 %v5884_v1, %s7827_s23 }
0x1139   :  { %v5800_v28 = vpop.f32.mrf.mxu0 }
0x113a   :  { %v5840_v43 = vmax.f32 %v5806_v48, 0.0  ;;  %v5801_v6 = vadd.f32 %v10387_v38, %v5800_v28  ;;  %5937 = vrot.lane.b32.xlu0 %v5883_v13, %s7827_s23  ;;  %v5863_v48 = vld [vmem:[#allocation2 + $0x17] sm:$0xff] }
0x113b   :  { %v5886_v45 = vld [vmem:[#allocation2 + $0x60] sm:$0xff] }
0x113c   :  { %5856 = vst.msk [vmem:[#allocation2 + $0x70] sm:$0xff] %vm14_vm0, %v5840_v43  ;;  %v5839_v53 = vmax.f32 %v5801_v6, 0.0  ;;  %6003 = vrot.lane.b32.xlu1 %v5900_v47, %s7826_s0 }
0x113d   :  { %v5885_v32 = vld [vmem:[#allocation2 + $0x58] sm:$0xff] }
0x113e   :  { %5855 = vst.msk [vmem:[#allocation2 + $0x68] sm:$0xff] %vm14_vm0, %v5839_v53  ;;  %6001 = vrot.lane.b32.xlu0 %v5899_v14, %s7826_s0  ;;  %v5901_v17 = vld [vmem:[#allocation2 + $0x59] sm:$0xff] }
0x113f   :  { %v7770_v24 = vpop.f32.mrf.mxu0  ;;  %v5864_v14 = vld [vmem:[#allocation2 + $0x1f] sm:$0xff] }
0x1140   :  { %v5816_v39 = vadd.f32 %v7770_v24, %v10387_v38  ;;  %5999 = vrot.lane.b32.xlu1 %v5898_v4, %s7826_s0 }
0x1141   :  { %v5810_v7 = vpop.f32.mrf.mxu0 }
0x1142   :  { %v5842_v18 = vmax.f32 %v5816_v39, 0.0  ;;  %v5811_v60 = vadd.f32 %v10387_v38, %v5810_v7  ;;  %5941 = vrot.lane.b32.xlu0 %v5885_v32, %s7827_s23  ;;  %v5865_v39 = vld [vmem:[#allocation2 + $0x27] sm:$0xff] }
0x1143   :  { %v7773_v49 = vpop.f32.mrf.mxu0  ;;  %v5888_v34 = vld [vmem:[#allocation2 + $0x70] sm:$0xff] }
0x1144   :  { %5858 = vst.msk [vmem:[#allocation2 + $0x80] sm:$0xff] %vm14_vm0, %v5842_v18  ;;  %v5841_v0 = vmax.f32 %v5811_v60, 0.0  ;;  %v5826_v55 = vadd.f32 %v7773_v49, %v10387_v38  ;;  %5943 = vrot.lane.b32.xlu1 %v5886_v45, %s7827_s23 }
0x1145   :  { %v5820_v58 = vpop.f32.mrf.mxu0  ;;  %v5887_v54 = vld [vmem:[#allocation2 + $0x68] sm:$0xff] }
0x1146   :  { %5857 = vst.msk [vmem:[#allocation2 + $0x78] sm:$0xff] %vm14_vm0, %v5841_v0  ;;  %v5844_v31 = vmax.f32 %v5826_v55, 0.0  ;;  %v5821_v16 = vadd.f32 %v10387_v38, %v5820_v58  ;;  %6005 = vrot.lane.b32.xlu0 %v5901_v17, %s7826_s0  ;;  %v5902_v30 = vld [vmem:[#allocation2 + $0x61] sm:$0xff]  ;;  %v5903_v52 = vld [vmem:[#allocation2 + $0x69] sm:$0xff] }
0x1147   :  { %v5866_v58 = vld [vmem:[#allocation2 + $0x2f] sm:$0xff] }
0x1148   :  { %5860 = vst.msk [vmem:[#allocation2 + $0x90] sm:$0xff] %vm14_vm0, %v5844_v31  ;;  %v5843_v10 = vmax.f32 %v5821_v16, 0.0  ;;  %5947 = vrot.lane.b32.xlu1 %v5888_v34, %s7827_s23  ;;  %v5867_v31 = vld [vmem:[#allocation2 + $0x37] sm:$0xff] }
0x114a   :  { %5859 = vst.msk [vmem:[#allocation2 + $0x88] sm:$0xff] %vm14_vm0, %v5843_v10  ;;  %5945 = vrot.lane.b32.xlu0 %v5887_v54, %s7827_s23 }
0x114b   :  { %v5890_v38 = vld [vmem:[#allocation2 + $0x80] sm:$0xff] }
0x114c   :  { %6007 = vrot.lane.b32.xlu1 %v5902_v30, %s7826_s0 }
0x114d   :  { %v5889_v42 = vld [vmem:[#allocation2 + $0x78] sm:$0xff] }
0x114e   :  { %6009 = vrot.lane.b32.xlu0 %v5903_v52, %s7826_s0  ;;  %v5904_v26 = vld [vmem:[#allocation2 + $0x71] sm:$0xff]  ;;  %v5905_v5 = vld [vmem:[#allocation2 + $0x79] sm:$0xff] }
0x114f   :  { %v5892_v15 = vld [vmem:[#allocation2 + $0x90] sm:$0xff]  ;;  %v5868_v52 = vld [vmem:[#allocation2 + $0x3f] sm:$0xff] }
0x1150   :  { %5951 = vrot.lane.b32.xlu1 %v5890_v38, %s7827_s23  ;;  %v5908_v8 = vld [vmem:[#allocation2 + $0x91] sm:$0xff] }
0x1151   :  { %v5891_v11 = vld [vmem:[#allocation2 + $0x88] sm:$0xff] }
0x1152   :  { %5949 = vrot.lane.b32.xlu0 %v5889_v42, %s7827_s23  ;;  %v5906_v33 = vld [vmem:[#allocation2 + $0x81] sm:$0xff]  ;;  %v5907_v22 = vld [vmem:[#allocation2 + $0x89] sm:$0xff] }
0x1154   :  { %6011 = vrot.lane.b32.xlu1 %v5904_v26, %s7826_s0 }
0x1156   :  { %6013 = vrot.lane.b32.xlu0 %v5905_v5, %s7826_s0  ;;  %v5869_v5 = vld [vmem:[#allocation2 + $0x57] sm:$0xff] }
0x1158   :  { %5955 = vrot.lane.b32.xlu1 %v5892_v15, %s7827_s23 }
0x115a   :  { %5953 = vrot.lane.b32.xlu0 %v5891_v11, %s7827_s23 }
0x115c   :  { %6015 = vrot.lane.b32.xlu1 %v5906_v33, %s7826_s0 }
0x115e   :  { %6017 = vrot.lane.b32.xlu0 %v5907_v22, %s7826_s0 }
0x1160   :  { %6019 = vrot.lane.b32.xlu1 %v5908_v8, %s7826_s0 }
0x118a   :  { %v5928_v36 = vpop.permute.xlu1 %5927 }
0x118b   :  { %v6038_v25 = vsel %vm14_vm0, %v5862_v59, %v5928_v36 }
0x118c   :  { %v5926_v50 = vpop.permute.xlu0 %5925 }
0x118d   :  { %v6037_v35 = vsel %vm14_vm0, %v5861_v23, %v5926_v50  ;;  %v5870_v50 = vld [vmem:[#allocation2 + $0x5f] sm:$0xff] }
0x1190   :  { %v5990_v12 = vpop.permute.xlu0 %5989 }
0x1191   :  { %v6053_v9 = vsel %vm259_vm1, %v6037_v35, %v5990_v12  ;;  %v5871_v12 = vld [vmem:[#allocation2 + $0x67] sm:$0xff] }
0x1192   :  { %7798 = vmatprep.mubr.msk.f32.mxu1 %vm295_vm2, %v6053_v9 }
0x1196   :  { %v5932_v40 = vpop.permute.xlu1 %5931 }
0x1197   :  { %v6040_v24 = vsel %vm14_vm0, %v5864_v14, %v5932_v40 }
0x1198   :  { %v5930_v21 = vpop.permute.xlu0 %5929 }
0x1199   :  { %v6039_v13 = vsel %vm14_vm0, %v5863_v48, %v5930_v21 }
0x119a   :  { %v5992_v1 = vpop.permute.xlu1 %5991 }
0x119b   :  { %v6054_v28 = vsel %vm259_vm1, %v6038_v25, %v5992_v1  ;;  %v5872_v1 = vld [vmem:[#allocation2 + $0x6f] sm:$0xff] }
0x119c   :  { %v5994_v43 = vpop.permute.xlu0 %5993  ;;  %7799 = vmatmul.mubr.msk.f32.vlgmr.msra.gmra.mxu1 %vm295_vm2, %v6054_v28 }
0x119d   :  { %v6055_v6 = vsel %vm259_vm1, %v6039_v13, %v5994_v43  ;;  %v5873_v13 = vld [vmem:[#allocation2 + $0x77] sm:$0xff] }
0x119e   :  { %7801 = vmatprep.mubr.msk.f32.mxu1 %vm295_vm2, %v6055_v6 }
0x11a2   :  { %v5936_v47 = vpop.permute.xlu1 %5935 }
0x11a3   :  { %v6042_v17 = vsel %vm14_vm0, %v5866_v58, %v5936_v47 }
0x11a4   :  { %v5934_v53 = vpop.permute.xlu0 %5933 }
0x11a5   :  { %v6041_v32 = vsel %vm14_vm0, %v5865_v39, %v5934_v53 }
0x11a6   :  { %v5996_v4 = vpop.permute.xlu1 %5995 }
0x11a7   :  { %v6056_v7 = vsel %vm259_vm1, %v6040_v24, %v5996_v4  ;;  %v5874_v4 = vld [vmem:[#allocation2 + $0x7f] sm:$0xff] }
0x11a8   :  { %v5998_v18 = vpop.permute.xlu0 %5997  ;;  %7802 = vmatmul.mubr.msk.f32.gmra.mxu1 %vm295_vm2, %v6056_v7 }
0x11a9   :  { %v6057_v60 = vsel %vm259_vm1, %v6041_v32, %v5998_v18  ;;  %v5875_v32 = vld [vmem:[#allocation2 + $0x87] sm:$0xff] }
0x11aa   :  { %v5940_v49 = vpop.permute.xlu1 %5939  ;;  %7804 = vmatprep.mubr.msk.f32.mxu1 %vm295_vm2, %v6057_v60 }
0x11ab   :  { %v6044_v38 = vsel %vm14_vm0, %v5868_v52, %v5940_v49 }
0x11ac   :  { %v5938_v45 = vpop.permute.xlu0 %5937 }
0x11ad   :  { %v6043_v34 = vsel %vm14_vm0, %v5867_v31, %v5938_v45  ;;  %v5876_v45 = vld [vmem:[#allocation2 + $0x8f] sm:$0xff]  ;;  %v10528_v31 = vld [vmem:[%s10644_s2 + $0xd] ss:$0 sm:$0xff] }
0x11ae   :  { %v6004_v0 = vpop.permute.xlu1 %6003 }
0x11af   :  { %v6060_v26 = vsel %vm259_vm1, %v6044_v38, %v6004_v0 }
0x11b0   :  { %v6002_v55 = vpop.permute.xlu0 %6001 }
0x11b1   :  { %v6059_v54 = vsel %vm259_vm1, %v6043_v34, %v6002_v55 }
0x11b2   :  { %v6000_v16 = vpop.permute.xlu1 %5999 }
0x11b3   :  { %v6058_v10 = vsel %vm259_vm1, %v6042_v17, %v6000_v16 }
0x11b4   :  { %v5942_v30 = vpop.permute.xlu0 %5941  ;;  %7805 = vmatmul.mubr.msk.f32.gmra.mxu1 %vm295_vm2, %v6058_v10 }
0x11b5   :  { %7807 = vmatprep.mubr.msk.f32.mxu1 %vm295_vm2, %v6059_v54  ;;  %v6045_v15 = vsel %vm14_vm0, %v5869_v5, %v5942_v30 }
0x11b6   :  { %v5944_v42 = vpop.permute.xlu1 %5943 }
0x11b7   :  { %v6046_v23 = vsel %vm14_vm0, %v5870_v50, %v5944_v42 }
0x11b8   :  { %v6006_v11 = vpop.permute.xlu0 %6005  ;;  %7808 = vmatmul.mubr.msk.f32.gmra.mxu1 %vm295_vm2, %v6060_v26 }
0x11b9   :  { %v6061_v33 = vsel %vm259_vm1, %v6045_v15, %v6006_v11 }
0x11ba   :  { %v5948_v22 = vpop.permute.xlu1 %5947  ;;  %7810 = vmatprep.mubr.msk.f32.mxu1 %vm295_vm2, %v6061_v33 }
0x11bb   :  { %v6048_v48 = vsel %vm14_vm0, %v5872_v1, %v5948_v22 }
0x11bc   :  { %v5946_v8 = vpop.permute.xlu0 %5945 }
0x11bd   :  { %v6047_v36 = vsel %vm14_vm0, %v5871_v12, %v5946_v8 }
0x11be   :  { %v6008_v35 = vpop.permute.xlu1 %6007 }
0x11bf   :  { %v6062_v9 = vsel %vm259_vm1, %v6046_v23, %v6008_v35 }
0x11c0   :  { %v6010_v40 = vpop.permute.xlu0 %6009  ;;  %7811 = vmatmul.mubr.msk.f32.gmra.mxu1 %vm295_vm2, %v6062_v9 }
0x11c1   :  { %v6063_v21 = vsel %vm259_vm1, %v6047_v36, %v6010_v40 }
0x11c2   :  { %v5952_v59 = vpop.permute.xlu1 %5951  ;;  %7813 = vmatprep.mubr.msk.f32.mxu1 %vm295_vm2, %v6063_v21 }
0x11c3   :  { %v6050_v39 = vsel %vm14_vm0, %v5874_v4, %v5952_v59 }
0x11c4   :  { %v5950_v25 = vpop.permute.xlu0 %5949 }
0x11c5   :  { %v6049_v6 = vsel %vm14_vm0, %v5873_v13, %v5950_v25 }
0x11c6   :  { %v6012_v28 = vpop.permute.xlu1 %6011 }
0x11c7   :  { %v6064_v43 = vsel %vm259_vm1, %v6048_v48, %v6012_v28 }
0x11c8   :  { %v6014_v47 = vpop.permute.xlu0 %6013  ;;  %7814 = vmatmul.mubr.msk.f32.gmra.mxu1 %vm295_vm2, %v6064_v43 }
0x11c9   :  { %v6065_v53 = vsel %vm259_vm1, %v6049_v6, %v6014_v47 }
0x11ca   :  { %v5956_v14 = vpop.permute.xlu1 %5955  ;;  %7816 = vmatprep.mubr.msk.f32.mxu1 %vm295_vm2, %v6065_v53 }
0x11cb   :  { %v6052_v55 = vsel %vm14_vm0, %v5876_v45, %v5956_v14 }
0x11cc   :  { %v5954_v24 = vpop.permute.xlu0 %5953 }
0x11cd   :  { %v6051_v60 = vsel %vm14_vm0, %v5875_v32, %v5954_v24 }
0x11ce   :  { %v6016_v7 = vpop.permute.xlu1 %6015 }
0x11cf   :  { %v6066_v18 = vsel %vm259_vm1, %v6050_v39, %v6016_v7 }
0x11d0   :  { %v6018_v49 = vpop.permute.xlu0 %6017  ;;  %7817 = vmatmul.mubr.msk.f32.gmra.mxu1 %vm295_vm2, %v6066_v18 }
0x11d1   :  { %v6067_v0 = vsel %vm259_vm1, %v6051_v60, %v6018_v49 }
0x11d2   :  { %v6020_v58 = vpop.permute.xlu1 %6019  ;;  %7819 = vmatprep.mubr.msk.f32.mxu1 %vm295_vm2, %v6067_v0 }
0x11d3   :  { %v6068_v17 = vsel %vm259_vm1, %v6052_v55, %v6020_v58 }
0x11d4   :  { %7820 = vmatmul.mubr.msk.f32.gmra.mxu1 %vm295_vm2, %v6068_v17 }
0x125c   :  { %v7800_v16 = vpop.f32.mrf.mxu1 }
0x125d   :  { %v6210_v34 = vadd.f32 %v7800_v16, %v10528_v31 }
0x125e   :  { %v6204_v10 = vpop.f32.mrf.mxu1 }
0x125f   :  { %v6284_v54 = vmax.f32 %v6210_v34, 0.0  ;;  %v6205_v30 = vadd.f32 %v10528_v31, %v6204_v10 }
0x1261   :  { %6300 = vst.msk [vmem:[#allocation2 + $0x10] sm:$0xff] %vm14_vm0, %v6284_v54  ;;  %v6316_v52 = vadd.f32 %v6284_v54, %v9223_v37  ;;  %v6283_v38 = vmax.f32 %v6205_v30, 0.0 }
0x1263   :  { %6332 = vst.msk [vmem:[%s10645_s3 + $0x8] sm:$0xff] %vm14_vm0, %v6316_v52  ;;  %6299 = vst.msk [vmem:[#allocation2 + $0x8] sm:$0xff] %vm14_vm0, %v6283_v38  ;;  %v6315_v42 = vadd.f32 %v6283_v38, %v9227_v61 }
0x1265   :  { %6331 = vst.msk [vmem:[%s10645_s3] sm:$0xff] %vm14_vm0, %v6315_v42 }
0x1268   :  { %v7803_v26 = vpop.f32.mrf.mxu1 }
0x1269   :  { %v6220_v5 = vadd.f32 %v7803_v26, %v10528_v31 }
0x126a   :  { %v6214_v15 = vpop.f32.mrf.mxu1 }
0x126b   :  { %v6286_v37 = vmax.f32 %v6220_v5, 0.0  ;;  %v6215_v11 = vadd.f32 %v10528_v31, %v6214_v15 }
0x126d   :  { %6302 = vst.msk [vmem:[#allocation2 + $0x20] sm:$0xff] %vm14_vm0, %v6286_v37  ;;  %v6318_v33 = vadd.f32 %v6286_v37, %v9250_v46  ;;  %v6285_v22 = vmax.f32 %v6215_v11, 0.0 }
0x126f   :  { %6334 = vst.msk [vmem:[%s10645_s3 + $0x18] sm:$0xff] %vm14_vm0, %v6318_v33  ;;  %6301 = vst.msk [vmem:[#allocation2 + $0x18] sm:$0xff] %vm14_vm0, %v6285_v22  ;;  %v6317_v61 = vadd.f32 %v6285_v22, %v9258_v51 }
0x1271   :  { %6333 = vst.msk [vmem:[%s10645_s3 + $0x10] sm:$0xff] %vm14_vm0, %v6317_v61 }
0x1274   :  { %v7806_v8 = vpop.f32.mrf.mxu1 }
0x1275   :  { %v6230_v50 = vadd.f32 %v7806_v8, %v10528_v31 }
0x1276   :  { %v6224_v23 = vpop.f32.mrf.mxu1 }
0x1277   :  { %v6288_v46 = vmax.f32 %v6230_v50, 0.0  ;;  %v6225_v35 = vadd.f32 %v10528_v31, %v6224_v23 }
0x1278   :  { %v7809_v12 = vpop.f32.mrf.mxu1 }
0x1279   :  { %6304 = vst.msk [vmem:[#allocation2 + $0x30] sm:$0xff] %vm14_vm0, %v6288_v46  ;;  %v6320_v9 = vadd.f32 %v6288_v46, %v9270_v41  ;;  %v6287_v36 = vmax.f32 %v6225_v35, 0.0  ;;  %v6240_v51 = vadd.f32 %v7809_v12, %v10528_v31 }
0x127a   :  { %v6234_v40 = vpop.f32.mrf.mxu1 }
0x127b   :  { %6336 = vst.msk [vmem:[%s10645_s3 + $0x28] sm:$0xff] %vm14_vm0, %v6320_v9  ;;  %6303 = vst.msk [vmem:[#allocation2 + $0x28] sm:$0xff] %vm14_vm0, %v6287_v36  ;;  %v6319_v21 = vadd.f32 %v6287_v36, %v9276_v44  ;;  %v6290_v59 = vmax.f32 %v6240_v51, 0.0  ;;  %v6235_v25 = vadd.f32 %v10528_v31, %v6234_v40 }
0x127d   :  { %6335 = vst.msk [vmem:[%s10645_s3 + $0x20] sm:$0xff] %vm14_vm0, %v6319_v21  ;;  %6306 = vst.msk [vmem:[#allocation2 + $0x40] sm:$0xff] %vm14_vm0, %v6290_v59  ;;  %v6322_v41 = vadd.f32 %v6290_v59, %v9286_v57  ;;  %v6289_v1 = vmax.f32 %v6235_v25, 0.0 }
0x127f   :  { %6338 = vst.msk [vmem:[%s10645_s3 + $0x38] sm:$0xff] %vm14_vm0, %v6322_v41  ;;  %6305 = vst.msk [vmem:[#allocation2 + $0x38] sm:$0xff] %vm14_vm0, %v6289_v1  ;;  %v6321_v44 = vadd.f32 %v6289_v1, %v9293_v20 }
0x1280   :  { %v7812_v48 = vpop.f32.mrf.mxu1 }
0x1281   :  { %6337 = vst.msk [vmem:[%s10645_s3 + $0x30] sm:$0xff] %vm14_vm0, %v6321_v44  ;;  %v6250_v28 = vadd.f32 %v7812_v48, %v10528_v31 }
0x1282   :  { %v6244_v13 = vpop.f32.mrf.mxu1 }
0x1283   :  { %v6292_v57 = vmax.f32 %v6250_v28, 0.0  ;;  %v6245_v43 = vadd.f32 %v10528_v31, %v6244_v13 }
0x1285   :  { %6308 = vst.msk [vmem:[#allocation2 + $0x60] sm:$0xff] %vm14_vm0, %v6292_v57  ;;  %v6324_v6 = vadd.f32 %v6292_v57, %v9302_v63  ;;  %v6291_v47 = vmax.f32 %v6245_v43, 0.0 }
0x1287   :  { %6340 = vst.msk [vmem:[%s10645_s3 + $0x48] sm:$0xff] %vm14_vm0, %v6324_v6  ;;  %6307 = vst.msk [vmem:[#allocation2 + $0x58] sm:$0xff] %vm14_vm0, %v6291_v47  ;;  %v6323_v20 = vadd.f32 %v6291_v47, %v9307_v27 }
0x1288   :  { %v7815_v53 = vpop.f32.mrf.mxu1 }
0x1289   :  { %6339 = vst.msk [vmem:[%s10645_s3 + $0x40] sm:$0xff] %vm14_vm0, %v6323_v20  ;;  %v6260_v14 = vadd.f32 %v7815_v53, %v10528_v31 }
0x128a   :  { %v6254_v24 = vpop.f32.mrf.mxu1 }
0x128b   :  { %v6294_v63 = vmax.f32 %v6260_v14, 0.0  ;;  %v6255_v4 = vadd.f32 %v10528_v31, %v6254_v24 }
0x128d   :  { %6310 = vst.msk [vmem:[#allocation2 + $0x70] sm:$0xff] %vm14_vm0, %v6294_v63  ;;  %v6326_v39 = vadd.f32 %v6294_v63, %v9320_v2  ;;  %v6293_v7 = vmax.f32 %v6255_v4, 0.0 }
0x128f   :  { %6342 = vst.msk [vmem:[%s10645_s3 + $0x58] sm:$0xff] %vm14_vm0, %v6326_v39  ;;  %6309 = vst.msk [vmem:[#allocation2 + $0x68] sm:$0xff] %vm14_vm0, %v6293_v7  ;;  %v6325_v27 = vadd.f32 %v6293_v7, %v9327_v19 }
0x1290   :  { %v7818_v32 = vpop.f32.mrf.mxu1 }
0x1291   :  { %6341 = vst.msk [vmem:[%s10645_s3 + $0x50] sm:$0xff] %vm14_vm0, %v6325_v27  ;;  %v6270_v18 = vadd.f32 %v7818_v32, %v10528_v31 }
0x1292   :  { %v6264_v60 = vpop.f32.mrf.mxu1 }
0x1293   :  { %v6296_v2 = vmax.f32 %v6270_v18, 0.0  ;;  %v6265_v49 = vadd.f32 %v10528_v31, %v6264_v60 }
0x1294   :  { %v7821_v45 = vpop.f32.mrf.mxu1 }
0x1295   :  { %6312 = vst.msk [vmem:[#allocation2 + $0x80] sm:$0xff] %vm14_vm0, %v6296_v2  ;;  %v6328_v0 = vadd.f32 %v6296_v2, %v9338_v29  ;;  %v6295_v55 = vmax.f32 %v6265_v49, 0.0  ;;  %v6280_v19 = vadd.f32 %v7821_v45, %v10528_v31 }
0x1296   :  { %v6274_v58 = vpop.f32.mrf.mxu1 }
0x1297   :  { %6344 = vst.msk [vmem:[%s10645_s3 + $0x68] sm:$0xff] %vm14_vm0, %v6328_v0  ;;  %6311 = vst.msk [vmem:[#allocation2 + $0x78] sm:$0xff] %vm14_vm0, %v6295_v55  ;;  %v6327_v17 = vadd.f32 %v6295_v55, %v9346_v56  ;;  %v6298_v16 = vmax.f32 %v6280_v19, 0.0  ;;  %v6275_v34 = vadd.f32 %v10528_v31, %v6274_v58 }
0x1299   :  { %6343 = vst.msk [vmem:[%s10645_s3 + $0x60] sm:$0xff] %vm14_vm0, %v6327_v17  ;;  %6314 = vst.msk [vmem:[#allocation2 + $0x90] sm:$0xff] %vm14_vm0, %v6298_v16  ;;  %v6330_v29 = vadd.f32 %v6298_v16, %v9354_v3  ;;  %v6297_v10 = vmax.f32 %v6275_v34, 0.0 }
0x129b   :  { %6346 = vst.msk [vmem:[%s10645_s3 + $0x78] sm:$0xff] %vm14_vm0, %v6330_v29  ;;  %6313 = vst.msk [vmem:[#allocation2 + $0x88] sm:$0xff] %vm14_vm0, %v6297_v10  ;;  %v6329_v56 = vadd.f32 %v6297_v10, %v9361_v62 }
0x129d   :  { %6345 = vst.msk [vmem:[%s10645_s3 + $0x70] sm:$0xff] %vm14_vm0, %v6329_v56 }

</bundles_post_ra>
